<compile_context>
chip_gen: v6e
topology: v6e:2x2x1
jax: 0.10.0
libtpu: 0.0.40
codegen_flags: <defaults>
</compile_context>

<pallas_src>
import math
import functools

import jax
import jax.numpy as jnp
from jax.experimental import pallas as pl
from jax.experimental.pallas import tpu as pltpu

# ---------------- hyper-parameters (stand-in for `args`) ----------------
K_KNN = 4          # args.k
K_POOL1 = 4        # args.k_pool1
K_POOL2 = 4        # args.k_pool2
POOL1_POINTS = -1  # args.pool1_points  (-1 -> use ratio)
POOL2_POINTS = -1  # args.pool2_points
SCORING_FUN = "tanh"
EMB_DIMS = 64      # args.emb_dims (kept small for the example)
BN_EPS = 1e-5
NEG_SLOPE = 0.2

_POINT_TILE = 512                    # point tile (review: 512-1024 amortizes grid overhead)
_VMEM_LIMIT = 64 * 1024 * 1024       # raised scoped-VMEM cap; <= physical on all gens


def _tile_n(n, target=_POINT_TILE):
    """Largest point tile <= target that divides n; prefers multiples of 16 (bf16
    sublane packing), accepts multiples of 8, falls back to the full dim (always
    legal for a BlockSpec)."""
    if n <= target:
        return n
    for align in (16, 8):
        for cand in range(min(target, n), 0, -1):
            if n % cand == 0 and cand % align == 0:
                return cand
    # TODO(synk): pad N to a tile multiple instead of taking a full-N resident tile.
    return n


def _activate(y, act):
    if act == "leaky":
        return jnp.where(y >= 0, y, NEG_SLOPE * y)
    return jnp.maximum(y, 0.0)      # "relu" (edge-pool score head)


# ============================ Pallas kernels ============================

def _edgeconv_fused_kernel(xx_ref, feat_ref, ctr_ref, wn_ref, wd_ref, b_ref,
                           o_ref, *, k, n_total, act):
    # xx_ref:   (1, 1, N)    f32   precomputed sum(x^2) per point (lane-major)
    # feat_ref: (1, N, C)    bf16  full per-batch feature map, resident in VMEM
    # ctr_ref:  (1, TN, C)   bf16  this tile's center points
    # wn_ref:   (C, Cout)    bf16  weight acting on the neighbor features
    # wd_ref:   (C, Cout)    bf16  (w_center - w_neighbor)
    # b_ref:    (1, Cout)    f32   folded BN bias (or conv bias for the score head)
    # o_ref:    (1, TN, Cout)
    #
    # Weight-split edge conv: y_kk = nbr_kk @ w_nbr + ctr @ (w_ctr - w_nbr) + b;
    # Leaky/ReLU are monotone so max-over-K commutes with the activation and the
    # per-point base term.
    feat = feat_ref[0]                                        # (N, C)  bf16
    ctr = ctr_ref[0]                                          # (TN, C) bf16
    tn = ctr.shape[0]
    cout = wn_ref.shape[1]

    # ---- pairwise -||xi - xj||^2 for this tile's rows against all points.
    # bf16 x bf16 products are exact in the f32 MXU accumulator, and qq/xx are f32
    # sums of the same exact products, so the cancellation is consistent.
    inner = jax.lax.dot_general(
        ctr, feat, (((1,), (1,)), ((), ())),
        preferred_element_type=jnp.float32)                   # (TN, N)
    qq = jnp.sum(jnp.square(ctr.astype(jnp.float32)), axis=1, keepdims=True)
    d = 2.0 * inner - qq - xx_ref[0]                          # (TN, N)

    # ---- center half of the split conv + bias (shared by all K neighbors).
    base = jnp.dot(ctr, wd_ref[...],
                   preferred_element_type=jnp.float32) + b_ref[...]   # (TN, Cout)

    # ---- fused top-k selection + MXU one-hot gather.
    # The (col == sel) mask is needed anyway to knock the selected column out of d;
    # reusing it as a one-hot gather matrix (oh @ feat) fetches the neighbor rows
    # exactly (single non-zero bf16 product per output element) without any HBM
    # round trip or vector-gather primitive.
    col = jax.lax.broadcasted_iota(jnp.int32, (tn, n_total), 1)
    gathered = []
    for _ in range(k):                                        # static unroll, k tiny
        m = jnp.max(d, axis=-1, keepdims=True)                              # (TN, 1)
        sel = jnp.min(jnp.where(d >= m, col, n_total), axis=-1, keepdims=True)
        onehot = col == sel                                                 # (TN, N)
        oh = jnp.where(onehot, 1.0, 0.0).astype(jnp.bfloat16)
        nbr = jnp.dot(oh, feat, preferred_element_type=jnp.float32)         # (TN, C)
        gathered.append(nbr.astype(jnp.bfloat16))             # exact bf16 row gather
        d = jnp.where(onehot, -jnp.inf, d)                    # remove selected column

    if tn % 8 == 0:
        # Merged neighbor conv: one long (K*TN, C) @ (C, Cout) MXU stream instead of
        # K short ones; the leading-dim reshape back to (K, TN, Cout) is layout-free.
        g = jnp.concatenate(gathered, axis=0)                 # (K*TN, C)
        y = jnp.dot(g, wn_ref[...], preferred_element_type=jnp.float32)
        y = y.reshape(k, tn, cout)
        mx = y[0]
        for kk in range(1, k):
            mx = jnp.maximum(mx, y[kk])
    else:
        # Sublane-misaligned tiny tiles: fall back to per-k dots with a running max.
        mx = None
        for nbr in gathered:
            y = jnp.dot(nbr, wn_ref[...], preferred_element_type=jnp.float32)
            mx = y if mx is None else jnp.maximum(mx, y)

    o_ref[0] = _activate(mx + base, act).astype(o_ref.dtype)


def _conv1d_kernel(x_ref, w_ref, b_ref, o_ref):
    # conv5: 1x1 Conv1d + folded BN + LeakyReLU (no neighbor axis).
    y = jnp.dot(x_ref[0], w_ref[...],
                preferred_element_type=jnp.float32) + b_ref[...]
    o_ref[0] = jnp.where(y >= 0, y, NEG_SLOPE * y)


# ============================ Pallas wrappers ===========================

def _edgeconv_fused(feat, xx, wn, wd, b, *, k, act, out_dtype):
    # feat: (B, N, C) bf16, xx: (B, 1, N) f32, wn/wd: (C, Cout) bf16, b: (1, Cout) f32
    B, N, C = feat.shape
    Cout = wn.shape[1]
    tn = _tile_n(N)
    kern = functools.partial(_edgeconv_fused_kernel, k=k, n_total=N, act=act)
    return pl.pallas_call(
        kern,
        out_shape=jax.ShapeDtypeStruct((B, N, Cout), out_dtype),
        grid=(B, N // tn),
        in_specs=[
            pl.BlockSpec((1, 1, N), lambda bi, ti: (bi, 0, 0)),    # xx (resident)
            pl.BlockSpec((1, N, C), lambda bi, ti: (bi, 0, 0)),    # feat (resident)
            pl.BlockSpec((1, tn, C), lambda bi, ti: (bi, ti, 0)),  # center tile
            pl.BlockSpec((C, Cout), lambda bi, ti: (0, 0)),
            pl.BlockSpec((C, Cout), lambda bi, ti: (0, 0)),
            pl.BlockSpec((1, Cout), lambda bi, ti: (0, 0)),
        ],
        out_specs=pl.BlockSpec((1, tn, Cout), lambda bi, ti: (bi, ti, 0)),
        compiler_params=pltpu.CompilerParams(
            dimension_semantics=("parallel", "parallel"),
            vmem_limit_bytes=_VMEM_LIMIT),
    )(xx, feat, feat, wn, wd, b)


def conv1d_block(x, w, b):
    # x: (B, N, Cin) bf16 -> (B, N, Cout) f32
    B, N, Cin = x.shape
    Cout = w.shape[1]
    tn = _tile_n(N)
    return pl.pallas_call(
        _conv1d_kernel,
        out_shape=jax.ShapeDtypeStruct((B, N, Cout), jnp.float32),
        grid=(B, N // tn),
        in_specs=[
            pl.BlockSpec((1, tn, Cin), lambda bi, ti: (bi, ti, 0)),
            pl.BlockSpec((Cin, Cout), lambda bi, ti: (0, 0)),
            pl.BlockSpec((1, Cout), lambda bi, ti: (0, 0)),
        ],
        out_specs=pl.BlockSpec((1, tn, Cout), lambda bi, ti: (bi, ti, 0)),
        compiler_params=pltpu.CompilerParams(
            dimension_semantics=("parallel", "parallel"),
            vmem_limit_bytes=_VMEM_LIMIT),
    )(x, w, b)


# ============================== layers ==================================

def _sqnorm(feat):
    # (B, N, C) bf16 -> (B, 1, N) f32 sum of squares, lane-major (review item 5).
    return jnp.sum(jnp.square(feat.astype(jnp.float32)), axis=-1)[:, None, :]


def edgeconv_layer(feat, k, wn, wd, b):
    # One DGCNN EdgeConv block: knn + graph feature + conv + BN + LeakyReLU + max_K.
    xx = _sqnorm(feat)
    return _edgeconv_fused(feat, xx, wn, wd, b, k=k, act="leaky",
                           out_dtype=jnp.bfloat16)


def edge_scores(feat, k, wn, wd, b):
    # EdgePoolingLayer score head: relu(max_K(score_conv(graph_feature))).
    xx = _sqnorm(feat)
    s = _edgeconv_fused(feat, xx, wn, wd, b, k=k, act="relu",
                        out_dtype=jnp.float32)                 # (B, N, 1)
    return s[..., 0]


def edge_pool(feat, k, ratio, num_points, wsn, wsd, bs):
    # feat: (B, N, C) bf16 -> (B, num_keypoints, C) bf16  (EdgePoolingLayer)
    B, N, C = feat.shape
    scores = edge_scores(feat, k, wsn, wsd, bs)                # (B, N) f32
    if num_points < 0:
        num_kp = int(math.floor(N * ratio))
    else:
        assert num_points < N
        num_kp = num_points
    top, top_idx = jax.lax.top_k(scores, num_kp)               # (B, num_kp)
    kept = jax.vmap(lambda f, i: f[i])(feat, top_idx)          # (B, num_kp, C) bf16
    if SCORING_FUN == "tanh":
        gate = jnp.tanh(top)
    elif SCORING_FUN == "softmax":
        gate = jax.nn.softmax(top, axis=1)
    elif SCORING_FUN == "leaky-relu":
        gate = jnp.where(top >= 0, top, 0.001 * top)
    else:
        gate = top
    return (kept.astype(jnp.float32) * gate[:, :, None]).astype(jnp.bfloat16)


# ============================ parameters ================================

def make_conv_bn_params(key, cin, cout):
    """1x1 conv (no bias) + BatchNorm folded into (w, b); w:(cin,cout), b:(1,cout)."""
    k1, k2, k3, k4, k5 = jax.random.split(key, 5)
    w = jax.random.normal(k1, (cin, cout), jnp.float32) * 0.1
    gamma = jax.random.uniform(k2, (cout,), jnp.float32, minval=0.5, maxval=1.5)
    beta = jax.random.normal(k3, (cout,), jnp.float32) * 0.1
    mean = jax.random.normal(k4, (cout,), jnp.float32) * 0.1
    var = jax.random.uniform(k5, (cout,), jnp.float32, minval=0.5, maxval=1.5)
    scale = gamma / jnp.sqrt(var + BN_EPS)
    return w * scale[None, :], (beta - scale * mean)[None, :]


def make_edgeconv_params(key, c, cout):
    # Split the folded (2C, Cout) weight: first C rows act on (nbr - ctr),
    # last C rows on ctr; wd = w_ctr - w_nbr so y_k = nbr_k@wn + ctr@wd + b.
    w, b = make_conv_bn_params(key, 2 * c, cout)
    wn = w[:c].astype(jnp.bfloat16)
    wd = (w[c:] - w[:c]).astype(jnp.bfloat16)
    return wn, wd, b


def make_score_params(key, c):
    k1, k2 = jax.random.split(key)
    w = jax.random.normal(k1, (2 * c, 1), jnp.float32) * 0.1
    b = jax.random.normal(k2, (1, 1), jnp.float32) * 0.1
    wn = w[:c].astype(jnp.bfloat16)
    wd = (w[c:] - w[:c]).astype(jnp.bfloat16)
    return wn, wd, b


def init_params(key):
    keys = jax.random.split(key, 7)
    p = {}
    p["wn1"], p["wd1"], p["b1"] = make_edgeconv_params(keys[0], 3, 64)     # conv1 (6 -> 64)
    p["wn2"], p["wd2"], p["b2"] = make_edgeconv_params(keys[1], 64, 64)    # conv2 (128 -> 64)
    p["wsn1"], p["wsd1"], p["bs1"] = make_score_params(keys[2], 64)        # pool1 score
    p["wn3"], p["wd3"], p["b3"] = make_edgeconv_params(keys[3], 64, 128)   # conv3 (128 -> 128)
    p["wsn2"], p["wsd2"], p["bs2"] = make_score_params(keys[4], 128)       # pool2 score
    p["wn4"], p["wd4"], p["b4"] = make_edgeconv_params(keys[5], 128, 256)  # conv4 (256 -> 256)
    w5, b5 = make_conv_bn_params(keys[6], 256, EMB_DIMS)                   # conv5 (256 -> emb)
    p["w5"] = w5.astype(jnp.bfloat16)
    p["b5"] = b5
    return p


# ============================ DGCNN forward =============================

@jax.jit
def dgcnn_forward(x, params):
    # x: (B, 3, N)  ->  (B, EMB_DIMS, N // 4)
    xt = jnp.transpose(x, (0, 2, 1)).astype(jnp.bfloat16)                  # (B, N, 3)

    x1 = edgeconv_layer(xt, K_KNN, params["wn1"], params["wd1"], params["b1"])   # (B, N, 64)
    x2 = edgeconv_layer(x1, K_KNN, params["wn2"], params["wd2"], params["b2"])   # (B, N, 64)

    p1 = edge_pool(x2, K_POOL1, 0.5, POOL1_POINTS,
                   params["wsn1"], params["wsd1"], params["bs1"])          # (B, N/2, 64)

    x3 = edgeconv_layer(p1, K_KNN, params["wn3"], params["wd3"], params["b3"])   # (B, N/2, 128)

    p2 = edge_pool(x3, K_POOL2, 0.5, POOL2_POINTS,
                   params["wsn2"], params["wsd2"], params["bs2"])          # (B, N/4, 128)

    x4 = edgeconv_layer(p2, K_KNN, params["wn4"], params["wd4"], params["b4"])   # (B, N/4, 256)

    x5 = conv1d_block(x4, params["w5"], params["b5"])                      # (B, N/4, emb) f32
    return jnp.transpose(x5, (0, 2, 1))                                    # (B, emb, N/4)


# ================================ main ==================================

if __name__ == "__main__":
    key = jax.random.PRNGKey(0)
    k_x, k_p = jax.random.split(key)

    B, C_IN, N = 2, 3, 32
    x = jax.random.normal(k_x, (B, C_IN, N), jnp.float32)
    params = init_params(k_p)

    out = dgcnn_forward(x, params)
    out = jax.block_until_ready(out)

    assert out.shape == (B, EMB_DIMS, N // 4), out.shape
    assert bool(jnp.all(jnp.isfinite(out)))
    print("KERNEL_OK")
</pallas_src>

<mosaic_0001>
module attributes {stable_mosaic.version = 11 : i64} {
  func.func @_edgeconv_fused_kernel(%arg0: i32, %arg1: i32, %arg2: memref<1x1x32xf32, #tpu.memory_space<vmem>>, %arg3: memref<1x32x3xbf16, #tpu.memory_space<vmem>>, %arg4: memref<1x32x3xbf16, #tpu.memory_space<vmem>>, %arg5: memref<3x64xbf16, #tpu.memory_space<vmem>>, %arg6: memref<3x64xbf16, #tpu.memory_space<vmem>>, %arg7: memref<1x64xf32, #tpu.memory_space<vmem>>, %arg8: memref<1x32x64xbf16, #tpu.memory_space<vmem>>) attributes {dimension_semantics = [#tpu.dimension_semantics<parallel>, #tpu.dimension_semantics<parallel>], iteration_bounds = array<i64: 2, 1>, scalar_prefetch = 0 : i64, scratch_operands = 0 : i64, tpu.core_type = #tpu.core_type<tc>, window_params = [{transform_indices = @transform_0, window_bounds = array<i64: 1, 1, 32>}, {transform_indices = @transform_1, window_bounds = array<i64: 1, 32, 3>}, {transform_indices = @transform_2, window_bounds = array<i64: 1, 32, 3>}, {pipeline_mode = #tpu.pipeline_mode<synchronous>, transform_indices = @transform_3, window_bounds = array<i64: 3, 64>}, {pipeline_mode = #tpu.pipeline_mode<synchronous>, transform_indices = @transform_4, window_bounds = array<i64: 3, 64>}, {pipeline_mode = #tpu.pipeline_mode<synchronous>, transform_indices = @transform_5, window_bounds = array<i64: 1, 64>}, {transform_indices = @transform_6, window_bounds = array<i64: 1, 32, 64>}]} {
    %c0 = arith.constant 0 : index
    %c0_0 = arith.constant 0 : index
    %c0_1 = arith.constant 0 : index
    %0 = vector.load %arg3[%c0, %c0_0, %c0_1] : memref<1x32x3xbf16, #tpu.memory_space<vmem>>, vector<1x32x3xbf16>
    %1 = vector.shape_cast %0 : vector<1x32x3xbf16> to vector<32x3xbf16>
    %c0_2 = arith.constant 0 : index
    %c0_3 = arith.constant 0 : index
    %c0_4 = arith.constant 0 : index
    %2 = vector.load %arg4[%c0_2, %c0_3, %c0_4] : memref<1x32x3xbf16, #tpu.memory_space<vmem>>, vector<1x32x3xbf16>
    %3 = vector.shape_cast %2 : vector<1x32x3xbf16> to vector<32x3xbf16>
    %cst = arith.constant dense<0.000000e+00> : vector<32x32xf32>
    %4 = tpu.matmul %3, %1, %cst {dimension_numbers = #tpu.dot_dimension_numbers<[1], [1], [0], [0], [0, 0, 1, 0], [], []>} : vector<32x3xbf16>, vector<32x3xbf16>, vector<32x32xf32> -> vector<32x32xf32>
    %5 = arith.extf %3 : vector<32x3xbf16> to vector<32x3xf32>
    %6 = arith.mulf %5, %5 : vector<32x3xf32>
    %cst_5 = arith.constant dense<0.000000e+00> : vector<32xf32>
    %7 = vector.multi_reduction <add>, %6, %cst_5 [1] : vector<32x3xf32> to vector<32xf32>
    %8 = vector.shape_cast %7 : vector<32xf32> to vector<32x1xf32>
    %cst_6 = arith.constant 2.000000e+00 : f32
    %9 = vector.broadcast %cst_6 : f32 to vector<32x32xf32>
    %10 = arith.mulf %9, %4 : vector<32x32xf32>
    %11 = vector.broadcast %8 : vector<32x1xf32> to vector<32x32xf32>
    %12 = arith.subf %10, %11 : vector<32x32xf32>
    %c0_7 = arith.constant 0 : index
    %c0_8 = arith.constant 0 : index
    %c0_9 = arith.constant 0 : index
    %13 = vector.load %arg2[%c0_7, %c0_8, %c0_9] : memref<1x1x32xf32, #tpu.memory_space<vmem>>, vector<1x1x32xf32>
    %14 = vector.shape_cast %13 : vector<1x1x32xf32> to vector<1x32xf32>
    %15 = vector.broadcast %14 : vector<1x32xf32> to vector<32x32xf32>
    %16 = arith.subf %12, %15 : vector<32x32xf32>
    %c0_10 = arith.constant 0 : index
    %c0_11 = arith.constant 0 : index
    %17 = vector.load %arg6[%c0_10, %c0_11] : memref<3x64xbf16, #tpu.memory_space<vmem>>, vector<3x64xbf16>
    %cst_12 = arith.constant dense<0.000000e+00> : vector<32x64xf32>
    %18 = tpu.matmul %3, %17, %cst_12 {dimension_numbers = #tpu.dot_dimension_numbers<[1], [0], [0], [1], [0, 0, 1, 1], [], []>} : vector<32x3xbf16>, vector<3x64xbf16>, vector<32x64xf32> -> vector<32x64xf32>
    %c0_13 = arith.constant 0 : index
    %c0_14 = arith.constant 0 : index
    %19 = vector.load %arg7[%c0_13, %c0_14] : memref<1x64xf32, #tpu.memory_space<vmem>>, vector<1x64xf32>
    %20 = vector.broadcast %19 : vector<1x64xf32> to vector<32x64xf32>
    %21 = arith.addf %18, %20 : vector<32x64xf32>
    %22 = tpu.iota {dimensions = array<i32: 1>} : vector<32x32xi32>
    %cst_15 = arith.constant dense<0xFF800000> : vector<32xf32>
    %23 = vector.multi_reduction <maximumf>, %16, %cst_15 [1] : vector<32x32xf32> to vector<32xf32>
    %24 = vector.shape_cast %23 : vector<32xf32> to vector<32x1xf32>
    %25 = vector.broadcast %24 : vector<32x1xf32> to vector<32x32xf32>
    %26 = arith.cmpf oge, %16, %25 : vector<32x32xf32>
    %c32_i32 = arith.constant 32 : i32
    %27 = vector.broadcast %c32_i32 : i32 to vector<32x32xi32>
    %28 = arith.select %26, %22, %27 : vector<32x32xi1>, vector<32x32xi32>
    %cst_16 = arith.constant dense<2147483647> : vector<32xi32>
    %29 = vector.multi_reduction <minsi>, %28, %cst_16 [1] : vector<32x32xi32> to vector<32xi32>
    %30 = vector.shape_cast %29 : vector<32xi32> to vector<32x1xi32>
    %31 = vector.broadcast %30 : vector<32x1xi32> to vector<32x32xi32>
    %32 = arith.cmpi eq, %22, %31 : vector<32x32xi32>
    %cst_17 = arith.constant 1.000000e+00 : f32
    %cst_18 = arith.constant 0.000000e+00 : f32
    %33 = vector.broadcast %cst_17 : f32 to vector<32x32xf32>
    %34 = vector.broadcast %cst_18 : f32 to vector<32x32xf32>
    %35 = arith.select %32, %33, %34 : vector<32x32xi1>, vector<32x32xf32>
    %36 = arith.truncf %35 : vector<32x32xf32> to vector<32x32xbf16>
    %cst_19 = arith.constant dense<0.000000e+00> : vector<32x3xf32>
    %37 = tpu.matmul %36, %1, %cst_19 {dimension_numbers = #tpu.dot_dimension_numbers<[1], [0], [0], [1], [0, 0, 1, 1], [], []>} : vector<32x32xbf16>, vector<32x3xbf16>, vector<32x3xf32> -> vector<32x3xf32>
    %38 = arith.truncf %37 : vector<32x3xf32> to vector<32x3xbf16>
    %cst_20 = arith.constant 0xFF800000 : f32
    %39 = vector.broadcast %cst_20 : f32 to vector<32x32xf32>
    %40 = arith.select %32, %39, %16 : vector<32x32xi1>, vector<32x32xf32>
    %cst_21 = arith.constant dense<0xFF800000> : vector<32xf32>
    %41 = vector.multi_reduction <maximumf>, %40, %cst_21 [1] : vector<32x32xf32> to vector<32xf32>
    %42 = vector.shape_cast %41 : vector<32xf32> to vector<32x1xf32>
    %43 = vector.broadcast %42 : vector<32x1xf32> to vector<32x32xf32>
    %44 = arith.cmpf oge, %40, %43 : vector<32x32xf32>
    %c32_i32_22 = arith.constant 32 : i32
    %45 = vector.broadcast %c32_i32_22 : i32 to vector<32x32xi32>
    %46 = arith.select %44, %22, %45 : vector<32x32xi1>, vector<32x32xi32>
    %cst_23 = arith.constant dense<2147483647> : vector<32xi32>
    %47 = vector.multi_reduction <minsi>, %46, %cst_23 [1] : vector<32x32xi32> to vector<32xi32>
    %48 = vector.shape_cast %47 : vector<32xi32> to vector<32x1xi32>
    %49 = vector.broadcast %48 : vector<32x1xi32> to vector<32x32xi32>
    %50 = arith.cmpi eq, %22, %49 : vector<32x32xi32>
    %cst_24 = arith.constant 1.000000e+00 : f32
    %cst_25 = arith.constant 0.000000e+00 : f32
    %51 = vector.broadcast %cst_24 : f32 to vector<32x32xf32>
    %52 = vector.broadcast %cst_25 : f32 to vector<32x32xf32>
    %53 = arith.select %50, %51, %52 : vector<32x32xi1>, vector<32x32xf32>
    %54 = arith.truncf %53 : vector<32x32xf32> to vector<32x32xbf16>
    %cst_26 = arith.constant dense<0.000000e+00> : vector<32x3xf32>
    %55 = tpu.matmul %54, %1, %cst_26 {dimension_numbers = #tpu.dot_dimension_numbers<[1], [0], [0], [1], [0, 0, 1, 1], [], []>} : vector<32x32xbf16>, vector<32x3xbf16>, vector<32x3xf32> -> vector<32x3xf32>
    %56 = arith.truncf %55 : vector<32x3xf32> to vector<32x3xbf16>
    %cst_27 = arith.constant 0xFF800000 : f32
    %57 = vector.broadcast %cst_27 : f32 to vector<32x32xf32>
    %58 = arith.select %50, %57, %40 : vector<32x32xi1>, vector<32x32xf32>
    %cst_28 = arith.constant dense<0xFF800000> : vector<32xf32>
    %59 = vector.multi_reduction <maximumf>, %58, %cst_28 [1] : vector<32x32xf32> to vector<32xf32>
    %60 = vector.shape_cast %59 : vector<32xf32> to vector<32x1xf32>
    %61 = vector.broadcast %60 : vector<32x1xf32> to vector<32x32xf32>
    %62 = arith.cmpf oge, %58, %61 : vector<32x32xf32>
    %c32_i32_29 = arith.constant 32 : i32
    %63 = vector.broadcast %c32_i32_29 : i32 to vector<32x32xi32>
    %64 = arith.select %62, %22, %63 : vector<32x32xi1>, vector<32x32xi32>
    %cst_30 = arith.constant dense<2147483647> : vector<32xi32>
    %65 = vector.multi_reduction <minsi>, %64, %cst_30 [1] : vector<32x32xi32> to vector<32xi32>
    %66 = vector.shape_cast %65 : vector<32xi32> to vector<32x1xi32>
    %67 = vector.broadcast %66 : vector<32x1xi32> to vector<32x32xi32>
    %68 = arith.cmpi eq, %22, %67 : vector<32x32xi32>
    %cst_31 = arith.constant 1.000000e+00 : f32
    %cst_32 = arith.constant 0.000000e+00 : f32
    %69 = vector.broadcast %cst_31 : f32 to vector<32x32xf32>
    %70 = vector.broadcast %cst_32 : f32 to vector<32x32xf32>
    %71 = arith.select %68, %69, %70 : vector<32x32xi1>, vector<32x32xf32>
    %72 = arith.truncf %71 : vector<32x32xf32> to vector<32x32xbf16>
    %cst_33 = arith.constant dense<0.000000e+00> : vector<32x3xf32>
    %73 = tpu.matmul %72, %1, %cst_33 {dimension_numbers = #tpu.dot_dimension_numbers<[1], [0], [0], [1], [0, 0, 1, 1], [], []>} : vector<32x32xbf16>, vector<32x3xbf16>, vector<32x3xf32> -> vector<32x3xf32>
    %74 = arith.truncf %73 : vector<32x3xf32> to vector<32x3xbf16>
    %cst_34 = arith.constant 0xFF800000 : f32
    %75 = vector.broadcast %cst_34 : f32 to vector<32x32xf32>
    %76 = arith.select %68, %75, %58 : vector<32x32xi1>, vector<32x32xf32>
    %cst_35 = arith.constant dense<0xFF800000> : vector<32xf32>
    %77 = vector.multi_reduction <maximumf>, %76, %cst_35 [1] : vector<32x32xf32> to vector<32xf32>
    %78 = vector.shape_cast %77 : vector<32xf32> to vector<32x1xf32>
    %79 = vector.broadcast %78 : vector<32x1xf32> to vector<32x32xf32>
    %80 = arith.cmpf oge, %76, %79 : vector<32x32xf32>
    %c32_i32_36 = arith.constant 32 : i32
    %81 = vector.broadcast %c32_i32_36 : i32 to vector<32x32xi32>
    %82 = arith.select %80, %22, %81 : vector<32x32xi1>, vector<32x32xi32>
    %cst_37 = arith.constant dense<2147483647> : vector<32xi32>
    %83 = vector.multi_reduction <minsi>, %82, %cst_37 [1] : vector<32x32xi32> to vector<32xi32>
    %84 = vector.shape_cast %83 : vector<32xi32> to vector<32x1xi32>
    %85 = vector.broadcast %84 : vector<32x1xi32> to vector<32x32xi32>
    %86 = arith.cmpi eq, %22, %85 : vector<32x32xi32>
    %cst_38 = arith.constant 1.000000e+00 : f32
    %cst_39 = arith.constant 0.000000e+00 : f32
    %87 = vector.broadcast %cst_38 : f32 to vector<32x32xf32>
    %88 = vector.broadcast %cst_39 : f32 to vector<32x32xf32>
    %89 = arith.select %86, %87, %88 : vector<32x32xi1>, vector<32x32xf32>
    %90 = arith.truncf %89 : vector<32x32xf32> to vector<32x32xbf16>
    %cst_40 = arith.constant dense<0.000000e+00> : vector<32x3xf32>
    %91 = tpu.matmul %90, %1, %cst_40 {dimension_numbers = #tpu.dot_dimension_numbers<[1], [0], [0], [1], [0, 0, 1, 1], [], []>} : vector<32x32xbf16>, vector<32x3xbf16>, vector<32x3xf32> -> vector<32x3xf32>
    %92 = arith.truncf %91 : vector<32x3xf32> to vector<32x3xbf16>
    %93 = tpu.concatenate %38, %56, %74, %92 in 0 : vector<32x3xbf16>, vector<32x3xbf16>, vector<32x3xbf16>, vector<32x3xbf16> -> vector<128x3xbf16>
    %c0_41 = arith.constant 0 : index
    %c0_42 = arith.constant 0 : index
    %94 = vector.load %arg5[%c0_41, %c0_42] : memref<3x64xbf16, #tpu.memory_space<vmem>>, vector<3x64xbf16>
    %cst_43 = arith.constant dense<0.000000e+00> : vector<128x64xf32>
    %95 = tpu.matmul %93, %94, %cst_43 {dimension_numbers = #tpu.dot_dimension_numbers<[1], [0], [0], [1], [0, 0, 1, 1], [], []>} : vector<128x3xbf16>, vector<3x64xbf16>, vector<128x64xf32> -> vector<128x64xf32>
    %96 = vector.shape_cast %95 : vector<128x64xf32> to vector<4x32x64xf32>
    %97 = vector.extract_strided_slice %96 {offsets = [0, 0, 0], sizes = [1, 32, 64], strides = [1, 1, 1]} : vector<4x32x64xf32> to vector<1x32x64xf32>
    %98 = vector.shape_cast %97 : vector<1x32x64xf32> to vector<32x64xf32>
    %99 = vector.extract_strided_slice %96 {offsets = [1, 0, 0], sizes = [1, 32, 64], strides = [1, 1, 1]} : vector<4x32x64xf32> to vector<1x32x64xf32>
    %100 = vector.shape_cast %99 : vector<1x32x64xf32> to vector<32x64xf32>
    %101 = arith.maximumf %98, %100 : vector<32x64xf32>
    %102 = vector.extract_strided_slice %96 {offsets = [2, 0, 0], sizes = [1, 32, 64], strides = [1, 1, 1]} : vector<4x32x64xf32> to vector<1x32x64xf32>
    %103 = vector.shape_cast %102 : vector<1x32x64xf32> to vector<32x64xf32>
    %104 = arith.maximumf %101, %103 : vector<32x64xf32>
    %105 = vector.extract_strided_slice %96 {offsets = [3, 0, 0], sizes = [1, 32, 64], strides = [1, 1, 1]} : vector<4x32x64xf32> to vector<1x32x64xf32>
    %106 = vector.shape_cast %105 : vector<1x32x64xf32> to vector<32x64xf32>
    %107 = arith.maximumf %104, %106 : vector<32x64xf32>
    %108 = arith.addf %107, %21 : vector<32x64xf32>
    %cst_44 = arith.constant 0.000000e+00 : f32
    %109 = vector.broadcast %cst_44 : f32 to vector<32x64xf32>
    %110 = arith.cmpf oge, %108, %109 : vector<32x64xf32>
    %cst_45 = arith.constant 2.000000e-01 : f32
    %111 = vector.broadcast %cst_45 : f32 to vector<32x64xf32>
    %112 = arith.mulf %111, %108 : vector<32x64xf32>
    %113 = arith.select %110, %108, %112 : vector<32x64xi1>, vector<32x64xf32>
    %114 = arith.truncf %113 : vector<32x64xf32> to vector<32x64xbf16>
    %c0_46 = arith.constant 0 : index
    %c0_47 = arith.constant 0 : index
    %c0_48 = arith.constant 0 : index
    %115 = vector.load %arg8[%c0_46, %c0_47, %c0_48] : memref<1x32x64xbf16, #tpu.memory_space<vmem>>, vector<1x32x64xbf16>
    %116 = vector.shape_cast %115 : vector<1x32x64xbf16> to vector<32x64xbf16>
    %117 = vector.shape_cast %114 : vector<32x64xbf16> to vector<1x32x64xbf16>
    tpu.vector_store %arg8[%c0_46, %c0_47, %c0_48], %117 {strides = array<i32>} : memref<1x32x64xbf16, #tpu.memory_space<vmem>>, vector<1x32x64xbf16>,
    return
  }
  func.func @transform_0(%arg0: i32, %arg1: i32) -> (i32, i32, i32) {
    %c0_i32 = arith.constant 0 : i32
    %c0_i32_0 = arith.constant 0 : i32
    %c0_i32_1 = arith.constant 0 : i32
    return %arg0, %c0_i32, %c0_i32_0 : i32, i32, i32
  }
  func.func @transform_1(%arg0: i32, %arg1: i32) -> (i32, i32, i32) {
    %c0_i32 = arith.constant 0 : i32
    %c0_i32_0 = arith.constant 0 : i32
    %c0_i32_1 = arith.constant 0 : i32
    return %arg0, %c0_i32, %c0_i32_0 : i32, i32, i32
  }
  func.func @transform_2(%arg0: i32, %arg1: i32) -> (i32, i32, i32) {
    %c0_i32 = arith.constant 0 : i32
    %c0_i32_0 = arith.constant 0 : i32
    return %arg0, %arg1, %c0_i32 : i32, i32, i32
  }
  func.func @transform_3(%arg0: i32, %arg1: i32) -> (i32, i32) {
    %c0_i32 = arith.constant 0 : i32
    %c0_i32_0 = arith.constant 0 : i32
    %c0_i32_1 = arith.constant 0 : i32
    return %c0_i32, %c0_i32_0 : i32, i32
  }
  func.func @transform_4(%arg0: i32, %arg1: i32) -> (i32, i32) {
    %c0_i32 = arith.constant 0 : i32
    %c0_i32_0 = arith.constant 0 : i32
    %c0_i32_1 = arith.constant 0 : i32
    return %c0_i32, %c0_i32_0 : i32, i32
  }
  func.func @transform_5(%arg0: i32, %arg1: i32) -> (i32, i32) {
    %c0_i32 = arith.constant 0 : i32
    %c0_i32_0 = arith.constant 0 : i32
    %c0_i32_1 = arith.constant 0 : i32
    return %c0_i32, %c0_i32_0 : i32, i32
  }
  func.func @transform_6(%arg0: i32, %arg1: i32) -> (i32, i32, i32) {
    %c0_i32 = arith.constant 0 : i32
    %c0_i32_0 = arith.constant 0 : i32
    return %arg0, %arg1, %c0_i32 : i32, i32, i32
  }
}

module attributes {stable_mosaic.version = 11 : i64} {
  func.func @_edgeconv_fused_kernel(%arg0: i32, %arg1: i32, %arg2: memref<1x1x32xf32, #tpu.memory_space<vmem>>, %arg3: memref<1x32x64xbf16, #tpu.memory_space<vmem>>, %arg4: memref<1x32x64xbf16, #tpu.memory_space<vmem>>, %arg5: memref<64x64xbf16, #tpu.memory_space<vmem>>, %arg6: memref<64x64xbf16, #tpu.memory_space<vmem>>, %arg7: memref<1x64xf32, #tpu.memory_space<vmem>>, %arg8: memref<1x32x64xbf16, #tpu.memory_space<vmem>>) attributes {dimension_semantics = [#tpu.dimension_semantics<parallel>, #tpu.dimension_semantics<parallel>], iteration_bounds = array<i64: 2, 1>, scalar_prefetch = 0 : i64, scratch_operands = 0 : i64, tpu.core_type = #tpu.core_type<tc>, window_params = [{transform_indices = @transform_0, window_bounds = array<i64: 1, 1, 32>}, {transform_indices = @transform_1, window_bounds = array<i64: 1, 32, 64>}, {transform_indices = @transform_2, window_bounds = array<i64: 1, 32, 64>}, {pipeline_mode = #tpu.pipeline_mode<synchronous>, transform_indices = @transform_3, window_bounds = array<i64: 64, 64>}, {pipeline_mode = #tpu.pipeline_mode<synchronous>, transform_indices = @transform_4, window_bounds = array<i64: 64, 64>}, {pipeline_mode = #tpu.pipeline_mode<synchronous>, transform_indices = @transform_5, window_bounds = array<i64: 1, 64>}, {transform_indices = @transform_6, window_bounds = array<i64: 1, 32, 64>}]} {
    %c0 = arith.constant 0 : index
    %c0_0 = arith.constant 0 : index
    %c0_1 = arith.constant 0 : index
    %0 = vector.load %arg3[%c0, %c0_0, %c0_1] : memref<1x32x64xbf16, #tpu.memory_space<vmem>>, vector<1x32x64xbf16>
    %1 = vector.shape_cast %0 : vector<1x32x64xbf16> to vector<32x64xbf16>
    %c0_2 = arith.constant 0 : index
    %c0_3 = arith.constant 0 : index
    %c0_4 = arith.constant 0 : index
    %2 = vector.load %arg4[%c0_2, %c0_3, %c0_4] : memref<1x32x64xbf16, #tpu.memory_space<vmem>>, vector<1x32x64xbf16>
    %3 = vector.shape_cast %2 : vector<1x32x64xbf16> to vector<32x64xbf16>
    %cst = arith.constant dense<0.000000e+00> : vector<32x32xf32>
    %4 = tpu.matmul %3, %1, %cst {dimension_numbers = #tpu.dot_dimension_numbers<[1], [1], [0], [0], [0, 0, 1, 0], [], []>} : vector<32x64xbf16>, vector<32x64xbf16>, vector<32x32xf32> -> vector<32x32xf32>
    %5 = arith.extf %3 : vector<32x64xbf16> to vector<32x64xf32>
    %6 = arith.mulf %5, %5 : vector<32x64xf32>
    %cst_5 = arith.constant dense<0.000000e+00> : vector<32xf32>
    %7 = vector.multi_reduction <add>, %6, %cst_5 [1] : vector<32x64xf32> to vector<32xf32>
    %8 = vector.shape_cast %7 : vector<32xf32> to vector<32x1xf32>
    %cst_6 = arith.constant 2.000000e+00 : f32
    %9 = vector.broadcast %cst_6 : f32 to vector<32x32xf32>
    %10 = arith.mulf %9, %4 : vector<32x32xf32>
    %11 = vector.broadcast %8 : vector<32x1xf32> to vector<32x32xf32>
    %12 = arith.subf %10, %11 : vector<32x32xf32>
    %c0_7 = arith.constant 0 : index
    %c0_8 = arith.constant 0 : index
    %c0_9 = arith.constant 0 : index
    %13 = vector.load %arg2[%c0_7, %c0_8, %c0_9] : memref<1x1x32xf32, #tpu.memory_space<vmem>>, vector<1x1x32xf32>
    %14 = vector.shape_cast %13 : vector<1x1x32xf32> to vector<1x32xf32>
    %15 = vector.broadcast %14 : vector<1x32xf32> to vector<32x32xf32>
    %16 = arith.subf %12, %15 : vector<32x32xf32>
    %c0_10 = arith.constant 0 : index
    %c0_11 = arith.constant 0 : index
    %17 = vector.load %arg6[%c0_10, %c0_11] : memref<64x64xbf16, #tpu.memory_space<vmem>>, vector<64x64xbf16>
    %cst_12 = arith.constant dense<0.000000e+00> : vector<32x64xf32>
    %18 = tpu.matmul %3, %17, %cst_12 {dimension_numbers = #tpu.dot_dimension_numbers<[1], [0], [0], [1], [0, 0, 1, 1], [], []>} : vector<32x64xbf16>, vector<64x64xbf16>, vector<32x64xf32> -> vector<32x64xf32>
    %c0_13 = arith.constant 0 : index
    %c0_14 = arith.constant 0 : index
    %19 = vector.load %arg7[%c0_13, %c0_14] : memref<1x64xf32, #tpu.memory_space<vmem>>, vector<1x64xf32>
    %20 = vector.broadcast %19 : vector<1x64xf32> to vector<32x64xf32>
    %21 = arith.addf %18, %20 : vector<32x64xf32>
    %22 = tpu.iota {dimensions = array<i32: 1>} : vector<32x32xi32>
    %cst_15 = arith.constant dense<0xFF800000> : vector<32xf32>
    %23 = vector.multi_reduction <maximumf>, %16, %cst_15 [1] : vector<32x32xf32> to vector<32xf32>
    %24 = vector.shape_cast %23 : vector<32xf32> to vector<32x1xf32>
    %25 = vector.broadcast %24 : vector<32x1xf32> to vector<32x32xf32>
    %26 = arith.cmpf oge, %16, %25 : vector<32x32xf32>
    %c32_i32 = arith.constant 32 : i32
    %27 = vector.broadcast %c32_i32 : i32 to vector<32x32xi32>
    %28 = arith.select %26, %22, %27 : vector<32x32xi1>, vector<32x32xi32>
    %cst_16 = arith.constant dense<2147483647> : vector<32xi32>
    %29 = vector.multi_reduction <minsi>, %28, %cst_16 [1] : vector<32x32xi32> to vector<32xi32>
    %30 = vector.shape_cast %29 : vector<32xi32> to vector<32x1xi32>
    %31 = vector.broadcast %30 : vector<32x1xi32> to vector<32x32xi32>
    %32 = arith.cmpi eq, %22, %31 : vector<32x32xi32>
    %cst_17 = arith.constant 1.000000e+00 : f32
    %cst_18 = arith.constant 0.000000e+00 : f32
    %33 = vector.broadcast %cst_17 : f32 to vector<32x32xf32>
    %34 = vector.broadcast %cst_18 : f32 to vector<32x32xf32>
    %35 = arith.select %32, %33, %34 : vector<32x32xi1>, vector<32x32xf32>
    %36 = arith.truncf %35 : vector<32x32xf32> to vector<32x32xbf16>
    %cst_19 = arith.constant dense<0.000000e+00> : vector<32x64xf32>
    %37 = tpu.matmul %36, %1, %cst_19 {dimension_numbers = #tpu.dot_dimension_numbers<[1], [0], [0], [1], [0, 0, 1, 1], [], []>} : vector<32x32xbf16>, vector<32x64xbf16>, vector<32x64xf32> -> vector<32x64xf32>
    %38 = arith.truncf %37 : vector<32x64xf32> to vector<32x64xbf16>
    %cst_20 = arith.constant 0xFF800000 : f32
    %39 = vector.broadcast %cst_20 : f32 to vector<32x32xf32>
    %40 = arith.select %32, %39, %16 : vector<32x32xi1>, vector<32x32xf32>
    %cst_21 = arith.constant dense<0xFF800000> : vector<32xf32>
    %41 = vector.multi_reduction <maximumf>, %40, %cst_21 [1] : vector<32x32xf32> to vector<32xf32>
    %42 = vector.shape_cast %41 : vector<32xf32> to vector<32x1xf32>
    %43 = vector.broadcast %42 : vector<32x1xf32> to vector<32x32xf32>
    %44 = arith.cmpf oge, %40, %43 : vector<32x32xf32>
    %c32_i32_22 = arith.constant 32 : i32
    %45 = vector.broadcast %c32_i32_22 : i32 to vector<32x32xi32>
    %46 = arith.select %44, %22, %45 : vector<32x32xi1>, vector<32x32xi32>
    %cst_23 = arith.constant dense<2147483647> : vector<32xi32>
    %47 = vector.multi_reduction <minsi>, %46, %cst_23 [1] : vector<32x32xi32> to vector<32xi32>
    %48 = vector.shape_cast %47 : vector<32xi32> to vector<32x1xi32>
    %49 = vector.broadcast %48 : vector<32x1xi32> to vector<32x32xi32>
    %50 = arith.cmpi eq, %22, %49 : vector<32x32xi32>
    %cst_24 = arith.constant 1.000000e+00 : f32
    %cst_25 = arith.constant 0.000000e+00 : f32
    %51 = vector.broadcast %cst_24 : f32 to vector<32x32xf32>
    %52 = vector.broadcast %cst_25 : f32 to vector<32x32xf32>
    %53 = arith.select %50, %51, %52 : vector<32x32xi1>, vector<32x32xf32>
    %54 = arith.truncf %53 : vector<32x32xf32> to vector<32x32xbf16>
    %cst_26 = arith.constant dense<0.000000e+00> : vector<32x64xf32>
    %55 = tpu.matmul %54, %1, %cst_26 {dimension_numbers = #tpu.dot_dimension_numbers<[1], [0], [0], [1], [0, 0, 1, 1], [], []>} : vector<32x32xbf16>, vector<32x64xbf16>, vector<32x64xf32> -> vector<32x64xf32>
    %56 = arith.truncf %55 : vector<32x64xf32> to vector<32x64xbf16>
    %cst_27 = arith.constant 0xFF800000 : f32
    %57 = vector.broadcast %cst_27 : f32 to vector<32x32xf32>
    %58 = arith.select %50, %57, %40 : vector<32x32xi1>, vector<32x32xf32>
    %cst_28 = arith.constant dense<0xFF800000> : vector<32xf32>
    %59 = vector.multi_reduction <maximumf>, %58, %cst_28 [1] : vector<32x32xf32> to vector<32xf32>
    %60 = vector.shape_cast %59 : vector<32xf32> to vector<32x1xf32>
    %61 = vector.broadcast %60 : vector<32x1xf32> to vector<32x32xf32>
    %62 = arith.cmpf oge, %58, %61 : vector<32x32xf32>
    %c32_i32_29 = arith.constant 32 : i32
    %63 = vector.broadcast %c32_i32_29 : i32 to vector<32x32xi32>
    %64 = arith.select %62, %22, %63 : vector<32x32xi1>, vector<32x32xi32>
    %cst_30 = arith.constant dense<2147483647> : vector<32xi32>
    %65 = vector.multi_reduction <minsi>, %64, %cst_30 [1] : vector<32x32xi32> to vector<32xi32>
    %66 = vector.shape_cast %65 : vector<32xi32> to vector<32x1xi32>
    %67 = vector.broadcast %66 : vector<32x1xi32> to vector<32x32xi32>
    %68 = arith.cmpi eq, %22, %67 : vector<32x32xi32>
    %cst_31 = arith.constant 1.000000e+00 : f32
    %cst_32 = arith.constant 0.000000e+00 : f32
    %69 = vector.broadcast %cst_31 : f32 to vector<32x32xf32>
    %70 = vector.broadcast %cst_32 : f32 to vector<32x32xf32>
    %71 = arith.select %68, %69, %70 : vector<32x32xi1>, vector<32x32xf32>
    %72 = arith.truncf %71 : vector<32x32xf32> to vector<32x32xbf16>
    %cst_33 = arith.constant dense<0.000000e+00> : vector<32x64xf32>
    %73 = tpu.matmul %72, %1, %cst_33 {dimension_numbers = #tpu.dot_dimension_numbers<[1], [0], [0], [1], [0, 0, 1, 1], [], []>} : vector<32x32xbf16>, vector<32x64xbf16>, vector<32x64xf32> -> vector<32x64xf32>
    %74 = arith.truncf %73 : vector<32x64xf32> to vector<32x64xbf16>
    %cst_34 = arith.constant 0xFF800000 : f32
    %75 = vector.broadcast %cst_34 : f32 to vector<32x32xf32>
    %76 = arith.select %68, %75, %58 : vector<32x32xi1>, vector<32x32xf32>
    %cst_35 = arith.constant dense<0xFF800000> : vector<32xf32>
    %77 = vector.multi_reduction <maximumf>, %76, %cst_35 [1] : vector<32x32xf32> to vector<32xf32>
    %78 = vector.shape_cast %77 : vector<32xf32> to vector<32x1xf32>
    %79 = vector.broadcast %78 : vector<32x1xf32> to vector<32x32xf32>
    %80 = arith.cmpf oge, %76, %79 : vector<32x32xf32>
    %c32_i32_36 = arith.constant 32 : i32
    %81 = vector.broadcast %c32_i32_36 : i32 to vector<32x32xi32>
    %82 = arith.select %80, %22, %81 : vector<32x32xi1>, vector<32x32xi32>
    %cst_37 = arith.constant dense<2147483647> : vector<32xi32>
    %83 = vector.multi_reduction <minsi>, %82, %cst_37 [1] : vector<32x32xi32> to vector<32xi32>
    %84 = vector.shape_cast %83 : vector<32xi32> to vector<32x1xi32>
    %85 = vector.broadcast %84 : vector<32x1xi32> to vector<32x32xi32>
    %86 = arith.cmpi eq, %22, %85 : vector<32x32xi32>
    %cst_38 = arith.constant 1.000000e+00 : f32
    %cst_39 = arith.constant 0.000000e+00 : f32
    %87 = vector.broadcast %cst_38 : f32 to vector<32x32xf32>
    %88 = vector.broadcast %cst_39 : f32 to vector<32x32xf32>
    %89 = arith.select %86, %87, %88 : vector<32x32xi1>, vector<32x32xf32>
    %90 = arith.truncf %89 : vector<32x32xf32> to vector<32x32xbf16>
    %cst_40 = arith.constant dense<0.000000e+00> : vector<32x64xf32>
    %91 = tpu.matmul %90, %1, %cst_40 {dimension_numbers = #tpu.dot_dimension_numbers<[1], [0], [0], [1], [0, 0, 1, 1], [], []>} : vector<32x32xbf16>, vector<32x64xbf16>, vector<32x64xf32> -> vector<32x64xf32>
    %92 = arith.truncf %91 : vector<32x64xf32> to vector<32x64xbf16>
    %93 = tpu.concatenate %38, %56, %74, %92 in 0 : vector<32x64xbf16>, vector<32x64xbf16>, vector<32x64xbf16>, vector<32x64xbf16> -> vector<128x64xbf16>
    %c0_41 = arith.constant 0 : index
    %c0_42 = arith.constant 0 : index
    %94 = vector.load %arg5[%c0_41, %c0_42] : memref<64x64xbf16, #tpu.memory_space<vmem>>, vector<64x64xbf16>
    %cst_43 = arith.constant dense<0.000000e+00> : vector<128x64xf32>
    %95 = tpu.matmul %93, %94, %cst_43 {dimension_numbers = #tpu.dot_dimension_numbers<[1], [0], [0], [1], [0, 0, 1, 1], [], []>} : vector<128x64xbf16>, vector<64x64xbf16>, vector<128x64xf32> -> vector<128x64xf32>
    %96 = vector.shape_cast %95 : vector<128x64xf32> to vector<4x32x64xf32>
    %97 = vector.extract_strided_slice %96 {offsets = [0, 0, 0], sizes = [1, 32, 64], strides = [1, 1, 1]} : vector<4x32x64xf32> to vector<1x32x64xf32>
    %98 = vector.shape_cast %97 : vector<1x32x64xf32> to vector<32x64xf32>
    %99 = vector.extract_strided_slice %96 {offsets = [1, 0, 0], sizes = [1, 32, 64], strides = [1, 1, 1]} : vector<4x32x64xf32> to vector<1x32x64xf32>
    %100 = vector.shape_cast %99 : vector<1x32x64xf32> to vector<32x64xf32>
    %101 = arith.maximumf %98, %100 : vector<32x64xf32>
    %102 = vector.extract_strided_slice %96 {offsets = [2, 0, 0], sizes = [1, 32, 64], strides = [1, 1, 1]} : vector<4x32x64xf32> to vector<1x32x64xf32>
    %103 = vector.shape_cast %102 : vector<1x32x64xf32> to vector<32x64xf32>
    %104 = arith.maximumf %101, %103 : vector<32x64xf32>
    %105 = vector.extract_strided_slice %96 {offsets = [3, 0, 0], sizes = [1, 32, 64], strides = [1, 1, 1]} : vector<4x32x64xf32> to vector<1x32x64xf32>
    %106 = vector.shape_cast %105 : vector<1x32x64xf32> to vector<32x64xf32>
    %107 = arith.maximumf %104, %106 : vector<32x64xf32>
    %108 = arith.addf %107, %21 : vector<32x64xf32>
    %cst_44 = arith.constant 0.000000e+00 : f32
    %109 = vector.broadcast %cst_44 : f32 to vector<32x64xf32>
    %110 = arith.cmpf oge, %108, %109 : vector<32x64xf32>
    %cst_45 = arith.constant 2.000000e-01 : f32
    %111 = vector.broadcast %cst_45 : f32 to vector<32x64xf32>
    %112 = arith.mulf %111, %108 : vector<32x64xf32>
    %113 = arith.select %110, %108, %112 : vector<32x64xi1>, vector<32x64xf32>
    %114 = arith.truncf %113 : vector<32x64xf32> to vector<32x64xbf16>
    %c0_46 = arith.constant 0 : index
    %c0_47 = arith.constant 0 : index
    %c0_48 = arith.constant 0 : index
    %115 = vector.load %arg8[%c0_46, %c0_47, %c0_48] : memref<1x32x64xbf16, #tpu.memory_space<vmem>>, vector<1x32x64xbf16>
    %116 = vector.shape_cast %115 : vector<1x32x64xbf16> to vector<32x64xbf16>
    %117 = vector.shape_cast %114 : vector<32x64xbf16> to vector<1x32x64xbf16>
    tpu.vector_store %arg8[%c0_46, %c0_47, %c0_48], %117 {strides = array<i32>} : memref<1x32x64xbf16, #tpu.memory_space<vmem>>, vector<1x32x64xbf16>,
    return
  }
  func.func @transform_0(%arg0: i32, %arg1: i32) -> (i32, i32, i32) {
    %c0_i32 = arith.constant 0 : i32
    %c0_i32_0 = arith.constant 0 : i32
    %c0_i32_1 = arith.constant 0 : i32
    return %arg0, %c0_i32, %c0_i32_0 : i32, i32, i32
  }
  func.func @transform_1(%arg0: i32, %arg1: i32) -> (i32, i32, i32) {
    %c0_i32 = arith.constant 0 : i32
    %c0_i32_0 = arith.constant 0 : i32
    %c0_i32_1 = arith.constant 0 : i32
    return %arg0, %c0_i32, %c0_i32_0 : i32, i32, i32
  }
  func.func @transform_2(%arg0: i32, %arg1: i32) -> (i32, i32, i32) {
    %c0_i32 = arith.constant 0 : i32
    %c0_i32_0 = arith.constant 0 : i32
    return %arg0, %arg1, %c0_i32 : i32, i32, i32
  }
  func.func @transform_3(%arg0: i32, %arg1: i32) -> (i32, i32) {
    %c0_i32 = arith.constant 0 : i32
    %c0_i32_0 = arith.constant 0 : i32
    %c0_i32_1 = arith.constant 0 : i32
    return %c0_i32, %c0_i32_0 : i32, i32
  }
  func.func @transform_4(%arg0: i32, %arg1: i32) -> (i32, i32) {
    %c0_i32 = arith.constant 0 : i32
    %c0_i32_0 = arith.constant 0 : i32
    %c0_i32_1 = arith.constant 0 : i32
    return %c0_i32, %c0_i32_0 : i32, i32
  }
  func.func @transform_5(%arg0: i32, %arg1: i32) -> (i32, i32) {
    %c0_i32 = arith.constant 0 : i32
    %c0_i32_0 = arith.constant 0 : i32
    %c0_i32_1 = arith.constant 0 : i32
    return %c0_i32, %c0_i32_0 : i32, i32
  }
  func.func @transform_6(%arg0: i32, %arg1: i32) -> (i32, i32, i32) {
    %c0_i32 = arith.constant 0 : i32
    %c0_i32_0 = arith.constant 0 : i32
    return %arg0, %arg1, %c0_i32 : i32, i32, i32
  }
}

module attributes {stable_mosaic.version = 11 : i64} {
  func.func @_edgeconv_fused_kernel(%arg0: i32, %arg1: i32, %arg2: memref<1x1x32xf32, #tpu.memory_space<vmem>>, %arg3: memref<1x32x64xbf16, #tpu.memory_space<vmem>>, %arg4: memref<1x32x64xbf16, #tpu.memory_space<vmem>>, %arg5: memref<64x1xbf16, #tpu.memory_space<vmem>>, %arg6: memref<64x1xbf16, #tpu.memory_space<vmem>>, %arg7: memref<1x1xf32, #tpu.memory_space<vmem>>, %arg8: memref<1x32x1xf32, #tpu.memory_space<vmem>>) attributes {dimension_semantics = [#tpu.dimension_semantics<parallel>, #tpu.dimension_semantics<parallel>], iteration_bounds = array<i64: 2, 1>, scalar_prefetch = 0 : i64, scratch_operands = 0 : i64, tpu.core_type = #tpu.core_type<tc>, window_params = [{transform_indices = @transform_0, window_bounds = array<i64: 1, 1, 32>}, {transform_indices = @transform_1, window_bounds = array<i64: 1, 32, 64>}, {transform_indices = @transform_2, window_bounds = array<i64: 1, 32, 64>}, {pipeline_mode = #tpu.pipeline_mode<synchronous>, transform_indices = @transform_3, window_bounds = array<i64: 64, 1>}, {pipeline_mode = #tpu.pipeline_mode<synchronous>, transform_indices = @transform_4, window_bounds = array<i64: 64, 1>}, {pipeline_mode = #tpu.pipeline_mode<synchronous>, transform_indices = @transform_5, window_bounds = array<i64: 1, 1>}, {transform_indices = @transform_6, window_bounds = array<i64: 1, 32, 1>}]} {
    %c0 = arith.constant 0 : index
    %c0_0 = arith.constant 0 : index
    %c0_1 = arith.constant 0 : index
    %0 = vector.load %arg3[%c0, %c0_0, %c0_1] : memref<1x32x64xbf16, #tpu.memory_space<vmem>>, vector<1x32x64xbf16>
    %1 = vector.shape_cast %0 : vector<1x32x64xbf16> to vector<32x64xbf16>
    %c0_2 = arith.constant 0 : index
    %c0_3 = arith.constant 0 : index
    %c0_4 = arith.constant 0 : index
    %2 = vector.load %arg4[%c0_2, %c0_3, %c0_4] : memref<1x32x64xbf16, #tpu.memory_space<vmem>>, vector<1x32x64xbf16>
    %3 = vector.shape_cast %2 : vector<1x32x64xbf16> to vector<32x64xbf16>
    %cst = arith.constant dense<0.000000e+00> : vector<32x32xf32>
    %4 = tpu.matmul %3, %1, %cst {dimension_numbers = #tpu.dot_dimension_numbers<[1], [1], [0], [0], [0, 0, 1, 0], [], []>} : vector<32x64xbf16>, vector<32x64xbf16>, vector<32x32xf32> -> vector<32x32xf32>
    %5 = arith.extf %3 : vector<32x64xbf16> to vector<32x64xf32>
    %6 = arith.mulf %5, %5 : vector<32x64xf32>
    %cst_5 = arith.constant dense<0.000000e+00> : vector<32xf32>
    %7 = vector.multi_reduction <add>, %6, %cst_5 [1] : vector<32x64xf32> to vector<32xf32>
    %8 = vector.shape_cast %7 : vector<32xf32> to vector<32x1xf32>
    %cst_6 = arith.constant 2.000000e+00 : f32
    %9 = vector.broadcast %cst_6 : f32 to vector<32x32xf32>
    %10 = arith.mulf %9, %4 : vector<32x32xf32>
    %11 = vector.broadcast %8 : vector<32x1xf32> to vector<32x32xf32>
    %12 = arith.subf %10, %11 : vector<32x32xf32>
    %c0_7 = arith.constant 0 : index
    %c0_8 = arith.constant 0 : index
    %c0_9 = arith.constant 0 : index
    %13 = vector.load %arg2[%c0_7, %c0_8, %c0_9] : memref<1x1x32xf32, #tpu.memory_space<vmem>>, vector<1x1x32xf32>
    %14 = vector.shape_cast %13 : vector<1x1x32xf32> to vector<1x32xf32>
    %15 = vector.broadcast %14 : vector<1x32xf32> to vector<32x32xf32>
    %16 = arith.subf %12, %15 : vector<32x32xf32>
    %c0_10 = arith.constant 0 : index
    %c0_11 = arith.constant 0 : index
    %17 = vector.load %arg6[%c0_10, %c0_11] : memref<64x1xbf16, #tpu.memory_space<vmem>>, vector<64x1xbf16>
    %cst_12 = arith.constant dense<0.000000e+00> : vector<32x1xf32>
    %18 = tpu.matmul %3, %17, %cst_12 {dimension_numbers = #tpu.dot_dimension_numbers<[1], [0], [0], [1], [0, 0, 1, 1], [], []>} : vector<32x64xbf16>, vector<64x1xbf16>, vector<32x1xf32> -> vector<32x1xf32>
    %c0_13 = arith.constant 0 : index
    %c0_14 = arith.constant 0 : index
    %19 = vector.load %arg7[%c0_13, %c0_14] : memref<1x1xf32, #tpu.memory_space<vmem>>, vector<1x1xf32>
    %20 = vector.broadcast %19 : vector<1x1xf32> to vector<32x1xf32>
    %21 = arith.addf %18, %20 : vector<32x1xf32>
    %22 = tpu.iota {dimensions = array<i32: 1>} : vector<32x32xi32>
    %cst_15 = arith.constant dense<0xFF800000> : vector<32xf32>
    %23 = vector.multi_reduction <maximumf>, %16, %cst_15 [1] : vector<32x32xf32> to vector<32xf32>
    %24 = vector.shape_cast %23 : vector<32xf32> to vector<32x1xf32>
    %25 = vector.broadcast %24 : vector<32x1xf32> to vector<32x32xf32>
    %26 = arith.cmpf oge, %16, %25 : vector<32x32xf32>
    %c32_i32 = arith.constant 32 : i32
    %27 = vector.broadcast %c32_i32 : i32 to vector<32x32xi32>
    %28 = arith.select %26, %22, %27 : vector<32x32xi1>, vector<32x32xi32>
    %cst_16 = arith.constant dense<2147483647> : vector<32xi32>
    %29 = vector.multi_reduction <minsi>, %28, %cst_16 [1] : vector<32x32xi32> to vector<32xi32>
    %30 = vector.shape_cast %29 : vector<32xi32> to vector<32x1xi32>
    %31 = vector.broadcast %30 : vector<32x1xi32> to vector<32x32xi32>
    %32 = arith.cmpi eq, %22, %31 : vector<32x32xi32>
    %cst_17 = arith.constant 1.000000e+00 : f32
    %cst_18 = arith.constant 0.000000e+00 : f32
    %33 = vector.broadcast %cst_17 : f32 to vector<32x32xf32>
    %34 = vector.broadcast %cst_18 : f32 to vector<32x32xf32>
    %35 = arith.select %32, %33, %34 : vector<32x32xi1>, vector<32x32xf32>
    %36 = arith.truncf %35 : vector<32x32xf32> to vector<32x32xbf16>
    %cst_19 = arith.constant dense<0.000000e+00> : vector<32x64xf32>
    %37 = tpu.matmul %36, %1, %cst_19 {dimension_numbers = #tpu.dot_dimension_numbers<[1], [0], [0], [1], [0, 0, 1, 1], [], []>} : vector<32x32xbf16>, vector<32x64xbf16>, vector<32x64xf32> -> vector<32x64xf32>
    %38 = arith.truncf %37 : vector<32x64xf32> to vector<32x64xbf16>
    %cst_20 = arith.constant 0xFF800000 : f32
    %39 = vector.broadcast %cst_20 : f32 to vector<32x32xf32>
    %40 = arith.select %32, %39, %16 : vector<32x32xi1>, vector<32x32xf32>
    %cst_21 = arith.constant dense<0xFF800000> : vector<32xf32>
    %41 = vector.multi_reduction <maximumf>, %40, %cst_21 [1] : vector<32x32xf32> to vector<32xf32>
    %42 = vector.shape_cast %41 : vector<32xf32> to vector<32x1xf32>
    %43 = vector.broadcast %42 : vector<32x1xf32> to vector<32x32xf32>
    %44 = arith.cmpf oge, %40, %43 : vector<32x32xf32>
    %c32_i32_22 = arith.constant 32 : i32
    %45 = vector.broadcast %c32_i32_22 : i32 to vector<32x32xi32>
    %46 = arith.select %44, %22, %45 : vector<32x32xi1>, vector<32x32xi32>
    %cst_23 = arith.constant dense<2147483647> : vector<32xi32>
    %47 = vector.multi_reduction <minsi>, %46, %cst_23 [1] : vector<32x32xi32> to vector<32xi32>
    %48 = vector.shape_cast %47 : vector<32xi32> to vector<32x1xi32>
    %49 = vector.broadcast %48 : vector<32x1xi32> to vector<32x32xi32>
    %50 = arith.cmpi eq, %22, %49 : vector<32x32xi32>
    %cst_24 = arith.constant 1.000000e+00 : f32
    %cst_25 = arith.constant 0.000000e+00 : f32
    %51 = vector.broadcast %cst_24 : f32 to vector<32x32xf32>
    %52 = vector.broadcast %cst_25 : f32 to vector<32x32xf32>
    %53 = arith.select %50, %51, %52 : vector<32x32xi1>, vector<32x32xf32>
    %54 = arith.truncf %53 : vector<32x32xf32> to vector<32x32xbf16>
    %cst_26 = arith.constant dense<0.000000e+00> : vector<32x64xf32>
    %55 = tpu.matmul %54, %1, %cst_26 {dimension_numbers = #tpu.dot_dimension_numbers<[1], [0], [0], [1], [0, 0, 1, 1], [], []>} : vector<32x32xbf16>, vector<32x64xbf16>, vector<32x64xf32> -> vector<32x64xf32>
    %56 = arith.truncf %55 : vector<32x64xf32> to vector<32x64xbf16>
    %cst_27 = arith.constant 0xFF800000 : f32
    %57 = vector.broadcast %cst_27 : f32 to vector<32x32xf32>
    %58 = arith.select %50, %57, %40 : vector<32x32xi1>, vector<32x32xf32>
    %cst_28 = arith.constant dense<0xFF800000> : vector<32xf32>
    %59 = vector.multi_reduction <maximumf>, %58, %cst_28 [1] : vector<32x32xf32> to vector<32xf32>
    %60 = vector.shape_cast %59 : vector<32xf32> to vector<32x1xf32>
    %61 = vector.broadcast %60 : vector<32x1xf32> to vector<32x32xf32>
    %62 = arith.cmpf oge, %58, %61 : vector<32x32xf32>
    %c32_i32_29 = arith.constant 32 : i32
    %63 = vector.broadcast %c32_i32_29 : i32 to vector<32x32xi32>
    %64 = arith.select %62, %22, %63 : vector<32x32xi1>, vector<32x32xi32>
    %cst_30 = arith.constant dense<2147483647> : vector<32xi32>
    %65 = vector.multi_reduction <minsi>, %64, %cst_30 [1] : vector<32x32xi32> to vector<32xi32>
    %66 = vector.shape_cast %65 : vector<32xi32> to vector<32x1xi32>
    %67 = vector.broadcast %66 : vector<32x1xi32> to vector<32x32xi32>
    %68 = arith.cmpi eq, %22, %67 : vector<32x32xi32>
    %cst_31 = arith.constant 1.000000e+00 : f32
    %cst_32 = arith.constant 0.000000e+00 : f32
    %69 = vector.broadcast %cst_31 : f32 to vector<32x32xf32>
    %70 = vector.broadcast %cst_32 : f32 to vector<32x32xf32>
    %71 = arith.select %68, %69, %70 : vector<32x32xi1>, vector<32x32xf32>
    %72 = arith.truncf %71 : vector<32x32xf32> to vector<32x32xbf16>
    %cst_33 = arith.constant dense<0.000000e+00> : vector<32x64xf32>
    %73 = tpu.matmul %72, %1, %cst_33 {dimension_numbers = #tpu.dot_dimension_numbers<[1], [0], [0], [1], [0, 0, 1, 1], [], []>} : vector<32x32xbf16>, vector<32x64xbf16>, vector<32x64xf32> -> vector<32x64xf32>
    %74 = arith.truncf %73 : vector<32x64xf32> to vector<32x64xbf16>
    %cst_34 = arith.constant 0xFF800000 : f32
    %75 = vector.broadcast %cst_34 : f32 to vector<32x32xf32>
    %76 = arith.select %68, %75, %58 : vector<32x32xi1>, vector<32x32xf32>
    %cst_35 = arith.constant dense<0xFF800000> : vector<32xf32>
    %77 = vector.multi_reduction <maximumf>, %76, %cst_35 [1] : vector<32x32xf32> to vector<32xf32>
    %78 = vector.shape_cast %77 : vector<32xf32> to vector<32x1xf32>
    %79 = vector.broadcast %78 : vector<32x1xf32> to vector<32x32xf32>
    %80 = arith.cmpf oge, %76, %79 : vector<32x32xf32>
    %c32_i32_36 = arith.constant 32 : i32
    %81 = vector.broadcast %c32_i32_36 : i32 to vector<32x32xi32>
    %82 = arith.select %80, %22, %81 : vector<32x32xi1>, vector<32x32xi32>
    %cst_37 = arith.constant dense<2147483647> : vector<32xi32>
    %83 = vector.multi_reduction <minsi>, %82, %cst_37 [1] : vector<32x32xi32> to vector<32xi32>
    %84 = vector.shape_cast %83 : vector<32xi32> to vector<32x1xi32>
    %85 = vector.broadcast %84 : vector<32x1xi32> to vector<32x32xi32>
    %86 = arith.cmpi eq, %22, %85 : vector<32x32xi32>
    %cst_38 = arith.constant 1.000000e+00 : f32
    %cst_39 = arith.constant 0.000000e+00 : f32
    %87 = vector.broadcast %cst_38 : f32 to vector<32x32xf32>
    %88 = vector.broadcast %cst_39 : f32 to vector<32x32xf32>
    %89 = arith.select %86, %87, %88 : vector<32x32xi1>, vector<32x32xf32>
    %90 = arith.truncf %89 : vector<32x32xf32> to vector<32x32xbf16>
    %cst_40 = arith.constant dense<0.000000e+00> : vector<32x64xf32>
    %91 = tpu.matmul %90, %1, %cst_40 {dimension_numbers = #tpu.dot_dimension_numbers<[1], [0], [0], [1], [0, 0, 1, 1], [], []>} : vector<32x32xbf16>, vector<32x64xbf16>, vector<32x64xf32> -> vector<32x64xf32>
    %92 = arith.truncf %91 : vector<32x64xf32> to vector<32x64xbf16>
    %93 = tpu.concatenate %38, %56, %74, %92 in 0 : vector<32x64xbf16>, vector<32x64xbf16>, vector<32x64xbf16>, vector<32x64xbf16> -> vector<128x64xbf16>
    %c0_41 = arith.constant 0 : index
    %c0_42 = arith.constant 0 : index
    %94 = vector.load %arg5[%c0_41, %c0_42] : memref<64x1xbf16, #tpu.memory_space<vmem>>, vector<64x1xbf16>
    %cst_43 = arith.constant dense<0.000000e+00> : vector<128x1xf32>
    %95 = tpu.matmul %93, %94, %cst_43 {dimension_numbers = #tpu.dot_dimension_numbers<[1], [0], [0], [1], [0, 0, 1, 1], [], []>} : vector<128x64xbf16>, vector<64x1xbf16>, vector<128x1xf32> -> vector<128x1xf32>
    %96 = vector.shape_cast %95 : vector<128x1xf32> to vector<4x32x1xf32>
    %97 = vector.extract_strided_slice %96 {offsets = [0, 0, 0], sizes = [1, 32, 1], strides = [1, 1, 1]} : vector<4x32x1xf32> to vector<1x32x1xf32>
    %98 = vector.shape_cast %97 : vector<1x32x1xf32> to vector<32x1xf32>
    %99 = vector.extract_strided_slice %96 {offsets = [1, 0, 0], sizes = [1, 32, 1], strides = [1, 1, 1]} : vector<4x32x1xf32> to vector<1x32x1xf32>
    %100 = vector.shape_cast %99 : vector<1x32x1xf32> to vector<32x1xf32>
    %101 = arith.maximumf %98, %100 : vector<32x1xf32>
    %102 = vector.extract_strided_slice %96 {offsets = [2, 0, 0], sizes = [1, 32, 1], strides = [1, 1, 1]} : vector<4x32x1xf32> to vector<1x32x1xf32>
    %103 = vector.shape_cast %102 : vector<1x32x1xf32> to vector<32x1xf32>
    %104 = arith.maximumf %101, %103 : vector<32x1xf32>
    %105 = vector.extract_strided_slice %96 {offsets = [3, 0, 0], sizes = [1, 32, 1], strides = [1, 1, 1]} : vector<4x32x1xf32> to vector<1x32x1xf32>
    %106 = vector.shape_cast %105 : vector<1x32x1xf32> to vector<32x1xf32>
    %107 = arith.maximumf %104, %106 : vector<32x1xf32>
    %108 = arith.addf %107, %21 : vector<32x1xf32>
    %cst_44 = arith.constant 0.000000e+00 : f32
    %109 = vector.broadcast %cst_44 : f32 to vector<32x1xf32>
    %110 = arith.maximumf %108, %109 : vector<32x1xf32>
    %c0_45 = arith.constant 0 : index
    %c0_46 = arith.constant 0 : index
    %c0_47 = arith.constant 0 : index
    %111 = vector.load %arg8[%c0_45, %c0_46, %c0_47] : memref<1x32x1xf32, #tpu.memory_space<vmem>>, vector<1x32x1xf32>
    %112 = vector.shape_cast %111 : vector<1x32x1xf32> to vector<32x1xf32>
    %113 = vector.shape_cast %110 : vector<32x1xf32> to vector<1x32x1xf32>
    tpu.vector_store %arg8[%c0_45, %c0_46, %c0_47], %113 {strides = array<i32>} : memref<1x32x1xf32, #tpu.memory_space<vmem>>, vector<1x32x1xf32>,
    return
  }
  func.func @transform_0(%arg0: i32, %arg1: i32) -> (i32, i32, i32) {
    %c0_i32 = arith.constant 0 : i32
    %c0_i32_0 = arith.constant 0 : i32
    %c0_i32_1 = arith.constant 0 : i32
    return %arg0, %c0_i32, %c0_i32_0 : i32, i32, i32
  }
  func.func @transform_1(%arg0: i32, %arg1: i32) -> (i32, i32, i32) {
    %c0_i32 = arith.constant 0 : i32
    %c0_i32_0 = arith.constant 0 : i32
    %c0_i32_1 = arith.constant 0 : i32
    return %arg0, %c0_i32, %c0_i32_0 : i32, i32, i32
  }
  func.func @transform_2(%arg0: i32, %arg1: i32) -> (i32, i32, i32) {
    %c0_i32 = arith.constant 0 : i32
    %c0_i32_0 = arith.constant 0 : i32
    return %arg0, %arg1, %c0_i32 : i32, i32, i32
  }
  func.func @transform_3(%arg0: i32, %arg1: i32) -> (i32, i32) {
    %c0_i32 = arith.constant 0 : i32
    %c0_i32_0 = arith.constant 0 : i32
    %c0_i32_1 = arith.constant 0 : i32
    return %c0_i32, %c0_i32_0 : i32, i32
  }
  func.func @transform_4(%arg0: i32, %arg1: i32) -> (i32, i32) {
    %c0_i32 = arith.constant 0 : i32
    %c0_i32_0 = arith.constant 0 : i32
    %c0_i32_1 = arith.constant 0 : i32
    return %c0_i32, %c0_i32_0 : i32, i32
  }
  func.func @transform_5(%arg0: i32, %arg1: i32) -> (i32, i32) {
    %c0_i32 = arith.constant 0 : i32
    %c0_i32_0 = arith.constant 0 : i32
    %c0_i32_1 = arith.constant 0 : i32
    return %c0_i32, %c0_i32_0 : i32, i32
  }
  func.func @transform_6(%arg0: i32, %arg1: i32) -> (i32, i32, i32) {
    %c0_i32 = arith.constant 0 : i32
    %c0_i32_0 = arith.constant 0 : i32
    return %arg0, %arg1, %c0_i32 : i32, i32, i32
  }
}

module attributes {stable_mosaic.version = 11 : i64} {
  func.func @_edgeconv_fused_kernel(%arg0: i32, %arg1: i32, %arg2: memref<1x1x16xf32, #tpu.memory_space<vmem>>, %arg3: memref<1x16x64xbf16, #tpu.memory_space<vmem>>, %arg4: memref<1x16x64xbf16, #tpu.memory_space<vmem>>, %arg5: memref<64x128xbf16, #tpu.memory_space<vmem>>, %arg6: memref<64x128xbf16, #tpu.memory_space<vmem>>, %arg7: memref<1x128xf32, #tpu.memory_space<vmem>>, %arg8: memref<1x16x128xbf16, #tpu.memory_space<vmem>>) attributes {dimension_semantics = [#tpu.dimension_semantics<parallel>, #tpu.dimension_semantics<parallel>], iteration_bounds = array<i64: 2, 1>, scalar_prefetch = 0 : i64, scratch_operands = 0 : i64, tpu.core_type = #tpu.core_type<tc>, window_params = [{transform_indices = @transform_0, window_bounds = array<i64: 1, 1, 16>}, {transform_indices = @transform_1, window_bounds = array<i64: 1, 16, 64>}, {transform_indices = @transform_2, window_bounds = array<i64: 1, 16, 64>}, {pipeline_mode = #tpu.pipeline_mode<synchronous>, transform_indices = @transform_3, window_bounds = array<i64: 64, 128>}, {pipeline_mode = #tpu.pipeline_mode<synchronous>, transform_indices = @transform_4, window_bounds = array<i64: 64, 128>}, {pipeline_mode = #tpu.pipeline_mode<synchronous>, transform_indices = @transform_5, window_bounds = array<i64: 1, 128>}, {transform_indices = @transform_6, window_bounds = array<i64: 1, 16, 128>}]} {
    %c0 = arith.constant 0 : index
    %c0_0 = arith.constant 0 : index
    %c0_1 = arith.constant 0 : index
    %0 = vector.load %arg3[%c0, %c0_0, %c0_1] : memref<1x16x64xbf16, #tpu.memory_space<vmem>>, vector<1x16x64xbf16>
    %1 = vector.shape_cast %0 : vector<1x16x64xbf16> to vector<16x64xbf16>
    %c0_2 = arith.constant 0 : index
    %c0_3 = arith.constant 0 : index
    %c0_4 = arith.constant 0 : index
    %2 = vector.load %arg4[%c0_2, %c0_3, %c0_4] : memref<1x16x64xbf16, #tpu.memory_space<vmem>>, vector<1x16x64xbf16>
    %3 = vector.shape_cast %2 : vector<1x16x64xbf16> to vector<16x64xbf16>
    %cst = arith.constant dense<0.000000e+00> : vector<16x16xf32>
    %4 = tpu.matmul %3, %1, %cst {dimension_numbers = #tpu.dot_dimension_numbers<[1], [1], [0], [0], [0, 0, 1, 0], [], []>} : vector<16x64xbf16>, vector<16x64xbf16>, vector<16x16xf32> -> vector<16x16xf32>
    %5 = arith.extf %3 : vector<16x64xbf16> to vector<16x64xf32>
    %6 = arith.mulf %5, %5 : vector<16x64xf32>
    %cst_5 = arith.constant dense<0.000000e+00> : vector<16xf32>
    %7 = vector.multi_reduction <add>, %6, %cst_5 [1] : vector<16x64xf32> to vector<16xf32>
    %8 = vector.shape_cast %7 : vector<16xf32> to vector<16x1xf32>
    %cst_6 = arith.constant 2.000000e+00 : f32
    %9 = vector.broadcast %cst_6 : f32 to vector<16x16xf32>
    %10 = arith.mulf %9, %4 : vector<16x16xf32>
    %11 = vector.broadcast %8 : vector<16x1xf32> to vector<16x16xf32>
    %12 = arith.subf %10, %11 : vector<16x16xf32>
    %c0_7 = arith.constant 0 : index
    %c0_8 = arith.constant 0 : index
    %c0_9 = arith.constant 0 : index
    %13 = vector.load %arg2[%c0_7, %c0_8, %c0_9] : memref<1x1x16xf32, #tpu.memory_space<vmem>>, vector<1x1x16xf32>
    %14 = vector.shape_cast %13 : vector<1x1x16xf32> to vector<1x16xf32>
    %15 = vector.broadcast %14 : vector<1x16xf32> to vector<16x16xf32>
    %16 = arith.subf %12, %15 : vector<16x16xf32>
    %c0_10 = arith.constant 0 : index
    %c0_11 = arith.constant 0 : index
    %17 = vector.load %arg6[%c0_10, %c0_11] : memref<64x128xbf16, #tpu.memory_space<vmem>>, vector<64x128xbf16>
    %cst_12 = arith.constant dense<0.000000e+00> : vector<16x128xf32>
    %18 = tpu.matmul %3, %17, %cst_12 {dimension_numbers = #tpu.dot_dimension_numbers<[1], [0], [0], [1], [0, 0, 1, 1], [], []>} : vector<16x64xbf16>, vector<64x128xbf16>, vector<16x128xf32> -> vector<16x128xf32>
    %c0_13 = arith.constant 0 : index
    %c0_14 = arith.constant 0 : index
    %19 = vector.load %arg7[%c0_13, %c0_14] : memref<1x128xf32, #tpu.memory_space<vmem>>, vector<1x128xf32>
    %20 = vector.broadcast %19 : vector<1x128xf32> to vector<16x128xf32>
    %21 = arith.addf %18, %20 : vector<16x128xf32>
    %22 = tpu.iota {dimensions = array<i32: 1>} : vector<16x16xi32>
    %cst_15 = arith.constant dense<0xFF800000> : vector<16xf32>
    %23 = vector.multi_reduction <maximumf>, %16, %cst_15 [1] : vector<16x16xf32> to vector<16xf32>
    %24 = vector.shape_cast %23 : vector<16xf32> to vector<16x1xf32>
    %25 = vector.broadcast %24 : vector<16x1xf32> to vector<16x16xf32>
    %26 = arith.cmpf oge, %16, %25 : vector<16x16xf32>
    %c16_i32 = arith.constant 16 : i32
    %27 = vector.broadcast %c16_i32 : i32 to vector<16x16xi32>
    %28 = arith.select %26, %22, %27 : vector<16x16xi1>, vector<16x16xi32>
    %cst_16 = arith.constant dense<2147483647> : vector<16xi32>
    %29 = vector.multi_reduction <minsi>, %28, %cst_16 [1] : vector<16x16xi32> to vector<16xi32>
    %30 = vector.shape_cast %29 : vector<16xi32> to vector<16x1xi32>
    %31 = vector.broadcast %30 : vector<16x1xi32> to vector<16x16xi32>
    %32 = arith.cmpi eq, %22, %31 : vector<16x16xi32>
    %cst_17 = arith.constant 1.000000e+00 : f32
    %cst_18 = arith.constant 0.000000e+00 : f32
    %33 = vector.broadcast %cst_17 : f32 to vector<16x16xf32>
    %34 = vector.broadcast %cst_18 : f32 to vector<16x16xf32>
    %35 = arith.select %32, %33, %34 : vector<16x16xi1>, vector<16x16xf32>
    %36 = arith.truncf %35 : vector<16x16xf32> to vector<16x16xbf16>
    %cst_19 = arith.constant dense<0.000000e+00> : vector<16x64xf32>
    %37 = tpu.matmul %36, %1, %cst_19 {dimension_numbers = #tpu.dot_dimension_numbers<[1], [0], [0], [1], [0, 0, 1, 1], [], []>} : vector<16x16xbf16>, vector<16x64xbf16>, vector<16x64xf32> -> vector<16x64xf32>
    %38 = arith.truncf %37 : vector<16x64xf32> to vector<16x64xbf16>
    %cst_20 = arith.constant 0xFF800000 : f32
    %39 = vector.broadcast %cst_20 : f32 to vector<16x16xf32>
    %40 = arith.select %32, %39, %16 : vector<16x16xi1>, vector<16x16xf32>
    %cst_21 = arith.constant dense<0xFF800000> : vector<16xf32>
    %41 = vector.multi_reduction <maximumf>, %40, %cst_21 [1] : vector<16x16xf32> to vector<16xf32>
    %42 = vector.shape_cast %41 : vector<16xf32> to vector<16x1xf32>
    %43 = vector.broadcast %42 : vector<16x1xf32> to vector<16x16xf32>
    %44 = arith.cmpf oge, %40, %43 : vector<16x16xf32>
    %c16_i32_22 = arith.constant 16 : i32
    %45 = vector.broadcast %c16_i32_22 : i32 to vector<16x16xi32>
    %46 = arith.select %44, %22, %45 : vector<16x16xi1>, vector<16x16xi32>
    %cst_23 = arith.constant dense<2147483647> : vector<16xi32>
    %47 = vector.multi_reduction <minsi>, %46, %cst_23 [1] : vector<16x16xi32> to vector<16xi32>
    %48 = vector.shape_cast %47 : vector<16xi32> to vector<16x1xi32>
    %49 = vector.broadcast %48 : vector<16x1xi32> to vector<16x16xi32>
    %50 = arith.cmpi eq, %22, %49 : vector<16x16xi32>
    %cst_24 = arith.constant 1.000000e+00 : f32
    %cst_25 = arith.constant 0.000000e+00 : f32
    %51 = vector.broadcast %cst_24 : f32 to vector<16x16xf32>
    %52 = vector.broadcast %cst_25 : f32 to vector<16x16xf32>
    %53 = arith.select %50, %51, %52 : vector<16x16xi1>, vector<16x16xf32>
    %54 = arith.truncf %53 : vector<16x16xf32> to vector<16x16xbf16>
    %cst_26 = arith.constant dense<0.000000e+00> : vector<16x64xf32>
    %55 = tpu.matmul %54, %1, %cst_26 {dimension_numbers = #tpu.dot_dimension_numbers<[1], [0], [0], [1], [0, 0, 1, 1], [], []>} : vector<16x16xbf16>, vector<16x64xbf16>, vector<16x64xf32> -> vector<16x64xf32>
    %56 = arith.truncf %55 : vector<16x64xf32> to vector<16x64xbf16>
    %cst_27 = arith.constant 0xFF800000 : f32
    %57 = vector.broadcast %cst_27 : f32 to vector<16x16xf32>
    %58 = arith.select %50, %57, %40 : vector<16x16xi1>, vector<16x16xf32>
    %cst_28 = arith.constant dense<0xFF800000> : vector<16xf32>
    %59 = vector.multi_reduction <maximumf>, %58, %cst_28 [1] : vector<16x16xf32> to vector<16xf32>
    %60 = vector.shape_cast %59 : vector<16xf32> to vector<16x1xf32>
    %61 = vector.broadcast %60 : vector<16x1xf32> to vector<16x16xf32>
    %62 = arith.cmpf oge, %58, %61 : vector<16x16xf32>
    %c16_i32_29 = arith.constant 16 : i32
    %63 = vector.broadcast %c16_i32_29 : i32 to vector<16x16xi32>
    %64 = arith.select %62, %22, %63 : vector<16x16xi1>, vector<16x16xi32>
    %cst_30 = arith.constant dense<2147483647> : vector<16xi32>
    %65 = vector.multi_reduction <minsi>, %64, %cst_30 [1] : vector<16x16xi32> to vector<16xi32>
    %66 = vector.shape_cast %65 : vector<16xi32> to vector<16x1xi32>
    %67 = vector.broadcast %66 : vector<16x1xi32> to vector<16x16xi32>
    %68 = arith.cmpi eq, %22, %67 : vector<16x16xi32>
    %cst_31 = arith.constant 1.000000e+00 : f32
    %cst_32 = arith.constant 0.000000e+00 : f32
    %69 = vector.broadcast %cst_31 : f32 to vector<16x16xf32>
    %70 = vector.broadcast %cst_32 : f32 to vector<16x16xf32>
    %71 = arith.select %68, %69, %70 : vector<16x16xi1>, vector<16x16xf32>
    %72 = arith.truncf %71 : vector<16x16xf32> to vector<16x16xbf16>
    %cst_33 = arith.constant dense<0.000000e+00> : vector<16x64xf32>
    %73 = tpu.matmul %72, %1, %cst_33 {dimension_numbers = #tpu.dot_dimension_numbers<[1], [0], [0], [1], [0, 0, 1, 1], [], []>} : vector<16x16xbf16>, vector<16x64xbf16>, vector<16x64xf32> -> vector<16x64xf32>
    %74 = arith.truncf %73 : vector<16x64xf32> to vector<16x64xbf16>
    %cst_34 = arith.constant 0xFF800000 : f32
    %75 = vector.broadcast %cst_34 : f32 to vector<16x16xf32>
    %76 = arith.select %68, %75, %58 : vector<16x16xi1>, vector<16x16xf32>
    %cst_35 = arith.constant dense<0xFF800000> : vector<16xf32>
    %77 = vector.multi_reduction <maximumf>, %76, %cst_35 [1] : vector<16x16xf32> to vector<16xf32>
    %78 = vector.shape_cast %77 : vector<16xf32> to vector<16x1xf32>
    %79 = vector.broadcast %78 : vector<16x1xf32> to vector<16x16xf32>
    %80 = arith.cmpf oge, %76, %79 : vector<16x16xf32>
    %c16_i32_36 = arith.constant 16 : i32
    %81 = vector.broadcast %c16_i32_36 : i32 to vector<16x16xi32>
    %82 = arith.select %80, %22, %81 : vector<16x16xi1>, vector<16x16xi32>
    %cst_37 = arith.constant dense<2147483647> : vector<16xi32>
    %83 = vector.multi_reduction <minsi>, %82, %cst_37 [1] : vector<16x16xi32> to vector<16xi32>
    %84 = vector.shape_cast %83 : vector<16xi32> to vector<16x1xi32>
    %85 = vector.broadcast %84 : vector<16x1xi32> to vector<16x16xi32>
    %86 = arith.cmpi eq, %22, %85 : vector<16x16xi32>
    %cst_38 = arith.constant 1.000000e+00 : f32
    %cst_39 = arith.constant 0.000000e+00 : f32
    %87 = vector.broadcast %cst_38 : f32 to vector<16x16xf32>
    %88 = vector.broadcast %cst_39 : f32 to vector<16x16xf32>
    %89 = arith.select %86, %87, %88 : vector<16x16xi1>, vector<16x16xf32>
    %90 = arith.truncf %89 : vector<16x16xf32> to vector<16x16xbf16>
    %cst_40 = arith.constant dense<0.000000e+00> : vector<16x64xf32>
    %91 = tpu.matmul %90, %1, %cst_40 {dimension_numbers = #tpu.dot_dimension_numbers<[1], [0], [0], [1], [0, 0, 1, 1], [], []>} : vector<16x16xbf16>, vector<16x64xbf16>, vector<16x64xf32> -> vector<16x64xf32>
    %92 = arith.truncf %91 : vector<16x64xf32> to vector<16x64xbf16>
    %93 = tpu.concatenate %38, %56, %74, %92 in 0 : vector<16x64xbf16>, vector<16x64xbf16>, vector<16x64xbf16>, vector<16x64xbf16> -> vector<64x64xbf16>
    %c0_41 = arith.constant 0 : index
    %c0_42 = arith.constant 0 : index
    %94 = vector.load %arg5[%c0_41, %c0_42] : memref<64x128xbf16, #tpu.memory_space<vmem>>, vector<64x128xbf16>
    %cst_43 = arith.constant dense<0.000000e+00> : vector<64x128xf32>
    %95 = tpu.matmul %93, %94, %cst_43 {dimension_numbers = #tpu.dot_dimension_numbers<[1], [0], [0], [1], [0, 0, 1, 1], [], []>} : vector<64x64xbf16>, vector<64x128xbf16>, vector<64x128xf32> -> vector<64x128xf32>
    %96 = vector.shape_cast %95 : vector<64x128xf32> to vector<4x16x128xf32>
    %97 = vector.extract_strided_slice %96 {offsets = [0, 0, 0], sizes = [1, 16, 128], strides = [1, 1, 1]} : vector<4x16x128xf32> to vector<1x16x128xf32>
    %98 = vector.shape_cast %97 : vector<1x16x128xf32> to vector<16x128xf32>
    %99 = vector.extract_strided_slice %96 {offsets = [1, 0, 0], sizes = [1, 16, 128], strides = [1, 1, 1]} : vector<4x16x128xf32> to vector<1x16x128xf32>
    %100 = vector.shape_cast %99 : vector<1x16x128xf32> to vector<16x128xf32>
    %101 = arith.maximumf %98, %100 : vector<16x128xf32>
    %102 = vector.extract_strided_slice %96 {offsets = [2, 0, 0], sizes = [1, 16, 128], strides = [1, 1, 1]} : vector<4x16x128xf32> to vector<1x16x128xf32>
    %103 = vector.shape_cast %102 : vector<1x16x128xf32> to vector<16x128xf32>
    %104 = arith.maximumf %101, %103 : vector<16x128xf32>
    %105 = vector.extract_strided_slice %96 {offsets = [3, 0, 0], sizes = [1, 16, 128], strides = [1, 1, 1]} : vector<4x16x128xf32> to vector<1x16x128xf32>
    %106 = vector.shape_cast %105 : vector<1x16x128xf32> to vector<16x128xf32>
    %107 = arith.maximumf %104, %106 : vector<16x128xf32>
    %108 = arith.addf %107, %21 : vector<16x128xf32>
    %cst_44 = arith.constant 0.000000e+00 : f32
    %109 = vector.broadcast %cst_44 : f32 to vector<16x128xf32>
    %110 = arith.cmpf oge, %108, %109 : vector<16x128xf32>
    %cst_45 = arith.constant 2.000000e-01 : f32
    %111 = vector.broadcast %cst_45 : f32 to vector<16x128xf32>
    %112 = arith.mulf %111, %108 : vector<16x128xf32>
    %113 = arith.select %110, %108, %112 : vector<16x128xi1>, vector<16x128xf32>
    %114 = arith.truncf %113 : vector<16x128xf32> to vector<16x128xbf16>
    %c0_46 = arith.constant 0 : index
    %c0_47 = arith.constant 0 : index
    %c0_48 = arith.constant 0 : index
    %115 = vector.load %arg8[%c0_46, %c0_47, %c0_48] : memref<1x16x128xbf16, #tpu.memory_space<vmem>>, vector<1x16x128xbf16>
    %116 = vector.shape_cast %115 : vector<1x16x128xbf16> to vector<16x128xbf16>
    %117 = vector.shape_cast %114 : vector<16x128xbf16> to vector<1x16x128xbf16>
    tpu.vector_store %arg8[%c0_46, %c0_47, %c0_48], %117 {strides = array<i32>} : memref<1x16x128xbf16, #tpu.memory_space<vmem>>, vector<1x16x128xbf16>,
    return
  }
  func.func @transform_0(%arg0: i32, %arg1: i32) -> (i32, i32, i32) {
    %c0_i32 = arith.constant 0 : i32
    %c0_i32_0 = arith.constant 0 : i32
    %c0_i32_1 = arith.constant 0 : i32
    return %arg0, %c0_i32, %c0_i32_0 : i32, i32, i32
  }
  func.func @transform_1(%arg0: i32, %arg1: i32) -> (i32, i32, i32) {
    %c0_i32 = arith.constant 0 : i32
    %c0_i32_0 = arith.constant 0 : i32
    %c0_i32_1 = arith.constant 0 : i32
    return %arg0, %c0_i32, %c0_i32_0 : i32, i32, i32
  }
  func.func @transform_2(%arg0: i32, %arg1: i32) -> (i32, i32, i32) {
    %c0_i32 = arith.constant 0 : i32
    %c0_i32_0 = arith.constant 0 : i32
    return %arg0, %arg1, %c0_i32 : i32, i32, i32
  }
  func.func @transform_3(%arg0: i32, %arg1: i32) -> (i32, i32) {
    %c0_i32 = arith.constant 0 : i32
    %c0_i32_0 = arith.constant 0 : i32
    %c0_i32_1 = arith.constant 0 : i32
    return %c0_i32, %c0_i32_0 : i32, i32
  }
  func.func @transform_4(%arg0: i32, %arg1: i32) -> (i32, i32) {
    %c0_i32 = arith.constant 0 : i32
    %c0_i32_0 = arith.constant 0 : i32
    %c0_i32_1 = arith.constant 0 : i32
    return %c0_i32, %c0_i32_0 : i32, i32
  }
  func.func @transform_5(%arg0: i32, %arg1: i32) -> (i32, i32) {
    %c0_i32 = arith.constant 0 : i32
    %c0_i32_0 = arith.constant 0 : i32
    %c0_i32_1 = arith.constant 0 : i32
    return %c0_i32, %c0_i32_0 : i32, i32
  }
  func.func @transform_6(%arg0: i32, %arg1: i32) -> (i32, i32, i32) {
    %c0_i32 = arith.constant 0 : i32
    %c0_i32_0 = arith.constant 0 : i32
    return %arg0, %arg1, %c0_i32 : i32, i32, i32
  }
}

module attributes {stable_mosaic.version = 11 : i64} {
  func.func @_edgeconv_fused_kernel(%arg0: i32, %arg1: i32, %arg2: memref<1x1x16xf32, #tpu.memory_space<vmem>>, %arg3: memref<1x16x128xbf16, #tpu.memory_space<vmem>>, %arg4: memref<1x16x128xbf16, #tpu.memory_space<vmem>>, %arg5: memref<128x1xbf16, #tpu.memory_space<vmem>>, %arg6: memref<128x1xbf16, #tpu.memory_space<vmem>>, %arg7: memref<1x1xf32, #tpu.memory_space<vmem>>, %arg8: memref<1x16x1xf32, #tpu.memory_space<vmem>>) attributes {dimension_semantics = [#tpu.dimension_semantics<parallel>, #tpu.dimension_semantics<parallel>], iteration_bounds = array<i64: 2, 1>, scalar_prefetch = 0 : i64, scratch_operands = 0 : i64, tpu.core_type = #tpu.core_type<tc>, window_params = [{transform_indices = @transform_0, window_bounds = array<i64: 1, 1, 16>}, {transform_indices = @transform_1, window_bounds = array<i64: 1, 16, 128>}, {transform_indices = @transform_2, window_bounds = array<i64: 1, 16, 128>}, {pipeline_mode = #tpu.pipeline_mode<synchronous>, transform_indices = @transform_3, window_bounds = array<i64: 128, 1>}, {pipeline_mode = #tpu.pipeline_mode<synchronous>, transform_indices = @transform_4, window_bounds = array<i64: 128, 1>}, {pipeline_mode = #tpu.pipeline_mode<synchronous>, transform_indices = @transform_5, window_bounds = array<i64: 1, 1>}, {transform_indices = @transform_6, window_bounds = array<i64: 1, 16, 1>}]} {
    %c0 = arith.constant 0 : index
    %c0_0 = arith.constant 0 : index
    %c0_1 = arith.constant 0 : index
    %0 = vector.load %arg3[%c0, %c0_0, %c0_1] : memref<1x16x128xbf16, #tpu.memory_space<vmem>>, vector<1x16x128xbf16>
    %1 = vector.shape_cast %0 : vector<1x16x128xbf16> to vector<16x128xbf16>
    %c0_2 = arith.constant 0 : index
    %c0_3 = arith.constant 0 : index
    %c0_4 = arith.constant 0 : index
    %2 = vector.load %arg4[%c0_2, %c0_3, %c0_4] : memref<1x16x128xbf16, #tpu.memory_space<vmem>>, vector<1x16x128xbf16>
    %3 = vector.shape_cast %2 : vector<1x16x128xbf16> to vector<16x128xbf16>
    %cst = arith.constant dense<0.000000e+00> : vector<16x16xf32>
    %4 = tpu.matmul %3, %1, %cst {dimension_numbers = #tpu.dot_dimension_numbers<[1], [1], [0], [0], [0, 0, 1, 0], [], []>} : vector<16x128xbf16>, vector<16x128xbf16>, vector<16x16xf32> -> vector<16x16xf32>
    %5 = arith.extf %3 : vector<16x128xbf16> to vector<16x128xf32>
    %6 = arith.mulf %5, %5 : vector<16x128xf32>
    %cst_5 = arith.constant dense<0.000000e+00> : vector<16xf32>
    %7 = vector.multi_reduction <add>, %6, %cst_5 [1] : vector<16x128xf32> to vector<16xf32>
    %8 = vector.shape_cast %7 : vector<16xf32> to vector<16x1xf32>
    %cst_6 = arith.constant 2.000000e+00 : f32
    %9 = vector.broadcast %cst_6 : f32 to vector<16x16xf32>
    %10 = arith.mulf %9, %4 : vector<16x16xf32>
    %11 = vector.broadcast %8 : vector<16x1xf32> to vector<16x16xf32>
    %12 = arith.subf %10, %11 : vector<16x16xf32>
    %c0_7 = arith.constant 0 : index
    %c0_8 = arith.constant 0 : index
    %c0_9 = arith.constant 0 : index
    %13 = vector.load %arg2[%c0_7, %c0_8, %c0_9] : memref<1x1x16xf32, #tpu.memory_space<vmem>>, vector<1x1x16xf32>
    %14 = vector.shape_cast %13 : vector<1x1x16xf32> to vector<1x16xf32>
    %15 = vector.broadcast %14 : vector<1x16xf32> to vector<16x16xf32>
    %16 = arith.subf %12, %15 : vector<16x16xf32>
    %c0_10 = arith.constant 0 : index
    %c0_11 = arith.constant 0 : index
    %17 = vector.load %arg6[%c0_10, %c0_11] : memref<128x1xbf16, #tpu.memory_space<vmem>>, vector<128x1xbf16>
    %cst_12 = arith.constant dense<0.000000e+00> : vector<16x1xf32>
    %18 = tpu.matmul %3, %17, %cst_12 {dimension_numbers = #tpu.dot_dimension_numbers<[1], [0], [0], [1], [0, 0, 1, 1], [], []>} : vector<16x128xbf16>, vector<128x1xbf16>, vector<16x1xf32> -> vector<16x1xf32>
    %c0_13 = arith.constant 0 : index
    %c0_14 = arith.constant 0 : index
    %19 = vector.load %arg7[%c0_13, %c0_14] : memref<1x1xf32, #tpu.memory_space<vmem>>, vector<1x1xf32>
    %20 = vector.broadcast %19 : vector<1x1xf32> to vector<16x1xf32>
    %21 = arith.addf %18, %20 : vector<16x1xf32>
    %22 = tpu.iota {dimensions = array<i32: 1>} : vector<16x16xi32>
    %cst_15 = arith.constant dense<0xFF800000> : vector<16xf32>
    %23 = vector.multi_reduction <maximumf>, %16, %cst_15 [1] : vector<16x16xf32> to vector<16xf32>
    %24 = vector.shape_cast %23 : vector<16xf32> to vector<16x1xf32>
    %25 = vector.broadcast %24 : vector<16x1xf32> to vector<16x16xf32>
    %26 = arith.cmpf oge, %16, %25 : vector<16x16xf32>
    %c16_i32 = arith.constant 16 : i32
    %27 = vector.broadcast %c16_i32 : i32 to vector<16x16xi32>
    %28 = arith.select %26, %22, %27 : vector<16x16xi1>, vector<16x16xi32>
    %cst_16 = arith.constant dense<2147483647> : vector<16xi32>
    %29 = vector.multi_reduction <minsi>, %28, %cst_16 [1] : vector<16x16xi32> to vector<16xi32>
    %30 = vector.shape_cast %29 : vector<16xi32> to vector<16x1xi32>
    %31 = vector.broadcast %30 : vector<16x1xi32> to vector<16x16xi32>
    %32 = arith.cmpi eq, %22, %31 : vector<16x16xi32>
    %cst_17 = arith.constant 1.000000e+00 : f32
    %cst_18 = arith.constant 0.000000e+00 : f32
    %33 = vector.broadcast %cst_17 : f32 to vector<16x16xf32>
    %34 = vector.broadcast %cst_18 : f32 to vector<16x16xf32>
    %35 = arith.select %32, %33, %34 : vector<16x16xi1>, vector<16x16xf32>
    %36 = arith.truncf %35 : vector<16x16xf32> to vector<16x16xbf16>
    %cst_19 = arith.constant dense<0.000000e+00> : vector<16x128xf32>
    %37 = tpu.matmul %36, %1, %cst_19 {dimension_numbers = #tpu.dot_dimension_numbers<[1], [0], [0], [1], [0, 0, 1, 1], [], []>} : vector<16x16xbf16>, vector<16x128xbf16>, vector<16x128xf32> -> vector<16x128xf32>
    %38 = arith.truncf %37 : vector<16x128xf32> to vector<16x128xbf16>
    %cst_20 = arith.constant 0xFF800000 : f32
    %39 = vector.broadcast %cst_20 : f32 to vector<16x16xf32>
    %40 = arith.select %32, %39, %16 : vector<16x16xi1>, vector<16x16xf32>
    %cst_21 = arith.constant dense<0xFF800000> : vector<16xf32>
    %41 = vector.multi_reduction <maximumf>, %40, %cst_21 [1] : vector<16x16xf32> to vector<16xf32>
    %42 = vector.shape_cast %41 : vector<16xf32> to vector<16x1xf32>
    %43 = vector.broadcast %42 : vector<16x1xf32> to vector<16x16xf32>
    %44 = arith.cmpf oge, %40, %43 : vector<16x16xf32>
    %c16_i32_22 = arith.constant 16 : i32
    %45 = vector.broadcast %c16_i32_22 : i32 to vector<16x16xi32>
    %46 = arith.select %44, %22, %45 : vector<16x16xi1>, vector<16x16xi32>
    %cst_23 = arith.constant dense<2147483647> : vector<16xi32>
    %47 = vector.multi_reduction <minsi>, %46, %cst_23 [1] : vector<16x16xi32> to vector<16xi32>
    %48 = vector.shape_cast %47 : vector<16xi32> to vector<16x1xi32>
    %49 = vector.broadcast %48 : vector<16x1xi32> to vector<16x16xi32>
    %50 = arith.cmpi eq, %22, %49 : vector<16x16xi32>
    %cst_24 = arith.constant 1.000000e+00 : f32
    %cst_25 = arith.constant 0.000000e+00 : f32
    %51 = vector.broadcast %cst_24 : f32 to vector<16x16xf32>
    %52 = vector.broadcast %cst_25 : f32 to vector<16x16xf32>
    %53 = arith.select %50, %51, %52 : vector<16x16xi1>, vector<16x16xf32>
    %54 = arith.truncf %53 : vector<16x16xf32> to vector<16x16xbf16>
    %cst_26 = arith.constant dense<0.000000e+00> : vector<16x128xf32>
    %55 = tpu.matmul %54, %1, %cst_26 {dimension_numbers = #tpu.dot_dimension_numbers<[1], [0], [0], [1], [0, 0, 1, 1], [], []>} : vector<16x16xbf16>, vector<16x128xbf16>, vector<16x128xf32> -> vector<16x128xf32>
    %56 = arith.truncf %55 : vector<16x128xf32> to vector<16x128xbf16>
    %cst_27 = arith.constant 0xFF800000 : f32
    %57 = vector.broadcast %cst_27 : f32 to vector<16x16xf32>
    %58 = arith.select %50, %57, %40 : vector<16x16xi1>, vector<16x16xf32>
    %cst_28 = arith.constant dense<0xFF800000> : vector<16xf32>
    %59 = vector.multi_reduction <maximumf>, %58, %cst_28 [1] : vector<16x16xf32> to vector<16xf32>
    %60 = vector.shape_cast %59 : vector<16xf32> to vector<16x1xf32>
    %61 = vector.broadcast %60 : vector<16x1xf32> to vector<16x16xf32>
    %62 = arith.cmpf oge, %58, %61 : vector<16x16xf32>
    %c16_i32_29 = arith.constant 16 : i32
    %63 = vector.broadcast %c16_i32_29 : i32 to vector<16x16xi32>
    %64 = arith.select %62, %22, %63 : vector<16x16xi1>, vector<16x16xi32>
    %cst_30 = arith.constant dense<2147483647> : vector<16xi32>
    %65 = vector.multi_reduction <minsi>, %64, %cst_30 [1] : vector<16x16xi32> to vector<16xi32>
    %66 = vector.shape_cast %65 : vector<16xi32> to vector<16x1xi32>
    %67 = vector.broadcast %66 : vector<16x1xi32> to vector<16x16xi32>
    %68 = arith.cmpi eq, %22, %67 : vector<16x16xi32>
    %cst_31 = arith.constant 1.000000e+00 : f32
    %cst_32 = arith.constant 0.000000e+00 : f32
    %69 = vector.broadcast %cst_31 : f32 to vector<16x16xf32>
    %70 = vector.broadcast %cst_32 : f32 to vector<16x16xf32>
    %71 = arith.select %68, %69, %70 : vector<16x16xi1>, vector<16x16xf32>
    %72 = arith.truncf %71 : vector<16x16xf32> to vector<16x16xbf16>
    %cst_33 = arith.constant dense<0.000000e+00> : vector<16x128xf32>
    %73 = tpu.matmul %72, %1, %cst_33 {dimension_numbers = #tpu.dot_dimension_numbers<[1], [0], [0], [1], [0, 0, 1, 1], [], []>} : vector<16x16xbf16>, vector<16x128xbf16>, vector<16x128xf32> -> vector<16x128xf32>
    %74 = arith.truncf %73 : vector<16x128xf32> to vector<16x128xbf16>
    %cst_34 = arith.constant 0xFF800000 : f32
    %75 = vector.broadcast %cst_34 : f32 to vector<16x16xf32>
    %76 = arith.select %68, %75, %58 : vector<16x16xi1>, vector<16x16xf32>
    %cst_35 = arith.constant dense<0xFF800000> : vector<16xf32>
    %77 = vector.multi_reduction <maximumf>, %76, %cst_35 [1] : vector<16x16xf32> to vector<16xf32>
    %78 = vector.shape_cast %77 : vector<16xf32> to vector<16x1xf32>
    %79 = vector.broadcast %78 : vector<16x1xf32> to vector<16x16xf32>
    %80 = arith.cmpf oge, %76, %79 : vector<16x16xf32>
    %c16_i32_36 = arith.constant 16 : i32
    %81 = vector.broadcast %c16_i32_36 : i32 to vector<16x16xi32>
    %82 = arith.select %80, %22, %81 : vector<16x16xi1>, vector<16x16xi32>
    %cst_37 = arith.constant dense<2147483647> : vector<16xi32>
    %83 = vector.multi_reduction <minsi>, %82, %cst_37 [1] : vector<16x16xi32> to vector<16xi32>
    %84 = vector.shape_cast %83 : vector<16xi32> to vector<16x1xi32>
    %85 = vector.broadcast %84 : vector<16x1xi32> to vector<16x16xi32>
    %86 = arith.cmpi eq, %22, %85 : vector<16x16xi32>
    %cst_38 = arith.constant 1.000000e+00 : f32
    %cst_39 = arith.constant 0.000000e+00 : f32
    %87 = vector.broadcast %cst_38 : f32 to vector<16x16xf32>
    %88 = vector.broadcast %cst_39 : f32 to vector<16x16xf32>
    %89 = arith.select %86, %87, %88 : vector<16x16xi1>, vector<16x16xf32>
    %90 = arith.truncf %89 : vector<16x16xf32> to vector<16x16xbf16>
    %cst_40 = arith.constant dense<0.000000e+00> : vector<16x128xf32>
    %91 = tpu.matmul %90, %1, %cst_40 {dimension_numbers = #tpu.dot_dimension_numbers<[1], [0], [0], [1], [0, 0, 1, 1], [], []>} : vector<16x16xbf16>, vector<16x128xbf16>, vector<16x128xf32> -> vector<16x128xf32>
    %92 = arith.truncf %91 : vector<16x128xf32> to vector<16x128xbf16>
    %93 = tpu.concatenate %38, %56, %74, %92 in 0 : vector<16x128xbf16>, vector<16x128xbf16>, vector<16x128xbf16>, vector<16x128xbf16> -> vector<64x128xbf16>
    %c0_41 = arith.constant 0 : index
    %c0_42 = arith.constant 0 : index
    %94 = vector.load %arg5[%c0_41, %c0_42] : memref<128x1xbf16, #tpu.memory_space<vmem>>, vector<128x1xbf16>
    %cst_43 = arith.constant dense<0.000000e+00> : vector<64x1xf32>
    %95 = tpu.matmul %93, %94, %cst_43 {dimension_numbers = #tpu.dot_dimension_numbers<[1], [0], [0], [1], [0, 0, 1, 1], [], []>} : vector<64x128xbf16>, vector<128x1xbf16>, vector<64x1xf32> -> vector<64x1xf32>
    %96 = vector.shape_cast %95 : vector<64x1xf32> to vector<4x16x1xf32>
    %97 = vector.extract_strided_slice %96 {offsets = [0, 0, 0], sizes = [1, 16, 1], strides = [1, 1, 1]} : vector<4x16x1xf32> to vector<1x16x1xf32>
    %98 = vector.shape_cast %97 : vector<1x16x1xf32> to vector<16x1xf32>
    %99 = vector.extract_strided_slice %96 {offsets = [1, 0, 0], sizes = [1, 16, 1], strides = [1, 1, 1]} : vector<4x16x1xf32> to vector<1x16x1xf32>
    %100 = vector.shape_cast %99 : vector<1x16x1xf32> to vector<16x1xf32>
    %101 = arith.maximumf %98, %100 : vector<16x1xf32>
    %102 = vector.extract_strided_slice %96 {offsets = [2, 0, 0], sizes = [1, 16, 1], strides = [1, 1, 1]} : vector<4x16x1xf32> to vector<1x16x1xf32>
    %103 = vector.shape_cast %102 : vector<1x16x1xf32> to vector<16x1xf32>
    %104 = arith.maximumf %101, %103 : vector<16x1xf32>
    %105 = vector.extract_strided_slice %96 {offsets = [3, 0, 0], sizes = [1, 16, 1], strides = [1, 1, 1]} : vector<4x16x1xf32> to vector<1x16x1xf32>
    %106 = vector.shape_cast %105 : vector<1x16x1xf32> to vector<16x1xf32>
    %107 = arith.maximumf %104, %106 : vector<16x1xf32>
    %108 = arith.addf %107, %21 : vector<16x1xf32>
    %cst_44 = arith.constant 0.000000e+00 : f32
    %109 = vector.broadcast %cst_44 : f32 to vector<16x1xf32>
    %110 = arith.maximumf %108, %109 : vector<16x1xf32>
    %c0_45 = arith.constant 0 : index
    %c0_46 = arith.constant 0 : index
    %c0_47 = arith.constant 0 : index
    %111 = vector.load %arg8[%c0_45, %c0_46, %c0_47] : memref<1x16x1xf32, #tpu.memory_space<vmem>>, vector<1x16x1xf32>
    %112 = vector.shape_cast %111 : vector<1x16x1xf32> to vector<16x1xf32>
    %113 = vector.shape_cast %110 : vector<16x1xf32> to vector<1x16x1xf32>
    tpu.vector_store %arg8[%c0_45, %c0_46, %c0_47], %113 {strides = array<i32>} : memref<1x16x1xf32, #tpu.memory_space<vmem>>, vector<1x16x1xf32>,
    return
  }
  func.func @transform_0(%arg0: i32, %arg1: i32) -> (i32, i32, i32) {
    %c0_i32 = arith.constant 0 : i32
    %c0_i32_0 = arith.constant 0 : i32
    %c0_i32_1 = arith.constant 0 : i32
    return %arg0, %c0_i32, %c0_i32_0 : i32, i32, i32
  }
  func.func @transform_1(%arg0: i32, %arg1: i32) -> (i32, i32, i32) {
    %c0_i32 = arith.constant 0 : i32
    %c0_i32_0 = arith.constant 0 : i32
    %c0_i32_1 = arith.constant 0 : i32
    return %arg0, %c0_i32, %c0_i32_0 : i32, i32, i32
  }
  func.func @transform_2(%arg0: i32, %arg1: i32) -> (i32, i32, i32) {
    %c0_i32 = arith.constant 0 : i32
    %c0_i32_0 = arith.constant 0 : i32
    return %arg0, %arg1, %c0_i32 : i32, i32, i32
  }
  func.func @transform_3(%arg0: i32, %arg1: i32) -> (i32, i32) {
    %c0_i32 = arith.constant 0 : i32
    %c0_i32_0 = arith.constant 0 : i32
    %c0_i32_1 = arith.constant 0 : i32
    return %c0_i32, %c0_i32_0 : i32, i32
  }
  func.func @transform_4(%arg0: i32, %arg1: i32) -> (i32, i32) {
    %c0_i32 = arith.constant 0 : i32
    %c0_i32_0 = arith.constant 0 : i32
    %c0_i32_1 = arith.constant 0 : i32
    return %c0_i32, %c0_i32_0 : i32, i32
  }
  func.func @transform_5(%arg0: i32, %arg1: i32) -> (i32, i32) {
    %c0_i32 = arith.constant 0 : i32
    %c0_i32_0 = arith.constant 0 : i32
    %c0_i32_1 = arith.constant 0 : i32
    return %c0_i32, %c0_i32_0 : i32, i32
  }
  func.func @transform_6(%arg0: i32, %arg1: i32) -> (i32, i32, i32) {
    %c0_i32 = arith.constant 0 : i32
    %c0_i32_0 = arith.constant 0 : i32
    return %arg0, %arg1, %c0_i32 : i32, i32, i32
  }
}

module attributes {stable_mosaic.version = 11 : i64} {
  func.func @_edgeconv_fused_kernel(%arg0: i32, %arg1: i32, %arg2: memref<1x1x8xf32, #tpu.memory_space<vmem>>, %arg3: memref<1x8x128xbf16, #tpu.memory_space<vmem>>, %arg4: memref<1x8x128xbf16, #tpu.memory_space<vmem>>, %arg5: memref<128x256xbf16, #tpu.memory_space<vmem>>, %arg6: memref<128x256xbf16, #tpu.memory_space<vmem>>, %arg7: memref<1x256xf32, #tpu.memory_space<vmem>>, %arg8: memref<1x8x256xbf16, #tpu.memory_space<vmem>>) attributes {dimension_semantics = [#tpu.dimension_semantics<parallel>, #tpu.dimension_semantics<parallel>], iteration_bounds = array<i64: 2, 1>, scalar_prefetch = 0 : i64, scratch_operands = 0 : i64, tpu.core_type = #tpu.core_type<tc>, window_params = [{transform_indices = @transform_0, window_bounds = array<i64: 1, 1, 8>}, {transform_indices = @transform_1, window_bounds = array<i64: 1, 8, 128>}, {transform_indices = @transform_2, window_bounds = array<i64: 1, 8, 128>}, {pipeline_mode = #tpu.pipeline_mode<synchronous>, transform_indices = @transform_3, window_bounds = array<i64: 128, 256>}, {pipeline_mode = #tpu.pipeline_mode<synchronous>, transform_indices = @transform_4, window_bounds = array<i64: 128, 256>}, {pipeline_mode = #tpu.pipeline_mode<synchronous>, transform_indices = @transform_5, window_bounds = array<i64: 1, 256>}, {transform_indices = @transform_6, window_bounds = array<i64: 1, 8, 256>}]} {
    %c0 = arith.constant 0 : index
    %c0_0 = arith.constant 0 : index
    %c0_1 = arith.constant 0 : index
    %0 = vector.load %arg3[%c0, %c0_0, %c0_1] : memref<1x8x128xbf16, #tpu.memory_space<vmem>>, vector<1x8x128xbf16>
    %1 = vector.shape_cast %0 : vector<1x8x128xbf16> to vector<8x128xbf16>
    %c0_2 = arith.constant 0 : index
    %c0_3 = arith.constant 0 : index
    %c0_4 = arith.constant 0 : index
    %2 = vector.load %arg4[%c0_2, %c0_3, %c0_4] : memref<1x8x128xbf16, #tpu.memory_space<vmem>>, vector<1x8x128xbf16>
    %3 = vector.shape_cast %2 : vector<1x8x128xbf16> to vector<8x128xbf16>
    %cst = arith.constant dense<0.000000e+00> : vector<8x8xf32>
    %4 = tpu.matmul %3, %1, %cst {dimension_numbers = #tpu.dot_dimension_numbers<[1], [1], [0], [0], [0, 0, 1, 0], [], []>} : vector<8x128xbf16>, vector<8x128xbf16>, vector<8x8xf32> -> vector<8x8xf32>
    %5 = arith.extf %3 : vector<8x128xbf16> to vector<8x128xf32>
    %6 = arith.mulf %5, %5 : vector<8x128xf32>
    %cst_5 = arith.constant dense<0.000000e+00> : vector<8xf32>
    %7 = vector.multi_reduction <add>, %6, %cst_5 [1] : vector<8x128xf32> to vector<8xf32>
    %8 = vector.shape_cast %7 : vector<8xf32> to vector<8x1xf32>
    %cst_6 = arith.constant 2.000000e+00 : f32
    %9 = vector.broadcast %cst_6 : f32 to vector<8x8xf32>
    %10 = arith.mulf %9, %4 : vector<8x8xf32>
    %11 = vector.broadcast %8 : vector<8x1xf32> to vector<8x8xf32>
    %12 = arith.subf %10, %11 : vector<8x8xf32>
    %c0_7 = arith.constant 0 : index
    %c0_8 = arith.constant 0 : index
    %c0_9 = arith.constant 0 : index
    %13 = vector.load %arg2[%c0_7, %c0_8, %c0_9] : memref<1x1x8xf32, #tpu.memory_space<vmem>>, vector<1x1x8xf32>
    %14 = vector.shape_cast %13 : vector<1x1x8xf32> to vector<1x8xf32>
    %15 = vector.broadcast %14 : vector<1x8xf32> to vector<8x8xf32>
    %16 = arith.subf %12, %15 : vector<8x8xf32>
    %c0_10 = arith.constant 0 : index
    %c0_11 = arith.constant 0 : index
    %17 = vector.load %arg6[%c0_10, %c0_11] : memref<128x256xbf16, #tpu.memory_space<vmem>>, vector<128x256xbf16>
    %cst_12 = arith.constant dense<0.000000e+00> : vector<8x256xf32>
    %18 = tpu.matmul %3, %17, %cst_12 {dimension_numbers = #tpu.dot_dimension_numbers<[1], [0], [0], [1], [0, 0, 1, 1], [], []>} : vector<8x128xbf16>, vector<128x256xbf16>, vector<8x256xf32> -> vector<8x256xf32>
    %c0_13 = arith.constant 0 : index
    %c0_14 = arith.constant 0 : index
    %19 = vector.load %arg7[%c0_13, %c0_14] : memref<1x256xf32, #tpu.memory_space<vmem>>, vector<1x256xf32>
    %20 = vector.broadcast %19 : vector<1x256xf32> to vector<8x256xf32>
    %21 = arith.addf %18, %20 : vector<8x256xf32>
    %22 = tpu.iota {dimensions = array<i32: 1>} : vector<8x8xi32>
    %cst_15 = arith.constant dense<0xFF800000> : vector<8xf32>
    %23 = vector.multi_reduction <maximumf>, %16, %cst_15 [1] : vector<8x8xf32> to vector<8xf32>
    %24 = vector.shape_cast %23 : vector<8xf32> to vector<8x1xf32>
    %25 = vector.broadcast %24 : vector<8x1xf32> to vector<8x8xf32>
    %26 = arith.cmpf oge, %16, %25 : vector<8x8xf32>
    %c8_i32 = arith.constant 8 : i32
    %27 = vector.broadcast %c8_i32 : i32 to vector<8x8xi32>
    %28 = arith.select %26, %22, %27 : vector<8x8xi1>, vector<8x8xi32>
    %cst_16 = arith.constant dense<2147483647> : vector<8xi32>
    %29 = vector.multi_reduction <minsi>, %28, %cst_16 [1] : vector<8x8xi32> to vector<8xi32>
    %30 = vector.shape_cast %29 : vector<8xi32> to vector<8x1xi32>
    %31 = vector.broadcast %30 : vector<8x1xi32> to vector<8x8xi32>
    %32 = arith.cmpi eq, %22, %31 : vector<8x8xi32>
    %cst_17 = arith.constant 1.000000e+00 : f32
    %cst_18 = arith.constant 0.000000e+00 : f32
    %33 = vector.broadcast %cst_17 : f32 to vector<8x8xf32>
    %34 = vector.broadcast %cst_18 : f32 to vector<8x8xf32>
    %35 = arith.select %32, %33, %34 : vector<8x8xi1>, vector<8x8xf32>
    %36 = arith.truncf %35 : vector<8x8xf32> to vector<8x8xbf16>
    %cst_19 = arith.constant dense<0.000000e+00> : vector<8x128xf32>
    %37 = tpu.matmul %36, %1, %cst_19 {dimension_numbers = #tpu.dot_dimension_numbers<[1], [0], [0], [1], [0, 0, 1, 1], [], []>} : vector<8x8xbf16>, vector<8x128xbf16>, vector<8x128xf32> -> vector<8x128xf32>
    %38 = arith.truncf %37 : vector<8x128xf32> to vector<8x128xbf16>
    %cst_20 = arith.constant 0xFF800000 : f32
    %39 = vector.broadcast %cst_20 : f32 to vector<8x8xf32>
    %40 = arith.select %32, %39, %16 : vector<8x8xi1>, vector<8x8xf32>
    %cst_21 = arith.constant dense<0xFF800000> : vector<8xf32>
    %41 = vector.multi_reduction <maximumf>, %40, %cst_21 [1] : vector<8x8xf32> to vector<8xf32>
    %42 = vector.shape_cast %41 : vector<8xf32> to vector<8x1xf32>
    %43 = vector.broadcast %42 : vector<8x1xf32> to vector<8x8xf32>
    %44 = arith.cmpf oge, %40, %43 : vector<8x8xf32>
    %c8_i32_22 = arith.constant 8 : i32
    %45 = vector.broadcast %c8_i32_22 : i32 to vector<8x8xi32>
    %46 = arith.select %44, %22, %45 : vector<8x8xi1>, vector<8x8xi32>
    %cst_23 = arith.constant dense<2147483647> : vector<8xi32>
    %47 = vector.multi_reduction <minsi>, %46, %cst_23 [1] : vector<8x8xi32> to vector<8xi32>
    %48 = vector.shape_cast %47 : vector<8xi32> to vector<8x1xi32>
    %49 = vector.broadcast %48 : vector<8x1xi32> to vector<8x8xi32>
    %50 = arith.cmpi eq, %22, %49 : vector<8x8xi32>
    %cst_24 = arith.constant 1.000000e+00 : f32
    %cst_25 = arith.constant 0.000000e+00 : f32
    %51 = vector.broadcast %cst_24 : f32 to vector<8x8xf32>
    %52 = vector.broadcast %cst_25 : f32 to vector<8x8xf32>
    %53 = arith.select %50, %51, %52 : vector<8x8xi1>, vector<8x8xf32>
    %54 = arith.truncf %53 : vector<8x8xf32> to vector<8x8xbf16>
    %cst_26 = arith.constant dense<0.000000e+00> : vector<8x128xf32>
    %55 = tpu.matmul %54, %1, %cst_26 {dimension_numbers = #tpu.dot_dimension_numbers<[1], [0], [0], [1], [0, 0, 1, 1], [], []>} : vector<8x8xbf16>, vector<8x128xbf16>, vector<8x128xf32> -> vector<8x128xf32>
    %56 = arith.truncf %55 : vector<8x128xf32> to vector<8x128xbf16>
    %cst_27 = arith.constant 0xFF800000 : f32
    %57 = vector.broadcast %cst_27 : f32 to vector<8x8xf32>
    %58 = arith.select %50, %57, %40 : vector<8x8xi1>, vector<8x8xf32>
    %cst_28 = arith.constant dense<0xFF800000> : vector<8xf32>
    %59 = vector.multi_reduction <maximumf>, %58, %cst_28 [1] : vector<8x8xf32> to vector<8xf32>
    %60 = vector.shape_cast %59 : vector<8xf32> to vector<8x1xf32>
    %61 = vector.broadcast %60 : vector<8x1xf32> to vector<8x8xf32>
    %62 = arith.cmpf oge, %58, %61 : vector<8x8xf32>
    %c8_i32_29 = arith.constant 8 : i32
    %63 = vector.broadcast %c8_i32_29 : i32 to vector<8x8xi32>
    %64 = arith.select %62, %22, %63 : vector<8x8xi1>, vector<8x8xi32>
    %cst_30 = arith.constant dense<2147483647> : vector<8xi32>
    %65 = vector.multi_reduction <minsi>, %64, %cst_30 [1] : vector<8x8xi32> to vector<8xi32>
    %66 = vector.shape_cast %65 : vector<8xi32> to vector<8x1xi32>
    %67 = vector.broadcast %66 : vector<8x1xi32> to vector<8x8xi32>
    %68 = arith.cmpi eq, %22, %67 : vector<8x8xi32>
    %cst_31 = arith.constant 1.000000e+00 : f32
    %cst_32 = arith.constant 0.000000e+00 : f32
    %69 = vector.broadcast %cst_31 : f32 to vector<8x8xf32>
    %70 = vector.broadcast %cst_32 : f32 to vector<8x8xf32>
    %71 = arith.select %68, %69, %70 : vector<8x8xi1>, vector<8x8xf32>
    %72 = arith.truncf %71 : vector<8x8xf32> to vector<8x8xbf16>
    %cst_33 = arith.constant dense<0.000000e+00> : vector<8x128xf32>
    %73 = tpu.matmul %72, %1, %cst_33 {dimension_numbers = #tpu.dot_dimension_numbers<[1], [0], [0], [1], [0, 0, 1, 1], [], []>} : vector<8x8xbf16>, vector<8x128xbf16>, vector<8x128xf32> -> vector<8x128xf32>
    %74 = arith.truncf %73 : vector<8x128xf32> to vector<8x128xbf16>
    %cst_34 = arith.constant 0xFF800000 : f32
    %75 = vector.broadcast %cst_34 : f32 to vector<8x8xf32>
    %76 = arith.select %68, %75, %58 : vector<8x8xi1>, vector<8x8xf32>
    %cst_35 = arith.constant dense<0xFF800000> : vector<8xf32>
    %77 = vector.multi_reduction <maximumf>, %76, %cst_35 [1] : vector<8x8xf32> to vector<8xf32>
    %78 = vector.shape_cast %77 : vector<8xf32> to vector<8x1xf32>
    %79 = vector.broadcast %78 : vector<8x1xf32> to vector<8x8xf32>
    %80 = arith.cmpf oge, %76, %79 : vector<8x8xf32>
    %c8_i32_36 = arith.constant 8 : i32
    %81 = vector.broadcast %c8_i32_36 : i32 to vector<8x8xi32>
    %82 = arith.select %80, %22, %81 : vector<8x8xi1>, vector<8x8xi32>
    %cst_37 = arith.constant dense<2147483647> : vector<8xi32>
    %83 = vector.multi_reduction <minsi>, %82, %cst_37 [1] : vector<8x8xi32> to vector<8xi32>
    %84 = vector.shape_cast %83 : vector<8xi32> to vector<8x1xi32>
    %85 = vector.broadcast %84 : vector<8x1xi32> to vector<8x8xi32>
    %86 = arith.cmpi eq, %22, %85 : vector<8x8xi32>
    %cst_38 = arith.constant 1.000000e+00 : f32
    %cst_39 = arith.constant 0.000000e+00 : f32
    %87 = vector.broadcast %cst_38 : f32 to vector<8x8xf32>
    %88 = vector.broadcast %cst_39 : f32 to vector<8x8xf32>
    %89 = arith.select %86, %87, %88 : vector<8x8xi1>, vector<8x8xf32>
    %90 = arith.truncf %89 : vector<8x8xf32> to vector<8x8xbf16>
    %cst_40 = arith.constant dense<0.000000e+00> : vector<8x128xf32>
    %91 = tpu.matmul %90, %1, %cst_40 {dimension_numbers = #tpu.dot_dimension_numbers<[1], [0], [0], [1], [0, 0, 1, 1], [], []>} : vector<8x8xbf16>, vector<8x128xbf16>, vector<8x128xf32> -> vector<8x128xf32>
    %92 = arith.truncf %91 : vector<8x128xf32> to vector<8x128xbf16>
    %93 = tpu.concatenate %38, %56, %74, %92 in 0 : vector<8x128xbf16>, vector<8x128xbf16>, vector<8x128xbf16>, vector<8x128xbf16> -> vector<32x128xbf16>
    %c0_41 = arith.constant 0 : index
    %c0_42 = arith.constant 0 : index
    %94 = vector.load %arg5[%c0_41, %c0_42] : memref<128x256xbf16, #tpu.memory_space<vmem>>, vector<128x256xbf16>
    %cst_43 = arith.constant dense<0.000000e+00> : vector<32x256xf32>
    %95 = tpu.matmul %93, %94, %cst_43 {dimension_numbers = #tpu.dot_dimension_numbers<[1], [0], [0], [1], [0, 0, 1, 1], [], []>} : vector<32x128xbf16>, vector<128x256xbf16>, vector<32x256xf32> -> vector<32x256xf32>
    %96 = vector.shape_cast %95 : vector<32x256xf32> to vector<4x8x256xf32>
    %97 = vector.extract_strided_slice %96 {offsets = [0, 0, 0], sizes = [1, 8, 256], strides = [1, 1, 1]} : vector<4x8x256xf32> to vector<1x8x256xf32>
    %98 = vector.shape_cast %97 : vector<1x8x256xf32> to vector<8x256xf32>
    %99 = vector.extract_strided_slice %96 {offsets = [1, 0, 0], sizes = [1, 8, 256], strides = [1, 1, 1]} : vector<4x8x256xf32> to vector<1x8x256xf32>
    %100 = vector.shape_cast %99 : vector<1x8x256xf32> to vector<8x256xf32>
    %101 = arith.maximumf %98, %100 : vector<8x256xf32>
    %102 = vector.extract_strided_slice %96 {offsets = [2, 0, 0], sizes = [1, 8, 256], strides = [1, 1, 1]} : vector<4x8x256xf32> to vector<1x8x256xf32>
    %103 = vector.shape_cast %102 : vector<1x8x256xf32> to vector<8x256xf32>
    %104 = arith.maximumf %101, %103 : vector<8x256xf32>
    %105 = vector.extract_strided_slice %96 {offsets = [3, 0, 0], sizes = [1, 8, 256], strides = [1, 1, 1]} : vector<4x8x256xf32> to vector<1x8x256xf32>
    %106 = vector.shape_cast %105 : vector<1x8x256xf32> to vector<8x256xf32>
    %107 = arith.maximumf %104, %106 : vector<8x256xf32>
    %108 = arith.addf %107, %21 : vector<8x256xf32>
    %cst_44 = arith.constant 0.000000e+00 : f32
    %109 = vector.broadcast %cst_44 : f32 to vector<8x256xf32>
    %110 = arith.cmpf oge, %108, %109 : vector<8x256xf32>
    %cst_45 = arith.constant 2.000000e-01 : f32
    %111 = vector.broadcast %cst_45 : f32 to vector<8x256xf32>
    %112 = arith.mulf %111, %108 : vector<8x256xf32>
    %113 = arith.select %110, %108, %112 : vector<8x256xi1>, vector<8x256xf32>
    %114 = arith.truncf %113 : vector<8x256xf32> to vector<8x256xbf16>
    %c0_46 = arith.constant 0 : index
    %c0_47 = arith.constant 0 : index
    %c0_48 = arith.constant 0 : index
    %115 = vector.load %arg8[%c0_46, %c0_47, %c0_48] : memref<1x8x256xbf16, #tpu.memory_space<vmem>>, vector<1x8x256xbf16>
    %116 = vector.shape_cast %115 : vector<1x8x256xbf16> to vector<8x256xbf16>
    %117 = vector.shape_cast %114 : vector<8x256xbf16> to vector<1x8x256xbf16>
    tpu.vector_store %arg8[%c0_46, %c0_47, %c0_48], %117 {strides = array<i32>} : memref<1x8x256xbf16, #tpu.memory_space<vmem>>, vector<1x8x256xbf16>,
    return
  }
  func.func @transform_0(%arg0: i32, %arg1: i32) -> (i32, i32, i32) {
    %c0_i32 = arith.constant 0 : i32
    %c0_i32_0 = arith.constant 0 : i32
    %c0_i32_1 = arith.constant 0 : i32
    return %arg0, %c0_i32, %c0_i32_0 : i32, i32, i32
  }
  func.func @transform_1(%arg0: i32, %arg1: i32) -> (i32, i32, i32) {
    %c0_i32 = arith.constant 0 : i32
    %c0_i32_0 = arith.constant 0 : i32
    %c0_i32_1 = arith.constant 0 : i32
    return %arg0, %c0_i32, %c0_i32_0 : i32, i32, i32
  }
  func.func @transform_2(%arg0: i32, %arg1: i32) -> (i32, i32, i32) {
    %c0_i32 = arith.constant 0 : i32
    %c0_i32_0 = arith.constant 0 : i32
    return %arg0, %arg1, %c0_i32 : i32, i32, i32
  }
  func.func @transform_3(%arg0: i32, %arg1: i32) -> (i32, i32) {
    %c0_i32 = arith.constant 0 : i32
    %c0_i32_0 = arith.constant 0 : i32
    %c0_i32_1 = arith.constant 0 : i32
    return %c0_i32, %c0_i32_0 : i32, i32
  }
  func.func @transform_4(%arg0: i32, %arg1: i32) -> (i32, i32) {
    %c0_i32 = arith.constant 0 : i32
    %c0_i32_0 = arith.constant 0 : i32
    %c0_i32_1 = arith.constant 0 : i32
    return %c0_i32, %c0_i32_0 : i32, i32
  }
  func.func @transform_5(%arg0: i32, %arg1: i32) -> (i32, i32) {
    %c0_i32 = arith.constant 0 : i32
    %c0_i32_0 = arith.constant 0 : i32
    %c0_i32_1 = arith.constant 0 : i32
    return %c0_i32, %c0_i32_0 : i32, i32
  }
  func.func @transform_6(%arg0: i32, %arg1: i32) -> (i32, i32, i32) {
    %c0_i32 = arith.constant 0 : i32
    %c0_i32_0 = arith.constant 0 : i32
    return %arg0, %arg1, %c0_i32 : i32, i32, i32
  }
}

module attributes {stable_mosaic.version = 11 : i64} {
  func.func @_conv1d_kernel(%arg0: i32, %arg1: i32, %arg2: memref<1x8x256xbf16, #tpu.memory_space<vmem>>, %arg3: memref<256x64xbf16, #tpu.memory_space<vmem>>, %arg4: memref<1x64xf32, #tpu.memory_space<vmem>>, %arg5: memref<1x8x64xf32, #tpu.memory_space<vmem>>) attributes {dimension_semantics = [#tpu.dimension_semantics<parallel>, #tpu.dimension_semantics<parallel>], iteration_bounds = array<i64: 2, 1>, scalar_prefetch = 0 : i64, scratch_operands = 0 : i64, tpu.core_type = #tpu.core_type<tc>, window_params = [{transform_indices = @transform_0, window_bounds = array<i64: 1, 8, 256>}, {pipeline_mode = #tpu.pipeline_mode<synchronous>, transform_indices = @transform_1, window_bounds = array<i64: 256, 64>}, {pipeline_mode = #tpu.pipeline_mode<synchronous>, transform_indices = @transform_2, window_bounds = array<i64: 1, 64>}, {transform_indices = @transform_3, window_bounds = array<i64: 1, 8, 64>}]} {
    %c0 = arith.constant 0 : index
    %c0_0 = arith.constant 0 : index
    %c0_1 = arith.constant 0 : index
    %0 = vector.load %arg2[%c0, %c0_0, %c0_1] : memref<1x8x256xbf16, #tpu.memory_space<vmem>>, vector<1x8x256xbf16>
    %1 = vector.shape_cast %0 : vector<1x8x256xbf16> to vector<8x256xbf16>
    %c0_2 = arith.constant 0 : index
    %c0_3 = arith.constant 0 : index
    %2 = vector.load %arg3[%c0_2, %c0_3] : memref<256x64xbf16, #tpu.memory_space<vmem>>, vector<256x64xbf16>
    %cst = arith.constant dense<0.000000e+00> : vector<8x64xf32>
    %3 = tpu.matmul %1, %2, %cst {dimension_numbers = #tpu.dot_dimension_numbers<[1], [0], [0], [1], [0, 0, 1, 1], [], []>} : vector<8x256xbf16>, vector<256x64xbf16>, vector<8x64xf32> -> vector<8x64xf32>
    %c0_4 = arith.constant 0 : index
    %c0_5 = arith.constant 0 : index
    %4 = vector.load %arg4[%c0_4, %c0_5] : memref<1x64xf32, #tpu.memory_space<vmem>>, vector<1x64xf32>
    %5 = vector.broadcast %4 : vector<1x64xf32> to vector<8x64xf32>
    %6 = arith.addf %3, %5 : vector<8x64xf32>
    %cst_6 = arith.constant 0.000000e+00 : f32
    %7 = vector.broadcast %cst_6 : f32 to vector<8x64xf32>
    %8 = arith.cmpf oge, %6, %7 : vector<8x64xf32>
    %cst_7 = arith.constant 2.000000e-01 : f32
    %9 = vector.broadcast %cst_7 : f32 to vector<8x64xf32>
    %10 = arith.mulf %9, %6 : vector<8x64xf32>
    %11 = arith.select %8, %6, %10 : vector<8x64xi1>, vector<8x64xf32>
    %c0_8 = arith.constant 0 : index
    %c0_9 = arith.constant 0 : index
    %c0_10 = arith.constant 0 : index
    %12 = vector.load %arg5[%c0_8, %c0_9, %c0_10] : memref<1x8x64xf32, #tpu.memory_space<vmem>>, vector<1x8x64xf32>
    %13 = vector.shape_cast %12 : vector<1x8x64xf32> to vector<8x64xf32>
    %14 = vector.shape_cast %11 : vector<8x64xf32> to vector<1x8x64xf32>
    tpu.vector_store %arg5[%c0_8, %c0_9, %c0_10], %14 {strides = array<i32>} : memref<1x8x64xf32, #tpu.memory_space<vmem>>, vector<1x8x64xf32>,
    return
  }
  func.func @transform_0(%arg0: i32, %arg1: i32) -> (i32, i32, i32) {
    %c0_i32 = arith.constant 0 : i32
    %c0_i32_0 = arith.constant 0 : i32
    return %arg0, %arg1, %c0_i32 : i32, i32, i32
  }
  func.func @transform_1(%arg0: i32, %arg1: i32) -> (i32, i32) {
    %c0_i32 = arith.constant 0 : i32
    %c0_i32_0 = arith.constant 0 : i32
    %c0_i32_1 = arith.constant 0 : i32
    return %c0_i32, %c0_i32_0 : i32, i32
  }
  func.func @transform_2(%arg0: i32, %arg1: i32) -> (i32, i32) {
    %c0_i32 = arith.constant 0 : i32
    %c0_i32_0 = arith.constant 0 : i32
    %c0_i32_1 = arith.constant 0 : i32
    return %c0_i32, %c0_i32_0 : i32, i32
  }
  func.func @transform_3(%arg0: i32, %arg1: i32) -> (i32, i32, i32) {
    %c0_i32 = arith.constant 0 : i32
    %c0_i32_0 = arith.constant 0 : i32
    return %arg0, %arg1, %c0_i32 : i32, i32, i32
  }
}

</mosaic_0001>

<bundles_post_ra>
// kernel: dgcnn_forward.7
= control target key start
LH: loop header
LB: loop body
LE: loop exit
PB: predicated region body
PF: predicated region fallthrough
CT: control target
= control target key end

     0   :  { %s1647_s21 = smov 0   ;;  %s1649_s22 = smov 0   ;;  %s1920_s0 = inlined_call_operand.vmem [shape: f32[2,1,32], index: 0, kind: input, shape index: {}]   ;;  %s1921_s1 = inlined_call_operand.vmem [shape: bf16[2,32,3], index: 1, kind: input, shape index: {}, may-alias: {1,2}]   ;;  %s1922_s2 = inlined_call_operand.vmem [shape: bf16[2,32,3], index: 2, kind: input, shape index: {}, may-alias: {1,2}]   ;;  %s1923_s3 = inlined_call_operand.vmem [shape: bf16[3,64], index: 3, kind: input, shape index: {}]   ;;  %s1924_s4 = inlined_call_operand.vmem [shape: bf16[3,64], index: 4, kind: input, shape index: {}]   ;;  %s1925_s5 = inlined_call_operand.vmem [shape: f32[1,64], index: 5, kind: input, shape index: {}]   ;;  %s1926_s6 = inlined_call_operand.vmem [shape: bf16[2,32,64], index: 6, kind: output, shape index: {}]  }
   0x1   :  { %s1651_s23 = smov 0  }
   0x2 LB: > { %s28_s24 = sadd.s32 1, %s1604_s22  ;;  %p1410_p0 = scmp.ge.s32.totalorder %s1608_s23, 1  ;;  %s1608_s23 = sphi %s1651_s23, %s16_s23   ;;  %s1604_s22 = sphi %s1649_s22, %s1928_s22   ;;  %s1600_s21 = sphi %s1647_s21, %s1927_s21  }
   0x3   : > { %p30_p1 = scmp.ge.s32.totalorder %s28_s24, 2  ;;  %p251_p2 = scmp.lt.s32.totalorder %s1608_s23, 3 }
   0x5   : > { %s1930_s24 = smov (%p30_p1, %s28_s24), 0  ;;  %p252_p3 = pnand %p1410_p0, %p251_p2 }
   0x6   : > { %p297_p4 = scmp.lt.s32.totalorder (!%p252_p3), %s1600_s21, 1 }
   0x7   : > { %255 = sbr.rel (%p252_p3) target bundleno = 2375 (0x947), region = 44 }
   0xc   : > { %s1932_s21 = smov (!%p297_p4, %s1600_s21), 1  ;;  %vm354_vm0 = vcmask 23552   ;;  %vm521_vm1 = vcmask 261120   ;;  %v519_v43 = vlaneseq }
   0xd   : > { %s1668_s25 = sshll.u32 %s1932_s21, 4  ;;  %s299_s10 = scalar_lea.vmem %s1920_s0, %s1932_s21 }
   0xe   : > { %s304_s28 = scalar_lea.vmem %s1921_s1, %s1668_s25  ;;  %s313_s7 = scalar_lea.vmem %s1922_s2, %s1668_s25  ;;  %v1423_v29 = vld [vmem:[%s299_s10] ss:$0 sm:$0xff]  ;;  %v1727_v44 = vand.u32 127, %v519_v43 }
   0xf   : > { %v1678_v0 = vld [vmem:[%s304_s28 + $0x8] sm:$0xff]   ;;  %v1680_v1 = vld [vmem:[%s304_s28] sm:$0xff]   ;;  %s323_s19 = scalar_lea.vmem %s1926_s6, %s1668_s25 }
  0x10   : > { %1552 = vmatprep.subr.msk.bf16.mxu1 %vm354_vm0, %v1678_v0  ;;  %v365_v2 = vsel %vm354_vm0, %v1678_v0, 0  ;;  %v330_v3 = vld [vmem:[%s313_s7] sm:$0xff]   ;;  %v1686_v4 = vld [vmem:[%s313_s7 + $0x8] sm:$0xff]   ;;  %v362_v14 = vsel %vm354_vm0, %v1680_v1, 0 }
  0x11   : > { %1489 = vmatpush3.bf16.xpose.msra.mxu1 %v365_v2  ;;  %v418_v5 = vunpack.c.l.bf16 %v1686_v4  ;;  %v416_v6 = vunpack.c.l.bf16 %v330_v3  ;;  %v419_v7 = vunpack.c.h.bf16 %v1686_v4  ;;  %v417_v8 = vunpack.c.h.bf16 %v330_v3  ;;  %1492 = vmatprep.mubr.msk.bf16.mxu1 %vm354_vm0, %v330_v3 }
  0x12   : > { %1553 = vmatprep.subr.msk.bf16.mxu1 %vm354_vm0, %v1680_v1  ;;  %1498 = vmatprep.mubr.msk.bf16.mxu0 %vm354_vm0, %v330_v3 }
  0x13   : > { %v422_v9 = vmul.f32 %v418_v5, %v418_v5  ;;  %v420_v10 = vmul.f32 %v416_v6, %v416_v6  ;;  %v423_v11 = vmul.f32 %v419_v7, %v419_v7  ;;  %v421_v12 = vmul.f32 %v417_v8, %v417_v8 }
  0x15   : > { %v430_v13 = vsel %vm354_vm0, %v422_v9, 0.0  ;;  %v424_v15 = vsel %vm354_vm0, %v420_v10, 0.0  ;;  %v433_v16 = vsel %vm354_vm0, %v423_v11, 0.0  ;;  %v427_v17 = vsel %vm354_vm0, %v421_v12, 0.0 }
  0x16   : > { %431 = vadd.xlane.f32.xlu1 %v430_v13  ;;  %425 = vadd.xlane.f32.xlu0 %v424_v15 }
  0x19   : > { %1491 = vmatpush3.bf16.xpose.msra.mxu1 %v362_v14 }
  0x1a   : > { %434 = vadd.xlane.f32.xlu1 %v433_v16  ;;  %1502 = vmatprep.subr.bf16.mxu1 %v1678_v0 }
  0x1b   : > { %428 = vadd.xlane.f32.xlu0 %v427_v17 }
  0x20   : > { %1493 = vmatmul.mubr.msk.bf16.vlgmr.msra.gmra.mxu1 %vm354_vm0, %v1686_v4 }
  0x21   : > { %1503 = vmatpush3.bf16.msra.mxu1 %v1678_v0 }
  0x22   : > { %1504 = vmatprep.subr.bf16.mxu1 %v1680_v1 }
  0x25   : > { %1505 = vmatpush3.bf16.msra.mxu1 %v1680_v1 }
  0x26   : > { %1510 = vmatprep.subr.bf16.mxu1 %v1678_v0 }
  0x9f   : > { %v432_v18 = vpop.xlane.xlu1 %431  ;;  %v426_v20 = vpop.xlane.xlu0 %425 }
  0xa3   : > { %v435_v28 = vpop.xlane.xlu1 %434 }
  0xa4   : > { %v429_v31 = vpop.xlane.xlu0 %428 }
  0xe0   : > { %v1494_v19 = vpop.f32.mrf.mxu1 }
  0xe1   : > { %v438_v21 = vmul.f32 2.0, %v1494_v19 }
  0xe2   : > { %v401_v22 = vpop.f32.mrf.mxu1 }
  0xe3   : > { %v436_v23 = vmul.f32 2.0, %v401_v22  ;;  %v442_v25 = vsub.f32 %v438_v21, %v432_v18 }
  0xe4   : > { %v1495_v24 = vpop.f32.mrf.mxu1 }
  0xe5   : > { %v440_v26 = vsub.f32 %v436_v23, %v426_v20  ;;  %v439_v27 = vmul.f32 2.0, %v1495_v24  ;;  %v1713_v34 = vsub.f32 %v442_v25, %v1423_v29 }
  0xe6   : > { %v404_v30 = vpop.f32.mrf.mxu1 }
  0xe7   : > { %v1711_v32 = vsub.f32 %v440_v26, %v1423_v29  ;;  %v437_v33 = vmul.f32 2.0, %v404_v30  ;;  %v443_v35 = vsub.f32 %v439_v27, %v435_v28  ;;  %v528_v41 = vsel %vm521_vm1, %v1713_v34, -inf }
  0xe9   : > { %v441_v36 = vsub.f32 %v437_v33, %v429_v31  ;;  %v522_v37 = vsel %vm521_vm1, %v1711_v32, -inf  ;;  %v1719_v39 = vsub.f32 %v443_v35, %v1423_v29 }
  0xea   : > { %523 = vmax.xlane.f32.xlu0 %v522_v37 }
  0xeb   : > { %v1717_v38 = vsub.f32 %v441_v36, %v1423_v29  ;;  %v531_v42 = vsel %vm521_vm1, %v1719_v39, -inf }
  0xed   : > { %v525_v40 = vsel %vm521_vm1, %v1717_v38, -inf }
  0xee   : > { %526 = vmax.xlane.f32.xlu1 %v525_v40  ;;  %529 = vmax.xlane.f32.xlu0 %v528_v41 }
  0xf2   : > { %532 = vmax.xlane.f32.xlu1 %v531_v42 }
 0x173   : > { %v524_v45 = vpop.xlane.xlu0 %523 }
 0x174   : > { %vm534_vm2 = vcmp.ge.f32.partialorder %v1711_v32, %v524_v45 }
 0x175   : > { %v538_v46 = vsel %vm534_vm2, %v1727_v44, 32 }
 0x176   : > { %v542_v47 = vsel %vm521_vm1, %v538_v46, 2147483647  ;;  %v1610_v46 = vmov 0.0  }
 0x177   : > { %v527_v48 = vpop.xlane.xlu1 %526  ;;  %v530_v49 = vpop.xlane.xlu0 %529  ;;  %v544_v50 = vshra.s32 %v542_v47, 16  ;;  %v543_v3 = vand.u32 65535, %v542_v47 }
 0x178   : > { %vm535_vm3 = vcmp.ge.f32.partialorder %v1717_v38, %v527_v48  ;;  %vm536_vm4 = vcmp.ge.f32.partialorder %v1713_v34, %v530_v49 }
 0x179   : > { %v539_v51 = vsel %vm535_vm3, %v1727_v44, 32  ;;  %v540_v52 = vsel %vm536_vm4, %v1727_v44, 32  ;;  %v546_v53 = vcvt.s32.f32 %v544_v50  ;;  %v545_v6 = vcvt.s32.f32 %v543_v3 }
 0x17a   : > { %v557_v54 = vsel %vm521_vm1, %v539_v51, 2147483647  ;;  %v572_v55 = vsel %vm521_vm1, %v540_v52, 2147483647 }
 0x17b   : > { %v533_v56 = vpop.xlane.xlu1 %532  ;;  %547 = vmin.xlane.f32.xlu0 %v546_v53  ;;  %v559_v57 = vshra.s32 %v557_v54, 16  ;;  %v574_v58 = vshra.s32 %v572_v55, 16  ;;  %v558_v7 = vand.u32 65535, %v557_v54  ;;  %v573_v8 = vand.u32 65535, %v572_v55 }
 0x17c   : > { %vm537_vm5 = vcmp.ge.f32.partialorder %v1719_v39, %v533_v56 }
 0x17d   : > { %v541_v59 = vsel %vm537_vm5, %v1727_v44, 32  ;;  %v561_v60 = vcvt.s32.f32 %v559_v57  ;;  %v576_v61 = vcvt.s32.f32 %v574_v58  ;;  %v560_v12 = vcvt.s32.f32 %v558_v7 }
 0x17e   : > { %v587_v62 = vsel %vm521_vm1, %v541_v59, 2147483647  ;;  %v575_v13 = vcvt.s32.f32 %v573_v8 }
 0x17f   : > { %562 = vmin.xlane.f32.xlu1 %v561_v60  ;;  %577 = vmin.xlane.f32.xlu0 %v576_v61  ;;  %v589_v63 = vshra.s32 %v587_v62, 16  ;;  %v588_v14 = vand.u32 65535, %v587_v62 }
 0x181   : > { %v591_v2 = vcvt.s32.f32 %v589_v63  ;;  %v590_v18 = vcvt.s32.f32 %v588_v14 }
 0x183   : > { %592 = vmin.xlane.f32.xlu1 %v591_v2 }
 0x204   : > { %v548_v5 = vpop.xlane.xlu0 %547 }
 0x205   : > { %vm549_vm6 = vcmp.eq.f32.partialorder %v546_v53, %v548_v5  ;;  %v554_v20 = vcvt.f32.s32 %v548_v5 }
 0x206   : > { %v550_v9 = vsel %vm549_vm6, %v545_v6, inf }
 0x207   : > { %551 = vmin.xlane.f32.xlu0 %v550_v9  ;;  %v555_v24 = vshll.u32 %v554_v20, 16 }
 0x208   : > { %v563_v10 = vpop.xlane.xlu1 %562  ;;  %v578_v11 = vpop.xlane.xlu0 %577 }
 0x209   : > { %vm564_vm7 = vcmp.eq.f32.partialorder %v561_v60, %v563_v10  ;;  %vm579_vm8 = vcmp.eq.f32.partialorder %v576_v61, %v578_v11  ;;  %v569_v21 = vcvt.f32.s32 %v563_v10  ;;  %v584_v22 = vcvt.f32.s32 %v578_v11 }
 0x20a   : > { %v565_v15 = vsel %vm564_vm7, %v560_v12, inf  ;;  %v580_v16 = vsel %vm579_vm8, %v575_v13, inf }
 0x20b   : > { %566 = vmin.xlane.f32.xlu1 %v565_v15  ;;  %581 = vmin.xlane.f32.xlu0 %v580_v16  ;;  %v570_v27 = vshll.u32 %v569_v21, 16  ;;  %v585_v28 = vshll.u32 %v584_v22, 16 }
 0x20c   : > { %v593_v17 = vpop.xlane.xlu1 %592 }
 0x20d   : > { %vm594_vm9 = vcmp.eq.f32.partialorder %v591_v2, %v593_v17  ;;  %v599_v31 = vcvt.f32.s32 %v593_v17 }
 0x20e   : > { %v595_v19 = vsel %vm594_vm9, %v590_v18, inf }
 0x20f   : > { %596 = vmin.xlane.f32.xlu1 %v595_v19  ;;  %v600_v43 = vshll.u32 %v599_v31, 16 }
 0x290   : > { %v552_v23 = vpop.xlane.xlu0 %551 }
 0x291   : > { %v553_v25 = vcvt.f32.s32 %v552_v23 }
 0x293   : > { %v556_v26 = vadd.s32 %v555_v24, %v553_v25 }
 0x294   : > { %v567_v29 = vpop.xlane.xlu1 %566  ;;  %v582_v30 = vpop.xlane.xlu0 %581 }
 0x295   : > { %v568_v33 = vcvt.f32.s32 %v567_v29  ;;  %v583_v35 = vcvt.f32.s32 %v582_v30  ;;  %vm602_vm10 = vcmp.eq.s32.totalorder %v1727_v44, %v556_v26 }
 0x296   : > { %v1743_v36 = vsel %vm602_vm10, -inf, %v1711_v32  ;;  %v606_v47 = vsel %vm602_vm10, 1.0, %v1610_v46 }
 0x297   : > { %v571_v37 = vadd.s32 %v570_v27, %v568_v33  ;;  %v586_v40 = vadd.s32 %v585_v28, %v583_v35  ;;  %v675_v41 = vsel %vm521_vm1, %v1743_v36, -inf }
 0x298   : > { %v597_v42 = vpop.xlane.xlu1 %596  ;;  %676 = vmax.xlane.f32.xlu0 %v675_v41 }
 0x299   : > { %v598_v45 = vcvt.f32.s32 %v597_v42  ;;  %vm603_vm11 = vcmp.eq.s32.totalorder %v1727_v44, %v571_v37  ;;  %vm604_vm12 = vcmp.eq.s32.totalorder %v1727_v44, %v586_v40 }
 0x29a   : > { %v1751_v48 = vsel %vm603_vm11, -inf, %v1717_v38  ;;  %v607_v32 = vsel %vm603_vm11, 1.0, %v1610_v46  ;;  %v1755_v49 = vsel %vm604_vm12, -inf, %v1713_v34  ;;  %v608_v38 = vsel %vm604_vm12, 1.0, %v1610_v46 }
 0x29b   : > { %v601_v50 = vadd.s32 %v600_v43, %v598_v45  ;;  %v678_v51 = vsel %vm521_vm1, %v1751_v48, -inf  ;;  %v610_v52 = vpack.c.bf16 %v607_v32, %v606_v47  ;;  %v681_v53 = vsel %vm521_vm1, %v1755_v49, -inf }
 0x29c   : > { %679 = vmax.xlane.f32.xlu1 %v678_v51  ;;  %682 = vmax.xlane.f32.xlu0 %v681_v53 }
 0x29d   : > { %1506 = vmatprep.mubr.msk.bf16.mxu1 %vm521_vm1, %v610_v52  ;;  %vm605_vm13 = vcmp.eq.s32.totalorder %v1727_v44, %v601_v50 }
 0x29e   : > { %v1765_v54 = vsel %vm605_vm13, -inf, %v1719_v39  ;;  %v609_v34 = vsel %vm605_vm13, 1.0, %v1610_v46 }
 0x29f   : > { %v684_v55 = vsel %vm521_vm1, %v1765_v54, -inf  ;;  %v611_v56 = vpack.c.bf16 %v609_v34, %v608_v38 }
 0x2a0   : > { %685 = vmax.xlane.f32.xlu1 %v684_v55 }
 0x2a1   : > { %1507 = vmatmul.mubr.msk.bf16.vlgmr.msra.gmra.mxu1 %vm521_vm1, %v611_v56 }
 0x2a2   : > { %1511 = vmatpush3.bf16.msra.mxu1 %v1678_v0 }
 0x2a3   : > { %1512 = vmatprep.subr.bf16.mxu1 %v1680_v1 }
 0x2a6   : > { %1513 = vmatpush3.bf16.msra.mxu1 %v1680_v1 }
 0x2a7   : > { %1526 = vmatprep.subr.bf16.mxu1 %v1678_v0 }
 0x321   : > { %v677_v57 = vpop.xlane.xlu0 %676 }
 0x322   : > { %vm687_vm14 = vcmp.ge.f32.partialorder %v1743_v36, %v677_v57 }
 0x323   : > { %v691_v39 = vsel %vm687_vm14, %v1727_v44, 32 }
 0x324   : > { %v695_v58 = vsel %vm521_vm1, %v691_v39, 2147483647 }
 0x325   : > { %v680_v59 = vpop.xlane.xlu1 %679  ;;  %v683_v60 = vpop.xlane.xlu0 %682  ;;  %v697_v61 = vshra.s32 %v695_v58, 16  ;;  %v696_v15 = vand.u32 65535, %v695_v58 }
 0x326   : > { %vm688_vm15 = vcmp.ge.f32.partialorder %v1751_v48, %v680_v59  ;;  %vm689_vm2 = vcmp.ge.f32.partialorder %v1755_v49, %v683_v60 }
 0x327   : > { %v692_v62 = vsel %vm688_vm15, %v1727_v44, 32  ;;  %v693_v63 = vsel %vm689_vm2, %v1727_v44, 32  ;;  %v699_v2 = vcvt.s32.f32 %v697_v61  ;;  %v698_v17 = vcvt.s32.f32 %v696_v15 }
 0x328   : > { %v710_v3 = vsel %vm521_vm1, %v692_v62, 2147483647  ;;  %v725_v5 = vsel %vm521_vm1, %v693_v63, 2147483647 }
 0x329   : > { %v686_v6 = vpop.xlane.xlu1 %685  ;;  %700 = vmin.xlane.f32.xlu0 %v699_v2  ;;  %v712_v7 = vshra.s32 %v710_v3, 16  ;;  %v727_v8 = vshra.s32 %v725_v5, 16  ;;  %v711_v18 = vand.u32 65535, %v710_v3  ;;  %v726_v19 = vand.u32 65535, %v725_v5 }
 0x32a   : > { %vm690_vm3 = vcmp.ge.f32.partialorder %v1765_v54, %v686_v6 }
 0x32b   : > { %v694_v9 = vsel %vm690_vm3, %v1727_v44, 32  ;;  %v714_v10 = vcvt.s32.f32 %v712_v7  ;;  %v729_v11 = vcvt.s32.f32 %v727_v8  ;;  %v713_v23 = vcvt.s32.f32 %v711_v18 }
 0x32c   : > { %v740_v12 = vsel %vm521_vm1, %v694_v9, 2147483647  ;;  %v728_v24 = vcvt.s32.f32 %v726_v19 }
 0x32d   : > { %715 = vmin.xlane.f32.xlu1 %v714_v10  ;;  %730 = vmin.xlane.f32.xlu0 %v729_v11  ;;  %v742_v13 = vshra.s32 %v740_v12, 16  ;;  %v741_v25 = vand.u32 65535, %v740_v12 }
 0x32f   : > { %v744_v14 = vcvt.s32.f32 %v742_v13  ;;  %v743_v29 = vcvt.s32.f32 %v741_v25 }
 0x331   : > { %745 = vmin.xlane.f32.xlu1 %v744_v14 }
 0x3b2   : > { %v701_v16 = vpop.xlane.xlu0 %700 }
 0x3b3   : > { %vm702_vm4 = vcmp.eq.f32.partialorder %v699_v2, %v701_v16  ;;  %v707_v31 = vcvt.f32.s32 %v701_v16 }
 0x3b4   : > { %v703_v20 = vsel %vm702_vm4, %v698_v17, inf }
 0x3b5   : > { %704 = vmin.xlane.f32.xlu0 %v703_v20  ;;  %v708_v40 = vshll.u32 %v707_v31, 16 }
 0x3b6   : > { %v716_v21 = vpop.xlane.xlu1 %715  ;;  %v731_v22 = vpop.xlane.xlu0 %730 }
 0x3b7   : > { %vm717_vm5 = vcmp.eq.f32.partialorder %v714_v10, %v716_v21  ;;  %vm732_vm6 = vcmp.eq.f32.partialorder %v729_v11, %v731_v22  ;;  %v722_v33 = vcvt.f32.s32 %v716_v21  ;;  %v737_v35 = vcvt.f32.s32 %v731_v22 }
 0x3b8   : > { %v718_v26 = vsel %vm717_vm5, %v713_v23, inf  ;;  %v733_v27 = vsel %vm732_vm6, %v728_v24, inf  ;;  %vm463_vm6 = vcmask 1040384  }
 0x3b9   : > { %719 = vmin.xlane.f32.xlu1 %v718_v26  ;;  %734 = vmin.xlane.f32.xlu0 %v733_v27  ;;  %v723_v43 = vshll.u32 %v722_v33, 16  ;;  %v738_v45 = vshll.u32 %v737_v35, 16 }
 0x3ba   : > { %v746_v28 = vpop.xlane.xlu1 %745 }
 0x3bb   : > { %vm747_vm7 = vcmp.eq.f32.partialorder %v744_v14, %v746_v28  ;;  %v752_v50 = vcvt.f32.s32 %v746_v28 }
 0x3bc   : > { %v748_v30 = vsel %vm747_vm7, %v743_v29, inf  ;;  %vm464_vm7 = vcmask 1041408  }
 0x3bd   : > { %749 = vmin.xlane.f32.xlu1 %v748_v30  ;;  %v753_v57 = vshll.u32 %v752_v50, 16  ;;  %v1611_v50 = vmov 65535  }
 0x43e   : > { %v705_v37 = vpop.xlane.xlu0 %704 }
 0x43f   : > { %v706_v41 = vcvt.f32.s32 %v705_v37 }
 0x441   : > { %v709_v42 = vadd.s32 %v708_v40, %v706_v41 }
 0x442   : > { %v720_v47 = vpop.xlane.xlu1 %719  ;;  %v735_v32 = vpop.xlane.xlu0 %734 }
 0x443   : > { %v721_v51 = vcvt.f32.s32 %v720_v47  ;;  %v736_v52 = vcvt.f32.s32 %v735_v32  ;;  %vm755_vm8 = vcmp.eq.s32.totalorder %v1727_v44, %v709_v42 }
 0x444   : > { %v1789_v53 = vsel %vm755_vm8, -inf, %v1743_v36  ;;  %v759_v58 = vsel %vm755_vm8, 1.0, %v1610_v46 }
 0x445   : > { %v724_v38 = vadd.s32 %v723_v43, %v721_v51  ;;  %v739_v34 = vadd.s32 %v738_v45, %v736_v52  ;;  %v826_v55 = vsel %vm521_vm1, %v1789_v53, -inf  ;;  %v465_v51 = vsel %vm463_vm6, 4294967295, %v1611_v50  ;;  %v455_v52 = vld [vmem:[%s1924_s4] sm:$0x3] }
 0x446   : > { %v750_v56 = vpop.xlane.xlu1 %749  ;;  %827 = vmax.xlane.f32.xlu0 %v826_v55  ;;  %v1124_v55 = vld [vmem:[%s1923_s3] sm:$0x3] }
 0x447   : > { %v751_v39 = vcvt.f32.s32 %v750_v56  ;;  %vm756_vm9 = vcmp.eq.s32.totalorder %v1727_v44, %v724_v38  ;;  %vm757_vm10 = vcmp.eq.s32.totalorder %v1727_v44, %v739_v34  ;;  %v466_v38 = vsel %vm464_vm7, %v465_v51, 0 }
 0x448   : > { %v1797_v59 = vsel %vm756_vm9, -inf, %v1751_v48  ;;  %v760_v36 = vsel %vm756_vm9, 1.0, %v1610_v46  ;;  %v1801_v60 = vsel %vm757_vm10, -inf, %v1755_v49  ;;  %v761_v48 = vsel %vm757_vm10, 1.0, %v1610_v46 }
 0x449   : > { %v754_v61 = vadd.s32 %v753_v57, %v751_v39  ;;  %v829_v62 = vsel %vm521_vm1, %v1797_v59, -inf  ;;  %v763_v63 = vpack.c.bf16 %v760_v36, %v759_v58  ;;  %v832_v2 = vsel %vm521_vm1, %v1801_v60, -inf  ;;  %v1508_v57 = vpop.f32.mrf.mxu1 }
 0x44a   : > { %830 = vmax.xlane.f32.xlu1 %v829_v62  ;;  %833 = vmax.xlane.f32.xlu0 %v832_v2  ;;  %v468_v34 = vand.u32 %v466_v38, %v455_v52  ;;  %v1150_v56 = vand.u32 %v1124_v55, %v466_v38 }
 0x44b   : > { %1514 = vmatprep.mubr.msk.bf16.mxu1 %vm521_vm1, %v763_v63  ;;  %vm758_vm11 = vcmp.eq.s32.totalorder %v1727_v44, %v754_v61  ;;  %v654_v58 = vpop.f32.mrf.mxu1 }
 0x44c   : > { %v1811_v3 = vsel %vm758_vm11, -inf, %v1765_v54  ;;  %v762_v49 = vsel %vm758_vm11, 1.0, %v1610_v46  ;;  %1496 = vmatprep.subr.bf16.mxu0 %v468_v34 }
 0x44d   : > { %v835_v5 = vsel %vm521_vm1, %v1811_v3, -inf  ;;  %v764_v6 = vpack.c.bf16 %v762_v49, %v761_v48  ;;  %1497 = vmatpush3.bf16.msra.mxu0 %v468_v34  ;;  %v1509_v48 = vpop.f32.mrf.mxu1 }
 0x44e   : > { %836 = vmax.xlane.f32.xlu1 %v835_v5  ;;  %1518 = vmatprep.subr.bf16.mxu0 %v1678_v0 }
 0x44f   : > { %1515 = vmatmul.mubr.msk.bf16.vlgmr.msra.gmra.mxu1 %vm521_vm1, %v764_v6 }
 0x450   : > { %1527 = vmatpush3.bf16.msra.mxu1 %v1678_v0  ;;  %1499 = vmatmul.mubr.msk.bf16.vlgmr.msra.gmra.mxu0 %vm354_vm0, %v1686_v4 }
 0x451   : > { %1528 = vmatprep.subr.bf16.mxu1 %v1680_v1  ;;  %1519 = vmatpush3.bf16.msra.mxu0 %v1678_v0 }
 0x452   : > { %1520 = vmatprep.subr.bf16.mxu0 %v1680_v1 }
 0x454   : > { %1529 = vmatpush3.bf16.msra.mxu1 %v1680_v1 }
 0x455   : > { %1521 = vmatpush3.bf16.msra.mxu0 %v1680_v1 }
 0x456   : > { %1534 = vmatprep.subr.bf16.mxu0 %v1150_v56 }
 0x4cf   : > { %v828_v7 = vpop.xlane.xlu0 %827 }
 0x4d0   : > { %vm838_vm12 = vcmp.ge.f32.partialorder %v1789_v53, %v828_v7 }
 0x4d1   : > { %v842_v54 = vsel %vm838_vm12, %v1727_v44, 32 }
 0x4d2   : > { %v846_v8 = vsel %vm521_vm1, %v842_v54, 2147483647 }
 0x4d3   : > { %v831_v9 = vpop.xlane.xlu1 %830  ;;  %v834_v10 = vpop.xlane.xlu0 %833  ;;  %v848_v11 = vshra.s32 %v846_v8, 16  ;;  %v847_v26 = vand.u32 65535, %v846_v8 }
 0x4d4   : > { %vm839_vm13 = vcmp.ge.f32.partialorder %v1797_v59, %v831_v9  ;;  %vm840_vm14 = vcmp.ge.f32.partialorder %v1801_v60, %v834_v10  ;;  %v657_v9 = vpop.f32.mrf.mxu1 }
 0x4d5   : > { %v843_v12 = vsel %vm839_vm13, %v1727_v44, 32  ;;  %v844_v13 = vsel %vm840_vm14, %v1727_v44, 32  ;;  %v850_v14 = vcvt.s32.f32 %v848_v11  ;;  %v849_v28 = vcvt.s32.f32 %v847_v26 }
 0x4d6   : > { %v861_v15 = vsel %vm521_vm1, %v843_v12, 2147483647  ;;  %v876_v16 = vsel %vm521_vm1, %v844_v13, 2147483647 }
 0x4d7   : > { %v837_v17 = vpop.xlane.xlu1 %836  ;;  %851 = vmin.xlane.f32.xlu0 %v850_v14  ;;  %v863_v18 = vshra.s32 %v861_v15, 16  ;;  %v878_v19 = vshra.s32 %v876_v16, 16  ;;  %v862_v29 = vand.u32 65535, %v861_v15  ;;  %v877_v30 = vand.u32 65535, %v876_v16 }
 0x4d8   : > { %vm841_vm15 = vcmp.ge.f32.partialorder %v1811_v3, %v837_v17 }
 0x4d9   : > { %v845_v20 = vsel %vm841_vm15, %v1727_v44, 32  ;;  %v865_v21 = vcvt.s32.f32 %v863_v18  ;;  %v880_v22 = vcvt.s32.f32 %v878_v19  ;;  %v864_v37 = vcvt.s32.f32 %v862_v29 }
 0x4da   : > { %v891_v23 = vsel %vm521_vm1, %v845_v20, 2147483647  ;;  %v879_v40 = vcvt.s32.f32 %v877_v30 }
 0x4db   : > { %866 = vmin.xlane.f32.xlu1 %v865_v21  ;;  %881 = vmin.xlane.f32.xlu0 %v880_v22  ;;  %v893_v24 = vshra.s32 %v891_v23, 16  ;;  %v892_v41 = vand.u32 65535, %v891_v23 }
 0x4dd   : > { %v895_v25 = vcvt.s32.f32 %v893_v24  ;;  %v894_v47 = vcvt.s32.f32 %v892_v41 }
 0x4df   : > { %896 = vmin.xlane.f32.xlu1 %v895_v25 }
 0x560   : > { %v852_v27 = vpop.xlane.xlu0 %851 }
 0x561   : > { %vm853_vm2 = vcmp.eq.f32.partialorder %v850_v14, %v852_v27  ;;  %v858_v39 = vcvt.f32.s32 %v852_v27  ;;  %v1516_v14 = vpop.f32.mrf.mxu1 }
 0x562   : > { %v854_v31 = vsel %vm853_vm2, %v849_v28, inf  ;;  %v669_v28 = vpack.c.bf16 %v657_v9, %v654_v58 }
 0x563   : > { %855 = vmin.xlane.f32.xlu0 %v854_v31  ;;  %v859_v63 = vshll.u32 %v858_v39, 16  ;;  %v805_v24 = vpop.f32.mrf.mxu1  ;;  %v670_v31 = vpack.c.bf16 %v1509_v48, %v1508_v57 }
 0x564   : > { %v867_v33 = vpop.xlane.xlu1 %866  ;;  %v882_v35 = vpop.xlane.xlu0 %881 }
 0x565   : > { %vm868_vm3 = vcmp.eq.f32.partialorder %v865_v21, %v867_v33  ;;  %vm883_vm4 = vcmp.eq.f32.partialorder %v880_v22, %v882_v35  ;;  %v873_v36 = vcvt.f32.s32 %v867_v33  ;;  %v888_v61 = vcvt.f32.s32 %v882_v35  ;;  %v1517_v29 = vpop.f32.mrf.mxu1 }
 0x566   : > { %v869_v42 = vsel %vm868_vm3, %v864_v37, inf  ;;  %v884_v43 = vsel %vm883_vm4, %v879_v40, inf }
 0x567   : > { %870 = vmin.xlane.f32.xlu1 %v869_v42  ;;  %885 = vmin.xlane.f32.xlu0 %v884_v43  ;;  %v874_v5 = vshll.u32 %v873_v36, 16  ;;  %v889_v4 = vshll.u32 %v888_v61, 16  ;;  %v808_v30 = vpop.f32.mrf.mxu1  ;;  %v1874_v61 = vpop.f32.mrf.mxu0 }
 0x568   : > { %v897_v45 = vpop.xlane.xlu1 %896  ;;  %v820_v33 = vpack.c.bf16 %v808_v30, %v805_v24 }
 0x569   : > { %vm898_vm5 = vcmp.eq.f32.partialorder %v895_v25, %v897_v45  ;;  %v903_v7 = vcvt.f32.s32 %v897_v45 }
 0x56a   : > { %v899_v32 = vsel %vm898_vm5, %v894_v47, inf }
 0x56b   : > { %900 = vmin.xlane.f32.xlu1 %v899_v32  ;;  %v904_v15 = vshll.u32 %v903_v7, 16 }
 0x5ec   : > { %v856_v62 = vpop.xlane.xlu0 %855 }
 0x5ed   : > { %v857_v2 = vcvt.f32.s32 %v856_v62  ;;  %v1876_v62 = vpop.f32.mrf.mxu0 }
 0x5ef   : > { %v860_v49 = vadd.s32 %v859_v63, %v857_v2  ;;  %v1878_v63 = vpop.f32.mrf.mxu0 }
 0x5f0   : > { %v871_v6 = vpop.xlane.xlu1 %870  ;;  %v886_v0 = vpop.xlane.xlu0 %885 }
 0x5f1   : > { %v872_v54 = vcvt.f32.s32 %v871_v6  ;;  %v887_v8 = vcvt.f32.s32 %v886_v0  ;;  %vm906_vm8 = vcmp.eq.s32.totalorder %v1727_v44, %v860_v49  ;;  %v1880_v2 = vpop.f32.mrf.mxu0 }
 0x5f2   : > { %v973_v1 = vsel %vm906_vm8, -inf, %v1789_v53  ;;  %v910_v17 = vsel %vm906_vm8, 1.0, %v1610_v46 }
 0x5f3   : > { %v875_v10 = vadd.s32 %v874_v5, %v872_v54  ;;  %v890_v11 = vadd.s32 %v889_v4, %v887_v8  ;;  %v977_v12 = vsel %vm521_vm1, %v973_v1, -inf }
 0x5f4   : > { %v901_v13 = vpop.xlane.xlu1 %900  ;;  %978 = vmax.xlane.f32.xlu0 %v977_v12 }
 0x5f5   : > { %v902_v16 = vcvt.f32.s32 %v901_v13  ;;  %vm907_vm9 = vcmp.eq.s32.totalorder %v1727_v44, %v875_v10  ;;  %vm908_vm10 = vcmp.eq.s32.totalorder %v1727_v44, %v890_v11 }
 0x5f6   : > { %v974_v18 = vsel %vm907_vm9, -inf, %v1797_v59  ;;  %v911_v53 = vsel %vm907_vm9, 1.0, %v1610_v46  ;;  %v975_v19 = vsel %vm908_vm10, -inf, %v1801_v60  ;;  %v912_v25 = vsel %vm908_vm10, 1.0, %v1610_v46 }
 0x5f7   : > { %v905_v20 = vadd.s32 %v904_v15, %v902_v16  ;;  %v980_v21 = vsel %vm521_vm1, %v974_v18, -inf  ;;  %v914_v22 = vpack.c.bf16 %v911_v53, %v910_v17  ;;  %v983_v23 = vsel %vm521_vm1, %v975_v19, -inf }
 0x5f8   : > { %981 = vmax.xlane.f32.xlu1 %v980_v21  ;;  %984 = vmax.xlane.f32.xlu0 %v983_v23 }
 0x5f9   : > { %1522 = vmatprep.mubr.msk.bf16.mxu0 %vm521_vm1, %v914_v22  ;;  %vm909_vm11 = vcmp.eq.s32.totalorder %v1727_v44, %v905_v20 }
 0x5fa   : > { %v976_v59 = vsel %vm909_vm11, -inf, %v1811_v3  ;;  %v913_v26 = vsel %vm909_vm11, 1.0, %v1610_v46  ;;  %v821_v3 = vpack.c.bf16 %v1517_v29, %v1516_v14 }
 0x5fb   : > { %v986_v60 = vsel %vm521_vm1, %v976_v59, -inf  ;;  %v915_v27 = vpack.c.bf16 %v913_v26, %v912_v25 }
 0x5fc   : > { %987 = vmax.xlane.f32.xlu1 %v986_v60 }
 0x5fd   : > { %1523 = vmatmul.mubr.msk.bf16.vlgmr.msra.gmra.mxu0 %vm521_vm1, %v915_v27 }
 0x5fe   : > { %1536 = vmatprep.mubr.msk.bf16.mxu0 %vm354_vm0, %v669_v28  ;;  %1535 = vmatpush3.bf16.msra.mxu0 %v1150_v56 }
 0x605   : > { %1537 = vmatmul.mubr.msk.bf16.vlgmr.msra.gmra.mxu0 %vm354_vm0, %v670_v31 }
 0x606   : > { %1540 = vmatprep.mubr.msk.bf16.mxu0 %vm354_vm0, %v820_v33 }
 0x60d   : > { %1541 = vmatmul.mubr.msk.bf16.gmra.mxu0 %vm354_vm0, %v821_v3 }
 0x67d   : > { %v979_v35 = vpop.xlane.xlu0 %978 }
 0x67e   : > { %vm989_vm12 = vcmp.ge.f32.partialorder %v973_v1, %v979_v35 }
 0x67f   : > { %v993_v37 = vsel %vm989_vm12, %v1727_v44, 32 }
 0x680   : > { %v997_v40 = vsel %vm521_vm1, %v993_v37, 2147483647 }
 0x681   : > { %v982_v41 = vpop.xlane.xlu1 %981  ;;  %v985_v42 = vpop.xlane.xlu0 %984  ;;  %v999_v43 = vshra.s32 %v997_v40, 16  ;;  %v998_v7 = vand.u32 65535, %v997_v40 }
 0x682   : > { %vm990_vm13 = vcmp.ge.f32.partialorder %v974_v18, %v982_v41  ;;  %vm991_vm14 = vcmp.ge.f32.partialorder %v975_v19, %v985_v42 }
 0x683   : > { %v994_v45 = vsel %vm990_vm13, %v1727_v44, 32  ;;  %v995_v47 = vsel %vm991_vm14, %v1727_v44, 32  ;;  %v1001_v32 = vcvt.s32.f32 %v999_v43  ;;  %v1000_v8 = vcvt.s32.f32 %v998_v7  ;;  %v1424_v7 = vld [vmem:[%s1925_s5] ss:$0 sm:$0xff] }
 0x684   : > { %v1012_v50 = vsel %vm521_vm1, %v994_v45, 2147483647  ;;  %v1027_v51 = vsel %vm521_vm1, %v995_v47, 2147483647 }
 0x685   : > { %v988_v52 = vpop.xlane.xlu1 %987  ;;  %1002 = vmin.xlane.f32.xlu0 %v1001_v32  ;;  %v1014_v38 = vshra.s32 %v1012_v50, 16  ;;  %v1029_v34 = vshra.s32 %v1027_v51, 16  ;;  %v1013_v1 = vand.u32 65535, %v1012_v50  ;;  %v1028_v9 = vand.u32 65535, %v1027_v51 }
 0x686   : > { %vm992_vm15 = vcmp.ge.f32.partialorder %v976_v59, %v988_v52 }
 0x687   : > { %v996_v55 = vsel %vm992_vm15, %v1727_v44, 32  ;;  %v1016_v56 = vcvt.s32.f32 %v1014_v38  ;;  %v1031_v57 = vcvt.s32.f32 %v1029_v34  ;;  %v1015_v13 = vcvt.s32.f32 %v1013_v1 }
 0x688   : > { %v1042_v39 = vsel %vm521_vm1, %v996_v55, 2147483647  ;;  %v1030_v14 = vcvt.s32.f32 %v1028_v9 }
 0x689   : > { %1017 = vmin.xlane.f32.xlu1 %v1016_v56  ;;  %1032 = vmin.xlane.f32.xlu0 %v1031_v57  ;;  %v1044_v58 = vshra.s32 %v1042_v39, 16  ;;  %v1043_v15 = vand.u32 65535, %v1042_v39 }
 0x68b   : > { %v1046_v36 = vcvt.s32.f32 %v1044_v58  ;;  %v1045_v53 = vcvt.s32.f32 %v1043_v15  ;;  %v505_v15 = vadd.f32 %v1424_v7, %v1876_v62 }
 0x68d   : > { %1047 = vmin.xlane.f32.xlu1 %v1046_v36 }
 0x6bd   : > { %v1524_v48 = vpop.f32.mrf.mxu0 }
 0x6bf   : > { %v956_v49 = vpop.f32.mrf.mxu0 }
 0x6c1   : > { %v1525_v5 = vpop.f32.mrf.mxu0 }
 0x6c2   : > { %v972_v0 = vpack.c.bf16 %v1525_v5, %v1524_v48 }
 0x6c3   : > { %v959_v4 = vpop.f32.mrf.mxu0 }
 0x6c4   : > { %v971_v6 = vpack.c.bf16 %v959_v4, %v956_v49 }
 0x6c6   : > { %1544 = vmatprep.mubr.msk.bf16.mxu0 %vm354_vm0, %v971_v6 }
 0x6c7   : > { %1545 = vmatmul.mubr.msk.bf16.gmra.mxu0 %vm354_vm0, %v972_v0 }
 0x70e   : > { %v1003_v54 = vpop.xlane.xlu0 %1002 }
 0x70f   : > { %vm1004_vm2 = vcmp.eq.f32.partialorder %v1001_v32, %v1003_v54  ;;  %v1009_v20 = vcvt.f32.s32 %v1003_v54 }
 0x710   : > { %v1005_v10 = vsel %vm1004_vm2, %v1000_v8, inf }
 0x711   : > { %1006 = vmin.xlane.f32.xlu0 %v1005_v10  ;;  %v1010_v23 = vshll.u32 %v1009_v20, 16  ;;  %v513_v10 = vadd.f32 %v1874_v61, %v1424_v7 }
 0x712   : > { %v1018_v11 = vpop.xlane.xlu1 %1017  ;;  %v1033_v12 = vpop.xlane.xlu0 %1032 }
 0x713   : > { %vm1019_vm3 = vcmp.eq.f32.partialorder %v1016_v56, %v1018_v11  ;;  %vm1034_vm4 = vcmp.eq.f32.partialorder %v1031_v57, %v1033_v12  ;;  %v1024_v21 = vcvt.f32.s32 %v1018_v11  ;;  %v1039_v24 = vcvt.f32.s32 %v1033_v12 }
 0x714   : > { %v1020_v16 = vsel %vm1019_vm3, %v1015_v13, inf  ;;  %v1035_v17 = vsel %vm1034_vm4, %v1030_v14, inf }
 0x715   : > { %1021 = vmin.xlane.f32.xlu1 %v1020_v16  ;;  %1036 = vmin.xlane.f32.xlu0 %v1035_v17  ;;  %v1025_v26 = vshll.u32 %v1024_v21, 16  ;;  %v1040_v28 = vshll.u32 %v1039_v24, 16 }
 0x716   : > { %v1048_v18 = vpop.xlane.xlu1 %1047 }
 0x717   : > { %vm1049_vm5 = vcmp.eq.f32.partialorder %v1046_v36, %v1048_v18  ;;  %v1054_v29 = vcvt.f32.s32 %v1048_v18 }
 0x718   : > { %v1050_v19 = vsel %vm1049_vm5, %v1045_v53, inf  ;;  %v516_v53 = vadd.f32 %v1878_v63, %v1424_v7 }
 0x719   : > { %1051 = vmin.xlane.f32.xlu1 %v1050_v19  ;;  %v1055_v37 = vshll.u32 %v1054_v29, 16 }
 0x79a   : > { %v1007_v22 = vpop.xlane.xlu0 %1006 }
 0x79b   : > { %v1008_v25 = vcvt.f32.s32 %v1007_v22 }
 0x79d   : > { %v1011_v59 = vadd.s32 %v1010_v23, %v1008_v25 }
 0x79e   : > { %v1022_v60 = vpop.xlane.xlu1 %1021  ;;  %v1037_v27 = vpop.xlane.xlu0 %1036 }
 0x79f   : > { %v1023_v30 = vcvt.f32.s32 %v1022_v60  ;;  %v1038_v31 = vcvt.f32.s32 %v1037_v27  ;;  %vm1057_vm6 = vcmp.eq.s32.totalorder %v1727_v44, %v1011_v59 }
 0x7a0   : > { %v1061_v41 = vsel %vm1057_vm6, 1.0, %v1610_v46 }
 0x7a1   : > { %v1026_v33 = vadd.s32 %v1025_v26, %v1023_v30  ;;  %v1041_v3 = vadd.s32 %v1040_v28, %v1038_v31  ;;  %v508_v26 = vadd.f32 %v1424_v7, %v1880_v2 }
 0x7a2   : > { %v1052_v35 = vpop.xlane.xlu1 %1051 }
 0x7a3   : > { %vm1058_vm7 = vcmp.eq.s32.totalorder %v1727_v44, %v1026_v33  ;;  %v1053_v40 = vcvt.f32.s32 %v1052_v35  ;;  %vm1059_vm8 = vcmp.eq.s32.totalorder %v1727_v44, %v1041_v3 }
 0x7a4   : > { %v1062_v42 = vsel %vm1058_vm7, 1.0, %v1610_v46  ;;  %v1063_v47 = vsel %vm1059_vm8, 1.0, %v1610_v46 }
 0x7a5   : > { %v1065_v43 = vpack.c.bf16 %v1062_v42, %v1061_v41  ;;  %v1056_v45 = vadd.s32 %v1055_v37, %v1053_v40 }
 0x7a7   : > { %vm1060_vm9 = vcmp.eq.s32.totalorder %v1727_v44, %v1056_v45  ;;  %1530 = vmatprep.mubr.msk.bf16.mxu1 %vm521_vm1, %v1065_v43  ;;  %v1538_v44 = vpop.f32.mrf.mxu0 }
 0x7a8   : > { %v1064_v32 = vsel %vm1060_vm9, 1.0, %v1610_v46 }
 0x7a9   : > { %v1066_v50 = vpack.c.bf16 %v1064_v32, %v1063_v47  ;;  %v1186_v57 = vpop.f32.mrf.mxu0 }
 0x7ab   : > { %1531 = vmatmul.mubr.msk.bf16.vlgmr.msra.gmra.mxu1 %vm521_vm1, %v1066_v50  ;;  %v1539_v39 = vpop.f32.mrf.mxu0  ;;  %vm1293_vm1 = vcmask 519168  }
 0x7ad   : > { %v1189_v58 = vpop.f32.mrf.mxu0 }
 0x7af   : > { %v1542_v36 = vpop.f32.mrf.mxu0 }
 0x7b0   : > { %v1251_v0 = vmax.f32 %v1538_v44, %v1542_v36 }
 0x7b1   : > { %v1202_v48 = vpop.f32.mrf.mxu0 }
 0x7b2   : > { %v1249_v8 = vmax.f32 %v1186_v57, %v1202_v48 }
 0x7b3   : > { %v1543_v46 = vpop.f32.mrf.mxu0 }
 0x7b4   : > { %v1252_v11 = vmax.f32 %v1539_v39, %v1543_v46 }
 0x7b5   : > { %v1205_v49 = vpop.f32.mrf.mxu0 }
 0x7b6   : > { %v1250_v19 = vmax.f32 %v1189_v58, %v1205_v49 }
 0x7b7   : > { %v1546_v5 = vpop.f32.mrf.mxu0 }
 0x7b8   : > { %v1255_v1 = vmax.f32 %v1251_v0, %v1546_v5 }
 0x7b9   : > { %v1218_v4 = vpop.f32.mrf.mxu0 }
 0x7ba   : > { %v1253_v12 = vmax.f32 %v1249_v8, %v1218_v4 }
 0x7bb   : > { %v1547_v6 = vpop.f32.mrf.mxu0 }
 0x7bc   : > { %v1256_v16 = vmax.f32 %v1252_v11, %v1547_v6 }
 0x7bd   : > { %v1221_v54 = vpop.f32.mrf.mxu0 }
 0x7be   : > { %v1254_v24 = vmax.f32 %v1250_v19, %v1221_v54 }
 0x86b   : > { %v1532_v51 = vpop.f32.mrf.mxu1 }
 0x86d   : > { %v1107_v52 = vpop.f32.mrf.mxu1 }
 0x86f   : > { %v1533_v38 = vpop.f32.mrf.mxu1 }
 0x870   : > { %v1123_v56 = vpack.c.bf16 %v1533_v38, %v1532_v51 }
 0x871   : > { %v1110_v34 = vpop.f32.mrf.mxu1 }
 0x872   : > { %v1122_v55 = vpack.c.bf16 %v1110_v34, %v1107_v52 }
 0x874   : > { %1548 = vmatprep.mubr.msk.bf16.mxu0 %vm354_vm0, %v1122_v55 }
 0x875   : > { %1549 = vmatmul.mubr.msk.bf16.gmra.mxu0 %vm354_vm0, %v1123_v56 }
 0x935   : > { %v1550_v9 = vpop.f32.mrf.mxu0 }
 0x936   : > { %v1259_v13 = vmax.f32 %v1255_v1, %v1550_v9 }
 0x937   : > { %v1234_v14 = vpop.f32.mrf.mxu0 }
 0x938   : > { %v1263_v17 = vadd.f32 %v1259_v13, %v513_v10  ;;  %v1257_v18 = vmax.f32 %v1253_v12, %v1234_v14 }
 0x939   : > { %v1551_v20 = vpop.f32.mrf.mxu0 }
 0x93a   : > { %vm1267_vm0 = vcmp.ge.f32.partialorder %v1263_v17, 0.0  ;;  %v1271_v21 = vmul.f32 0.2, %v1263_v17  ;;  %v1261_v22 = vadd.f32 %v1257_v18, %v505_v15  ;;  %v1260_v23 = vmax.f32 %v1256_v16, %v1551_v20 }
 0x93b   : > { %v1237_v61 = vpop.f32.mrf.mxu0 }
 0x93c   : > { %v1275_v25 = vsel %vm1267_vm0, %v1263_v17, %v1271_v21  ;;  %vm1265_vm10 = vcmp.ge.f32.partialorder %v1261_v22, 0.0  ;;  %v1269_v62 = vmul.f32 0.2, %v1261_v22  ;;  %v1264_v59 = vadd.f32 %v1260_v23, %v516_v53 }
 0x93d   : > { %v1454_v63 = vpack.c.bf16 %v1275_v25, %v1275_v25  ;;  %v1258_v60 = vmax.f32 %v1254_v24, %v1237_v61 }
 0x93e   : > { %v1273_v27 = vsel %vm1265_vm10, %v1261_v22, %v1269_v62  ;;  %vm1268_vm11 = vcmp.ge.f32.partialorder %v1264_v59, 0.0  ;;  %v1272_v28 = vmul.f32 0.2, %v1264_v59 }
 0x93f   : > { %1296 = vst.msk [vmem:[%s323_s19 + $0x8] sm:$0xf] %vm1293_vm1, %v1454_v63  ;;  %v1452_v29 = vpack.c.bf16 %v1273_v27, %v1273_v27  ;;  %v1262_v30 = vadd.f32 %v1258_v60, %v508_v26 }
 0x940   : > { %v1276_v31 = vsel %vm1268_vm11, %v1264_v59, %v1272_v28 }
 0x941   : > { %1294 = vst.msk [vmem:[%s323_s19] sm:$0xf] %vm1293_vm1, %v1452_v29  ;;  %v1455_v33 = vpack.c.bf16 %v1276_v31, %v1276_v31  ;;  %vm1266_vm12 = vcmp.ge.f32.partialorder %v1262_v30, 0.0  ;;  %v1270_v3 = vmul.f32 0.2, %v1262_v30 }
 0x943   : > { %1297 = vst.msk [vmem:[%s323_s19 + $0xc] sm:$0xf] %vm1293_vm1, %v1455_v33  ;;  %v1274_v35 = vsel %vm1266_vm12, %v1262_v30, %v1270_v3 }
 0x944   : > { %v1453_v37 = vpack.c.bf16 %v1274_v35, %v1274_v35 }
 0x946   : > { %1295 = vst.msk [vmem:[%s323_s19 + $0x4] sm:$0xf] %vm1293_vm1, %v1453_v37 }
 0x947 PF: > { %s16_s23 = sadd.s32 1, %s1608_s23   ;;  %s1927_s21 = smov %s1604_s22 }
 0x948   : > { %p13_p5 = scmp.ge.s32.totalorder %s16_s23, 4   ;;  %s1928_s22 = smov %s1930_s24 }
 0x94a   :  { %15 = sbr.rel (!%p13_p5) target bundleno = 2 (0x2), region = 80 }

// kernel: dgcnn_forward.8
= control target key start
LH: loop header
LB: loop body
LE: loop exit
PB: predicated region body
PF: predicated region fallthrough
CT: control target
= control target key end

     0   :  { %s1731_s21 = smov 0   ;;  %s1733_s22 = smov 0   ;;  %s2025_s0 = inlined_call_operand.vmem [shape: f32[2,1,32], index: 0, kind: input, shape index: {}]   ;;  %s2026_s1 = inlined_call_operand.vmem [shape: bf16[2,32,64], index: 1, kind: input, shape index: {}, may-alias: {1,2}]   ;;  %s2027_s2 = inlined_call_operand.vmem [shape: bf16[2,32,64], index: 2, kind: input, shape index: {}, may-alias: {1,2}]   ;;  %s2028_s3 = inlined_call_operand.vmem [shape: bf16[64,64], index: 3, kind: input, shape index: {}]   ;;  %s2029_s4 = inlined_call_operand.vmem [shape: bf16[64,64], index: 4, kind: input, shape index: {}]   ;;  %s2030_s5 = inlined_call_operand.vmem [shape: f32[1,64], index: 5, kind: input, shape index: {}]   ;;  %s2031_s6 = inlined_call_operand.vmem [shape: bf16[2,32,64], index: 6, kind: output, shape index: {}]  }
   0x1   :  { %s1735_s23 = smov 0  }
   0x2 LB: > { %s28_s24 = sadd.s32 1, %s1689_s22  ;;  %p1462_p0 = scmp.ge.s32.totalorder %s1693_s23, 1  ;;  %s1693_s23 = sphi %s1735_s23, %s16_s23   ;;  %s1689_s22 = sphi %s1733_s22, %s2033_s22   ;;  %s1685_s21 = sphi %s1731_s21, %s2032_s21  }
   0x3   : > { %p30_p1 = scmp.ge.s32.totalorder %s28_s24, 2  ;;  %p251_p2 = scmp.lt.s32.totalorder %s1693_s23, 3 }
   0x5   : > { %s2035_s24 = smov (%p30_p1, %s28_s24), 0  ;;  %p252_p3 = pnand %p1462_p0, %p251_p2 }
   0x6   : > { %p297_p4 = scmp.lt.s32.totalorder (!%p252_p3), %s1685_s21, 1 }
   0x7   : > { %255 = sbr.rel (%p252_p3) target bundleno = 2375 (0x947), region = 44 }
   0xc   : > { %s2037_s21 = smov (!%p297_p4, %s1685_s21), 1  ;;  %vm354_vm0 = vcmask 523264   ;;  %vm545_vm1 = vcmask 261120   ;;  %v543_v43 = vlaneseq }
   0xd   : > { %s1752_s25 = sshll.u32 %s2037_s21, 4  ;;  %s299_s10 = scalar_lea.vmem %s2025_s0, %s2037_s21 }
   0xe   : > { %s304_s28 = scalar_lea.vmem %s2026_s1, %s1752_s25  ;;  %s313_s7 = scalar_lea.vmem %s2027_s2, %s1752_s25  ;;  %v1475_v29 = vld [vmem:[%s299_s10] ss:$0 sm:$0xff]  ;;  %v1811_v44 = vand.u32 127, %v543_v43 }
   0xf   : > { %v1762_v0 = vld [vmem:[%s304_s28 + $0x8] sm:$0xff]   ;;  %v1764_v1 = vld [vmem:[%s304_s28] sm:$0xff]   ;;  %s323_s11 = scalar_lea.vmem %s2031_s6, %s1752_s25 }
  0x10   : > { %1630 = vmatprep.subr.msk.bf16.mxu1 %vm354_vm0, %v1762_v0  ;;  %v365_v2 = vsel %vm354_vm0, %v1762_v0, 0  ;;  %v330_v3 = vld [vmem:[%s313_s7] sm:$0xff]   ;;  %v1770_v4 = vld [vmem:[%s313_s7 + $0x8] sm:$0xff]   ;;  %1574 = vmatprep.subr.bf16.mxu0 %v1762_v0  ;;  %v362_v14 = vsel %vm354_vm0, %v1764_v1, 0 }
  0x11   : > { %1555 = vmatpush3.bf16.xpose.msra.mxu1 %v365_v2  ;;  %v418_v5 = vunpack.c.l.bf16 %v1770_v4  ;;  %1575 = vmatpush3.bf16.msra.mxu0 %v1762_v0  ;;  %v416_v6 = vunpack.c.l.bf16 %v330_v3  ;;  %v419_v7 = vunpack.c.h.bf16 %v1770_v4  ;;  %v417_v8 = vunpack.c.h.bf16 %v330_v3 }
  0x12   : > { %1631 = vmatprep.subr.msk.bf16.mxu1 %vm354_vm0, %v1764_v1  ;;  %1576 = vmatprep.subr.bf16.mxu0 %v1764_v1 }
  0x13   : > { %1558 = vmatprep.mubr.msk.bf16.mxu1 %vm354_vm0, %v330_v3  ;;  %v422_v9 = vmul.f32 %v418_v5, %v418_v5  ;;  %v420_v10 = vmul.f32 %v416_v6, %v416_v6  ;;  %v423_v11 = vmul.f32 %v419_v7, %v419_v7  ;;  %v421_v12 = vmul.f32 %v417_v8, %v417_v8 }
  0x15   : > { %v430_v13 = vsel %vm354_vm0, %v422_v9, 0.0  ;;  %1577 = vmatpush3.bf16.msra.mxu0 %v1764_v1  ;;  %v424_v15 = vsel %vm354_vm0, %v420_v10, 0.0  ;;  %v433_v16 = vsel %vm354_vm0, %v423_v11, 0.0  ;;  %v427_v17 = vsel %vm354_vm0, %v421_v12, 0.0 }
  0x16   : > { %431 = vadd.xlane.f32.xlu1 %v430_v13  ;;  %1590 = vmatprep.subr.bf16.mxu0 %v1762_v0 }
  0x17   : > { %425 = vadd.xlane.f32.xlu0 %v424_v15 }
  0x19   : > { %1557 = vmatpush3.bf16.xpose.msra.mxu1 %v362_v14 }
  0x1a   : > { %434 = vadd.xlane.f32.xlu1 %v433_v16 }
  0x1b   : > { %428 = vadd.xlane.f32.xlu0 %v427_v17 }
  0x20   : > { %1559 = vmatmul.mubr.msk.bf16.vlgmr.msra.gmra.mxu1 %vm354_vm0, %v1770_v4 }
  0x21   : > { %1570 = vmatprep.mubr.msk.bf16.mxu1 %vm354_vm0, %v330_v3 }
  0x9f   : > { %v432_v18 = vpop.xlane.xlu1 %431 }
  0xa0   : > { %v426_v20 = vpop.xlane.xlu0 %425 }
  0xa3   : > { %v435_v28 = vpop.xlane.xlu1 %434 }
  0xa4   : > { %v429_v31 = vpop.xlane.xlu0 %428 }
  0xe0   : > { %v1560_v19 = vpop.f32.mrf.mxu1 }
  0xe1   : > { %v438_v21 = vmul.f32 2.0, %v1560_v19 }
  0xe2   : > { %v401_v22 = vpop.f32.mrf.mxu1 }
  0xe3   : > { %v436_v23 = vmul.f32 2.0, %v401_v22  ;;  %v442_v25 = vsub.f32 %v438_v21, %v432_v18 }
  0xe4   : > { %v1561_v24 = vpop.f32.mrf.mxu1 }
  0xe5   : > { %v440_v26 = vsub.f32 %v436_v23, %v426_v20  ;;  %v439_v27 = vmul.f32 2.0, %v1561_v24  ;;  %v1797_v34 = vsub.f32 %v442_v25, %v1475_v29 }
  0xe6   : > { %v404_v30 = vpop.f32.mrf.mxu1 }
  0xe7   : > { %v1795_v32 = vsub.f32 %v440_v26, %v1475_v29  ;;  %v437_v33 = vmul.f32 2.0, %v404_v30  ;;  %v443_v35 = vsub.f32 %v439_v27, %v435_v28  ;;  %v552_v41 = vsel %vm545_vm1, %v1797_v34, -inf }
  0xe9   : > { %v441_v36 = vsub.f32 %v437_v33, %v429_v31  ;;  %v546_v37 = vsel %vm545_vm1, %v1795_v32, -inf  ;;  %v1803_v39 = vsub.f32 %v443_v35, %v1475_v29 }
  0xea   : > { %547 = vmax.xlane.f32.xlu0 %v546_v37 }
  0xeb   : > { %v1801_v38 = vsub.f32 %v441_v36, %v1475_v29  ;;  %v555_v42 = vsel %vm545_vm1, %v1803_v39, -inf }
  0xed   : > { %v549_v40 = vsel %vm545_vm1, %v1801_v38, -inf }
  0xee   : > { %550 = vmax.xlane.f32.xlu1 %v549_v40  ;;  %553 = vmax.xlane.f32.xlu0 %v552_v41 }
  0xf2   : > { %556 = vmax.xlane.f32.xlu1 %v555_v42 }
 0x173   : > { %v548_v45 = vpop.xlane.xlu0 %547 }
 0x174   : > { %vm558_vm2 = vcmp.ge.f32.partialorder %v1795_v32, %v548_v45 }
 0x175   : > { %v562_v46 = vsel %vm558_vm2, %v1811_v44, 32 }
 0x176   : > { %v566_v47 = vsel %vm545_vm1, %v562_v46, 2147483647 }
 0x177   : > { %v551_v48 = vpop.xlane.xlu1 %550  ;;  %v554_v49 = vpop.xlane.xlu0 %553  ;;  %v568_v50 = vshra.s32 %v566_v47, 16  ;;  %v567_v3 = vand.u32 65535, %v566_v47 }
 0x178   : > { %vm559_vm3 = vcmp.ge.f32.partialorder %v1801_v38, %v551_v48  ;;  %vm560_vm4 = vcmp.ge.f32.partialorder %v1797_v34, %v554_v49 }
 0x179   : > { %v563_v51 = vsel %vm559_vm3, %v1811_v44, 32  ;;  %v564_v52 = vsel %vm560_vm4, %v1811_v44, 32  ;;  %v570_v53 = vcvt.s32.f32 %v568_v50  ;;  %v569_v6 = vcvt.s32.f32 %v567_v3 }
 0x17a   : > { %v581_v54 = vsel %vm545_vm1, %v563_v51, 2147483647  ;;  %v596_v55 = vsel %vm545_vm1, %v564_v52, 2147483647 }
 0x17b   : > { %v557_v56 = vpop.xlane.xlu1 %556  ;;  %571 = vmin.xlane.f32.xlu0 %v570_v53  ;;  %v583_v57 = vshra.s32 %v581_v54, 16  ;;  %v598_v58 = vshra.s32 %v596_v55, 16  ;;  %v582_v7 = vand.u32 65535, %v581_v54  ;;  %v597_v8 = vand.u32 65535, %v596_v55 }
 0x17c   : > { %vm561_vm5 = vcmp.ge.f32.partialorder %v1803_v39, %v557_v56 }
 0x17d   : > { %v565_v59 = vsel %vm561_vm5, %v1811_v44, 32  ;;  %v585_v60 = vcvt.s32.f32 %v583_v57  ;;  %v600_v61 = vcvt.s32.f32 %v598_v58  ;;  %v584_v12 = vcvt.s32.f32 %v582_v7 }
 0x17e   : > { %v611_v62 = vsel %vm545_vm1, %v565_v59, 2147483647  ;;  %v599_v13 = vcvt.s32.f32 %v597_v8 }
 0x17f   : > { %586 = vmin.xlane.f32.xlu1 %v585_v60  ;;  %601 = vmin.xlane.f32.xlu0 %v600_v61  ;;  %v613_v63 = vshra.s32 %v611_v62, 16  ;;  %v612_v14 = vand.u32 65535, %v611_v62 }
 0x181   : > { %v615_v2 = vcvt.s32.f32 %v613_v63  ;;  %v614_v18 = vcvt.s32.f32 %v612_v14 }
 0x183   : > { %616 = vmin.xlane.f32.xlu1 %v615_v2 }
 0x204   : > { %v572_v5 = vpop.xlane.xlu0 %571 }
 0x205   : > { %vm573_vm6 = vcmp.eq.f32.partialorder %v570_v53, %v572_v5  ;;  %v578_v20 = vcvt.f32.s32 %v572_v5 }
 0x206   : > { %v574_v9 = vsel %vm573_vm6, %v569_v6, inf }
 0x207   : > { %575 = vmin.xlane.f32.xlu0 %v574_v9  ;;  %v579_v24 = vshll.u32 %v578_v20, 16 }
 0x208   : > { %v587_v10 = vpop.xlane.xlu1 %586  ;;  %v602_v11 = vpop.xlane.xlu0 %601 }
 0x209   : > { %vm588_vm7 = vcmp.eq.f32.partialorder %v585_v60, %v587_v10  ;;  %vm603_vm8 = vcmp.eq.f32.partialorder %v600_v61, %v602_v11  ;;  %v593_v21 = vcvt.f32.s32 %v587_v10  ;;  %v608_v22 = vcvt.f32.s32 %v602_v11 }
 0x20a   : > { %v589_v15 = vsel %vm588_vm7, %v584_v12, inf  ;;  %v604_v16 = vsel %vm603_vm8, %v599_v13, inf }
 0x20b   : > { %590 = vmin.xlane.f32.xlu1 %v589_v15  ;;  %605 = vmin.xlane.f32.xlu0 %v604_v16  ;;  %v594_v27 = vshll.u32 %v593_v21, 16  ;;  %v609_v28 = vshll.u32 %v608_v22, 16  ;;  %v1661_v15 = vld [vmem:[%s2029_s4 + $0x18] sm:$0xff]   ;;  %v1662_v16 = vld [vmem:[%s2029_s4 + $0x10] sm:$0xff]  }
 0x20c   : > { %v617_v17 = vpop.xlane.xlu1 %616  ;;  %1562 = vmatprep.subr.bf16.mxu1 %v1661_v15 }
 0x20d   : > { %vm618_vm9 = vcmp.eq.f32.partialorder %v615_v2, %v617_v17  ;;  %v623_v31 = vcvt.f32.s32 %v617_v17  ;;  %1563 = vmatpush3.bf16.msra.mxu1 %v1661_v15 }
 0x20e   : > { %v619_v19 = vsel %vm618_vm9, %v614_v18, inf  ;;  %1564 = vmatprep.subr.bf16.mxu1 %v1662_v16 }
 0x20f   : > { %620 = vmin.xlane.f32.xlu1 %v619_v19  ;;  %v624_v43 = vshll.u32 %v623_v31, 16 }
 0x211   : > { %1565 = vmatpush3.bf16.msra.mxu1 %v1662_v16 }
 0x290   : > { %v576_v23 = vpop.xlane.xlu0 %575 }
 0x291   : > { %v577_v25 = vcvt.f32.s32 %v576_v23 }
 0x293   : > { %v580_v26 = vadd.s32 %v579_v24, %v577_v25 }
 0x294   : > { %v591_v29 = vpop.xlane.xlu1 %590  ;;  %v606_v30 = vpop.xlane.xlu0 %605 }
 0x295   : > { %v592_v33 = vcvt.f32.s32 %v591_v29  ;;  %v607_v35 = vcvt.f32.s32 %v606_v30  ;;  %vm626_vm10 = vcmp.eq.s32.totalorder %v1811_v44, %v580_v26 }
 0x296   : > { %v1827_v36 = vsel %vm626_vm10, -inf, %v1795_v32  ;;  %v1695_v32 = vmov 0.0  }
 0x297   : > { %v595_v37 = vadd.s32 %v594_v27, %v592_v33  ;;  %v610_v40 = vadd.s32 %v609_v28, %v607_v35  ;;  %v699_v41 = vsel %vm545_vm1, %v1827_v36, -inf  ;;  %v630_v48 = vsel %vm626_vm10, 1.0, %v1695_v32  ;;  %v1663_v35 = vld [vmem:[%s2029_s4 + $0x8] sm:$0xff]  }
 0x298   : > { %v621_v42 = vpop.xlane.xlu1 %620  ;;  %700 = vmax.xlane.f32.xlu0 %v699_v41  ;;  %1566 = vmatprep.subr.bf16.mxu1 %v1663_v35 }
 0x299   : > { %v622_v45 = vcvt.f32.s32 %v621_v42  ;;  %vm627_vm11 = vcmp.eq.s32.totalorder %v1811_v44, %v595_v37  ;;  %vm628_vm12 = vcmp.eq.s32.totalorder %v1811_v44, %v610_v40  ;;  %1567 = vmatpush3.bf16.msra.mxu1 %v1663_v35  ;;  %v1664_v37 = vld [vmem:[%s2029_s4] sm:$0xff]  }
 0x29a   : > { %v1834_v46 = vsel %vm627_vm11, -inf, %v1801_v38  ;;  %v1837_v47 = vsel %vm628_vm12, -inf, %v1797_v34  ;;  %v631_v49 = vsel %vm627_vm11, 1.0, %v1695_v32  ;;  %v632_v34 = vsel %vm628_vm12, 1.0, %v1695_v32  ;;  %1568 = vmatprep.subr.bf16.mxu1 %v1664_v37 }
 0x29b   : > { %v625_v50 = vadd.s32 %v624_v43, %v622_v45  ;;  %v702_v51 = vsel %vm545_vm1, %v1834_v46, -inf  ;;  %v705_v52 = vsel %vm545_vm1, %v1837_v47, -inf  ;;  %v634_v53 = vpack.c.bf16 %v631_v49, %v630_v48 }
 0x29c   : > { %703 = vmax.xlane.f32.xlu1 %v702_v51  ;;  %706 = vmax.xlane.f32.xlu0 %v705_v52 }
 0x29d   : > { %1578 = vmatprep.mubr.msk.bf16.mxu0 %vm545_vm1, %v634_v53  ;;  %vm629_vm13 = vcmp.eq.s32.totalorder %v1811_v44, %v625_v50  ;;  %1569 = vmatpush3.bf16.msra.mxu1 %v1664_v37 }
 0x29e   : > { %v1849_v38 = vsel %vm629_vm13, -inf, %v1803_v39  ;;  %v633_v54 = vsel %vm629_vm13, 1.0, %v1695_v32  ;;  %1582 = vmatprep.subr.bf16.mxu1 %v1762_v0 }
 0x29f   : > { %v708_v55 = vsel %vm545_vm1, %v1849_v38, -inf  ;;  %v635_v56 = vpack.c.bf16 %v633_v54, %v632_v34 }
 0x2a0   : > { %709 = vmax.xlane.f32.xlu1 %v708_v55  ;;  %1571 = vmatmul.mubr.msk.bf16.vlgmr.msra.gmra.mxu1 %vm354_vm0, %v1770_v4 }
 0x2a1   : > { %1579 = vmatmul.mubr.msk.bf16.vlgmr.msra.gmra.mxu0 %vm545_vm1, %v635_v56  ;;  %1583 = vmatpush3.bf16.msra.mxu1 %v1762_v0 }
 0x2a2   : > { %1591 = vmatpush3.bf16.msra.mxu0 %v1762_v0  ;;  %1584 = vmatprep.subr.bf16.mxu1 %v1764_v1 }
 0x2a3   : > { %1592 = vmatprep.subr.bf16.mxu0 %v1764_v1 }
 0x2a5   : > { %1585 = vmatpush3.bf16.msra.mxu1 %v1764_v1 }
 0x2a6   : > { %1593 = vmatpush3.bf16.msra.mxu0 %v1764_v1  ;;  %1598 = vmatprep.subr.bf16.mxu1 %v1762_v0 }
 0x321   : > { %v701_v57 = vpop.xlane.xlu0 %700 }
 0x322   : > { %vm711_vm14 = vcmp.ge.f32.partialorder %v1827_v36, %v701_v57 }
 0x323   : > { %v715_v39 = vsel %vm711_vm14, %v1811_v44, 32 }
 0x324   : > { %v719_v58 = vsel %vm545_vm1, %v715_v39, 2147483647 }
 0x325   : > { %v704_v59 = vpop.xlane.xlu1 %703  ;;  %v707_v60 = vpop.xlane.xlu0 %706  ;;  %v721_v61 = vshra.s32 %v719_v58, 16  ;;  %v720_v17 = vand.u32 65535, %v719_v58 }
 0x326   : > { %vm712_vm15 = vcmp.ge.f32.partialorder %v1834_v46, %v704_v59  ;;  %vm713_vm2 = vcmp.ge.f32.partialorder %v1837_v47, %v707_v60 }
 0x327   : > { %v716_v62 = vsel %vm712_vm15, %v1811_v44, 32  ;;  %v717_v63 = vsel %vm713_vm2, %v1811_v44, 32  ;;  %v723_v2 = vcvt.s32.f32 %v721_v61  ;;  %v722_v19 = vcvt.s32.f32 %v720_v17 }
 0x328   : > { %v734_v3 = vsel %vm545_vm1, %v716_v62, 2147483647  ;;  %v749_v5 = vsel %vm545_vm1, %v717_v63, 2147483647 }
 0x329   : > { %v710_v6 = vpop.xlane.xlu1 %709  ;;  %724 = vmin.xlane.f32.xlu0 %v723_v2  ;;  %v736_v7 = vshra.s32 %v734_v3, 16  ;;  %v751_v8 = vshra.s32 %v749_v5, 16  ;;  %v735_v20 = vand.u32 65535, %v734_v3  ;;  %v750_v21 = vand.u32 65535, %v749_v5 }
 0x32a   : > { %vm714_vm3 = vcmp.ge.f32.partialorder %v1849_v38, %v710_v6 }
 0x32b   : > { %v718_v9 = vsel %vm714_vm3, %v1811_v44, 32  ;;  %v738_v10 = vcvt.s32.f32 %v736_v7  ;;  %v753_v11 = vcvt.s32.f32 %v751_v8  ;;  %v737_v25 = vcvt.s32.f32 %v735_v20 }
 0x32c   : > { %v764_v12 = vsel %vm545_vm1, %v718_v9, 2147483647  ;;  %v752_v26 = vcvt.s32.f32 %v750_v21 }
 0x32d   : > { %739 = vmin.xlane.f32.xlu1 %v738_v10  ;;  %754 = vmin.xlane.f32.xlu0 %v753_v11  ;;  %v766_v13 = vshra.s32 %v764_v12, 16  ;;  %v765_v27 = vand.u32 65535, %v764_v12 }
 0x32f   : > { %v768_v14 = vcvt.s32.f32 %v766_v13  ;;  %v767_v31 = vcvt.s32.f32 %v765_v27 }
 0x331   : > { %769 = vmin.xlane.f32.xlu1 %v768_v14 }
 0x3b2   : > { %v725_v18 = vpop.xlane.xlu0 %724 }
 0x3b3   : > { %vm726_vm4 = vcmp.eq.f32.partialorder %v723_v2, %v725_v18  ;;  %v731_v40 = vcvt.f32.s32 %v725_v18 }
 0x3b4   : > { %v727_v22 = vsel %vm726_vm4, %v722_v19, inf }
 0x3b5   : > { %728 = vmin.xlane.f32.xlu0 %v727_v22  ;;  %v732_v45 = vshll.u32 %v731_v40, 16 }
 0x3b6   : > { %v740_v23 = vpop.xlane.xlu1 %739  ;;  %v755_v24 = vpop.xlane.xlu0 %754 }
 0x3b7   : > { %vm741_vm5 = vcmp.eq.f32.partialorder %v738_v10, %v740_v23  ;;  %vm756_vm6 = vcmp.eq.f32.partialorder %v753_v11, %v755_v24  ;;  %v746_v41 = vcvt.f32.s32 %v740_v23  ;;  %v761_v42 = vcvt.f32.s32 %v755_v24 }
 0x3b8   : > { %v742_v28 = vsel %vm741_vm5, %v737_v25, inf  ;;  %v757_v29 = vsel %vm756_vm6, %v752_v26, inf }
 0x3b9   : > { %743 = vmin.xlane.f32.xlu1 %v742_v28  ;;  %758 = vmin.xlane.f32.xlu0 %v757_v29  ;;  %v747_v50 = vshll.u32 %v746_v41, 16  ;;  %v762_v51 = vshll.u32 %v761_v42, 16 }
 0x3ba   : > { %v770_v30 = vpop.xlane.xlu1 %769 }
 0x3bb   : > { %vm771_vm7 = vcmp.eq.f32.partialorder %v768_v14, %v770_v30  ;;  %v776_v4 = vcvt.f32.s32 %v770_v30 }
 0x3bc   : > { %v772_v33 = vsel %vm771_vm7, %v767_v31, inf }
 0x3bd   : > { %773 = vmin.xlane.f32.xlu1 %v772_v33  ;;  %v777_v59 = vshll.u32 %v776_v4, 16 }
 0x43e   : > { %v729_v43 = vpop.xlane.xlu0 %728 }
 0x43f   : > { %v730_v48 = vcvt.f32.s32 %v729_v43 }
 0x441   : > { %v733_v49 = vadd.s32 %v732_v45, %v730_v48 }
 0x442   : > { %v744_v52 = vpop.xlane.xlu1 %743  ;;  %v759_v53 = vpop.xlane.xlu0 %758 }
 0x443   : > { %v745_v34 = vcvt.f32.s32 %v744_v52  ;;  %v760_v54 = vcvt.f32.s32 %v759_v53  ;;  %vm779_vm8 = vcmp.eq.s32.totalorder %v1811_v44, %v733_v49 }
 0x444   : > { %v1891_v55 = vsel %vm779_vm8, -inf, %v1827_v36  ;;  %v783_v61 = vsel %vm779_vm8, 1.0, %v1695_v32 }
 0x445   : > { %v748_v56 = vadd.s32 %v747_v50, %v745_v34  ;;  %v763_v57 = vadd.s32 %v762_v51, %v760_v54  ;;  %v850_v39 = vsel %vm545_vm1, %v1891_v55, -inf  ;;  %v1665_v51 = vld [vmem:[%s2028_s3 + $0x18] sm:$0xff]   ;;  %v1937_v54 = vpop.f32.mrf.mxu0 }
 0x446   : > { %v774_v58 = vpop.xlane.xlu1 %773  ;;  %851 = vmax.xlane.f32.xlu0 %v850_v39  ;;  %1606 = vmatprep.subr.bf16.mxu0 %v1665_v51 }
 0x447   : > { %v775_v60 = vcvt.f32.s32 %v774_v58  ;;  %vm780_vm9 = vcmp.eq.s32.totalorder %v1811_v44, %v748_v56  ;;  %vm781_vm10 = vcmp.eq.s32.totalorder %v1811_v44, %v763_v57  ;;  %v1939_v56 = vpop.f32.mrf.mxu1 }
 0x448   : > { %v1899_v62 = vsel %vm780_vm9, -inf, %v1834_v46  ;;  %v784_v36 = vsel %vm780_vm9, 1.0, %v1695_v32  ;;  %v1903_v63 = vsel %vm781_vm10, -inf, %v1837_v47  ;;  %v785_v46 = vsel %vm781_vm10, 1.0, %v1695_v32 }
 0x449   : > { %v778_v2 = vadd.s32 %v777_v59, %v775_v60  ;;  %v853_v3 = vsel %vm545_vm1, %v1899_v62, -inf  ;;  %v787_v5 = vpack.c.bf16 %v784_v36, %v783_v61  ;;  %v856_v6 = vsel %vm545_vm1, %v1903_v63, -inf }
 0x44a   : > { %854 = vmax.xlane.f32.xlu1 %v853_v3  ;;  %857 = vmax.xlane.f32.xlu0 %v856_v6  ;;  %v1941_v3 = vpop.f32.mrf.mxu1 }
 0x44b   : > { %1586 = vmatprep.mubr.msk.bf16.mxu1 %vm545_vm1, %v787_v5  ;;  %vm782_vm11 = vcmp.eq.s32.totalorder %v1811_v44, %v778_v2  ;;  %v678_v2 = vpop.f32.mrf.mxu0 }
 0x44c   : > { %v1913_v7 = vsel %vm782_vm11, -inf, %v1849_v38  ;;  %v786_v47 = vsel %vm782_vm11, 1.0, %v1695_v32 }
 0x44d   : > { %v859_v8 = vsel %vm545_vm1, %v1913_v7, -inf  ;;  %v788_v9 = vpack.c.bf16 %v786_v47, %v785_v46 }
 0x44e   : > { %860 = vmax.xlane.f32.xlu1 %v859_v8 }
 0x44f   : > { %1587 = vmatmul.mubr.msk.bf16.vlgmr.msra.gmra.mxu1 %vm545_vm1, %v788_v9 }
 0x450   : > { %1599 = vmatpush3.bf16.msra.mxu1 %v1762_v0 }
 0x451   : > { %1600 = vmatprep.subr.bf16.mxu1 %v1764_v1 }
 0x454   : > { %1601 = vmatpush3.bf16.msra.mxu1 %v1764_v1 }
 0x4cf   : > { %v852_v10 = vpop.xlane.xlu0 %851 }
 0x4d0   : > { %vm862_vm12 = vcmp.ge.f32.partialorder %v1891_v55, %v852_v10 }
 0x4d1   : > { %v866_v38 = vsel %vm862_vm12, %v1811_v44, 32 }
 0x4d2   : > { %v870_v11 = vsel %vm545_vm1, %v866_v38, 2147483647 }
 0x4d3   : > { %v855_v12 = vpop.xlane.xlu1 %854  ;;  %v858_v13 = vpop.xlane.xlu0 %857  ;;  %v872_v14 = vshra.s32 %v870_v11, 16  ;;  %v871_v27 = vand.u32 65535, %v870_v11 }
 0x4d4   : > { %vm863_vm13 = vcmp.ge.f32.partialorder %v1899_v62, %v855_v12  ;;  %vm864_vm14 = vcmp.ge.f32.partialorder %v1903_v63, %v858_v13  ;;  %v1581_v11 = vpop.f32.mrf.mxu0  ;;  %v1946_v12 = vpop.f32.mrf.mxu1 }
 0x4d5   : > { %v867_v0 = vsel %vm863_vm13, %v1811_v44, 32  ;;  %v868_v15 = vsel %vm864_vm14, %v1811_v44, 32  ;;  %v874_v16 = vcvt.s32.f32 %v872_v14  ;;  %v873_v29 = vcvt.s32.f32 %v871_v27 }
 0x4d6   : > { %v885_v1 = vsel %vm545_vm1, %v867_v0, 2147483647  ;;  %v900_v17 = vsel %vm545_vm1, %v868_v15, 2147483647 }
 0x4d7   : > { %v861_v18 = vpop.xlane.xlu1 %860  ;;  %875 = vmin.xlane.f32.xlu0 %v874_v16  ;;  %v887_v19 = vshra.s32 %v885_v1, 16  ;;  %v902_v20 = vshra.s32 %v900_v17, 16  ;;  %v886_v30 = vand.u32 65535, %v885_v1  ;;  %v901_v31 = vand.u32 65535, %v900_v17 }
 0x4d8   : > { %vm865_vm15 = vcmp.ge.f32.partialorder %v1913_v7, %v861_v18 }
 0x4d9   : > { %v869_v21 = vsel %vm865_vm15, %v1811_v44, 32  ;;  %v889_v22 = vcvt.s32.f32 %v887_v19  ;;  %v904_v23 = vcvt.s32.f32 %v902_v20  ;;  %v888_v40 = vcvt.s32.f32 %v886_v30  ;;  %v681_v20 = vpop.f32.mrf.mxu0 }
 0x4da   : > { %v915_v24 = vsel %vm545_vm1, %v869_v21, 2147483647  ;;  %v903_v41 = vcvt.s32.f32 %v901_v31  ;;  %v1956_v21 = vpop.f32.mrf.mxu1 }
 0x4db   : > { %890 = vmin.xlane.f32.xlu1 %v889_v22  ;;  %905 = vmin.xlane.f32.xlu0 %v904_v23  ;;  %v917_v25 = vshra.s32 %v915_v24, 16  ;;  %v916_v42 = vand.u32 65535, %v915_v24 }
 0x4dd   : > { %v919_v26 = vcvt.s32.f32 %v917_v25  ;;  %v918_v49 = vcvt.s32.f32 %v916_v42  ;;  %v1666_v25 = vld [vmem:[%s2028_s3 + $0x10] sm:$0xff]  }
 0x4df   : > { %920 = vmin.xlane.f32.xlu1 %v919_v26 }
 0x50f   : > { %v1588_v27 = vpop.f32.mrf.mxu1 }
 0x560   : > { %v876_v28 = vpop.xlane.xlu0 %875 }
 0x561   : > { %vm877_vm2 = vcmp.eq.f32.partialorder %v874_v16, %v876_v28  ;;  %v882_v52 = vcvt.f32.s32 %v876_v28  ;;  %v829_v28 = vpop.f32.mrf.mxu1 }
 0x562   : > { %v878_v33 = vsel %vm877_vm2, %v873_v29, inf  ;;  %v1668_v29 = vld [vmem:[%s2028_s3] sm:$0xff]  }
 0x563   : > { %879 = vmin.xlane.f32.xlu0 %v878_v33  ;;  %v883_v57 = vshll.u32 %v882_v52, 16  ;;  %v1589_v30 = vpop.f32.mrf.mxu1  ;;  %v694_v33 = vpack.c.bf16 %v1581_v11, %v1937_v54 }
 0x564   : > { %v891_v35 = vpop.xlane.xlu1 %890  ;;  %v906_v37 = vpop.xlane.xlu0 %905 }
 0x565   : > { %vm892_vm3 = vcmp.eq.f32.partialorder %v889_v22, %v891_v35  ;;  %vm907_vm4 = vcmp.eq.f32.partialorder %v904_v23, %v906_v37  ;;  %v897_v53 = vcvt.f32.s32 %v891_v35  ;;  %v912_v4 = vcvt.f32.s32 %v906_v37  ;;  %v832_v31 = vpop.f32.mrf.mxu1 }
 0x566   : > { %v893_v43 = vsel %vm892_vm3, %v888_v40, inf  ;;  %v908_v45 = vsel %vm907_vm4, %v903_v41, inf  ;;  %v844_v35 = vpack.c.bf16 %v832_v31, %v829_v28  ;;  %v845_v37 = vpack.c.bf16 %v1589_v30, %v1588_v27 }
 0x567   : > { %894 = vmin.xlane.f32.xlu1 %v893_v43  ;;  %909 = vmin.xlane.f32.xlu0 %v908_v45  ;;  %v898_v59 = vshll.u32 %v897_v53, 16  ;;  %v913_v60 = vshll.u32 %v912_v4, 16 }
 0x568   : > { %v921_v48 = vpop.xlane.xlu1 %920 }
 0x569   : > { %vm922_vm5 = vcmp.eq.f32.partialorder %v919_v26, %v921_v48  ;;  %v927_v5 = vcvt.f32.s32 %v921_v48  ;;  %v693_v26 = vpack.c.bf16 %v681_v20, %v678_v2 }
 0x56a   : > { %v923_v50 = vsel %vm922_vm5, %v918_v49, inf }
 0x56b   : > { %924 = vmin.xlane.f32.xlu1 %v923_v50  ;;  %v928_v13 = vshll.u32 %v927_v5, 16 }
 0x5ec   : > { %v880_v34 = vpop.xlane.xlu0 %879 }
 0x5ed   : > { %v881_v39 = vcvt.f32.s32 %v880_v34 }
 0x5ef   : > { %v884_v58 = vadd.s32 %v883_v57, %v881_v39 }
 0x5f0   : > { %v895_v61 = vpop.xlane.xlu1 %894  ;;  %v910_v36 = vpop.xlane.xlu0 %909 }
 0x5f1   : > { %v896_v6 = vcvt.f32.s32 %v895_v61  ;;  %v911_v46 = vcvt.f32.s32 %v910_v36  ;;  %vm930_vm6 = vcmp.eq.s32.totalorder %v1811_v44, %v884_v58 }
 0x5f2   : > { %v997_v47 = vsel %vm930_vm6, -inf, %v1891_v55  ;;  %v934_v0 = vsel %vm930_vm6, 1.0, %v1695_v32 }
 0x5f3   : > { %v899_v8 = vadd.s32 %v898_v59, %v896_v6  ;;  %v914_v9 = vadd.s32 %v913_v60, %v911_v46  ;;  %v1001_v10 = vsel %vm545_vm1, %v997_v47, -inf }
 0x5f4   : > { %v925_v38 = vpop.xlane.xlu1 %924  ;;  %1002 = vmax.xlane.f32.xlu0 %v1001_v10 }
 0x5f5   : > { %v926_v14 = vcvt.f32.s32 %v925_v38  ;;  %vm931_vm7 = vcmp.eq.s32.totalorder %v1811_v44, %v899_v8  ;;  %vm932_vm8 = vcmp.eq.s32.totalorder %v1811_v44, %v914_v9 }
 0x5f6   : > { %v998_v15 = vsel %vm931_vm7, -inf, %v1899_v62  ;;  %v935_v55 = vsel %vm931_vm7, 1.0, %v1695_v32  ;;  %v999_v16 = vsel %vm932_vm8, -inf, %v1903_v63  ;;  %v936_v62 = vsel %vm932_vm8, 1.0, %v1695_v32 }
 0x5f7   : > { %v929_v1 = vadd.s32 %v928_v13, %v926_v14  ;;  %v1004_v17 = vsel %vm545_vm1, %v998_v15, -inf  ;;  %v938_v18 = vpack.c.bf16 %v935_v55, %v934_v0  ;;  %v1007_v19 = vsel %vm545_vm1, %v999_v16, -inf }
 0x5f8   : > { %1005 = vmax.xlane.f32.xlu1 %v1004_v17  ;;  %1008 = vmax.xlane.f32.xlu0 %v1007_v19 }
 0x5f9   : > { %1594 = vmatprep.mubr.msk.bf16.mxu0 %vm545_vm1, %v938_v18  ;;  %vm933_vm9 = vcmp.eq.s32.totalorder %v1811_v44, %v929_v1 }
 0x5fa   : > { %v1000_v22 = vsel %vm933_vm9, -inf, %v1913_v7  ;;  %v937_v63 = vsel %vm933_vm9, 1.0, %v1695_v32  ;;  %v1667_v7 = vld [vmem:[%s2028_s3 + $0x8] sm:$0xff]  }
 0x5fb   : > { %v1010_v23 = vsel %vm545_vm1, %v1000_v22, -inf  ;;  %v939_v24 = vpack.c.bf16 %v937_v63, %v936_v62 }
 0x5fc   : > { %1011 = vmax.xlane.f32.xlu1 %v1010_v23 }
 0x5fd   : > { %1595 = vmatmul.mubr.msk.bf16.vlgmr.msra.gmra.mxu0 %vm545_vm1, %v939_v24 }
 0x5fe   : > { %1607 = vmatpush3.bf16.msra.mxu0 %v1665_v51  ;;  %1614 = vmatprep.mubr.msk.bf16.mxu0 %vm354_vm0, %v693_v26 }
 0x5ff   : > { %1608 = vmatprep.subr.bf16.mxu0 %v1666_v25 }
 0x602   : > { %1609 = vmatpush3.bf16.msra.mxu0 %v1666_v25 }
 0x603   : > { %1610 = vmatprep.subr.bf16.mxu0 %v1667_v7 }
 0x606   : > { %1611 = vmatpush3.bf16.msra.mxu0 %v1667_v7 }
 0x607   : > { %1612 = vmatprep.subr.bf16.mxu0 %v1668_v29 }
 0x60a   : > { %1613 = vmatpush3.bf16.msra.mxu0 %v1668_v29 }
 0x60d   : > { %1615 = vmatmul.mubr.msk.bf16.vlgmr.msra.gmra.mxu0 %vm354_vm0, %v694_v33 }
 0x60e   : > { %1618 = vmatprep.mubr.msk.bf16.mxu0 %vm354_vm0, %v844_v35 }
 0x615   : > { %1619 = vmatmul.mubr.msk.bf16.gmra.mxu0 %vm354_vm0, %v845_v37 }
 0x67d   : > { %v1003_v40 = vpop.xlane.xlu0 %1002 }
 0x67e   : > { %vm1013_vm10 = vcmp.ge.f32.partialorder %v997_v47, %v1003_v40 }
 0x67f   : > { %v1017_v41 = vsel %vm1013_vm10, %v1811_v44, 32 }
 0x680   : > { %v1021_v42 = vsel %vm545_vm1, %v1017_v41, 2147483647 }
 0x681   : > { %v1006_v43 = vpop.xlane.xlu1 %1005  ;;  %v1009_v45 = vpop.xlane.xlu0 %1008  ;;  %v1023_v48 = vshra.s32 %v1021_v42, 16  ;;  %v1022_v8 = vand.u32 65535, %v1021_v42 }
 0x682   : > { %vm1014_vm11 = vcmp.ge.f32.partialorder %v998_v15, %v1006_v43  ;;  %vm1015_vm12 = vcmp.ge.f32.partialorder %v999_v16, %v1009_v45 }
 0x683   : > { %v1018_v49 = vsel %vm1014_vm11, %v1811_v44, 32  ;;  %v1019_v50 = vsel %vm1015_vm12, %v1811_v44, 32  ;;  %v1025_v51 = vcvt.s32.f32 %v1023_v48  ;;  %v1024_v10 = vcvt.s32.f32 %v1022_v8  ;;  %v1476_v8 = vld [vmem:[%s2030_s5] ss:$0 sm:$0xff] }
 0x684   : > { %v1036_v52 = vsel %vm545_vm1, %v1018_v49, 2147483647  ;;  %v1051_v53 = vsel %vm545_vm1, %v1019_v50, 2147483647 }
 0x685   : > { %v1012_v4 = vpop.xlane.xlu1 %1011  ;;  %1026 = vmin.xlane.f32.xlu0 %v1025_v51  ;;  %v1038_v34 = vshra.s32 %v1036_v52, 16  ;;  %v1053_v54 = vshra.s32 %v1051_v53, 16  ;;  %v1037_v38 = vand.u32 65535, %v1036_v52  ;;  %v1052_v11 = vand.u32 65535, %v1051_v53 }
 0x686   : > { %vm1016_vm13 = vcmp.ge.f32.partialorder %v1000_v22, %v1012_v4 }
 0x687   : > { %v1020_v57 = vsel %vm1016_vm13, %v1811_v44, 32  ;;  %v1040_v39 = vcvt.s32.f32 %v1038_v34  ;;  %v1055_v58 = vcvt.s32.f32 %v1053_v54  ;;  %v1039_v15 = vcvt.s32.f32 %v1037_v38 }
 0x688   : > { %v1066_v59 = vsel %vm545_vm1, %v1020_v57, 2147483647  ;;  %v1054_v55 = vcvt.s32.f32 %v1052_v11 }
 0x689   : > { %1041 = vmin.xlane.f32.xlu1 %v1040_v39  ;;  %1056 = vmin.xlane.f32.xlu0 %v1055_v58  ;;  %v1068_v60 = vshra.s32 %v1066_v59, 16  ;;  %v1067_v16 = vand.u32 65535, %v1066_v59 }
 0x68b   : > { %v1070_v61 = vcvt.s32.f32 %v1068_v60  ;;  %v1069_v19 = vcvt.s32.f32 %v1067_v16  ;;  %v529_v16 = vadd.f32 %v1476_v8, %v1941_v3 }
 0x68d   : > { %1071 = vmin.xlane.f32.xlu1 %v1070_v61 }
 0x6bd   : > { %v1596_v36 = vpop.f32.mrf.mxu0 }
 0x6bf   : > { %v980_v2 = vpop.f32.mrf.mxu0 }
 0x6c1   : > { %v1597_v5 = vpop.f32.mrf.mxu0 }
 0x6c2   : > { %v996_v47 = vpack.c.bf16 %v1597_v5, %v1596_v36 }
 0x6c3   : > { %v983_v6 = vpop.f32.mrf.mxu0 }
 0x6c4   : > { %v995_v46 = vpack.c.bf16 %v983_v6, %v980_v2 }
 0x6c6   : > { %1622 = vmatprep.mubr.msk.bf16.mxu0 %vm354_vm0, %v995_v46 }
 0x6c7   : > { %1623 = vmatmul.mubr.msk.bf16.gmra.mxu0 %vm354_vm0, %v996_v47 }
 0x70e   : > { %v1027_v9 = vpop.xlane.xlu0 %1026 }
 0x70f   : > { %vm1028_vm14 = vcmp.eq.f32.partialorder %v1025_v51, %v1027_v9  ;;  %v1033_v62 = vcvt.f32.s32 %v1027_v9 }
 0x710   : > { %v1029_v13 = vsel %vm1028_vm14, %v1024_v10, inf }
 0x711   : > { %1030 = vmin.xlane.f32.xlu0 %v1029_v13  ;;  %v1034_v23 = vshll.u32 %v1033_v62, 16  ;;  %v537_v13 = vadd.f32 %v1939_v56, %v1476_v8 }
 0x712   : > { %v1042_v14 = vpop.xlane.xlu1 %1041  ;;  %v1057_v0 = vpop.xlane.xlu0 %1056 }
 0x713   : > { %vm1043_vm15 = vcmp.eq.f32.partialorder %v1040_v39, %v1042_v14  ;;  %vm1058_vm2 = vcmp.eq.f32.partialorder %v1055_v58, %v1057_v0  ;;  %v1048_v22 = vcvt.f32.s32 %v1042_v14  ;;  %v1063_v24 = vcvt.f32.s32 %v1057_v0 }
 0x714   : > { %v1044_v1 = vsel %vm1043_vm15, %v1039_v15, inf  ;;  %v1059_v17 = vsel %vm1058_vm2, %v1054_v55, inf }
 0x715   : > { %1045 = vmin.xlane.f32.xlu1 %v1044_v1  ;;  %1060 = vmin.xlane.f32.xlu0 %v1059_v17  ;;  %v1049_v27 = vshll.u32 %v1048_v22, 16  ;;  %v1064_v29 = vshll.u32 %v1063_v24, 16 }
 0x716   : > { %v1072_v18 = vpop.xlane.xlu1 %1071 }
 0x717   : > { %vm1073_vm3 = vcmp.eq.f32.partialorder %v1070_v61, %v1072_v18  ;;  %v1078_v30 = vcvt.f32.s32 %v1072_v18 }
 0x718   : > { %v1074_v20 = vsel %vm1073_vm3, %v1069_v19, inf  ;;  %v540_v19 = vadd.f32 %v1946_v12, %v1476_v8 }
 0x719   : > { %1075 = vmin.xlane.f32.xlu1 %v1074_v20  ;;  %v1079_v41 = vshll.u32 %v1078_v30, 16 }
 0x79a   : > { %v1031_v63 = vpop.xlane.xlu0 %1030 }
 0x79b   : > { %v1032_v25 = vcvt.f32.s32 %v1031_v63 }
 0x79d   : > { %v1035_v26 = vadd.s32 %v1034_v23, %v1032_v25 }
 0x79e   : > { %v1046_v7 = vpop.xlane.xlu1 %1045  ;;  %v1061_v28 = vpop.xlane.xlu0 %1060 }
 0x79f   : > { %v1047_v31 = vcvt.f32.s32 %v1046_v7  ;;  %v1062_v33 = vcvt.f32.s32 %v1061_v28  ;;  %vm1081_vm4 = vcmp.eq.s32.totalorder %v1811_v44, %v1035_v26 }
 0x7a0   : > { %v1085_v43 = vsel %vm1081_vm4, 1.0, %v1695_v32 }
 0x7a1   : > { %v1050_v35 = vadd.s32 %v1049_v27, %v1047_v31  ;;  %v1065_v37 = vadd.s32 %v1064_v29, %v1062_v33  ;;  %v532_v27 = vadd.f32 %v1476_v8, %v1956_v21 }
 0x7a2   : > { %v1076_v40 = vpop.xlane.xlu1 %1075 }
 0x7a3   : > { %vm1082_vm5 = vcmp.eq.s32.totalorder %v1811_v44, %v1050_v35  ;;  %v1077_v42 = vcvt.f32.s32 %v1076_v40  ;;  %vm1083_vm6 = vcmp.eq.s32.totalorder %v1811_v44, %v1065_v37 }
 0x7a4   : > { %v1086_v45 = vsel %vm1082_vm5, 1.0, %v1695_v32  ;;  %v1087_v50 = vsel %vm1083_vm6, 1.0, %v1695_v32 }
 0x7a5   : > { %v1089_v48 = vpack.c.bf16 %v1086_v45, %v1085_v43  ;;  %v1080_v49 = vadd.s32 %v1079_v41, %v1077_v42 }
 0x7a7   : > { %vm1084_vm7 = vcmp.eq.s32.totalorder %v1811_v44, %v1080_v49  ;;  %1602 = vmatprep.mubr.msk.bf16.mxu1 %vm545_vm1, %v1089_v48  ;;  %v1616_v44 = vpop.f32.mrf.mxu0 }
 0x7a8   : > { %v1088_v51 = vsel %vm1084_vm7, 1.0, %v1695_v32 }
 0x7a9   : > { %v1090_v52 = vpack.c.bf16 %v1088_v51, %v1087_v50  ;;  %v1238_v58 = vpop.f32.mrf.mxu0 }
 0x7ab   : > { %1603 = vmatmul.mubr.msk.bf16.vlgmr.msra.gmra.mxu1 %vm545_vm1, %v1090_v52  ;;  %v1617_v59 = vpop.f32.mrf.mxu0  ;;  %vm1345_vm1 = vcmask 519168  }
 0x7ad   : > { %v1241_v60 = vpop.f32.mrf.mxu0 }
 0x7af   : > { %v1620_v61 = vpop.f32.mrf.mxu0 }
 0x7b0   : > { %v1303_v47 = vmax.f32 %v1616_v44, %v1620_v61 }
 0x7b1   : > { %v1254_v36 = vpop.f32.mrf.mxu0 }
 0x7b2   : > { %v1301_v10 = vmax.f32 %v1238_v58, %v1254_v36 }
 0x7b3   : > { %v1621_v32 = vpop.f32.mrf.mxu0 }
 0x7b4   : > { %v1304_v14 = vmax.f32 %v1617_v59, %v1621_v32 }
 0x7b5   : > { %v1257_v2 = vpop.f32.mrf.mxu0 }
 0x7b6   : > { %v1302_v20 = vmax.f32 %v1241_v60, %v1257_v2 }
 0x7b7   : > { %v1624_v5 = vpop.f32.mrf.mxu0 }
 0x7b8   : > { %v1307_v38 = vmax.f32 %v1303_v47, %v1624_v5 }
 0x7b9   : > { %v1270_v6 = vpop.f32.mrf.mxu0 }
 0x7ba   : > { %v1305_v0 = vmax.f32 %v1301_v10, %v1270_v6 }
 0x7bb   : > { %v1625_v46 = vpop.f32.mrf.mxu0 }
 0x7bc   : > { %v1308_v1 = vmax.f32 %v1304_v14, %v1625_v46 }
 0x7bd   : > { %v1273_v9 = vpop.f32.mrf.mxu0 }
 0x7be   : > { %v1306_v24 = vmax.f32 %v1302_v20, %v1273_v9 }
 0x86b   : > { %v1604_v53 = vpop.f32.mrf.mxu1 }
 0x86d   : > { %v1131_v4 = vpop.f32.mrf.mxu1 }
 0x86f   : > { %v1605_v34 = vpop.f32.mrf.mxu1 }
 0x870   : > { %v1147_v39 = vpack.c.bf16 %v1605_v34, %v1604_v53 }
 0x871   : > { %v1134_v54 = vpop.f32.mrf.mxu1 }
 0x872   : > { %v1146_v57 = vpack.c.bf16 %v1134_v54, %v1131_v4 }
 0x874   : > { %1626 = vmatprep.mubr.msk.bf16.mxu0 %vm354_vm0, %v1146_v57 }
 0x875   : > { %1627 = vmatmul.mubr.msk.bf16.gmra.mxu0 %vm354_vm0, %v1147_v39 }
 0x935   : > { %v1628_v11 = vpop.f32.mrf.mxu0 }
 0x936   : > { %v1311_v15 = vmax.f32 %v1307_v38, %v1628_v11 }
 0x937   : > { %v1286_v55 = vpop.f32.mrf.mxu0 }
 0x938   : > { %v1315_v17 = vadd.f32 %v1311_v15, %v537_v13  ;;  %v1309_v18 = vmax.f32 %v1305_v0, %v1286_v55 }
 0x939   : > { %v1629_v62 = vpop.f32.mrf.mxu0 }
 0x93a   : > { %vm1319_vm0 = vcmp.ge.f32.partialorder %v1315_v17, 0.0  ;;  %v1323_v22 = vmul.f32 0.2, %v1315_v17  ;;  %v1313_v63 = vadd.f32 %v1309_v18, %v529_v16  ;;  %v1312_v23 = vmax.f32 %v1308_v1, %v1629_v62 }
 0x93b   : > { %v1289_v56 = vpop.f32.mrf.mxu0 }
 0x93c   : > { %v1327_v25 = vsel %vm1319_vm0, %v1315_v17, %v1323_v22  ;;  %vm1317_vm8 = vcmp.ge.f32.partialorder %v1313_v63, 0.0  ;;  %v1321_v3 = vmul.f32 0.2, %v1313_v63  ;;  %v1316_v26 = vadd.f32 %v1312_v23, %v540_v19 }
 0x93d   : > { %v1514_v12 = vpack.c.bf16 %v1327_v25, %v1327_v25  ;;  %v1310_v7 = vmax.f32 %v1306_v24, %v1289_v56 }
 0x93e   : > { %v1325_v28 = vsel %vm1317_vm8, %v1313_v63, %v1321_v3  ;;  %vm1320_vm9 = vcmp.ge.f32.partialorder %v1316_v26, 0.0  ;;  %v1324_v29 = vmul.f32 0.2, %v1316_v26 }
 0x93f   : > { %1348 = vst.msk [vmem:[%s323_s11 + $0x8] sm:$0xf] %vm1345_vm1, %v1514_v12  ;;  %v1512_v30 = vpack.c.bf16 %v1325_v28, %v1325_v28  ;;  %v1314_v31 = vadd.f32 %v1310_v7, %v532_v27 }
 0x940   : > { %v1328_v33 = vsel %vm1320_vm9, %v1316_v26, %v1324_v29 }
 0x941   : > { %1346 = vst.msk [vmem:[%s323_s11] sm:$0xf] %vm1345_vm1, %v1512_v30  ;;  %v1515_v35 = vpack.c.bf16 %v1328_v33, %v1328_v33  ;;  %vm1318_vm10 = vcmp.ge.f32.partialorder %v1314_v31, 0.0  ;;  %v1322_v37 = vmul.f32 0.2, %v1314_v31 }
 0x943   : > { %1349 = vst.msk [vmem:[%s323_s11 + $0xc] sm:$0xf] %vm1345_vm1, %v1515_v35  ;;  %v1326_v40 = vsel %vm1318_vm10, %v1314_v31, %v1322_v37 }
 0x944   : > { %v1513_v41 = vpack.c.bf16 %v1326_v40, %v1326_v40 }
 0x946   : > { %1347 = vst.msk [vmem:[%s323_s11 + $0x4] sm:$0xf] %vm1345_vm1, %v1513_v41 }
 0x947 PF: > { %s16_s23 = sadd.s32 1, %s1693_s23   ;;  %s2032_s21 = smov %s1689_s22 }
 0x948   : > { %p13_p5 = scmp.ge.s32.totalorder %s16_s23, 4   ;;  %s2033_s22 = smov %s2035_s24 }
 0x94a   :  { %15 = sbr.rel (!%p13_p5) target bundleno = 2 (0x2), region = 80 }

// kernel: dgcnn_forward.9
= control target key start
LH: loop header
LB: loop body
LE: loop exit
PB: predicated region body
PF: predicated region fallthrough
CT: control target
= control target key end

     0   :  { %s1704_s23 = smov 0   ;;  %s1706_s24 = smov 0   ;;  %s1991_s0 = inlined_call_operand.vmem [shape: f32[2,1,32], index: 0, kind: input, shape index: {}]   ;;  %s1992_s1 = inlined_call_operand.vmem [shape: bf16[2,32,64], index: 1, kind: input, shape index: {}, may-alias: {1,2}]   ;;  %s1993_s2 = inlined_call_operand.vmem [shape: bf16[2,32,64], index: 2, kind: input, shape index: {}, may-alias: {1,2}]   ;;  %s1994_s3 = inlined_call_operand.vmem [shape: bf16[64,1], index: 3, kind: input, shape index: {}]   ;;  %s1995_s4 = inlined_call_operand.vmem [shape: bf16[64,1], index: 4, kind: input, shape index: {}]   ;;  %s1996_s5 = inlined_call_operand.<no memory space> [shape: f32[1,1], index: 5, kind: input, shape index: {}]   ;;  %s1997_s6 = inlined_call_operand.vmem [shape: f32[2,32,1], index: 6, kind: output, shape index: {}]  }
   0x1   :  { %v11_v0 = vstv %s1996_s5  ;;  %s1708_s25 = smov 0  }
   0x2   :  { %12 = vst [vmem:[#allocation2] sm:$0x1] %v11_v0 }
   0x3 LB: > { %s30_s5 = sadd.s32 1, %s1659_s24  ;;  %p1440_p0 = scmp.ge.s32.totalorder %s1663_s25, 1  ;;  %s1663_s25 = sphi %s1708_s25, %s18_s25   ;;  %s1659_s24 = sphi %s1706_s24, %s1999_s24   ;;  %s1655_s23 = sphi %s1704_s23, %s1998_s23  }
   0x4   : > { %p32_p1 = scmp.ge.s32.totalorder %s30_s5, 2  ;;  %p253_p2 = scmp.lt.s32.totalorder %s1663_s25, 3 }
   0x6   : > { %s2001_s5 = smov (%p32_p1, %s30_s5), 0  ;;  %p254_p3 = pnand %p1440_p0, %p253_p2 }
   0x7   : > { %p299_p4 = scmp.lt.s32.totalorder (!%p254_p3), %s1655_s23, 1 }
   0x8   : > { %257 = sbr.rel (%p254_p3) target bundleno = 2372 (0x944), region = 44 }
   0xd   : > { %s2003_s23 = smov (!%p299_p4, %s1655_s23), 1  ;;  %vm356_vm0 = vcmask 523264   ;;  %vm547_vm1 = vcmask 261120   ;;  %v545_v44 = vlaneseq }
   0xe   : > { %s1483_s26 = sshll.u32 %s2003_s23, 4  ;;  %s301_s11 = scalar_lea.vmem %s1991_s0, %s2003_s23 }
   0xf   : > { %s306_s29 = scalar_lea.vmem %s1992_s1, %s1483_s26  ;;  %s315_s8 = scalar_lea.vmem %s1993_s2, %s1483_s26  ;;  %v1453_v30 = vld [vmem:[%s301_s11] ss:$0 sm:$0xff]  ;;  %v1780_v45 = vand.u32 127, %v545_v44 }
  0x10   : > { %v1731_v1 = vld [vmem:[%s306_s29 + $0x8] sm:$0xff]   ;;  %v1733_v2 = vld [vmem:[%s306_s29] sm:$0xff]   ;;  %s1485_s7 = sshll.u32 %s2003_s23, 5 }
  0x11   : > { %1600 = vmatprep.subr.msk.bf16.mxu1 %vm356_vm0, %v1731_v1  ;;  %v367_v3 = vsel %vm356_vm0, %v1731_v1, 0  ;;  %v332_v4 = vld [vmem:[%s315_s8] sm:$0xff]   ;;  %v1739_v5 = vld [vmem:[%s315_s8 + $0x8] sm:$0xff]   ;;  %1544 = vmatprep.subr.bf16.mxu0 %v1731_v1  ;;  %v364_v15 = vsel %vm356_vm0, %v1733_v2, 0  ;;  %s325_s10 = scalar_lea.vmem %s1997_s6, %s1485_s7 }
  0x12   : > { %1525 = vmatpush3.bf16.xpose.msra.mxu1 %v367_v3  ;;  %v420_v6 = vunpack.c.l.bf16 %v1739_v5  ;;  %1545 = vmatpush3.bf16.msra.mxu0 %v1731_v1  ;;  %v418_v7 = vunpack.c.l.bf16 %v332_v4  ;;  %v421_v8 = vunpack.c.h.bf16 %v1739_v5  ;;  %v419_v9 = vunpack.c.h.bf16 %v332_v4 }
  0x13   : > { %1601 = vmatprep.subr.msk.bf16.mxu1 %vm356_vm0, %v1733_v2  ;;  %1546 = vmatprep.subr.bf16.mxu0 %v1733_v2 }
  0x14   : > { %1528 = vmatprep.mubr.msk.bf16.mxu1 %vm356_vm0, %v332_v4  ;;  %v424_v10 = vmul.f32 %v420_v6, %v420_v6  ;;  %v422_v11 = vmul.f32 %v418_v7, %v418_v7  ;;  %v425_v12 = vmul.f32 %v421_v8, %v421_v8  ;;  %v423_v13 = vmul.f32 %v419_v9, %v419_v9 }
  0x16   : > { %v432_v14 = vsel %vm356_vm0, %v424_v10, 0.0  ;;  %1547 = vmatpush3.bf16.msra.mxu0 %v1733_v2  ;;  %v426_v16 = vsel %vm356_vm0, %v422_v11, 0.0  ;;  %v435_v17 = vsel %vm356_vm0, %v425_v12, 0.0  ;;  %v429_v18 = vsel %vm356_vm0, %v423_v13, 0.0 }
  0x17   : > { %433 = vadd.xlane.f32.xlu1 %v432_v14  ;;  %1560 = vmatprep.subr.bf16.mxu0 %v1731_v1 }
  0x18   : > { %427 = vadd.xlane.f32.xlu0 %v426_v16 }
  0x1a   : > { %1527 = vmatpush3.bf16.xpose.msra.mxu1 %v364_v15 }
  0x1b   : > { %436 = vadd.xlane.f32.xlu1 %v435_v17 }
  0x1c   : > { %430 = vadd.xlane.f32.xlu0 %v429_v18 }
  0x21   : > { %1529 = vmatmul.mubr.msk.bf16.vlgmr.msra.gmra.mxu1 %vm356_vm0, %v1739_v5 }
  0x22   : > { %1540 = vmatprep.mubr.msk.bf16.mxu1 %vm356_vm0, %v332_v4 }
  0xa0   : > { %v434_v19 = vpop.xlane.xlu1 %433 }
  0xa1   : > { %v428_v21 = vpop.xlane.xlu0 %427 }
  0xa4   : > { %v437_v29 = vpop.xlane.xlu1 %436 }
  0xa5   : > { %v431_v32 = vpop.xlane.xlu0 %430 }
  0xe1   : > { %v1530_v20 = vpop.f32.mrf.mxu1 }
  0xe2   : > { %v440_v22 = vmul.f32 2.0, %v1530_v20 }
  0xe3   : > { %v403_v23 = vpop.f32.mrf.mxu1 }
  0xe4   : > { %v438_v24 = vmul.f32 2.0, %v403_v23  ;;  %v444_v26 = vsub.f32 %v440_v22, %v434_v19 }
  0xe5   : > { %v1531_v25 = vpop.f32.mrf.mxu1 }
  0xe6   : > { %v442_v27 = vsub.f32 %v438_v24, %v428_v21  ;;  %v441_v28 = vmul.f32 2.0, %v1531_v25  ;;  %v1766_v35 = vsub.f32 %v444_v26, %v1453_v30 }
  0xe7   : > { %v406_v31 = vpop.f32.mrf.mxu1 }
  0xe8   : > { %v1764_v33 = vsub.f32 %v442_v27, %v1453_v30  ;;  %v439_v34 = vmul.f32 2.0, %v406_v31  ;;  %v445_v36 = vsub.f32 %v441_v28, %v437_v29  ;;  %v554_v42 = vsel %vm547_vm1, %v1766_v35, -inf }
  0xea   : > { %v443_v37 = vsub.f32 %v439_v34, %v431_v32  ;;  %v548_v38 = vsel %vm547_vm1, %v1764_v33, -inf  ;;  %v1772_v40 = vsub.f32 %v445_v36, %v1453_v30 }
  0xeb   : > { %549 = vmax.xlane.f32.xlu0 %v548_v38 }
  0xec   : > { %v1770_v39 = vsub.f32 %v443_v37, %v1453_v30  ;;  %v557_v43 = vsel %vm547_vm1, %v1772_v40, -inf }
  0xee   : > { %v551_v41 = vsel %vm547_vm1, %v1770_v39, -inf }
  0xef   : > { %552 = vmax.xlane.f32.xlu1 %v551_v41  ;;  %555 = vmax.xlane.f32.xlu0 %v554_v42 }
  0xf3   : > { %558 = vmax.xlane.f32.xlu1 %v557_v43 }
 0x174   : > { %v550_v46 = vpop.xlane.xlu0 %549 }
 0x175   : > { %vm560_vm2 = vcmp.ge.f32.partialorder %v1764_v33, %v550_v46 }
 0x176   : > { %v564_v47 = vsel %vm560_vm2, %v1780_v45, 32 }
 0x177   : > { %v568_v48 = vsel %vm547_vm1, %v564_v47, 2147483647 }
 0x178   : > { %v553_v49 = vpop.xlane.xlu1 %552  ;;  %v556_v50 = vpop.xlane.xlu0 %555  ;;  %v570_v51 = vshra.s32 %v568_v48, 16  ;;  %v569_v4 = vand.u32 65535, %v568_v48 }
 0x179   : > { %vm561_vm3 = vcmp.ge.f32.partialorder %v1770_v39, %v553_v49  ;;  %vm562_vm4 = vcmp.ge.f32.partialorder %v1766_v35, %v556_v50 }
 0x17a   : > { %v565_v52 = vsel %vm561_vm3, %v1780_v45, 32  ;;  %v566_v53 = vsel %vm562_vm4, %v1780_v45, 32  ;;  %v572_v54 = vcvt.s32.f32 %v570_v51  ;;  %v571_v7 = vcvt.s32.f32 %v569_v4 }
 0x17b   : > { %v583_v55 = vsel %vm547_vm1, %v565_v52, 2147483647  ;;  %v598_v56 = vsel %vm547_vm1, %v566_v53, 2147483647 }
 0x17c   : > { %v559_v57 = vpop.xlane.xlu1 %558  ;;  %573 = vmin.xlane.f32.xlu0 %v572_v54  ;;  %v585_v58 = vshra.s32 %v583_v55, 16  ;;  %v600_v59 = vshra.s32 %v598_v56, 16  ;;  %v584_v8 = vand.u32 65535, %v583_v55  ;;  %v599_v9 = vand.u32 65535, %v598_v56 }
 0x17d   : > { %vm563_vm5 = vcmp.ge.f32.partialorder %v1772_v40, %v559_v57 }
 0x17e   : > { %v567_v60 = vsel %vm563_vm5, %v1780_v45, 32  ;;  %v587_v61 = vcvt.s32.f32 %v585_v58  ;;  %v602_v62 = vcvt.s32.f32 %v600_v59  ;;  %v586_v13 = vcvt.s32.f32 %v584_v8 }
 0x17f   : > { %v613_v63 = vsel %vm547_vm1, %v567_v60, 2147483647  ;;  %v601_v14 = vcvt.s32.f32 %v599_v9 }
 0x180   : > { %588 = vmin.xlane.f32.xlu1 %v587_v61  ;;  %603 = vmin.xlane.f32.xlu0 %v602_v62  ;;  %v615_v0 = vshra.s32 %v613_v63, 16  ;;  %v614_v15 = vand.u32 65535, %v613_v63 }
 0x182   : > { %v617_v3 = vcvt.s32.f32 %v615_v0  ;;  %v616_v19 = vcvt.s32.f32 %v614_v15 }
 0x184   : > { %618 = vmin.xlane.f32.xlu1 %v617_v3 }
 0x205   : > { %v574_v6 = vpop.xlane.xlu0 %573 }
 0x206   : > { %vm575_vm6 = vcmp.eq.f32.partialorder %v572_v54, %v574_v6  ;;  %v580_v21 = vcvt.f32.s32 %v574_v6 }
 0x207   : > { %v576_v10 = vsel %vm575_vm6, %v571_v7, inf }
 0x208   : > { %577 = vmin.xlane.f32.xlu0 %v576_v10  ;;  %v581_v25 = vshll.u32 %v580_v21, 16 }
 0x209   : > { %v589_v11 = vpop.xlane.xlu1 %588  ;;  %v604_v12 = vpop.xlane.xlu0 %603 }
 0x20a   : > { %vm590_vm7 = vcmp.eq.f32.partialorder %v587_v61, %v589_v11  ;;  %vm605_vm8 = vcmp.eq.f32.partialorder %v602_v62, %v604_v12  ;;  %v595_v22 = vcvt.f32.s32 %v589_v11  ;;  %v610_v23 = vcvt.f32.s32 %v604_v12 }
 0x20b   : > { %v591_v16 = vsel %vm590_vm7, %v586_v13, inf  ;;  %v606_v17 = vsel %vm605_vm8, %v601_v14, inf }
 0x20c   : > { %592 = vmin.xlane.f32.xlu1 %v591_v16  ;;  %607 = vmin.xlane.f32.xlu0 %v606_v17  ;;  %v596_v28 = vshll.u32 %v595_v22, 16  ;;  %v611_v29 = vshll.u32 %v610_v23, 16  ;;  %v1631_v16 = vld [vmem:[%s1995_s4 + $0x18] sm:$0xff]   ;;  %v1632_v17 = vld [vmem:[%s1995_s4 + $0x10] sm:$0xff]  }
 0x20d   : > { %v619_v18 = vpop.xlane.xlu1 %618  ;;  %1532 = vmatprep.subr.bf16.mxu1 %v1631_v16 }
 0x20e   : > { %vm620_vm9 = vcmp.eq.f32.partialorder %v617_v3, %v619_v18  ;;  %v625_v32 = vcvt.f32.s32 %v619_v18  ;;  %1533 = vmatpush3.bf16.msra.mxu1 %v1631_v16 }
 0x20f   : > { %v621_v20 = vsel %vm620_vm9, %v616_v19, inf  ;;  %1534 = vmatprep.subr.bf16.mxu1 %v1632_v17 }
 0x210   : > { %622 = vmin.xlane.f32.xlu1 %v621_v20  ;;  %v626_v44 = vshll.u32 %v625_v32, 16 }
 0x212   : > { %1535 = vmatpush3.bf16.msra.mxu1 %v1632_v17 }
 0x291   : > { %v578_v24 = vpop.xlane.xlu0 %577 }
 0x292   : > { %v579_v26 = vcvt.f32.s32 %v578_v24 }
 0x294   : > { %v582_v27 = vadd.s32 %v581_v25, %v579_v26 }
 0x295   : > { %v593_v30 = vpop.xlane.xlu1 %592  ;;  %v608_v31 = vpop.xlane.xlu0 %607 }
 0x296   : > { %v594_v34 = vcvt.f32.s32 %v593_v30  ;;  %v609_v36 = vcvt.f32.s32 %v608_v31  ;;  %vm628_vm10 = vcmp.eq.s32.totalorder %v1780_v45, %v582_v27 }
 0x297   : > { %v1796_v37 = vsel %vm628_vm10, -inf, %v1764_v33  ;;  %v1665_v33 = vmov 0.0  }
 0x298   : > { %v597_v38 = vadd.s32 %v596_v28, %v594_v34  ;;  %v612_v41 = vadd.s32 %v611_v29, %v609_v36  ;;  %v701_v42 = vsel %vm547_vm1, %v1796_v37, -inf  ;;  %v632_v49 = vsel %vm628_vm10, 1.0, %v1665_v33  ;;  %v1633_v36 = vld [vmem:[%s1995_s4 + $0x8] sm:$0xff]  }
 0x299   : > { %v623_v43 = vpop.xlane.xlu1 %622  ;;  %702 = vmax.xlane.f32.xlu0 %v701_v42  ;;  %1536 = vmatprep.subr.bf16.mxu1 %v1633_v36 }
 0x29a   : > { %v624_v46 = vcvt.f32.s32 %v623_v43  ;;  %vm629_vm11 = vcmp.eq.s32.totalorder %v1780_v45, %v597_v38  ;;  %vm630_vm12 = vcmp.eq.s32.totalorder %v1780_v45, %v612_v41  ;;  %1537 = vmatpush3.bf16.msra.mxu1 %v1633_v36  ;;  %v1634_v38 = vld [vmem:[%s1995_s4] sm:$0xff]  }
 0x29b   : > { %v1803_v47 = vsel %vm629_vm11, -inf, %v1770_v39  ;;  %v1806_v48 = vsel %vm630_vm12, -inf, %v1766_v35  ;;  %v633_v50 = vsel %vm629_vm11, 1.0, %v1665_v33  ;;  %v634_v35 = vsel %vm630_vm12, 1.0, %v1665_v33  ;;  %1538 = vmatprep.subr.bf16.mxu1 %v1634_v38 }
 0x29c   : > { %v627_v51 = vadd.s32 %v626_v44, %v624_v46  ;;  %v704_v52 = vsel %vm547_vm1, %v1803_v47, -inf  ;;  %v707_v53 = vsel %vm547_vm1, %v1806_v48, -inf  ;;  %v636_v54 = vpack.c.bf16 %v633_v50, %v632_v49 }
 0x29d   : > { %705 = vmax.xlane.f32.xlu1 %v704_v52  ;;  %708 = vmax.xlane.f32.xlu0 %v707_v53 }
 0x29e   : > { %1548 = vmatprep.mubr.msk.bf16.mxu0 %vm547_vm1, %v636_v54  ;;  %vm631_vm13 = vcmp.eq.s32.totalorder %v1780_v45, %v627_v51  ;;  %1539 = vmatpush3.bf16.msra.mxu1 %v1634_v38 }
 0x29f   : > { %v1818_v39 = vsel %vm631_vm13, -inf, %v1772_v40  ;;  %v635_v55 = vsel %vm631_vm13, 1.0, %v1665_v33  ;;  %1552 = vmatprep.subr.bf16.mxu1 %v1731_v1 }
 0x2a0   : > { %v710_v56 = vsel %vm547_vm1, %v1818_v39, -inf  ;;  %v637_v57 = vpack.c.bf16 %v635_v55, %v634_v35 }
 0x2a1   : > { %711 = vmax.xlane.f32.xlu1 %v710_v56  ;;  %1541 = vmatmul.mubr.msk.bf16.vlgmr.msra.gmra.mxu1 %vm356_vm0, %v1739_v5 }
 0x2a2   : > { %1549 = vmatmul.mubr.msk.bf16.vlgmr.msra.gmra.mxu0 %vm547_vm1, %v637_v57  ;;  %1553 = vmatpush3.bf16.msra.mxu1 %v1731_v1 }
 0x2a3   : > { %1561 = vmatpush3.bf16.msra.mxu0 %v1731_v1  ;;  %1554 = vmatprep.subr.bf16.mxu1 %v1733_v2 }
 0x2a4   : > { %1562 = vmatprep.subr.bf16.mxu0 %v1733_v2 }
 0x2a6   : > { %1555 = vmatpush3.bf16.msra.mxu1 %v1733_v2 }
 0x2a7   : > { %1563 = vmatpush3.bf16.msra.mxu0 %v1733_v2  ;;  %1568 = vmatprep.subr.bf16.mxu1 %v1731_v1 }
 0x322   : > { %v703_v58 = vpop.xlane.xlu0 %702 }
 0x323   : > { %vm713_vm14 = vcmp.ge.f32.partialorder %v1796_v37, %v703_v58 }
 0x324   : > { %v717_v40 = vsel %vm713_vm14, %v1780_v45, 32 }
 0x325   : > { %v721_v59 = vsel %vm547_vm1, %v717_v40, 2147483647 }
 0x326   : > { %v706_v60 = vpop.xlane.xlu1 %705  ;;  %v709_v61 = vpop.xlane.xlu0 %708  ;;  %v723_v62 = vshra.s32 %v721_v59, 16  ;;  %v722_v18 = vand.u32 65535, %v721_v59 }
 0x327   : > { %vm714_vm15 = vcmp.ge.f32.partialorder %v1803_v47, %v706_v60  ;;  %vm715_vm2 = vcmp.ge.f32.partialorder %v1806_v48, %v709_v61 }
 0x328   : > { %v718_v63 = vsel %vm714_vm15, %v1780_v45, 32  ;;  %v719_v0 = vsel %vm715_vm2, %v1780_v45, 32  ;;  %v725_v3 = vcvt.s32.f32 %v723_v62  ;;  %v724_v20 = vcvt.s32.f32 %v722_v18 }
 0x329   : > { %v736_v4 = vsel %vm547_vm1, %v718_v63, 2147483647  ;;  %v751_v6 = vsel %vm547_vm1, %v719_v0, 2147483647 }
 0x32a   : > { %v712_v7 = vpop.xlane.xlu1 %711  ;;  %726 = vmin.xlane.f32.xlu0 %v725_v3  ;;  %v738_v8 = vshra.s32 %v736_v4, 16  ;;  %v753_v9 = vshra.s32 %v751_v6, 16  ;;  %v737_v21 = vand.u32 65535, %v736_v4  ;;  %v752_v22 = vand.u32 65535, %v751_v6 }
 0x32b   : > { %vm716_vm3 = vcmp.ge.f32.partialorder %v1818_v39, %v712_v7 }
 0x32c   : > { %v720_v10 = vsel %vm716_vm3, %v1780_v45, 32  ;;  %v740_v11 = vcvt.s32.f32 %v738_v8  ;;  %v755_v12 = vcvt.s32.f32 %v753_v9  ;;  %v739_v26 = vcvt.s32.f32 %v737_v21 }
 0x32d   : > { %v766_v13 = vsel %vm547_vm1, %v720_v10, 2147483647  ;;  %v754_v27 = vcvt.s32.f32 %v752_v22 }
 0x32e   : > { %741 = vmin.xlane.f32.xlu1 %v740_v11  ;;  %756 = vmin.xlane.f32.xlu0 %v755_v12  ;;  %v768_v14 = vshra.s32 %v766_v13, 16  ;;  %v767_v28 = vand.u32 65535, %v766_v13 }
 0x330   : > { %v770_v15 = vcvt.s32.f32 %v768_v14  ;;  %v769_v32 = vcvt.s32.f32 %v767_v28 }
 0x332   : > { %771 = vmin.xlane.f32.xlu1 %v770_v15 }
 0x3b3   : > { %v727_v19 = vpop.xlane.xlu0 %726 }
 0x3b4   : > { %vm728_vm4 = vcmp.eq.f32.partialorder %v725_v3, %v727_v19  ;;  %v733_v41 = vcvt.f32.s32 %v727_v19 }
 0x3b5   : > { %v729_v23 = vsel %vm728_vm4, %v724_v20, inf }
 0x3b6   : > { %730 = vmin.xlane.f32.xlu0 %v729_v23  ;;  %v734_v46 = vshll.u32 %v733_v41, 16 }
 0x3b7   : > { %v742_v24 = vpop.xlane.xlu1 %741  ;;  %v757_v25 = vpop.xlane.xlu0 %756 }
 0x3b8   : > { %vm743_vm5 = vcmp.eq.f32.partialorder %v740_v11, %v742_v24  ;;  %vm758_vm6 = vcmp.eq.f32.partialorder %v755_v12, %v757_v25  ;;  %v748_v42 = vcvt.f32.s32 %v742_v24  ;;  %v763_v43 = vcvt.f32.s32 %v757_v25 }
 0x3b9   : > { %v744_v29 = vsel %vm743_vm5, %v739_v26, inf  ;;  %v759_v30 = vsel %vm758_vm6, %v754_v27, inf }
 0x3ba   : > { %745 = vmin.xlane.f32.xlu1 %v744_v29  ;;  %760 = vmin.xlane.f32.xlu0 %v759_v30  ;;  %v749_v51 = vshll.u32 %v748_v42, 16  ;;  %v764_v52 = vshll.u32 %v763_v43, 16 }
 0x3bb   : > { %v772_v31 = vpop.xlane.xlu1 %771 }
 0x3bc   : > { %vm773_vm7 = vcmp.eq.f32.partialorder %v770_v15, %v772_v31  ;;  %v778_v5 = vcvt.f32.s32 %v772_v31 }
 0x3bd   : > { %v774_v34 = vsel %vm773_vm7, %v769_v32, inf }
 0x3be   : > { %775 = vmin.xlane.f32.xlu1 %v774_v34  ;;  %v779_v60 = vshll.u32 %v778_v5, 16 }
 0x43f   : > { %v731_v44 = vpop.xlane.xlu0 %730 }
 0x440   : > { %v732_v49 = vcvt.f32.s32 %v731_v44 }
 0x442   : > { %v735_v50 = vadd.s32 %v734_v46, %v732_v49 }
 0x443   : > { %v746_v53 = vpop.xlane.xlu1 %745  ;;  %v761_v54 = vpop.xlane.xlu0 %760 }
 0x444   : > { %v747_v35 = vcvt.f32.s32 %v746_v53  ;;  %v762_v55 = vcvt.f32.s32 %v761_v54  ;;  %vm781_vm8 = vcmp.eq.s32.totalorder %v1780_v45, %v735_v50 }
 0x445   : > { %v1860_v56 = vsel %vm781_vm8, -inf, %v1796_v37  ;;  %v785_v62 = vsel %vm781_vm8, 1.0, %v1665_v33 }
 0x446   : > { %v750_v57 = vadd.s32 %v749_v51, %v747_v35  ;;  %v765_v58 = vadd.s32 %v764_v52, %v762_v55  ;;  %v852_v40 = vsel %vm547_vm1, %v1860_v56, -inf  ;;  %v1635_v52 = vld [vmem:[%s1994_s3 + $0x18] sm:$0xff]   ;;  %v1906_v55 = vpop.f32.mrf.mxu0 }
 0x447   : > { %v776_v59 = vpop.xlane.xlu1 %775  ;;  %853 = vmax.xlane.f32.xlu0 %v852_v40  ;;  %1576 = vmatprep.subr.bf16.mxu0 %v1635_v52 }
 0x448   : > { %v777_v61 = vcvt.f32.s32 %v776_v59  ;;  %vm782_vm9 = vcmp.eq.s32.totalorder %v1780_v45, %v750_v57  ;;  %vm783_vm10 = vcmp.eq.s32.totalorder %v1780_v45, %v765_v58  ;;  %v1908_v57 = vpop.f32.mrf.mxu1 }
 0x449   : > { %v1868_v63 = vsel %vm782_vm9, -inf, %v1803_v47  ;;  %v786_v37 = vsel %vm782_vm9, 1.0, %v1665_v33  ;;  %v1872_v0 = vsel %vm783_vm10, -inf, %v1806_v48  ;;  %v787_v47 = vsel %vm783_vm10, 1.0, %v1665_v33 }
 0x44a   : > { %v780_v3 = vadd.s32 %v779_v60, %v777_v61  ;;  %v855_v4 = vsel %vm547_vm1, %v1868_v63, -inf  ;;  %v789_v6 = vpack.c.bf16 %v786_v37, %v785_v62  ;;  %v858_v7 = vsel %vm547_vm1, %v1872_v0, -inf }
 0x44b   : > { %856 = vmax.xlane.f32.xlu1 %v855_v4  ;;  %859 = vmax.xlane.f32.xlu0 %v858_v7  ;;  %v1910_v4 = vpop.f32.mrf.mxu1 }
 0x44c   : > { %1556 = vmatprep.mubr.msk.bf16.mxu1 %vm547_vm1, %v789_v6  ;;  %vm784_vm11 = vcmp.eq.s32.totalorder %v1780_v45, %v780_v3  ;;  %v680_v3 = vpop.f32.mrf.mxu0 }
 0x44d   : > { %v1882_v8 = vsel %vm784_vm11, -inf, %v1818_v39  ;;  %v788_v48 = vsel %vm784_vm11, 1.0, %v1665_v33 }
 0x44e   : > { %v861_v9 = vsel %vm547_vm1, %v1882_v8, -inf  ;;  %v790_v10 = vpack.c.bf16 %v788_v48, %v787_v47 }
 0x44f   : > { %862 = vmax.xlane.f32.xlu1 %v861_v9 }
 0x450   : > { %1557 = vmatmul.mubr.msk.bf16.vlgmr.msra.gmra.mxu1 %vm547_vm1, %v790_v10 }
 0x451   : > { %1569 = vmatpush3.bf16.msra.mxu1 %v1731_v1 }
 0x452   : > { %1570 = vmatprep.subr.bf16.mxu1 %v1733_v2 }
 0x455   : > { %1571 = vmatpush3.bf16.msra.mxu1 %v1733_v2 }
 0x4d0   : > { %v854_v11 = vpop.xlane.xlu0 %853 }
 0x4d1   : > { %vm864_vm12 = vcmp.ge.f32.partialorder %v1860_v56, %v854_v11 }
 0x4d2   : > { %v868_v39 = vsel %vm864_vm12, %v1780_v45, 32 }
 0x4d3   : > { %v872_v12 = vsel %vm547_vm1, %v868_v39, 2147483647 }
 0x4d4   : > { %v857_v13 = vpop.xlane.xlu1 %856  ;;  %v860_v14 = vpop.xlane.xlu0 %859  ;;  %v874_v15 = vshra.s32 %v872_v12, 16  ;;  %v873_v28 = vand.u32 65535, %v872_v12 }
 0x4d5   : > { %vm865_vm13 = vcmp.ge.f32.partialorder %v1868_v63, %v857_v13  ;;  %vm866_vm14 = vcmp.ge.f32.partialorder %v1872_v0, %v860_v14  ;;  %v1551_v12 = vpop.f32.mrf.mxu0  ;;  %v1915_v13 = vpop.f32.mrf.mxu1 }
 0x4d6   : > { %v869_v1 = vsel %vm865_vm13, %v1780_v45, 32  ;;  %v870_v16 = vsel %vm866_vm14, %v1780_v45, 32  ;;  %v876_v17 = vcvt.s32.f32 %v874_v15  ;;  %v875_v30 = vcvt.s32.f32 %v873_v28 }
 0x4d7   : > { %v887_v2 = vsel %vm547_vm1, %v869_v1, 2147483647  ;;  %v902_v18 = vsel %vm547_vm1, %v870_v16, 2147483647 }
 0x4d8   : > { %v863_v19 = vpop.xlane.xlu1 %862  ;;  %877 = vmin.xlane.f32.xlu0 %v876_v17  ;;  %v889_v20 = vshra.s32 %v887_v2, 16  ;;  %v904_v21 = vshra.s32 %v902_v18, 16  ;;  %v888_v31 = vand.u32 65535, %v887_v2  ;;  %v903_v32 = vand.u32 65535, %v902_v18 }
 0x4d9   : > { %vm867_vm15 = vcmp.ge.f32.partialorder %v1882_v8, %v863_v19 }
 0x4da   : > { %v871_v22 = vsel %vm867_vm15, %v1780_v45, 32  ;;  %v891_v23 = vcvt.s32.f32 %v889_v20  ;;  %v906_v24 = vcvt.s32.f32 %v904_v21  ;;  %v890_v41 = vcvt.s32.f32 %v888_v31  ;;  %v683_v21 = vpop.f32.mrf.mxu0 }
 0x4db   : > { %v917_v25 = vsel %vm547_vm1, %v871_v22, 2147483647  ;;  %v905_v42 = vcvt.s32.f32 %v903_v32  ;;  %v1925_v22 = vpop.f32.mrf.mxu1 }
 0x4dc   : > { %892 = vmin.xlane.f32.xlu1 %v891_v23  ;;  %907 = vmin.xlane.f32.xlu0 %v906_v24  ;;  %v919_v26 = vshra.s32 %v917_v25, 16  ;;  %v918_v43 = vand.u32 65535, %v917_v25 }
 0x4de   : > { %v921_v27 = vcvt.s32.f32 %v919_v26  ;;  %v920_v50 = vcvt.s32.f32 %v918_v43  ;;  %v1636_v26 = vld [vmem:[%s1994_s3 + $0x10] sm:$0xff]  }
 0x4e0   : > { %922 = vmin.xlane.f32.xlu1 %v921_v27 }
 0x510   : > { %v1558_v28 = vpop.f32.mrf.mxu1 }
 0x561   : > { %v878_v29 = vpop.xlane.xlu0 %877 }
 0x562   : > { %vm879_vm2 = vcmp.eq.f32.partialorder %v876_v17, %v878_v29  ;;  %v884_v53 = vcvt.f32.s32 %v878_v29  ;;  %v831_v29 = vpop.f32.mrf.mxu1 }
 0x563   : > { %v880_v34 = vsel %vm879_vm2, %v875_v30, inf  ;;  %v1638_v30 = vld [vmem:[%s1994_s3] sm:$0xff]  }
 0x564   : > { %881 = vmin.xlane.f32.xlu0 %v880_v34  ;;  %v885_v58 = vshll.u32 %v884_v53, 16  ;;  %v1559_v31 = vpop.f32.mrf.mxu1  ;;  %v696_v34 = vpack.c.bf16 %v1551_v12, %v1906_v55 }
 0x565   : > { %v893_v36 = vpop.xlane.xlu1 %892  ;;  %v908_v38 = vpop.xlane.xlu0 %907 }
 0x566   : > { %vm894_vm3 = vcmp.eq.f32.partialorder %v891_v23, %v893_v36  ;;  %vm909_vm4 = vcmp.eq.f32.partialorder %v906_v24, %v908_v38  ;;  %v899_v54 = vcvt.f32.s32 %v893_v36  ;;  %v914_v5 = vcvt.f32.s32 %v908_v38  ;;  %v834_v32 = vpop.f32.mrf.mxu1 }
 0x567   : > { %v895_v44 = vsel %vm894_vm3, %v890_v41, inf  ;;  %v910_v46 = vsel %vm909_vm4, %v905_v42, inf  ;;  %v846_v36 = vpack.c.bf16 %v834_v32, %v831_v29  ;;  %v847_v38 = vpack.c.bf16 %v1559_v31, %v1558_v28 }
 0x568   : > { %896 = vmin.xlane.f32.xlu1 %v895_v44  ;;  %911 = vmin.xlane.f32.xlu0 %v910_v46  ;;  %v900_v60 = vshll.u32 %v899_v54, 16  ;;  %v915_v61 = vshll.u32 %v914_v5, 16 }
 0x569   : > { %v923_v49 = vpop.xlane.xlu1 %922 }
 0x56a   : > { %vm924_vm5 = vcmp.eq.f32.partialorder %v921_v27, %v923_v49  ;;  %v929_v6 = vcvt.f32.s32 %v923_v49  ;;  %v695_v27 = vpack.c.bf16 %v683_v21, %v680_v3 }
 0x56b   : > { %v925_v51 = vsel %vm924_vm5, %v920_v50, inf }
 0x56c   : > { %926 = vmin.xlane.f32.xlu1 %v925_v51  ;;  %v930_v14 = vshll.u32 %v929_v6, 16 }
 0x5ed   : > { %v882_v35 = vpop.xlane.xlu0 %881 }
 0x5ee   : > { %v883_v40 = vcvt.f32.s32 %v882_v35 }
 0x5f0   : > { %v886_v59 = vadd.s32 %v885_v58, %v883_v40 }
 0x5f1   : > { %v897_v62 = vpop.xlane.xlu1 %896  ;;  %v912_v37 = vpop.xlane.xlu0 %911 }
 0x5f2   : > { %v898_v7 = vcvt.f32.s32 %v897_v62  ;;  %v913_v47 = vcvt.f32.s32 %v912_v37  ;;  %vm932_vm6 = vcmp.eq.s32.totalorder %v1780_v45, %v886_v59 }
 0x5f3   : > { %v999_v48 = vsel %vm932_vm6, -inf, %v1860_v56  ;;  %v936_v1 = vsel %vm932_vm6, 1.0, %v1665_v33 }
 0x5f4   : > { %v901_v9 = vadd.s32 %v900_v60, %v898_v7  ;;  %v916_v10 = vadd.s32 %v915_v61, %v913_v47  ;;  %v1003_v11 = vsel %vm547_vm1, %v999_v48, -inf }
 0x5f5   : > { %v927_v39 = vpop.xlane.xlu1 %926  ;;  %1004 = vmax.xlane.f32.xlu0 %v1003_v11 }
 0x5f6   : > { %v928_v15 = vcvt.f32.s32 %v927_v39  ;;  %vm933_vm7 = vcmp.eq.s32.totalorder %v1780_v45, %v901_v9  ;;  %vm934_vm8 = vcmp.eq.s32.totalorder %v1780_v45, %v916_v10 }
 0x5f7   : > { %v1000_v16 = vsel %vm933_vm7, -inf, %v1868_v63  ;;  %v937_v56 = vsel %vm933_vm7, 1.0, %v1665_v33  ;;  %v1001_v17 = vsel %vm934_vm8, -inf, %v1872_v0  ;;  %v938_v63 = vsel %vm934_vm8, 1.0, %v1665_v33 }
 0x5f8   : > { %v931_v2 = vadd.s32 %v930_v14, %v928_v15  ;;  %v1006_v18 = vsel %vm547_vm1, %v1000_v16, -inf  ;;  %v940_v19 = vpack.c.bf16 %v937_v56, %v936_v1  ;;  %v1009_v20 = vsel %vm547_vm1, %v1001_v17, -inf }
 0x5f9   : > { %1007 = vmax.xlane.f32.xlu1 %v1006_v18  ;;  %1010 = vmax.xlane.f32.xlu0 %v1009_v20 }
 0x5fa   : > { %1564 = vmatprep.mubr.msk.bf16.mxu0 %vm547_vm1, %v940_v19  ;;  %vm935_vm9 = vcmp.eq.s32.totalorder %v1780_v45, %v931_v2 }
 0x5fb   : > { %v1002_v23 = vsel %vm935_vm9, -inf, %v1882_v8  ;;  %v939_v0 = vsel %vm935_vm9, 1.0, %v1665_v33  ;;  %v1637_v8 = vld [vmem:[%s1994_s3 + $0x8] sm:$0xff]  }
 0x5fc   : > { %v1012_v24 = vsel %vm547_vm1, %v1002_v23, -inf  ;;  %v941_v25 = vpack.c.bf16 %v939_v0, %v938_v63 }
 0x5fd   : > { %1013 = vmax.xlane.f32.xlu1 %v1012_v24 }
 0x5fe   : > { %1565 = vmatmul.mubr.msk.bf16.vlgmr.msra.gmra.mxu0 %vm547_vm1, %v941_v25 }
 0x5ff   : > { %1577 = vmatpush3.bf16.msra.mxu0 %v1635_v52  ;;  %1584 = vmatprep.mubr.msk.bf16.mxu0 %vm356_vm0, %v695_v27 }
 0x600   : > { %1578 = vmatprep.subr.bf16.mxu0 %v1636_v26 }
 0x603   : > { %1579 = vmatpush3.bf16.msra.mxu0 %v1636_v26 }
 0x604   : > { %1580 = vmatprep.subr.bf16.mxu0 %v1637_v8 }
 0x607   : > { %1581 = vmatpush3.bf16.msra.mxu0 %v1637_v8 }
 0x608   : > { %1582 = vmatprep.subr.bf16.mxu0 %v1638_v30 }
 0x60b   : > { %1583 = vmatpush3.bf16.msra.mxu0 %v1638_v30 }
 0x60e   : > { %1585 = vmatmul.mubr.msk.bf16.vlgmr.msra.gmra.mxu0 %vm356_vm0, %v696_v34 }
 0x60f   : > { %1588 = vmatprep.mubr.msk.bf16.mxu0 %vm356_vm0, %v846_v36 }
 0x616   : > { %1589 = vmatmul.mubr.msk.bf16.gmra.mxu0 %vm356_vm0, %v847_v38 }
 0x67e   : > { %v1005_v41 = vpop.xlane.xlu0 %1004 }
 0x67f   : > { %vm1015_vm10 = vcmp.ge.f32.partialorder %v999_v48, %v1005_v41 }
 0x680   : > { %v1019_v42 = vsel %vm1015_vm10, %v1780_v45, 32 }
 0x681   : > { %v1023_v43 = vsel %vm547_vm1, %v1019_v42, 2147483647 }
 0x682   : > { %v1008_v44 = vpop.xlane.xlu1 %1007  ;;  %v1011_v46 = vpop.xlane.xlu0 %1010  ;;  %v1025_v49 = vshra.s32 %v1023_v43, 16  ;;  %v1024_v9 = vand.u32 65535, %v1023_v43 }
 0x683   : > { %vm1016_vm11 = vcmp.ge.f32.partialorder %v1000_v16, %v1008_v44  ;;  %vm1017_vm12 = vcmp.ge.f32.partialorder %v1001_v17, %v1011_v46 }
 0x684   : > { %v1020_v50 = vsel %vm1016_vm11, %v1780_v45, 32  ;;  %v1021_v51 = vsel %vm1017_vm12, %v1780_v45, 32  ;;  %v1027_v52 = vcvt.s32.f32 %v1025_v49  ;;  %v1026_v11 = vcvt.s32.f32 %v1024_v9  ;;  %v1454_v9 = vld [vmem:[#allocation2] ss:$0 sm:$0xff] }
 0x685   : > { %v1038_v53 = vsel %vm547_vm1, %v1020_v50, 2147483647  ;;  %v1053_v54 = vsel %vm547_vm1, %v1021_v51, 2147483647 }
 0x686   : > { %v1014_v5 = vpop.xlane.xlu1 %1013  ;;  %1028 = vmin.xlane.f32.xlu0 %v1027_v52  ;;  %v1040_v35 = vshra.s32 %v1038_v53, 16  ;;  %v1055_v55 = vshra.s32 %v1053_v54, 16  ;;  %v1039_v39 = vand.u32 65535, %v1038_v53  ;;  %v1054_v12 = vand.u32 65535, %v1053_v54 }
 0x687   : > { %vm1018_vm13 = vcmp.ge.f32.partialorder %v1002_v23, %v1014_v5 }
 0x688   : > { %v1022_v58 = vsel %vm1018_vm13, %v1780_v45, 32  ;;  %v1042_v40 = vcvt.s32.f32 %v1040_v35  ;;  %v1057_v59 = vcvt.s32.f32 %v1055_v55  ;;  %v1041_v16 = vcvt.s32.f32 %v1039_v39 }
 0x689   : > { %v1068_v60 = vsel %vm547_vm1, %v1022_v58, 2147483647  ;;  %v1056_v56 = vcvt.s32.f32 %v1054_v12 }
 0x68a   : > { %1043 = vmin.xlane.f32.xlu1 %v1042_v40  ;;  %1058 = vmin.xlane.f32.xlu0 %v1057_v59  ;;  %v1070_v61 = vshra.s32 %v1068_v60, 16  ;;  %v1069_v17 = vand.u32 65535, %v1068_v60 }
 0x68c   : > { %v1072_v62 = vcvt.s32.f32 %v1070_v61  ;;  %v1071_v20 = vcvt.s32.f32 %v1069_v17 }
 0x68e   : > { %1073 = vmin.xlane.f32.xlu1 %v1072_v62 }
 0x6be   : > { %v1566_v37 = vpop.f32.mrf.mxu0 }
 0x6c0   : > { %v982_v3 = vpop.f32.mrf.mxu0 }
 0x6c2   : > { %v1567_v6 = vpop.f32.mrf.mxu0 }
 0x6c3   : > { %v998_v48 = vpack.c.bf16 %v1567_v6, %v1566_v37 }
 0x6c4   : > { %v985_v7 = vpop.f32.mrf.mxu0 }
 0x6c5   : > { %v997_v47 = vpack.c.bf16 %v985_v7, %v982_v3 }
 0x6c7   : > { %1592 = vmatprep.mubr.msk.bf16.mxu0 %vm356_vm0, %v997_v47 }
 0x6c8   : > { %1593 = vmatmul.mubr.msk.bf16.gmra.mxu0 %vm356_vm0, %v998_v48 }
 0x70f   : > { %v1029_v10 = vpop.xlane.xlu0 %1028 }
 0x710   : > { %vm1030_vm14 = vcmp.eq.f32.partialorder %v1027_v52, %v1029_v10  ;;  %v1035_v63 = vcvt.f32.s32 %v1029_v10 }
 0x711   : > { %v1031_v14 = vsel %vm1030_vm14, %v1026_v11, inf }
 0x712   : > { %1032 = vmin.xlane.f32.xlu0 %v1031_v14  ;;  %v1036_v24 = vshll.u32 %v1035_v63, 16  ;;  %v539_v14 = vadd.f32 %v1908_v57, %v1454_v9 }
 0x713   : > { %v1044_v15 = vpop.xlane.xlu1 %1043  ;;  %v1059_v1 = vpop.xlane.xlu0 %1058 }
 0x714   : > { %vm1045_vm15 = vcmp.eq.f32.partialorder %v1042_v40, %v1044_v15  ;;  %vm1060_vm2 = vcmp.eq.f32.partialorder %v1057_v59, %v1059_v1  ;;  %v1050_v23 = vcvt.f32.s32 %v1044_v15  ;;  %v1065_v25 = vcvt.f32.s32 %v1059_v1 }
 0x715   : > { %v1046_v2 = vsel %vm1045_vm15, %v1041_v16, inf  ;;  %v1061_v18 = vsel %vm1060_vm2, %v1056_v56, inf  ;;  %v531_v56 = vadd.f32 %v1454_v9, %v1910_v4  ;;  %v534_v4 = vadd.f32 %v1454_v9, %v1925_v22 }
 0x716   : > { %1047 = vmin.xlane.f32.xlu1 %v1046_v2  ;;  %1062 = vmin.xlane.f32.xlu0 %v1061_v18  ;;  %v1051_v28 = vshll.u32 %v1050_v23, 16  ;;  %v1066_v30 = vshll.u32 %v1065_v25, 16 }
 0x717   : > { %v1074_v19 = vpop.xlane.xlu1 %1073 }
 0x718   : > { %vm1075_vm3 = vcmp.eq.f32.partialorder %v1072_v62, %v1074_v19  ;;  %v1080_v31 = vcvt.f32.s32 %v1074_v19 }
 0x719   : > { %v1076_v21 = vsel %vm1075_vm3, %v1071_v20, inf }
 0x71a   : > { %1077 = vmin.xlane.f32.xlu1 %v1076_v21  ;;  %v1081_v42 = vshll.u32 %v1080_v31, 16  ;;  %v542_v21 = vadd.f32 %v1915_v13, %v1454_v9 }
 0x79b   : > { %v1033_v0 = vpop.xlane.xlu0 %1032 }
 0x79c   : > { %v1034_v26 = vcvt.f32.s32 %v1033_v0 }
 0x79e   : > { %v1037_v27 = vadd.s32 %v1036_v24, %v1034_v26 }
 0x79f   : > { %v1048_v8 = vpop.xlane.xlu1 %1047  ;;  %v1063_v29 = vpop.xlane.xlu0 %1062 }
 0x7a0   : > { %v1049_v32 = vcvt.f32.s32 %v1048_v8  ;;  %v1064_v34 = vcvt.f32.s32 %v1063_v29  ;;  %vm1083_vm4 = vcmp.eq.s32.totalorder %v1780_v45, %v1037_v27 }
 0x7a1   : > { %v1087_v44 = vsel %vm1083_vm4, 1.0, %v1665_v33 }
 0x7a2   : > { %v1052_v36 = vadd.s32 %v1051_v28, %v1049_v32  ;;  %v1067_v38 = vadd.s32 %v1066_v30, %v1064_v34 }
 0x7a3   : > { %v1078_v41 = vpop.xlane.xlu1 %1077 }
 0x7a4   : > { %vm1084_vm5 = vcmp.eq.s32.totalorder %v1780_v45, %v1052_v36  ;;  %v1079_v43 = vcvt.f32.s32 %v1078_v41  ;;  %vm1085_vm6 = vcmp.eq.s32.totalorder %v1780_v45, %v1067_v38 }
 0x7a5   : > { %v1088_v46 = vsel %vm1084_vm5, 1.0, %v1665_v33  ;;  %v1089_v51 = vsel %vm1085_vm6, 1.0, %v1665_v33 }
 0x7a6   : > { %v1091_v49 = vpack.c.bf16 %v1088_v46, %v1087_v44  ;;  %v1082_v50 = vadd.s32 %v1081_v42, %v1079_v43 }
 0x7a8   : > { %vm1086_vm7 = vcmp.eq.s32.totalorder %v1780_v45, %v1082_v50  ;;  %1572 = vmatprep.mubr.msk.bf16.mxu1 %vm547_vm1, %v1091_v49  ;;  %v1586_v45 = vpop.f32.mrf.mxu0 }
 0x7a9   : > { %v1090_v52 = vsel %vm1086_vm7, 1.0, %v1665_v33 }
 0x7aa   : > { %v1092_v53 = vpack.c.bf16 %v1090_v52, %v1089_v51  ;;  %v1240_v59 = vpop.f32.mrf.mxu0 }
 0x7ac   : > { %1573 = vmatmul.mubr.msk.bf16.vlgmr.msra.gmra.mxu1 %vm547_vm1, %v1092_v53  ;;  %v1587_v60 = vpop.f32.mrf.mxu0 }
 0x7ae   : > { %v1243_v61 = vpop.f32.mrf.mxu0 }
 0x7b0   : > { %v1590_v62 = vpop.f32.mrf.mxu0 }
 0x7b1   : > { %v1305_v48 = vmax.f32 %v1586_v45, %v1590_v62 }
 0x7b2   : > { %v1256_v33 = vpop.f32.mrf.mxu0 }
 0x7b3   : > { %v1303_v11 = vmax.f32 %v1240_v59, %v1256_v33 }
 0x7b4   : > { %v1591_v37 = vpop.f32.mrf.mxu0 }
 0x7b5   : > { %v1306_v15 = vmax.f32 %v1587_v60, %v1591_v37 }
 0x7b6   : > { %v1259_v3 = vpop.f32.mrf.mxu0 }
 0x7b7   : > { %v1304_v2 = vmax.f32 %v1243_v61, %v1259_v3 }
 0x7b8   : > { %v1594_v6 = vpop.f32.mrf.mxu0 }
 0x7b9   : > { %v1309_v39 = vmax.f32 %v1305_v48, %v1594_v6 }
 0x7ba   : > { %v1272_v7 = vpop.f32.mrf.mxu0 }
 0x7bb   : > { %v1307_v1 = vmax.f32 %v1303_v11, %v1272_v7 }
 0x7bc   : > { %v1595_v47 = vpop.f32.mrf.mxu0 }
 0x7bd   : > { %v1310_v18 = vmax.f32 %v1306_v15, %v1595_v47 }
 0x7be   : > { %v1275_v10 = vpop.f32.mrf.mxu0 }
 0x7bf   : > { %v1308_v57 = vmax.f32 %v1304_v2, %v1275_v10 }
 0x86c   : > { %v1574_v54 = vpop.f32.mrf.mxu1 }
 0x86e   : > { %v1133_v5 = vpop.f32.mrf.mxu1 }
 0x870   : > { %v1575_v35 = vpop.f32.mrf.mxu1 }
 0x871   : > { %v1149_v40 = vpack.c.bf16 %v1575_v35, %v1574_v54 }
 0x872   : > { %v1136_v55 = vpop.f32.mrf.mxu1 }
 0x873   : > { %v1148_v58 = vpack.c.bf16 %v1136_v55, %v1133_v5 }
 0x875   : > { %1596 = vmatprep.mubr.msk.bf16.mxu0 %vm356_vm0, %v1148_v58 }
 0x876   : > { %1597 = vmatmul.mubr.msk.bf16.gmra.mxu0 %vm356_vm0, %v1149_v40  ;;  %vm1323_vm0 = vcmask 7168  }
 0x936   : > { %v1598_v12 = vpop.f32.mrf.mxu0 }
 0x937   : > { %v1313_v16 = vmax.f32 %v1309_v39, %v1598_v12 }
 0x938   : > { %v1288_v17 = vpop.f32.mrf.mxu0 }
 0x939   : > { %v1317_v19 = vadd.f32 %v1313_v16, %v539_v14  ;;  %v1311_v20 = vmax.f32 %v1307_v1, %v1288_v17 }
 0x93a   : > { %v1599_v63 = vpop.f32.mrf.mxu0 }
 0x93b   : > { %v1321_v23 = vmax.f32 %v1317_v19, 0.0  ;;  %v1315_v0 = vadd.f32 %v1311_v20, %v531_v56  ;;  %v1314_v24 = vmax.f32 %v1310_v18, %v1599_v63 }
 0x93c   : > { %v1291_v25 = vpop.f32.mrf.mxu0 }
 0x93d   : > { %1326 = vst.msk [vmem:[%s325_s10 + $0x10] sm:$0xff] %vm1323_vm0, %v1321_v23  ;;  %v1319_v26 = vmax.f32 %v1315_v0, 0.0  ;;  %v1318_v27 = vadd.f32 %v1314_v24, %v542_v21  ;;  %v1312_v28 = vmax.f32 %v1308_v57, %v1291_v25 }
 0x93f   : > { %1324 = vst.msk [vmem:[%s325_s10] sm:$0xff] %vm1323_vm0, %v1319_v26  ;;  %v1322_v13 = vmax.f32 %v1318_v27, 0.0  ;;  %v1316_v8 = vadd.f32 %v1312_v28, %v534_v4 }
 0x941   : > { %1327 = vst.msk [vmem:[%s325_s10 + $0x18] sm:$0xff] %vm1323_vm0, %v1322_v13  ;;  %v1320_v29 = vmax.f32 %v1316_v8, 0.0 }
 0x943   : > { %1325 = vst.msk [vmem:[%s325_s10 + $0x8] sm:$0xff] %vm1323_vm0, %v1320_v29 }
 0x944 PF: > { %s18_s25 = sadd.s32 1, %s1663_s25   ;;  %s1998_s23 = smov %s1659_s24 }
 0x945   : > { %p15_p5 = scmp.ge.s32.totalorder %s18_s25, 4   ;;  %s1999_s24 = smov %s2001_s5 }
 0x947   :  { %17 = sbr.rel (!%p15_p5) target bundleno = 3 (0x3), region = 80 }

// kernel: dgcnn_forward.10
= control target key start
LH: loop header
LB: loop body
LE: loop exit
PB: predicated region body
PF: predicated region fallthrough
CT: control target
= control target key end

     0   :  { %s1328_s21 = smov 0   ;;  %s1330_s22 = smov 0   ;;  %s1514_s0 = inlined_call_operand.vmem [shape: f32[2,1,16], index: 0, kind: input, shape index: {}]   ;;  %s1515_s1 = inlined_call_operand.vmem [shape: bf16[2,16,64], index: 1, kind: input, shape index: {}, may-alias: {1,2}]   ;;  %s1516_s2 = inlined_call_operand.vmem [shape: bf16[2,16,64], index: 2, kind: input, shape index: {}, may-alias: {1,2}]   ;;  %s1517_s3 = inlined_call_operand.vmem [shape: bf16[64,128], index: 3, kind: input, shape index: {}]   ;;  %s1518_s4 = inlined_call_operand.vmem [shape: bf16[64,128], index: 4, kind: input, shape index: {}]   ;;  %s1519_s5 = inlined_call_operand.vmem [shape: f32[1,128], index: 5, kind: input, shape index: {}]   ;;  %s1520_s6 = inlined_call_operand.vmem [shape: bf16[2,16,128], index: 6, kind: output, shape index: {}]  }
   0x1   :  { %s1332_s23 = smov 0  }
   0x2 LB: > { %s28_s24 = sadd.s32 1, %s1285_s22  ;;  %p1106_p0 = scmp.ge.s32.totalorder %s1289_s23, 1  ;;  %s1289_s23 = sphi %s1332_s23, %s16_s23   ;;  %s1285_s22 = sphi %s1330_s22, %s1522_s22   ;;  %s1281_s21 = sphi %s1328_s21, %s1521_s21  }
   0x3   : > { %p30_p1 = scmp.ge.s32.totalorder %s28_s24, 2  ;;  %p251_p2 = scmp.lt.s32.totalorder %s1289_s23, 3 }
   0x5   : > { %s1524_s24 = smov (%p30_p1, %s28_s24), 0  ;;  %p252_p3 = pnand %p1106_p0, %p251_p2 }
   0x6   : > { %p297_p4 = scmp.lt.s32.totalorder (!%p252_p3), %s1281_s21, 1 }
   0x7   : > { %255 = sbr.rel (%p252_p3) target bundleno = 2359 (0x937), region = 44 }
   0xc   : > { %v1291_v0 = vmov 0.0   ;;  %vm1292_vm0 = vmmov 0   ;;  %s1526_s21 = smov (!%p297_p4, %s1281_s21), 1  ;;  %vm340_vm1 = vcmask 523264   ;;  %vm493_vm2 = vcmask 130048   ;;  %v1258_v62 = vld [vmem:[%s1518_s4 + $0x18] sm:$0xff]  }
   0xd   : > { %1172 = vmatprep.subr.bf16.mxu0 %v1291_v0  ;;  %1174 = vmatprep.mubr.msk.bf16.mxu0 %vm1292_vm0, %v1291_v0  ;;  %s1352_s25 = sshll.u32 %s1526_s21, 3  ;;  %s299_s10 = scalar_lea.vmem %s1514_s0, %s1526_s21  ;;  %v491_v25 = vlaneseq  ;;  %v1259_v63 = vld [vmem:[%s1518_s4 + $0x10] sm:$0xff]  }
   0xe   : > { %1178 = vmatprep.subr.bf16.mxu1 %v1291_v0  ;;  %1186 = vmatprep.mubr.msk.bf16.mxu1 %vm1292_vm0, %v1291_v0  ;;  %s304_s28 = scalar_lea.vmem %s1515_s1, %s1352_s25  ;;  %s313_s7 = scalar_lea.vmem %s1516_s2, %s1352_s25  ;;  %v1116_v13 = vld [vmem:[%s299_s10] ss:$0 sm:$0xff] }
   0xf   : > { %v1362_v1 = vld [vmem:[%s304_s28] sm:$0xff]   ;;  %v1384_v26 = vand.u32 127, %v491_v25  ;;  %1179 = vmatpush3.bf16.msra.mxu1 %v1258_v62  ;;  %s323_s11 = scalar_lea.vmem %s1520_s6, %s1352_s25 }
  0x10   : > { %v1364_v2 = vld [vmem:[%s313_s7] sm:$0xff]   ;;  %v345_v3 = vsel %vm340_vm1, %v1362_v1, 0  ;;  %1180 = vmatprep.subr.bf16.mxu1 %v1291_v0 }
  0x11   : > { %v388_v4 = vunpack.c.l.bf16 %v1364_v2  ;;  %v389_v5 = vunpack.c.h.bf16 %v1364_v2  ;;  %1173 = vmatpush3.bf16.xpose.msra.mxu0 %v345_v3  ;;  %v1260_v3 = vld [vmem:[%s1518_s4 + $0x8] sm:$0xff]  }
  0x12   : > { %1190 = vmatprep.subr.bf16.mxu0 %v1291_v0 }
  0x13   : > { %v390_v6 = vmul.f32 %v388_v4, %v388_v4  ;;  %v391_v7 = vmul.f32 %v389_v5, %v389_v5  ;;  %1181 = vmatpush3.bf16.msra.mxu1 %v1259_v63  ;;  %v1261_v4 = vld [vmem:[%s1518_s4] sm:$0xff]  }
  0x14   : > { %1182 = vmatprep.subr.bf16.mxu1 %v1291_v0 }
  0x15   : > { %v392_v8 = vsel %vm340_vm1, %v390_v6, 0.0  ;;  %v395_v9 = vsel %vm340_vm1, %v391_v7, 0.0 }
  0x16   : > { %393 = vadd.xlane.f32.xlu0 %v392_v8 }
  0x17   : > { %1183 = vmatpush3.bf16.msra.mxu1 %v1260_v3 }
  0x18   : > { %1175 = vmatmul.mubr.msk.bf16.vlgmr.msra.gmra.mxu0 %vm340_vm1, %v1364_v2  ;;  %1184 = vmatprep.subr.bf16.mxu1 %v1291_v0 }
  0x19   : > { %1191 = vmatpush3.bf16.msra.mxu0 %v1362_v1  ;;  %1192 = vmatprep.mubr.msk.bf16.mxu0 %vm1292_vm0, %v1291_v0 }
  0x1a   : > { %396 = vadd.xlane.f32.xlu0 %v395_v9  ;;  %1196 = vmatprep.subr.bf16.mxu0 %v1291_v0 }
  0x1b   : > { %1185 = vmatpush3.bf16.msra.mxu1 %v1261_v4 }
  0x1e   : > { %1187 = vmatmul.mubr.msk.bf16.vlgmr.msra.gmra.mxu1 %vm340_vm1, %v1364_v2 }
  0x9f   : > { %v394_v10 = vpop.xlane.xlu0 %393 }
  0xa3   : > { %v397_v17 = vpop.xlane.xlu0 %396 }
  0xd8   : > { %v381_v11 = vpop.f32.mrf.mxu0 }
  0xd9   : > { %v398_v12 = vmul.f32 2.0, %v381_v11 }
  0xda   : > { %v1176_v14 = vpop.f32.mrf.mxu0 }
  0xdb   : > { %v400_v15 = vsub.f32 %v398_v12, %v394_v10 }
  0xdc   : > { %v384_v16 = vpop.f32.mrf.mxu0 }
  0xdd   : > { %v409_v18 = vsub.f32 %v400_v15, %v1116_v13  ;;  %v399_v19 = vmul.f32 2.0, %v384_v16 }
  0xde   : > { %v1177_v20 = vpop.f32.mrf.mxu0 }
  0xdf   : > { %v401_v21 = vsub.f32 %v399_v19, %v397_v17  ;;  %v494_v22 = vsel %vm493_vm2, %v409_v18, -inf }
  0xe0   : > { %495 = vmax.xlane.f32.xlu1 %v494_v22 }
  0xe1   : > { %v410_v23 = vsub.f32 %v401_v21, %v1116_v13 }
  0xe3   : > { %v497_v24 = vsel %vm493_vm2, %v410_v23, -inf }
  0xe4   : > { %498 = vmax.xlane.f32.xlu1 %v497_v24 }
 0x169   : > { %v496_v27 = vpop.xlane.xlu1 %495 }
 0x16a   : > { %vm500_vm3 = vcmp.ge.f32.partialorder %v409_v18, %v496_v27 }
 0x16b   : > { %v502_v28 = vsel %vm500_vm3, %v1384_v26, 16 }
 0x16c   : > { %v504_v29 = vsel %vm493_vm2, %v502_v28, 2147483647 }
 0x16d   : > { %v499_v30 = vpop.xlane.xlu1 %498  ;;  %v506_v31 = vshra.s32 %v504_v29, 16  ;;  %v505_v37 = vand.u32 65535, %v504_v29 }
 0x16e   : > { %vm501_vm4 = vcmp.ge.f32.partialorder %v410_v23, %v499_v30 }
 0x16f   : > { %v503_v32 = vsel %vm501_vm4, %v1384_v26, 16  ;;  %v508_v33 = vcvt.s32.f32 %v506_v31  ;;  %v507_v39 = vcvt.s32.f32 %v505_v37 }
 0x170   : > { %v519_v34 = vsel %vm493_vm2, %v503_v32, 2147483647 }
 0x171   : > { %509 = vmin.xlane.f32.xlu0 %v508_v33  ;;  %v521_v35 = vshra.s32 %v519_v34, 16  ;;  %v520_v40 = vand.u32 65535, %v519_v34 }
 0x173   : > { %v523_v36 = vcvt.s32.f32 %v521_v35  ;;  %v522_v43 = vcvt.s32.f32 %v520_v40 }
 0x175   : > { %524 = vmin.xlane.f32.xlu1 %v523_v36 }
 0x1fa   : > { %v510_v38 = vpop.xlane.xlu0 %509 }
 0x1fb   : > { %vm511_vm5 = vcmp.eq.f32.partialorder %v508_v33, %v510_v38  ;;  %v516_v45 = vcvt.f32.s32 %v510_v38 }
 0x1fc   : > { %v512_v41 = vsel %vm511_vm5, %v507_v39, inf }
 0x1fd   : > { %513 = vmin.xlane.f32.xlu0 %v512_v41  ;;  %v517_v47 = vshll.u32 %v516_v45, 16  ;;  %v1262_v45 = vld [vmem:[%s1517_s3 + $0x18] sm:$0xff]  }
 0x1fe   : > { %v525_v42 = vpop.xlane.xlu1 %524  ;;  %1214 = vmatprep.subr.bf16.mxu1 %v1262_v45 }
 0x1ff   : > { %vm526_vm6 = vcmp.eq.f32.partialorder %v523_v36, %v525_v42  ;;  %v531_v48 = vcvt.f32.s32 %v525_v42  ;;  %1215 = vmatpush3.bf16.msra.mxu1 %v1262_v45 }
 0x200   : > { %v527_v44 = vsel %vm526_vm6, %v522_v43, inf }
 0x201   : > { %528 = vmin.xlane.f32.xlu1 %v527_v44  ;;  %v532_v52 = vshll.u32 %v531_v48, 16  ;;  %v1265_v48 = vld [vmem:[%s1517_s3] sm:$0xff]  }
 0x286   : > { %v514_v46 = vpop.xlane.xlu0 %513 }
 0x287   : > { %v515_v49 = vcvt.f32.s32 %v514_v46  ;;  %v1263_v46 = vld [vmem:[%s1517_s3 + $0x10] sm:$0xff]  }
 0x288   : > { %1216 = vmatprep.subr.bf16.mxu1 %v1263_v46 }
 0x289   : > { %v518_v50 = vadd.s32 %v517_v47, %v515_v49  ;;  %v1264_v47 = vld [vmem:[%s1517_s3 + $0x8] sm:$0xff]   ;;  %1217 = vmatpush3.bf16.msra.mxu1 %v1263_v46 }
 0x28a   : > { %v529_v51 = vpop.xlane.xlu1 %528  ;;  %1218 = vmatprep.subr.bf16.mxu1 %v1264_v47 }
 0x28b   : > { %v530_v53 = vcvt.f32.s32 %v529_v51  ;;  %vm534_vm7 = vcmp.eq.s32.totalorder %v1384_v26, %v518_v50 }
 0x28c   : > { %v1391_v54 = vsel %vm534_vm7, -inf, %v409_v18  ;;  %v536_v57 = vsel %vm534_vm7, 1.0, %v1291_v0 }
 0x28d   : > { %v533_v55 = vadd.s32 %v532_v52, %v530_v53  ;;  %v587_v56 = vsel %vm493_vm2, %v1391_v54, -inf  ;;  %1219 = vmatpush3.bf16.msra.mxu1 %v1264_v47 }
 0x28e   : > { %588 = vmax.xlane.f32.xlu0 %v587_v56  ;;  %1220 = vmatprep.subr.bf16.mxu1 %v1265_v48 }
 0x28f   : > { %vm535_vm8 = vcmp.eq.s32.totalorder %v1384_v26, %v533_v55 }
 0x290   : > { %v1397_v58 = vsel %vm535_vm8, -inf, %v410_v23  ;;  %v537_v59 = vsel %vm535_vm8, 1.0, %v1291_v0 }
 0x291   : > { %v590_v60 = vsel %vm493_vm2, %v1397_v58, -inf  ;;  %v538_v61 = vpack.c.bf16 %v537_v59, %v536_v57  ;;  %1221 = vmatpush3.bf16.msra.mxu1 %v1265_v48  ;;  %v1468_v59 = vpop.f32.mrf.mxu1 }
 0x292   : > { %591 = vmax.xlane.f32.xlu1 %v590_v60 }
 0x293   : > { %1193 = vmatmul.mubr.msk.bf16.vlgmr.msra.gmra.mxu0 %vm493_vm2, %v538_v61  ;;  %v1188_v60 = vpop.f32.mrf.mxu1 }
 0x294   : > { %1197 = vmatpush3.bf16.msra.mxu0 %v1362_v1  ;;  %1198 = vmatprep.mubr.msk.bf16.mxu0 %vm1292_vm0, %v1291_v0 }
 0x295   : > { %1202 = vmatprep.subr.bf16.mxu0 %v1291_v0  ;;  %v1470_v61 = vpop.f32.mrf.mxu1 }
 0x297   : > { %v1189_v62 = vpop.f32.mrf.mxu1 }
 0x317   : > { %v589_v5 = vpop.xlane.xlu0 %588 }
 0x318   : > { %vm593_vm9 = vcmp.ge.f32.partialorder %v1391_v54, %v589_v5 }
 0x319   : > { %v595_v6 = vsel %vm593_vm9, %v1384_v26, 16 }
 0x31a   : > { %v597_v7 = vsel %vm493_vm2, %v595_v6, 2147483647 }
 0x31b   : > { %v592_v8 = vpop.xlane.xlu1 %591  ;;  %v599_v9 = vshra.s32 %v597_v7, 16  ;;  %v598_v19 = vand.u32 65535, %v597_v7 }
 0x31c   : > { %vm594_vm10 = vcmp.ge.f32.partialorder %v1397_v58, %v592_v8 }
 0x31d   : > { %v596_v10 = vsel %vm594_vm10, %v1384_v26, 16  ;;  %v601_v11 = vcvt.s32.f32 %v599_v9  ;;  %v600_v21 = vcvt.s32.f32 %v598_v19 }
 0x31e   : > { %v612_v12 = vsel %vm493_vm2, %v596_v10, 2147483647 }
 0x31f   : > { %602 = vmin.xlane.f32.xlu0 %v601_v11  ;;  %v614_v13 = vshra.s32 %v612_v12, 16  ;;  %v613_v22 = vand.u32 65535, %v612_v12 }
 0x321   : > { %v616_v14 = vcvt.s32.f32 %v614_v13  ;;  %v615_v25 = vcvt.s32.f32 %v613_v22 }
 0x323   : > { %617 = vmin.xlane.f32.xlu1 %v616_v14 }
 0x353   : > { %v577_v2 = vpop.f32.mrf.mxu0 }
 0x355   : > { %v1194_v15 = vpop.f32.mrf.mxu0 }
 0x357   : > { %v580_v16 = vpop.f32.mrf.mxu0 }
 0x358   : > { %v584_v17 = vpack.c.bf16 %v580_v16, %v577_v2 }
 0x359   : > { %v1195_v18 = vpop.f32.mrf.mxu0 }
 0x35a   : > { %1222 = vmatprep.mubr.msk.bf16.mxu1 %vm340_vm1, %v584_v17 }
 0x3a8   : > { %v603_v20 = vpop.xlane.xlu0 %602 }
 0x3a9   : > { %vm604_vm11 = vcmp.eq.f32.partialorder %v601_v11, %v603_v20  ;;  %v609_v28 = vcvt.f32.s32 %v603_v20 }
 0x3aa   : > { %v605_v23 = vsel %vm604_vm11, %v600_v21, inf }
 0x3ab   : > { %606 = vmin.xlane.f32.xlu0 %v605_v23  ;;  %v610_v30 = vshll.u32 %v609_v28, 16 }
 0x3ac   : > { %v618_v24 = vpop.xlane.xlu1 %617 }
 0x3ad   : > { %vm619_vm12 = vcmp.eq.f32.partialorder %v616_v14, %v618_v24  ;;  %v624_v31 = vcvt.f32.s32 %v618_v24 }
 0x3ae   : > { %v620_v27 = vsel %vm619_vm12, %v615_v25, inf }
 0x3af   : > { %621 = vmin.xlane.f32.xlu1 %v620_v27  ;;  %v625_v35 = vshll.u32 %v624_v31, 16 }
 0x434   : > { %v607_v29 = vpop.xlane.xlu0 %606 }
 0x435   : > { %v608_v32 = vcvt.f32.s32 %v607_v29 }
 0x437   : > { %v611_v33 = vadd.s32 %v610_v30, %v608_v32 }
 0x438   : > { %v622_v34 = vpop.xlane.xlu1 %621 }
 0x439   : > { %v623_v36 = vcvt.f32.s32 %v622_v34  ;;  %vm627_vm13 = vcmp.eq.s32.totalorder %v1384_v26, %v611_v33 }
 0x43a   : > { %v1433_v37 = vsel %vm627_vm13, -inf, %v1391_v54  ;;  %v629_v40 = vsel %vm627_vm13, 1.0, %v1291_v0 }
 0x43b   : > { %v626_v38 = vadd.s32 %v625_v35, %v623_v36  ;;  %v679_v39 = vsel %vm493_vm2, %v1433_v37, -inf }
 0x43c   : > { %680 = vmax.xlane.f32.xlu0 %v679_v39 }
 0x43d   : > { %vm628_vm14 = vcmp.eq.s32.totalorder %v1384_v26, %v626_v38 }
 0x43e   : > { %v1440_v41 = vsel %vm628_vm14, -inf, %v1397_v58  ;;  %v630_v42 = vsel %vm628_vm14, 1.0, %v1291_v0 }
 0x43f   : > { %v682_v43 = vsel %vm493_vm2, %v1440_v41, -inf  ;;  %v631_v44 = vpack.c.bf16 %v630_v42, %v629_v40 }
 0x440   : > { %683 = vmax.xlane.f32.xlu1 %v682_v43 }
 0x441   : > { %1199 = vmatmul.mubr.msk.bf16.vlgmr.msra.gmra.mxu0 %vm493_vm2, %v631_v44 }
 0x442   : > { %1203 = vmatpush3.bf16.msra.mxu0 %v1362_v1  ;;  %1204 = vmatprep.mubr.msk.bf16.mxu0 %vm1292_vm0, %v1291_v0 }
 0x443   : > { %1208 = vmatprep.subr.bf16.mxu0 %v1291_v0 }
 0x4c5   : > { %v681_v49 = vpop.xlane.xlu0 %680 }
 0x4c6   : > { %vm685_vm15 = vcmp.ge.f32.partialorder %v1433_v37, %v681_v49 }
 0x4c7   : > { %v687_v50 = vsel %vm685_vm15, %v1384_v26, 16 }
 0x4c8   : > { %v689_v51 = vsel %vm493_vm2, %v687_v50, 2147483647 }
 0x4c9   : > { %v684_v52 = vpop.xlane.xlu1 %683  ;;  %v691_v53 = vshra.s32 %v689_v51, 16  ;;  %v690_v7 = vand.u32 65535, %v689_v51 }
 0x4ca   : > { %vm686_vm3 = vcmp.ge.f32.partialorder %v1440_v41, %v684_v52 }
 0x4cb   : > { %v688_v54 = vsel %vm686_vm3, %v1384_v26, 16  ;;  %v693_v55 = vcvt.s32.f32 %v691_v53  ;;  %v692_v9 = vcvt.s32.f32 %v690_v7 }
 0x4cc   : > { %v704_v56 = vsel %vm493_vm2, %v688_v54, 2147483647 }
 0x4cd   : > { %694 = vmin.xlane.f32.xlu0 %v693_v55  ;;  %v706_v57 = vshra.s32 %v704_v56, 16  ;;  %v705_v10 = vand.u32 65535, %v704_v56 }
 0x4cf   : > { %v708_v58 = vcvt.s32.f32 %v706_v57  ;;  %v707_v13 = vcvt.s32.f32 %v705_v10 }
 0x4d1   : > { %709 = vmin.xlane.f32.xlu1 %v708_v58 }
 0x501   : > { %v669_v63 = vpop.f32.mrf.mxu0 }
 0x503   : > { %v1200_v3 = vpop.f32.mrf.mxu0 }
 0x505   : > { %v672_v4 = vpop.f32.mrf.mxu0 }
 0x506   : > { %v676_v5 = vpack.c.bf16 %v672_v4, %v669_v63 }
 0x507   : > { %v1201_v6 = vpop.f32.mrf.mxu0 }
 0x508   : > { %1223 = vmatmul.mubr.msk.bf16.vlgmr.msra.gmra.mxu1 %vm340_vm1, %v676_v5 }
 0x556   : > { %v695_v8 = vpop.xlane.xlu0 %694 }
 0x557   : > { %vm696_vm4 = vcmp.eq.f32.partialorder %v693_v55, %v695_v8  ;;  %v701_v2 = vcvt.f32.s32 %v695_v8 }
 0x558   : > { %v697_v11 = vsel %vm696_vm4, %v692_v9, inf }
 0x559   : > { %698 = vmin.xlane.f32.xlu0 %v697_v11  ;;  %v702_v16 = vshll.u32 %v701_v2, 16 }
 0x55a   : > { %v710_v12 = vpop.xlane.xlu1 %709 }
 0x55b   : > { %vm711_vm5 = vcmp.eq.f32.partialorder %v708_v58, %v710_v12  ;;  %v716_v17 = vcvt.f32.s32 %v710_v12 }
 0x55c   : > { %v712_v14 = vsel %vm711_vm5, %v707_v13, inf }
 0x55d   : > { %713 = vmin.xlane.f32.xlu1 %v712_v14  ;;  %v717_v21 = vshll.u32 %v716_v17, 16 }
 0x5c8   : > { %v1224_v13 = vpop.f32.mrf.mxu1 }
 0x5ca   : > { %v939_v14 = vpop.f32.mrf.mxu1 }
 0x5cc   : > { %v1225_v2 = vpop.f32.mrf.mxu1 }
 0x5e2   : > { %v699_v15 = vpop.xlane.xlu0 %698 }
 0x5e3   : > { %v700_v18 = vcvt.f32.s32 %v699_v15  ;;  %v942_v15 = vpop.f32.mrf.mxu1 }
 0x5e5   : > { %v703_v19 = vadd.s32 %v702_v16, %v700_v18 }
 0x5e6   : > { %v714_v20 = vpop.xlane.xlu1 %713 }
 0x5e7   : > { %v715_v22 = vcvt.f32.s32 %v714_v20  ;;  %vm719_vm6 = vcmp.eq.s32.totalorder %v1384_v26, %v703_v19 }
 0x5e8   : > { %v769_v23 = vsel %vm719_vm6, -inf, %v1433_v37  ;;  %v721_v27 = vsel %vm719_vm6, 1.0, %v1291_v0 }
 0x5e9   : > { %v718_v24 = vadd.s32 %v717_v21, %v715_v22  ;;  %v771_v25 = vsel %vm493_vm2, %v769_v23, -inf  ;;  %v971_v21 = vmax.f32 %v942_v15, %v1225_v2 }
 0x5ea   : > { %772 = vmax.xlane.f32.xlu0 %v771_v25 }
 0x5eb   : > { %vm720_vm7 = vcmp.eq.s32.totalorder %v1384_v26, %v718_v24 }
 0x5ec   : > { %v770_v28 = vsel %vm720_vm7, -inf, %v1440_v41  ;;  %v722_v29 = vsel %vm720_vm7, 1.0, %v1291_v0 }
 0x5ed   : > { %v774_v30 = vsel %vm493_vm2, %v770_v28, -inf  ;;  %v723_v31 = vpack.c.bf16 %v722_v29, %v721_v27 }
 0x5ee   : > { %775 = vmax.xlane.f32.xlu1 %v774_v30 }
 0x5ef   : > { %1205 = vmatmul.mubr.msk.bf16.vlgmr.msra.gmra.mxu0 %vm493_vm2, %v723_v31 }
 0x5f0   : > { %1209 = vmatpush3.bf16.msra.mxu0 %v1362_v1  ;;  %1210 = vmatprep.mubr.msk.bf16.mxu0 %vm1292_vm0, %v1291_v0 }
 0x673   : > { %v773_v32 = vpop.xlane.xlu0 %772 }
 0x674   : > { %vm777_vm8 = vcmp.ge.f32.partialorder %v769_v23, %v773_v32 }
 0x675   : > { %v779_v33 = vsel %vm777_vm8, %v1384_v26, 16 }
 0x676   : > { %v781_v34 = vsel %vm493_vm2, %v779_v33, 2147483647 }
 0x677   : > { %v776_v35 = vpop.xlane.xlu1 %775  ;;  %v783_v36 = vshra.s32 %v781_v34, 16  ;;  %v782_v46 = vand.u32 65535, %v781_v34 }
 0x678   : > { %vm778_vm9 = vcmp.ge.f32.partialorder %v770_v28, %v776_v35 }
 0x679   : > { %v780_v37 = vsel %vm778_vm9, %v1384_v26, 16  ;;  %v785_v38 = vcvt.s32.f32 %v783_v36  ;;  %v784_v48 = vcvt.s32.f32 %v782_v46 }
 0x67a   : > { %v796_v39 = vsel %vm493_vm2, %v780_v37, 2147483647 }
 0x67b   : > { %786 = vmin.xlane.f32.xlu0 %v785_v38  ;;  %v798_v40 = vshra.s32 %v796_v39, 16  ;;  %v797_v49 = vand.u32 65535, %v796_v39 }
 0x67d   : > { %v800_v1 = vcvt.s32.f32 %v798_v40  ;;  %v799_v52 = vcvt.s32.f32 %v797_v49 }
 0x67f   : > { %801 = vmin.xlane.f32.xlu1 %v800_v1 }
 0x6af   : > { %v761_v41 = vpop.f32.mrf.mxu0 }
 0x6b1   : > { %v1206_v42 = vpop.f32.mrf.mxu0 }
 0x6b3   : > { %v764_v43 = vpop.f32.mrf.mxu0 }
 0x6b4   : > { %v768_v44 = vpack.c.bf16 %v764_v43, %v761_v41 }
 0x6b5   : > { %v1207_v45 = vpop.f32.mrf.mxu0 }
 0x6b6   : > { %1226 = vmatprep.mubr.msk.bf16.mxu1 %vm340_vm1, %v768_v44 }
 0x704   : > { %v787_v47 = vpop.xlane.xlu0 %786 }
 0x705   : > { %vm788_vm0 = vcmp.eq.f32.partialorder %v785_v38, %v787_v47  ;;  %v793_v54 = vcvt.f32.s32 %v787_v47 }
 0x706   : > { %v789_v50 = vsel %vm788_vm0, %v784_v48, inf }
 0x707   : > { %790 = vmin.xlane.f32.xlu0 %v789_v50  ;;  %v794_v56 = vshll.u32 %v793_v54, 16 }
 0x708   : > { %v802_v51 = vpop.xlane.xlu1 %801 }
 0x709   : > { %vm803_vm10 = vcmp.eq.f32.partialorder %v800_v1, %v802_v51  ;;  %v808_v57 = vcvt.f32.s32 %v802_v51 }
 0x70a   : > { %v804_v53 = vsel %vm803_vm10, %v799_v52, inf }
 0x70b   : > { %805 = vmin.xlane.f32.xlu1 %v804_v53  ;;  %v809_v63 = vshll.u32 %v808_v57, 16 }
 0x790   : > { %v791_v55 = vpop.xlane.xlu0 %790 }
 0x791   : > { %v792_v58 = vcvt.f32.s32 %v791_v55 }
 0x793   : > { %v795_v60 = vadd.s32 %v794_v56, %v792_v58 }
 0x794   : > { %v806_v62 = vpop.xlane.xlu1 %805 }
 0x795   : > { %v807_v3 = vcvt.f32.s32 %v806_v62  ;;  %vm811_vm11 = vcmp.eq.s32.totalorder %v1384_v26, %v795_v60 }
 0x796   : > { %v813_v5 = vsel %vm811_vm11, 1.0, %v1291_v0 }
 0x797   : > { %v810_v4 = vadd.s32 %v809_v63, %v807_v3 }
 0x799   : > { %vm812_vm12 = vcmp.eq.s32.totalorder %v1384_v26, %v810_v4  ;;  %v970_v26 = vmax.f32 %v939_v14, %v1224_v13 }
 0x79a   : > { %v814_v6 = vsel %vm812_vm12, 1.0, %v1291_v0  ;;  %v1117_v0 = vld [vmem:[%s1519_s5] ss:$0 sm:$0xff] }
 0x79b   : > { %v815_v7 = vpack.c.bf16 %v814_v6, %v813_v5  ;;  %v485_v20 = vadd.f32 %v1117_v0, %v1468_v59  ;;  %v488_v27 = vadd.f32 %v1117_v0, %v1470_v61 }
 0x79d   : > { %1211 = vmatmul.mubr.msk.bf16.vlgmr.msra.gmra.mxu0 %vm493_vm2, %v815_v7 }
 0x85d   : > { %v853_v8 = vpop.f32.mrf.mxu0 }
 0x85f   : > { %v1212_v9 = vpop.f32.mrf.mxu0 }
 0x861   : > { %v856_v10 = vpop.f32.mrf.mxu0 }
 0x862   : > { %v860_v11 = vpack.c.bf16 %v856_v10, %v853_v8 }
 0x863   : > { %v1213_v12 = vpop.f32.mrf.mxu0 }
 0x864   : > { %1227 = vmatmul.mubr.msk.bf16.gmra.mxu1 %vm340_vm1, %v860_v11 }
 0x924   : > { %v1228_v16 = vpop.f32.mrf.mxu1 }
 0x926   : > { %v955_v17 = vpop.f32.mrf.mxu1 }
 0x927   : > { %v972_v18 = vmax.f32 %v970_v26, %v955_v17 }
 0x928   : > { %v1229_v19 = vpop.f32.mrf.mxu1 }
 0x929   : > { %v974_v22 = vmax.f32 %v972_v18, %v1228_v16 }
 0x92a   : > { %v958_v23 = vpop.f32.mrf.mxu1 }
 0x92b   : > { %v976_v24 = vadd.f32 %v974_v22, %v485_v20  ;;  %v973_v25 = vmax.f32 %v971_v21, %v958_v23 }
 0x92d   : > { %v975_v28 = vmax.f32 %v973_v25, %v1229_v19  ;;  %v980_v29 = vmul.f32 0.2, %v976_v24  ;;  %vm978_vm1 = vcmp.ge.f32.partialorder %v976_v24, 0.0 }
 0x92f   : > { %v977_v30 = vadd.f32 %v975_v28, %v488_v27  ;;  %v982_v32 = vsel %vm978_vm1, %v976_v24, %v980_v29 }
 0x931   : > { %vm979_vm2 = vcmp.ge.f32.partialorder %v977_v30, 0.0  ;;  %v981_v31 = vmul.f32 0.2, %v977_v30 }
 0x933   : > { %v983_v33 = vsel %vm979_vm2, %v977_v30, %v981_v31 }
 0x934   : > { %v1147_v59 = vpack.c.bf16 %v983_v33, %v982_v32 }
 0x936   : > { %1148 = vst [vmem:[%s323_s11] sm:$0xff] %v1147_v59  }
 0x937 PF: > { %s16_s23 = sadd.s32 1, %s1289_s23   ;;  %s1521_s21 = smov %s1285_s22 }
 0x938   : > { %p13_p5 = scmp.ge.s32.totalorder %s16_s23, 4   ;;  %s1522_s22 = smov %s1524_s24 }
 0x93a   :  { %15 = sbr.rel (!%p13_p5) target bundleno = 2 (0x2), region = 80 }

// kernel: dgcnn_forward.11
= control target key start
LH: loop header
LB: loop body
LE: loop exit
PB: predicated region body
PF: predicated region fallthrough
CT: control target
= control target key end

     0   :  { %s1391_s23 = smov 0   ;;  %s1393_s24 = smov 0   ;;  %s1593_s0 = inlined_call_operand.vmem [shape: f32[2,1,16], index: 0, kind: input, shape index: {}]   ;;  %s1594_s1 = inlined_call_operand.vmem [shape: bf16[2,16,128], index: 1, kind: input, shape index: {}, may-alias: {1,2}]   ;;  %s1595_s2 = inlined_call_operand.vmem [shape: bf16[2,16,128], index: 2, kind: input, shape index: {}, may-alias: {1,2}]   ;;  %s1596_s3 = inlined_call_operand.vmem [shape: bf16[128,1], index: 3, kind: input, shape index: {}]   ;;  %s1597_s4 = inlined_call_operand.vmem [shape: bf16[128,1], index: 4, kind: input, shape index: {}]   ;;  %s1598_s5 = inlined_call_operand.<no memory space> [shape: f32[1,1], index: 5, kind: input, shape index: {}]   ;;  %s1599_s6 = inlined_call_operand.vmem [shape: f32[2,16,1], index: 6, kind: output, shape index: {}]  }
   0x1   :  { %v11_v0 = vstv %s1598_s5  ;;  %s1395_s25 = smov 0  }
   0x2   :  { %12 = vst [vmem:[#allocation2] sm:$0x1] %v11_v0 }
   0x3 LB: > { %s30_s5 = sadd.s32 1, %s1345_s24  ;;  %p1141_p0 = scmp.ge.s32.totalorder %s1349_s25, 1  ;;  %s1349_s25 = sphi %s1395_s25, %s18_s25   ;;  %s1345_s24 = sphi %s1393_s24, %s1601_s24   ;;  %s1341_s23 = sphi %s1391_s23, %s1600_s23  }
   0x4   : > { %p32_p1 = scmp.ge.s32.totalorder %s30_s5, 2  ;;  %p253_p2 = scmp.lt.s32.totalorder %s1349_s25, 3 }
   0x6   : > { %s1603_s5 = smov (%p32_p1, %s30_s5), 0  ;;  %p254_p3 = pnand %p1141_p0, %p253_p2 }
   0x7   : > { %p299_p4 = scmp.lt.s32.totalorder (!%p254_p3), %s1341_s23, 1 }
   0x8   : > { %257 = sbr.rel (%p254_p3) target bundleno = 2356 (0x934), region = 44 }
   0xd   : > { %v1351_v1 = vmov 0.0   ;;  %vm1352_vm0 = vmmov 0   ;;  %s1605_s23 = smov (!%p299_p4, %s1341_s23), 1  ;;  %vm520_vm1 = vcmask 130048   ;;  %v518_v23 = vlaneseq  ;;  %v1310_v60 = vld [vmem:[%s1597_s4 + $0x38] sm:$0xff]   ;;  %v1311_v61 = vld [vmem:[%s1597_s4 + $0x30] sm:$0xff]  }
   0xe   : > { %1208 = vmatprep.subr.bf16.mxu0 %v1351_v1  ;;  %1210 = vmatprep.mubr.msk.bf16.mxu0 %vm1352_vm0, %v1351_v1  ;;  %s1174_s26 = sshll.u32 %s1605_s23, 3  ;;  %s301_s11 = scalar_lea.vmem %s1593_s0, %s1605_s23  ;;  %v1312_v62 = vld [vmem:[%s1597_s4 + $0x28] sm:$0xff]   ;;  %v1313_v63 = vld [vmem:[%s1597_s4 + $0x20] sm:$0xff]   ;;  %v1314_v0 = vld [vmem:[%s1597_s4 + $0x18] sm:$0xff]  }
   0xf   : > { %1214 = vmatprep.subr.bf16.mxu1 %v1351_v1  ;;  %1230 = vmatprep.mubr.msk.bf16.mxu1 %vm1352_vm0, %v1351_v1  ;;  %s306_s29 = scalar_lea.vmem %s1594_s1, %s1174_s26  ;;  %s315_s8 = scalar_lea.vmem %s1595_s2, %s1174_s26  ;;  %v1150_v11 = vld [vmem:[%s301_s11] ss:$0 sm:$0xff]  ;;  %v1443_v24 = vand.u32 127, %v518_v23 }
  0x10   : > { %v1424_v2 = vld [vmem:[%s306_s29] sm:$0xff]   ;;  %1215 = vmatpush3.bf16.msra.mxu1 %v1310_v60  ;;  %s1176_s26 = sshll.u32 %s1605_s23, 4 }
  0x11   : > { %v1426_v3 = vld [vmem:[%s315_s8] sm:$0xff]   ;;  %1209 = vmatpush3.bf16.xpose.msra.mxu0 %v1424_v2  ;;  %1216 = vmatprep.subr.bf16.mxu1 %v1351_v1  ;;  %s325_s29 = scalar_lea.vmem %s1599_s6, %s1176_s26 }
  0x12   : > { %v385_v4 = vunpack.c.l.bf16 %v1426_v3  ;;  %v386_v5 = vunpack.c.h.bf16 %v1426_v3  ;;  %1234 = vmatprep.subr.bf16.mxu0 %v1351_v1 }
  0x14   : > { %v387_v6 = vmul.f32 %v385_v4, %v385_v4  ;;  %v388_v7 = vmul.f32 %v386_v5, %v386_v5  ;;  %1217 = vmatpush3.bf16.msra.mxu1 %v1311_v61  ;;  %v1315_v4 = vld [vmem:[%s1597_s4 + $0x10] sm:$0xff]   ;;  %v1316_v5 = vld [vmem:[%s1597_s4 + $0x8] sm:$0xff]  }
  0x15   : > { %1218 = vmatprep.subr.bf16.mxu1 %v1351_v1 }
  0x16   : > { %389 = vadd.xlane.f32.xlu0 %v387_v6  ;;  %v1317_v6 = vld [vmem:[%s1597_s4] sm:$0xff]  }
  0x18   : > { %1211 = vmatmul.mubr.bf16.vlgmr.msra.gmra.mxu0 %v1426_v3  ;;  %1219 = vmatpush3.bf16.msra.mxu1 %v1312_v62 }
  0x19   : > { %1235 = vmatpush3.bf16.msra.mxu0 %v1424_v2  ;;  %1236 = vmatprep.mubr.msk.bf16.mxu0 %vm1352_vm0, %v1351_v1 }
  0x1a   : > { %391 = vadd.xlane.f32.xlu0 %v388_v7  ;;  %1240 = vmatprep.subr.bf16.mxu0 %v1351_v1 }
  0x1b   : > { %1220 = vmatprep.subr.bf16.mxu1 %v1351_v1 }
  0x1c   : > { %1221 = vmatpush3.bf16.msra.mxu1 %v1313_v63 }
  0x1d   : > { %1222 = vmatprep.subr.bf16.mxu1 %v1351_v1 }
  0x20   : > { %1223 = vmatpush3.bf16.msra.mxu1 %v1314_v0 }
  0x21   : > { %1224 = vmatprep.subr.bf16.mxu1 %v1351_v1 }
  0x24   : > { %1225 = vmatpush3.bf16.msra.mxu1 %v1315_v4 }
  0x25   : > { %1226 = vmatprep.subr.bf16.mxu1 %v1351_v1 }
  0x28   : > { %1227 = vmatpush3.bf16.msra.mxu1 %v1316_v5 }
  0x29   : > { %1228 = vmatprep.subr.bf16.mxu1 %v1351_v1 }
  0x2c   : > { %1229 = vmatpush3.bf16.msra.mxu1 %v1317_v6 }
  0x2f   : > { %1231 = vmatmul.mubr.bf16.vlgmr.msra.gmra.mxu1 %v1426_v3 }
  0x9f   : > { %v390_v8 = vpop.xlane.xlu0 %389 }
  0xa3   : > { %v392_v15 = vpop.xlane.xlu0 %391 }
  0xd8   : > { %v378_v9 = vpop.f32.mrf.mxu0 }
  0xd9   : > { %v393_v10 = vmul.f32 2.0, %v378_v9 }
  0xda   : > { %v1212_v12 = vpop.f32.mrf.mxu0 }
  0xdb   : > { %v395_v13 = vsub.f32 %v393_v10, %v390_v8 }
  0xdc   : > { %v381_v14 = vpop.f32.mrf.mxu0 }
  0xdd   : > { %v404_v16 = vsub.f32 %v395_v13, %v1150_v11  ;;  %v394_v17 = vmul.f32 2.0, %v381_v14 }
  0xde   : > { %v1213_v18 = vpop.f32.mrf.mxu0 }
  0xdf   : > { %v396_v19 = vsub.f32 %v394_v17, %v392_v15  ;;  %v521_v20 = vsel %vm520_vm1, %v404_v16, -inf }
  0xe0   : > { %522 = vmax.xlane.f32.xlu1 %v521_v20 }
  0xe1   : > { %v405_v21 = vsub.f32 %v396_v19, %v1150_v11 }
  0xe3   : > { %v524_v22 = vsel %vm520_vm1, %v405_v21, -inf }
  0xe4   : > { %525 = vmax.xlane.f32.xlu1 %v524_v22 }
  0xef   : > { %v1553_v4 = vpop.f32.mrf.mxu1 }
  0xf1   : > { %v1232_v5 = vpop.f32.mrf.mxu1 }
  0xf3   : > { %v1555_v6 = vpop.f32.mrf.mxu1 }
 0x169   : > { %v523_v25 = vpop.xlane.xlu1 %522 }
 0x16a   : > { %vm527_vm2 = vcmp.ge.f32.partialorder %v404_v16, %v523_v25 }
 0x16b   : > { %v529_v26 = vsel %vm527_vm2, %v1443_v24, 16 }
 0x16c   : > { %v531_v27 = vsel %vm520_vm1, %v529_v26, 2147483647 }
 0x16d   : > { %v526_v28 = vpop.xlane.xlu1 %525  ;;  %v533_v29 = vshra.s32 %v531_v27, 16  ;;  %v532_v35 = vand.u32 65535, %v531_v27 }
 0x16e   : > { %vm528_vm3 = vcmp.ge.f32.partialorder %v405_v21, %v526_v28 }
 0x16f   : > { %v530_v30 = vsel %vm528_vm3, %v1443_v24, 16  ;;  %v535_v31 = vcvt.s32.f32 %v533_v29  ;;  %v534_v37 = vcvt.s32.f32 %v532_v35 }
 0x170   : > { %v546_v32 = vsel %vm520_vm1, %v530_v30, 2147483647 }
 0x171   : > { %536 = vmin.xlane.f32.xlu0 %v535_v31  ;;  %v548_v33 = vshra.s32 %v546_v32, 16  ;;  %v547_v38 = vand.u32 65535, %v546_v32 }
 0x173   : > { %v550_v34 = vcvt.s32.f32 %v548_v33  ;;  %v549_v41 = vcvt.s32.f32 %v547_v38 }
 0x175   : > { %551 = vmin.xlane.f32.xlu1 %v550_v34 }
 0x1fa   : > { %v537_v36 = vpop.xlane.xlu0 %536 }
 0x1fb   : > { %vm538_vm4 = vcmp.eq.f32.partialorder %v535_v31, %v537_v36  ;;  %v543_v43 = vcvt.f32.s32 %v537_v36 }
 0x1fc   : > { %v539_v39 = vsel %vm538_vm4, %v534_v37, inf }
 0x1fd   : > { %540 = vmin.xlane.f32.xlu0 %v539_v39  ;;  %v544_v45 = vshll.u32 %v543_v43, 16 }
 0x1fe   : > { %v552_v40 = vpop.xlane.xlu1 %551 }
 0x1ff   : > { %vm553_vm5 = vcmp.eq.f32.partialorder %v550_v34, %v552_v40  ;;  %v558_v46 = vcvt.f32.s32 %v552_v40 }
 0x200   : > { %v554_v42 = vsel %vm553_vm5, %v549_v41, inf }
 0x201   : > { %555 = vmin.xlane.f32.xlu1 %v554_v42  ;;  %v559_v50 = vshll.u32 %v558_v46, 16 }
 0x286   : > { %v541_v44 = vpop.xlane.xlu0 %540 }
 0x287   : > { %v542_v47 = vcvt.f32.s32 %v541_v44 }
 0x289   : > { %v545_v48 = vadd.s32 %v544_v45, %v542_v47  ;;  %v1318_v47 = vld [vmem:[%s1596_s3 + $0x38] sm:$0xff]  }
 0x28a   : > { %v556_v49 = vpop.xlane.xlu1 %555  ;;  %1258 = vmatprep.subr.bf16.mxu1 %v1318_v47 }
 0x28b   : > { %v557_v51 = vcvt.f32.s32 %v556_v49  ;;  %vm561_vm6 = vcmp.eq.s32.totalorder %v1443_v24, %v545_v48  ;;  %v1319_v48 = vld [vmem:[%s1596_s3 + $0x30] sm:$0xff]   ;;  %1259 = vmatpush3.bf16.msra.mxu1 %v1318_v47  ;;  %v1320_v49 = vld [vmem:[%s1596_s3 + $0x28] sm:$0xff]  }
 0x28c   : > { %v1450_v52 = vsel %vm561_vm6, -inf, %v404_v16  ;;  %v563_v55 = vsel %vm561_vm6, 1.0, %v1351_v1  ;;  %1260 = vmatprep.subr.bf16.mxu1 %v1319_v48 }
 0x28d   : > { %v560_v53 = vadd.s32 %v559_v50, %v557_v51  ;;  %v613_v54 = vsel %vm520_vm1, %v1450_v52, -inf  ;;  %v1321_v50 = vld [vmem:[%s1596_s3 + $0x20] sm:$0xff]   ;;  %v1322_v51 = vld [vmem:[%s1596_s3 + $0x18] sm:$0xff]  }
 0x28e   : > { %614 = vmax.xlane.f32.xlu0 %v613_v54  ;;  %v1325_v54 = vld [vmem:[%s1596_s3] sm:$0xff]  }
 0x28f   : > { %vm562_vm7 = vcmp.eq.s32.totalorder %v1443_v24, %v560_v53  ;;  %1261 = vmatpush3.bf16.msra.mxu1 %v1319_v48  ;;  %v1324_v53 = vld [vmem:[%s1596_s3 + $0x8] sm:$0xff]  }
 0x290   : > { %v1456_v56 = vsel %vm562_vm7, -inf, %v405_v21  ;;  %v564_v57 = vsel %vm562_vm7, 1.0, %v1351_v1  ;;  %1262 = vmatprep.subr.bf16.mxu1 %v1320_v49 }
 0x291   : > { %v616_v58 = vsel %vm520_vm1, %v1456_v56, -inf  ;;  %v565_v59 = vpack.c.bf16 %v564_v57, %v563_v55 }
 0x292   : > { %617 = vmax.xlane.f32.xlu1 %v616_v58 }
 0x293   : > { %1237 = vmatmul.mubr.msk.bf16.vlgmr.msra.gmra.mxu0 %vm520_vm1, %v565_v59  ;;  %1263 = vmatpush3.bf16.msra.mxu1 %v1320_v49 }
 0x294   : > { %1241 = vmatpush3.bf16.msra.mxu0 %v1424_v2  ;;  %1242 = vmatprep.mubr.msk.bf16.mxu0 %vm1352_vm0, %v1351_v1 }
 0x295   : > { %1246 = vmatprep.subr.bf16.mxu0 %v1351_v1  ;;  %1264 = vmatprep.subr.bf16.mxu1 %v1321_v50 }
 0x297   : > { %1265 = vmatpush3.bf16.msra.mxu1 %v1321_v50 }
 0x298   : > { %1266 = vmatprep.subr.bf16.mxu1 %v1322_v51 }
 0x29b   : > { %1267 = vmatpush3.bf16.msra.mxu1 %v1322_v51 }
 0x317   : > { %v615_v7 = vpop.xlane.xlu0 %614 }
 0x318   : > { %vm619_vm8 = vcmp.ge.f32.partialorder %v1450_v52, %v615_v7  ;;  %v1233_v7 = vpop.f32.mrf.mxu1 }
 0x319   : > { %v621_v8 = vsel %vm619_vm8, %v1443_v24, 16 }
 0x31a   : > { %v623_v9 = vsel %vm520_vm1, %v621_v8, 2147483647 }
 0x31b   : > { %v618_v10 = vpop.xlane.xlu1 %617  ;;  %v625_v11 = vshra.s32 %v623_v9, 16  ;;  %v624_v21 = vand.u32 65535, %v623_v9 }
 0x31c   : > { %vm620_vm9 = vcmp.ge.f32.partialorder %v1456_v56, %v618_v10 }
 0x31d   : > { %v622_v12 = vsel %vm620_vm9, %v1443_v24, 16  ;;  %v627_v13 = vcvt.s32.f32 %v625_v11  ;;  %v626_v23 = vcvt.s32.f32 %v624_v21 }
 0x31e   : > { %v638_v14 = vsel %vm520_vm1, %v622_v12, 2147483647 }
 0x31f   : > { %628 = vmin.xlane.f32.xlu0 %v627_v13  ;;  %v640_v15 = vshra.s32 %v638_v14, 16  ;;  %v639_v25 = vand.u32 65535, %v638_v14 }
 0x321   : > { %v642_v16 = vcvt.s32.f32 %v640_v15  ;;  %v641_v28 = vcvt.s32.f32 %v639_v25 }
 0x323   : > { %643 = vmin.xlane.f32.xlu1 %v642_v16 }
 0x353   : > { %v603_v3 = vpop.f32.mrf.mxu0 }
 0x355   : > { %v1238_v17 = vpop.f32.mrf.mxu0 }
 0x357   : > { %v606_v18 = vpop.f32.mrf.mxu0 }
 0x358   : > { %v610_v19 = vpack.c.bf16 %v606_v18, %v603_v3 }
 0x359   : > { %v1239_v20 = vpop.f32.mrf.mxu0 }
 0x35a   : > { %1274 = vmatprep.mubr.bf16.mxu1 %v610_v19 }
 0x3a8   : > { %v629_v22 = vpop.xlane.xlu0 %628 }
 0x3a9   : > { %vm630_vm10 = vcmp.eq.f32.partialorder %v627_v13, %v629_v22  ;;  %v635_v30 = vcvt.f32.s32 %v629_v22 }
 0x3aa   : > { %v631_v26 = vsel %vm630_vm10, %v626_v23, inf }
 0x3ab   : > { %632 = vmin.xlane.f32.xlu0 %v631_v26  ;;  %v636_v32 = vshll.u32 %v635_v30, 16 }
 0x3ac   : > { %v644_v27 = vpop.xlane.xlu1 %643 }
 0x3ad   : > { %vm645_vm11 = vcmp.eq.f32.partialorder %v642_v16, %v644_v27  ;;  %v650_v33 = vcvt.f32.s32 %v644_v27 }
 0x3ae   : > { %v646_v29 = vsel %vm645_vm11, %v641_v28, inf }
 0x3af   : > { %647 = vmin.xlane.f32.xlu1 %v646_v29  ;;  %v651_v37 = vshll.u32 %v650_v33, 16 }
 0x434   : > { %v633_v31 = vpop.xlane.xlu0 %632 }
 0x435   : > { %v634_v34 = vcvt.f32.s32 %v633_v31 }
 0x437   : > { %v637_v35 = vadd.s32 %v636_v32, %v634_v34 }
 0x438   : > { %v648_v36 = vpop.xlane.xlu1 %647 }
 0x439   : > { %v649_v38 = vcvt.f32.s32 %v648_v36  ;;  %vm653_vm12 = vcmp.eq.s32.totalorder %v1443_v24, %v637_v35 }
 0x43a   : > { %v1506_v39 = vsel %vm653_vm12, -inf, %v1450_v52  ;;  %v655_v42 = vsel %vm653_vm12, 1.0, %v1351_v1  ;;  %v1323_v52 = vld [vmem:[%s1596_s3 + $0x10] sm:$0xff]  }
 0x43b   : > { %v652_v40 = vadd.s32 %v651_v37, %v649_v38  ;;  %v705_v41 = vsel %vm520_vm1, %v1506_v39, -inf  ;;  %1268 = vmatprep.subr.bf16.mxu1 %v1323_v52 }
 0x43c   : > { %706 = vmax.xlane.f32.xlu0 %v705_v41  ;;  %1269 = vmatpush3.bf16.msra.mxu1 %v1323_v52 }
 0x43d   : > { %vm654_vm13 = vcmp.eq.s32.totalorder %v1443_v24, %v652_v40  ;;  %1270 = vmatprep.subr.bf16.mxu1 %v1324_v53 }
 0x43e   : > { %v1513_v43 = vsel %vm654_vm13, -inf, %v1456_v56  ;;  %v656_v44 = vsel %vm654_vm13, 1.0, %v1351_v1 }
 0x43f   : > { %v708_v45 = vsel %vm520_vm1, %v1513_v43, -inf  ;;  %v657_v46 = vpack.c.bf16 %v656_v44, %v655_v42 }
 0x440   : > { %709 = vmax.xlane.f32.xlu1 %v708_v45  ;;  %1271 = vmatpush3.bf16.msra.mxu1 %v1324_v53 }
 0x441   : > { %1243 = vmatmul.mubr.msk.bf16.vlgmr.msra.gmra.mxu0 %vm520_vm1, %v657_v46  ;;  %1272 = vmatprep.subr.bf16.mxu1 %v1325_v54 }
 0x442   : > { %1247 = vmatpush3.bf16.msra.mxu0 %v1424_v2  ;;  %1248 = vmatprep.mubr.msk.bf16.mxu0 %vm1352_vm0, %v1351_v1 }
 0x443   : > { %1252 = vmatprep.subr.bf16.mxu0 %v1351_v1 }
 0x444   : > { %1273 = vmatpush3.bf16.msra.mxu1 %v1325_v54 }
 0x4c5   : > { %v707_v55 = vpop.xlane.xlu0 %706 }
 0x4c6   : > { %vm711_vm14 = vcmp.ge.f32.partialorder %v1506_v39, %v707_v55 }
 0x4c7   : > { %v713_v56 = vsel %vm711_vm14, %v1443_v24, 16 }
 0x4c8   : > { %v715_v57 = vsel %vm520_vm1, %v713_v56, 2147483647 }
 0x4c9   : > { %v710_v58 = vpop.xlane.xlu1 %709  ;;  %v717_v59 = vshra.s32 %v715_v57, 16  ;;  %v716_v13 = vand.u32 65535, %v715_v57 }
 0x4ca   : > { %vm712_vm15 = vcmp.ge.f32.partialorder %v1513_v43, %v710_v58 }
 0x4cb   : > { %v714_v60 = vsel %vm712_vm15, %v1443_v24, 16  ;;  %v719_v61 = vcvt.s32.f32 %v717_v59  ;;  %v718_v15 = vcvt.s32.f32 %v716_v13 }
 0x4cc   : > { %v730_v62 = vsel %vm520_vm1, %v714_v60, 2147483647 }
 0x4cd   : > { %720 = vmin.xlane.f32.xlu0 %v719_v61  ;;  %v732_v63 = vshra.s32 %v730_v62, 16  ;;  %v731_v16 = vand.u32 65535, %v730_v62 }
 0x4cf   : > { %v734_v0 = vcvt.s32.f32 %v732_v63  ;;  %v733_v18 = vcvt.s32.f32 %v731_v16 }
 0x4d1   : > { %735 = vmin.xlane.f32.xlu1 %v734_v0 }
 0x501   : > { %v695_v8 = vpop.f32.mrf.mxu0 }
 0x503   : > { %v1244_v9 = vpop.f32.mrf.mxu0 }
 0x505   : > { %v698_v10 = vpop.f32.mrf.mxu0 }
 0x506   : > { %v702_v11 = vpack.c.bf16 %v698_v10, %v695_v8 }
 0x507   : > { %v1245_v12 = vpop.f32.mrf.mxu0 }
 0x508   : > { %1275 = vmatmul.mubr.bf16.vlgmr.msra.gmra.mxu1 %v702_v11 }
 0x556   : > { %v721_v14 = vpop.xlane.xlu0 %720 }
 0x557   : > { %vm722_vm2 = vcmp.eq.f32.partialorder %v719_v61, %v721_v14  ;;  %v727_v20 = vcvt.f32.s32 %v721_v14 }
 0x558   : > { %v723_v3 = vsel %vm722_vm2, %v718_v15, inf }
 0x559   : > { %724 = vmin.xlane.f32.xlu0 %v723_v3  ;;  %v728_v22 = vshll.u32 %v727_v20, 16 }
 0x55a   : > { %v736_v17 = vpop.xlane.xlu1 %735 }
 0x55b   : > { %vm737_vm3 = vcmp.eq.f32.partialorder %v734_v0, %v736_v17  ;;  %v742_v23 = vcvt.f32.s32 %v736_v17 }
 0x55c   : > { %v738_v19 = vsel %vm737_vm3, %v733_v18, inf }
 0x55d   : > { %739 = vmin.xlane.f32.xlu1 %v738_v19  ;;  %v743_v28 = vshll.u32 %v742_v23, 16  ;;  %v1151_v23 = vld [vmem:[#allocation2] ss:$0 sm:$0xff] }
 0x5c8   : > { %v1276_v18 = vpop.f32.mrf.mxu1 }
 0x5ca   : > { %v985_v19 = vpop.f32.mrf.mxu1 }
 0x5cc   : > { %v1277_v20 = vpop.f32.mrf.mxu1 }
 0x5e2   : > { %v725_v21 = vpop.xlane.xlu0 %724 }
 0x5e3   : > { %v726_v25 = vcvt.f32.s32 %v725_v21  ;;  %v988_v21 = vpop.f32.mrf.mxu1 }
 0x5e5   : > { %v729_v26 = vadd.s32 %v728_v22, %v726_v25 }
 0x5e6   : > { %v740_v27 = vpop.xlane.xlu1 %739 }
 0x5e7   : > { %v741_v29 = vcvt.f32.s32 %v740_v27  ;;  %vm745_vm4 = vcmp.eq.s32.totalorder %v1443_v24, %v729_v26  ;;  %v512_v27 = vadd.f32 %v1151_v23, %v1553_v4 }
 0x5e8   : > { %v795_v30 = vsel %vm745_vm4, -inf, %v1506_v39  ;;  %v747_v33 = vsel %vm745_vm4, 1.0, %v1351_v1 }
 0x5e9   : > { %v744_v31 = vadd.s32 %v743_v28, %v741_v29  ;;  %v797_v32 = vsel %vm520_vm1, %v795_v30, -inf  ;;  %v1017_v28 = vmax.f32 %v988_v21, %v1277_v20 }
 0x5ea   : > { %798 = vmax.xlane.f32.xlu0 %v797_v32 }
 0x5eb   : > { %vm746_vm5 = vcmp.eq.s32.totalorder %v1443_v24, %v744_v31 }
 0x5ec   : > { %v796_v34 = vsel %vm746_vm5, -inf, %v1513_v43  ;;  %v748_v35 = vsel %vm746_vm5, 1.0, %v1351_v1 }
 0x5ed   : > { %v800_v36 = vsel %vm520_vm1, %v796_v34, -inf  ;;  %v749_v37 = vpack.c.bf16 %v748_v35, %v747_v33  ;;  %v515_v33 = vadd.f32 %v1151_v23, %v1555_v6 }
 0x5ee   : > { %801 = vmax.xlane.f32.xlu1 %v800_v36 }
 0x5ef   : > { %1249 = vmatmul.mubr.msk.bf16.vlgmr.msra.gmra.mxu0 %vm520_vm1, %v749_v37 }
 0x5f0   : > { %1253 = vmatpush3.bf16.msra.mxu0 %v1424_v2  ;;  %1254 = vmatprep.mubr.msk.bf16.mxu0 %vm1352_vm0, %v1351_v1 }
 0x673   : > { %v799_v38 = vpop.xlane.xlu0 %798 }
 0x674   : > { %vm803_vm6 = vcmp.ge.f32.partialorder %v795_v30, %v799_v38 }
 0x675   : > { %v805_v39 = vsel %vm803_vm6, %v1443_v24, 16 }
 0x676   : > { %v807_v40 = vsel %vm520_vm1, %v805_v39, 2147483647 }
 0x677   : > { %v802_v41 = vpop.xlane.xlu1 %801  ;;  %v809_v42 = vshra.s32 %v807_v40, 16  ;;  %v808_v52 = vand.u32 65535, %v807_v40 }
 0x678   : > { %vm804_vm7 = vcmp.ge.f32.partialorder %v796_v34, %v802_v41 }
 0x679   : > { %v806_v43 = vsel %vm804_vm7, %v1443_v24, 16  ;;  %v811_v44 = vcvt.s32.f32 %v809_v42  ;;  %v810_v54 = vcvt.s32.f32 %v808_v52 }
 0x67a   : > { %v822_v45 = vsel %vm520_vm1, %v806_v43, 2147483647 }
 0x67b   : > { %812 = vmin.xlane.f32.xlu0 %v811_v44  ;;  %v824_v46 = vshra.s32 %v822_v45, 16  ;;  %v823_v55 = vand.u32 65535, %v822_v45 }
 0x67d   : > { %v826_v2 = vcvt.s32.f32 %v824_v46  ;;  %v825_v58 = vcvt.s32.f32 %v823_v55 }
 0x67f   : > { %827 = vmin.xlane.f32.xlu1 %v826_v2 }
 0x6af   : > { %v787_v47 = vpop.f32.mrf.mxu0 }
 0x6b1   : > { %v1250_v48 = vpop.f32.mrf.mxu0 }
 0x6b3   : > { %v790_v49 = vpop.f32.mrf.mxu0 }
 0x6b4   : > { %v794_v50 = vpack.c.bf16 %v790_v49, %v787_v47 }
 0x6b5   : > { %v1251_v51 = vpop.f32.mrf.mxu0 }
 0x6b6   : > { %1278 = vmatprep.mubr.bf16.mxu1 %v794_v50 }
 0x704   : > { %v813_v53 = vpop.xlane.xlu0 %812 }
 0x705   : > { %vm814_vm0 = vcmp.eq.f32.partialorder %v811_v44, %v813_v53  ;;  %v819_v60 = vcvt.f32.s32 %v813_v53 }
 0x706   : > { %v815_v56 = vsel %vm814_vm0, %v810_v54, inf }
 0x707   : > { %816 = vmin.xlane.f32.xlu0 %v815_v56  ;;  %v820_v62 = vshll.u32 %v819_v60, 16 }
 0x708   : > { %v828_v57 = vpop.xlane.xlu1 %827 }
 0x709   : > { %vm829_vm8 = vcmp.eq.f32.partialorder %v826_v2, %v828_v57  ;;  %v834_v63 = vcvt.f32.s32 %v828_v57 }
 0x70a   : > { %v830_v59 = vsel %vm829_vm8, %v825_v58, inf }
 0x70b   : > { %831 = vmin.xlane.f32.xlu1 %v830_v59  ;;  %v835_v8 = vshll.u32 %v834_v63, 16 }
 0x790   : > { %v817_v61 = vpop.xlane.xlu0 %816 }
 0x791   : > { %v818_v0 = vcvt.f32.s32 %v817_v61 }
 0x793   : > { %v821_v5 = vadd.s32 %v820_v62, %v818_v0 }
 0x794   : > { %v832_v7 = vpop.xlane.xlu1 %831 }
 0x795   : > { %v833_v9 = vcvt.f32.s32 %v832_v7  ;;  %vm837_vm9 = vcmp.eq.s32.totalorder %v1443_v24, %v821_v5 }
 0x796   : > { %v839_v11 = vsel %vm837_vm9, 1.0, %v1351_v1 }
 0x797   : > { %v836_v10 = vadd.s32 %v835_v8, %v833_v9 }
 0x799   : > { %vm838_vm10 = vcmp.eq.s32.totalorder %v1443_v24, %v836_v10  ;;  %v1016_v24 = vmax.f32 %v985_v19, %v1276_v18 }
 0x79a   : > { %v840_v12 = vsel %vm838_vm10, 1.0, %v1351_v1 }
 0x79b   : > { %v841_v13 = vpack.c.bf16 %v840_v12, %v839_v11 }
 0x79d   : > { %1255 = vmatmul.mubr.msk.bf16.vlgmr.msra.gmra.mxu0 %vm520_vm1, %v841_v13  ;;  %vm1026_vm1 = vcmask 7168  }
 0x85d   : > { %v879_v14 = vpop.f32.mrf.mxu0 }
 0x85f   : > { %v1256_v15 = vpop.f32.mrf.mxu0 }
 0x861   : > { %v882_v16 = vpop.f32.mrf.mxu0 }
 0x862   : > { %v886_v3 = vpack.c.bf16 %v882_v16, %v879_v14 }
 0x863   : > { %v1257_v17 = vpop.f32.mrf.mxu0 }
 0x864   : > { %1279 = vmatmul.mubr.bf16.gmra.mxu1 %v886_v3 }
 0x924   : > { %v1280_v22 = vpop.f32.mrf.mxu1 }
 0x926   : > { %v1001_v25 = vpop.f32.mrf.mxu1 }
 0x927   : > { %v1018_v26 = vmax.f32 %v1016_v24, %v1001_v25 }
 0x928   : > { %v1281_v1 = vpop.f32.mrf.mxu1 }
 0x929   : > { %v1020_v29 = vmax.f32 %v1018_v26, %v1280_v22 }
 0x92a   : > { %v1004_v30 = vpop.f32.mrf.mxu1 }
 0x92b   : > { %v1022_v31 = vadd.f32 %v1020_v29, %v512_v27  ;;  %v1019_v32 = vmax.f32 %v1017_v28, %v1004_v30 }
 0x92d   : > { %v1024_v34 = vmax.f32 %v1022_v31, 0.0  ;;  %v1021_v35 = vmax.f32 %v1019_v32, %v1281_v1 }
 0x92f   : > { %1027 = vst.msk [vmem:[%s325_s29] sm:$0xff] %vm1026_vm1, %v1024_v34  ;;  %v1023_v36 = vadd.f32 %v1021_v35, %v515_v33 }
 0x931   : > { %v1025_v37 = vmax.f32 %v1023_v36, 0.0 }
 0x933   : > { %1028 = vst.msk [vmem:[%s325_s29 + $0x8] sm:$0xff] %vm1026_vm1, %v1025_v37 }
 0x934 PF: > { %s18_s25 = sadd.s32 1, %s1349_s25   ;;  %s1600_s23 = smov %s1345_s24 }
 0x935   : > { %p15_p5 = scmp.ge.s32.totalorder %s18_s25, 4   ;;  %s1601_s24 = smov %s1603_s5 }
 0x937   :  { %17 = sbr.rel (!%p15_p5) target bundleno = 3 (0x3), region = 80 }

// kernel: dgcnn_forward.13
= control target key start
LH: loop header
LB: loop body
LE: loop exit
PB: predicated region body
PF: predicated region fallthrough
CT: control target
= control target key end

     0   :  { %8 = vsyncpa [#allocation3], 0  ;;  %s860_s0 = inlined_call_operand.vmem [shape: bf16[2,8,256], index: 0, kind: input, shape index: {}]   ;;  %s861_s1 = inlined_call_operand.vmem [shape: bf16[256,64], index: 1, kind: input, shape index: {}]   ;;  %s862_s2 = inlined_call_operand.vmem [shape: f32[1,64], index: 2, kind: input, shape index: {}]   ;;  %s863_s3 = inlined_call_operand.hbm [shape: f32[2,8,64], index: 3, kind: output, shape index: {}]  }
   0x1   :  { %10 = vsyncpa [#allocation3 + $0x1], 0  ;;  %s704_s12 = smov 0   ;;  %s706_s13 = smov 0  }
   0x2   :  { %s708_s14 = smov 0   ;;  %s710_s15 = smov 0  }
   0x3   :  { %s712_s16 = smov 0   ;;  %s714_s17 = smov 0  }
   0x4 LB: > { %s478_s18 = sadd.s32 4294967295, %s681_s17   ;;  %s479_s19 = sadd.s32 4294967294, %s681_s17   ;;  %s681_s17 = sphi %s714_s17, %s16_s17   ;;  %s677_s16 = sphi %s712_s16, %s870_s16   ;;  %s673_s15 = sphi %s710_s15, %s869_s15   ;;  %s669_s14 = sphi %s708_s14, %s868_s14   ;;  %s665_s13 = sphi %s706_s13, %s867_s13   ;;  %s661_s12 = sphi %s704_s12, %s866_s12  }
   0x5   : > { %s28_s20 = sadd.s32 1, %s677_s16  ;;  %s107_s21 = sadd.s32 1, %s669_s14 }
   0x6   : > { %p30_p0 = scmp.ge.s32.totalorder %s28_s20, 2  ;;  %p117_p1 = scmp.ne.s32.totalorder %s669_s14, %s665_s13 }
   0x7   : > { %p118_p2 = scmp.eq.s32.totalorder %s478_s18, 1  ;;  %p123_p3 = scmp.ne.s32.totalorder %s665_s13, %s661_s12 }
   0x8   : > { %s872_s20 = smov (%p30_p0, %s28_s20), 0  ;;  %p124_p5 = scmp.eq.s32.totalorder %s479_s19, 1 }
   0x9   : > { %p744_p4 = por %p118_p2, %p117_p1  ;;  %s102_s23 = ssub.s32 %s677_s16, %s872_s20 }
   0xa   : > { %p482_p6 = scmp.ge.s32.totalorder %s681_s17, 1  ;;  %p105_p7 = scmp.eq.s32.totalorder %s102_s23, 0 }
   0xb   : > { %p751_p8 = por %p124_p5, %p123_p3  ;;  %p160_p9 = scmp.lt.s32.totalorder %s681_s17, 3 }
   0xc   : > { %s757_s25 = scalar_select %p105_p7, %s669_s14, %s107_s21  }
   0xd   : > { %p161_p10 = pnand %p482_p6, %p160_p9 }
   0xe   : > { %p188_p11 = scmp.lt.s32.totalorder (!%p161_p10), %s673_s15, 1  ;;  %s185_s29 = sand.u32 (!%p161_p10), 1, %s665_s13  }
   0xf   : > { %164 = sbr.rel (%p161_p10) target bundleno = 268 (0x10c), region = 32  ;;  %s483_s30 = sshll.u32 (!%p161_p10), %s185_s29, 3 }
  0x10   : > { %s506_s6 = sshll.u32 (!%p161_p10), %s673_s15, 7  ;;  %s187_s7 = scalar_lea.vmem (!%p161_p10), [#allocation2], %s483_s30 }
  0x11   : > { %s401_s8 = sshll.u32 (!%p161_p10), %s187_s7, 4  ;;  %s820_s11 = scalar_lea.hbm (!%p161_p10), %s863_s3, %s506_s6  ;;  %s402_s8 = int_to_ptr.vmem [resolvable:$true] %s401_s8 }
  0x12   : > { %s387_s18 = scalar_lea.sflag (!%p161_p10), [#allocation3], %s185_s29  ;;  %s605_s19 = scalar_lea.vmem (!%p161_p10), %s402_s8, 128 }
  0x13   : > { %p606_p12 = scmp.ne.s32.totalorder (!%p161_p10), %s402_s8, %s605_s19 }
  0x14   : > { %v587_v0 = vld [vmem:[%s861_s1 + $0x78] sm:$0xff]   ;;  %v589_v2 = vld [vmem:[%s861_s1 + $0x70] sm:$0xff]   ;;  %v591_v4 = vld [vmem:[%s861_s1 + $0x68] sm:$0xff]   ;;  %s189_s9 = scalar_select %p188_p11, %s673_s15, 1  ;;  %vm384_vm1 = vcmask 523264  }
  0x15   : > { %v588_v1 = vld [vmem:[%s861_s1 + $0x38] sm:$0xff]   ;;  %510 = vmatprep.subr.bf16.mxu0 %v587_v0  ;;  %v590_v3 = vld [vmem:[%s861_s1 + $0x30] sm:$0xff]   ;;  %v592_v5 = vld [vmem:[%s861_s1 + $0x28] sm:$0xff]   ;;  %p607_p13 = pnand %p606_p12, %p744_p4  ;;  %s683_s15 = smov [#allocation2]  }
  0x16   : > { %511 = vmatpush3.bf16.msra.mxu0 %v588_v1  ;;  %v593_v6 = vld [vmem:[%s861_s1 + $0x60] sm:$0xff]   ;;  %s509_s21 = sshll.u32 %s189_s9, 3  ;;  %v595_v8 = vld [vmem:[%s861_s1 + $0x58] sm:$0xff]   ;;  %v597_v10 = vld [vmem:[%s861_s1 + $0x50] sm:$0xff]  }
  0x17   : > { %512 = vmatprep.subr.bf16.mxu0 %v589_v2  ;;  %v594_v7 = vld [vmem:[%s861_s1 + $0x20] sm:$0xff]   ;;  %s196_s4 = scalar_lea.vmem %s860_s0, %s509_s21  ;;  %v596_v9 = vld [vmem:[%s861_s1 + $0x18] sm:$0xff]   ;;  %v598_v13 = vld [vmem:[%s861_s1 + $0x10] sm:$0xff]   ;;  %p608_p0 = pneg %p607_p13 }
  0x18   : > { %v198_v11 = vld [vmem:[%s196_s4] sm:$0xff]  ;;  %v599_v14 = vld [vmem:[%s861_s1 + $0x48] sm:$0xff]   ;;  %s609_s21 = sshll.u32 %s683_s15, 4  ;;  %s610_s21 = int_to_ptr.vmem [resolvable:$false] %s609_s21 }
  0x19   : > { %v488_v12 = vcombine.high %v198_v11, %v198_v11  ;;  %v600_v15 = vld [vmem:[%s861_s1 + $0x8] sm:$0xff]   ;;  %v601_v16 = vld [vmem:[%s861_s1 + $0x40] sm:$0xff]   ;;  %v487_v18 = vcombine.low %v198_v11, %v198_v11  ;;  %s611_s23 = scalar_lea.vmem %s610_s21, 256  ;;  %p612_p1 = scmp.lt.s32.totalorder %s402_s8, %s610_s21 }
  0x1a   : > { %513 = vmatpush3.bf16.msra.mxu0 %v590_v3  ;;  %v602_v17 = vld [vmem:[%s861_s1] sm:$0xff]   ;;  %p613_p2 = scmp.lt.s32.totalorder %s611_s23, %s605_s19 }
  0x1b   : > { %514 = vmatprep.subr.bf16.mxu0 %v591_v4  ;;  %373 = vmatprep.mubr.bf16.mxu0 %v488_v12  ;;  %v486_v20 = vld [vmem:[%s862_s2] ss:$0 sm:$0xff] }
  0x1c   : > { %p614_p3 = por %p613_p2, %p612_p1 }
  0x1e   : > { %515 = vmatpush3.bf16.msra.mxu0 %v592_v5  ;;  %p615_p5 = pnand %p614_p3, %p608_p0 }
  0x1f   : > { %516 = vmatprep.subr.bf16.mxu0 %v593_v6 }
  0x22   : > { %517 = vmatpush3.bf16.msra.mxu0 %v594_v7 }
  0x23   : > { %518 = vmatprep.subr.bf16.mxu0 %v595_v8 }
  0x26   : > { %519 = vmatpush3.bf16.msra.mxu0 %v596_v9 }
  0x27   : > { %520 = vmatprep.subr.bf16.mxu0 %v597_v10 }
  0x2a   : > { %521 = vmatpush3.bf16.msra.mxu0 %v598_v13 }
  0x2b   : > { %522 = vmatprep.subr.bf16.mxu0 %v599_v14 }
  0x2e   : > { %523 = vmatpush3.bf16.msra.mxu0 %v600_v15 }
  0x2f   : > { %524 = vmatprep.subr.bf16.mxu0 %v601_v16 }
  0x32   : > { %525 = vmatpush3.bf16.msra.mxu0 %v602_v17 }
  0x35   : > { %374 = vmatmul.mubr.bf16.vlgmr.msra.gmra.mxu0 %v487_v18 }
  0xf5   : > { %v526_v19 = vpop.f32.mrf.mxu0 }
  0xf7   : > { %v527_v21 = vpop.f32.mrf.mxu0 }
  0xf8   : > { %v528_v22 = vadd.f32 %v527_v21, %v526_v19 }
  0xf9   : > { %v529_v23 = vpop.f32.mrf.mxu0 }
  0xfa   : > { %v376_v24 = vadd.f32 %v528_v22, %v486_v20 }
  0xfb   : > { %v530_v25 = vpop.f32.mrf.mxu0 }
  0xfc   : > { %vm381_vm0 = vcmp.ge.f32.partialorder %v376_v24, 0.0  ;;  %v382_v26 = vmul.f32 0.2, %v376_v24 }
  0xfe   : > { %v383_v27 = vsel %vm381_vm0, %v376_v24, %v382_v26 }
  0xff   : > { %385 = vst.msk [vmem:[%s187_s7] sm:$0xff] %vm384_vm1, %v383_v27 }
 0x100   : > { %618 = shalt.err (!%p615_p5)
}
 0x101   : > { %s619_s26 = scalar_lea.hbm %s820_s11, 128  ;;  %s623_s29 = scalar_lea.hbm %s863_s3, 256 }
 0x102   : > { %p620_p6 = scmp.ne.s32.totalorder %s820_s11, %s619_s26  ;;  %p624_p10 = scmp.lt.s32.totalorder %s820_s11, %s863_s3 }
 0x103   : > { %p625_p11 = scmp.lt.s32.totalorder %s623_s29, %s619_s26 }
 0x104   : > { %p621_p7 = pnand %p620_p6, %p744_p4 }
 0x105   : > { %p626_p12 = por %p625_p11, %p624_p10 }
 0x106   : > { %p622_p9 = pneg %p621_p7 }
 0x108   : > { %p627_p13 = pnand %p626_p12, %p622_p9 }
 0x10a   : > { %630 = shalt.err (!%p627_p13)
}
 0x10b   : > { %532 = dma.vmem_to_hbm [thread:$0]  (%p744_p4), %s402_s8, 128, %s820_s11, %s387_s18  }
 0x10c PF: > { %p538_p0 = scmp.ge.s32.totalorder %s681_s17, 2  ;;  %s413_s5 = sand.u32 1, %s661_s12  }
 0x10d   : > { %s414_s6 = scalar_lea.sflag [#allocation3], %s413_s5 }
 0x10e   : > { %p535_p1 = pnand %p538_p0, %p751_p8 }
 0x110   : > { %p536_p2 = pneg %p535_p1 }
 0x112   : > { %656 = dma.done.wait (%p536_p2), %s414_s6, 128  }
 0x113   : > { %658 = vsyncadd (%p536_p2), %s414_s6, 4294967168  ;;  %s16_s17 = sadd.s32 1, %s681_s17   ;;  %s866_s12 = smov %s665_s13 }
 0x114   : > { %p13_p3 = scmp.ge.s32.totalorder %s16_s17, 4   ;;  %s867_s13 = smov %s669_s14 }
 0x115   : > { %s868_s14 = smov %s757_s25  ;;  %s869_s15 = smov %s677_s16 }
 0x116   : > { %s870_s16 = smov %s872_s20  ;;  %15 = sbr.rel (!%p13_p3) target bundleno = 4 (0x4), region = 67 }
 0x11b   :  { %419 = vsyncpa [#allocation3], 1 }
 0x11c   :  { %421 = vsyncpa [#allocation3 + $0x1], 1 }

// kernel: dgcnn_forward.12
= control target key start
LH: loop header
LB: loop body
LE: loop exit
PB: predicated region body
PF: predicated region fallthrough
CT: control target
= control target key end

     0   :  { %s1316_s21 = smov 0   ;;  %s1318_s22 = smov 0   ;;  %s1534_s0 = inlined_call_operand.vmem [shape: f32[2,1,8], index: 0, kind: input, shape index: {}]   ;;  %s1535_s1 = inlined_call_operand.vmem [shape: bf16[2,8,128], index: 1, kind: input, shape index: {}, may-alias: {1,2}]   ;;  %s1536_s2 = inlined_call_operand.vmem [shape: bf16[2,8,128], index: 2, kind: input, shape index: {}, may-alias: {1,2}]   ;;  %s1537_s3 = inlined_call_operand.vmem [shape: bf16[128,256], index: 3, kind: input, shape index: {}]   ;;  %s1538_s4 = inlined_call_operand.vmem [shape: bf16[128,256], index: 4, kind: input, shape index: {}]   ;;  %s1539_s5 = inlined_call_operand.vmem [shape: f32[1,256], index: 5, kind: input, shape index: {}]   ;;  %s1540_s6 = inlined_call_operand.vmem [shape: bf16[2,8,256], index: 6, kind: output, shape index: {}]  }
   0x1   :  { %s1320_s23 = smov 0  }
   0x2 LB: > { %s28_s24 = sadd.s32 1, %s1272_s22  ;;  %p1092_p0 = scmp.ge.s32.totalorder %s1276_s23, 1  ;;  %s1276_s23 = sphi %s1320_s23, %s16_s23   ;;  %s1272_s22 = sphi %s1318_s22, %s1542_s22   ;;  %s1268_s21 = sphi %s1316_s21, %s1541_s21  }
   0x3   : > { %p30_p1 = scmp.ge.s32.totalorder %s28_s24, 2  ;;  %p247_p2 = scmp.lt.s32.totalorder %s1276_s23, 3 }
   0x5   : > { %s1544_s24 = smov (%p30_p1, %s28_s24), 0  ;;  %p248_p3 = pnand %p1092_p0, %p247_p2 }
   0x6   : > { %p290_p4 = scmp.lt.s32.totalorder (!%p248_p3), %s1268_s21, 1 }
   0x7   : > { %251 = sbr.rel (%p248_p3) target bundleno = 2351 (0x92f), region = 44 }
   0xc   : > { %v1278_v0 = vmov 0.0   ;;  %vm1279_vm0 = vmmov 0   ;;  %s1546_s21 = smov (!%p290_p4, %s1268_s21), 1  ;;  %vm548_vm1 = vcmask 1043456   ;;  %vm521_vm2 = vcmask 64512  }
   0xd   : > { %1149 = vmatprep.subr.bf16.mxu0 %v1278_v0  ;;  %1151 = vmatprep.mubr.msk.bf16.mxu0 %vm1279_vm0, %v1278_v0  ;;  %s1093_s25 = sshll.u32 %s1546_s21, 2  ;;  %s292_s10 = scalar_lea.vmem %s1534_s0, %s1546_s21  ;;  %v388_v16 = vlaneseq  ;;  %v1206_v49 = vld [vmem:[%s1538_s4 + $0x74] ss:$8 sps:$4 sm:$0xff]   ;;  %v1208_v50 = vld [vmem:[%s1538_s4 + $0x70] ss:$8 sps:$4 sm:$0xff]  }
   0xe   : > { %s296_s28 = scalar_lea.vmem %s1535_s1, %s1093_s25  ;;  %s303_s7 = scalar_lea.vmem %s1536_s2, %s1093_s25  ;;  %v1097_v9 = vld [vmem:[%s292_s10] ss:$0 sm:$0xff]  ;;  %478 = vmatprep.subr.bf16.mxu1 %v1206_v49  ;;  %v1209_v60 = vld [vmem:[%s1538_s4 + $0x64] ss:$8 sps:$4 sm:$0xff]   ;;  %v1212_v62 = vld [vmem:[%s1538_s4 + $0x54] ss:$8 sps:$4 sm:$0xff]  }
   0xf   : > { %v314_v1 = vld [vmem:[%s296_s28] sm:$0xf]  ;;  %v1364_v17 = vand.u32 127, %v388_v16  ;;  %479 = vmatpush1.bf16.msra.mxu1 %v1208_v50  ;;  %v1214_v63 = vld [vmem:[%s1538_s4 + $0x50] ss:$8 sps:$4 sm:$0xff]   ;;  %s1137_s17 = sshll.u32 %s1546_s21, 3 }
  0x10   : > { %v1346_v2 = vld [vmem:[%s303_s7] sm:$0xf]  ;;  %1150 = vmatpush3.bf16.xpose.msra.mxu0 %v314_v1  ;;  %v1351_v5 = vsel %vm548_vm1, %v314_v1, 0  ;;  %480 = vmatprep.subr.bf16.mxu1 %v1209_v60  ;;  %v1215_v1 = vld [vmem:[%s1538_s4 + $0x44] ss:$8 sps:$4 sm:$0xff]   ;;  %s312_s20 = scalar_lea.vmem %s1540_s6, %s1137_s17 }
  0x11   : > { %v356_v3 = vunpack.c.l.bf16 %v1346_v2  ;;  %1155 = vmatprep.subr.bf16.mxu0 %v1278_v0  ;;  %v1211_v61 = vld [vmem:[%s1538_s4 + $0x60] ss:$8 sps:$4 sm:$0xff]  }
  0x13   : > { %v357_v4 = vmul.f32 %v356_v3, %v356_v3  ;;  %481 = vmatpush1.bf16.msra.mxu1 %v1211_v61  ;;  %v1217_v3 = vld [vmem:[%s1538_s4 + $0x40] ss:$8 sps:$4 sm:$0xff]  }
  0x14   : > { %482 = vmatprep.subr.bf16.mxu1 %v1212_v62 }
  0x15   : > { %358 = vadd.xlane.f32.xlu0 %v357_v4  ;;  %v1218_v4 = vld [vmem:[%s1538_s4 + $0x34] ss:$8 sps:$4 sm:$0xff]  }
  0x17   : > { %1152 = vmatmul.mubr.bf16.vlgmr.msra.gmra.mxu0 %v1346_v2  ;;  %483 = vmatpush1.bf16.msra.mxu1 %v1214_v63 }
  0x18   : > { %1156 = vmatpush3.bf16.msra.mxu0 %v1351_v5  ;;  %1157 = vmatprep.mubr.msk.bf16.mxu0 %vm1279_vm0, %v1278_v0 }
  0x19   : > { %1161 = vmatprep.subr.bf16.mxu0 %v1278_v0  ;;  %484 = vmatprep.subr.bf16.mxu1 %v1215_v1 }
  0x1b   : > { %485 = vmatpush1.bf16.msra.mxu1 %v1217_v3 }
  0x1c   : > { %486 = vmatprep.subr.bf16.mxu1 %v1218_v4 }
  0x9e   : > { %v359_v7 = vpop.xlane.xlu0 %358 }
  0xd7   : > { %v350_v6 = vpop.f32.mrf.mxu0 }
  0xd8   : > { %v360_v8 = vmul.f32 2.0, %v350_v6  ;;  %v1220_v6 = vld [vmem:[%s1538_s4 + $0x30] ss:$8 sps:$4 sm:$0xff]  }
  0xd9   : > { %v1153_v10 = vpop.f32.mrf.mxu0  ;;  %487 = vmatpush1.bf16.msra.mxu1 %v1220_v6 }
  0xda   : > { %v361_v11 = vsub.f32 %v360_v8, %v359_v7  ;;  %v1221_v7 = vld [vmem:[%s1538_s4 + $0x24] ss:$8 sps:$4 sm:$0xff]   ;;  %v1280_v8 = vmov 0   ;;  %v1224_v10 = vld [vmem:[%s1538_s4 + $0x14] ss:$8 sps:$4 sm:$0xff]  }
  0xdb   : > { %v353_v12 = vpop.f32.mrf.mxu0  ;;  %510 = vmatprep.mubr.bf16.mxu1 %v1280_v8  ;;  %488 = vmatprep.subr.bf16.mxu1 %v1221_v7 }
  0xdc   : > { %v369_v13 = vsub.f32 %v361_v11, %v1097_v9  ;;  %v1223_v9 = vld [vmem:[%s1538_s4 + $0x20] ss:$8 sps:$4 sm:$0xff]   ;;  %v1226_v11 = vld [vmem:[%s1538_s4 + $0x10] ss:$8 sps:$4 sm:$0xff]   ;;  %v1227_v12 = vld [vmem:[%s1538_s4 + $0x4] ss:$8 sps:$4 sm:$0xff]  }
  0xdd   : > { %v1154_v14 = vpop.f32.mrf.mxu0  ;;  %489 = vmatpush1.bf16.msra.mxu1 %v1223_v9 }
  0xde   : > { %v522_v15 = vsel %vm521_vm2, %v369_v13, -inf  ;;  %490 = vmatprep.subr.bf16.mxu1 %v1224_v10  ;;  %v1232_v14 = vld [vmem:[%s1537_s3 + $0x74] ss:$8 sps:$4 sm:$0xff]  }
  0xdf   : > { %523 = vmax.xlane.f32.xlu0 %v522_v15  ;;  %v1230_v15 = vld [vmem:[%s1537_s3 + $0x70] ss:$8 sps:$4 sm:$0xff]  }
  0xe1   : > { %491 = vmatpush1.bf16.msra.mxu1 %v1226_v11 }
  0xe2   : > { %492 = vmatprep.subr.bf16.mxu1 %v1227_v12 }
 0x168   : > { %v524_v18 = vpop.xlane.xlu0 %523 }
 0x169   : > { %vm525_vm3 = vcmp.ge.f32.partialorder %v369_v13, %v524_v18  ;;  %v1235_v18 = vld [vmem:[%s1537_s3 + $0x64] ss:$8 sps:$4 sm:$0xff]  }
 0x16a   : > { %v526_v19 = vsel %vm525_vm3, %v1364_v17, 8 }
 0x16b   : > { %v527_v20 = vsel %vm521_vm2, %v526_v19, 2147483647  ;;  %v1233_v19 = vld [vmem:[%s1537_s3 + $0x60] ss:$8 sps:$4 sm:$0xff]  }
 0x16c   : > { %v529_v21 = vshra.s32 %v527_v20, 16  ;;  %v528_v23 = vand.u32 65535, %v527_v20  ;;  %v1238_v20 = vld [vmem:[%s1537_s3 + $0x54] ss:$8 sps:$4 sm:$0xff]  }
 0x16e   : > { %v531_v22 = vcvt.s32.f32 %v529_v21  ;;  %v530_v25 = vcvt.s32.f32 %v528_v23  ;;  %v1236_v21 = vld [vmem:[%s1537_s3 + $0x50] ss:$8 sps:$4 sm:$0xff]   ;;  %v1244_v23 = vld [vmem:[%s1537_s3 + $0x34] ss:$8 sps:$4 sm:$0xff]  }
 0x170   : > { %532 = vmin.xlane.f32.xlu1 %v531_v22 }
 0x1f9   : > { %v533_v24 = vpop.xlane.xlu1 %532 }
 0x1fa   : > { %vm534_vm4 = vcmp.eq.f32.partialorder %v531_v22, %v533_v24  ;;  %v539_v27 = vcvt.f32.s32 %v533_v24  ;;  %v1239_v22 = vld [vmem:[%s1537_s3 + $0x40] ss:$8 sps:$4 sm:$0xff]   ;;  %v1242_v24 = vld [vmem:[%s1537_s3 + $0x30] ss:$8 sps:$4 sm:$0xff]  }
 0x1fb   : > { %v535_v26 = vsel %vm534_vm4, %v530_v25, inf  ;;  %v1247_v25 = vld [vmem:[%s1537_s3 + $0x24] ss:$8 sps:$4 sm:$0xff]  }
 0x1fc   : > { %536 = vmin.xlane.f32.xlu1 %v535_v26  ;;  %v540_v29 = vshll.u32 %v539_v27, 16  ;;  %v1245_v26 = vld [vmem:[%s1537_s3 + $0x20] ss:$8 sps:$4 sm:$0xff]   ;;  %v1250_v27 = vld [vmem:[%s1537_s3 + $0x14] ss:$8 sps:$4 sm:$0xff]  }
 0x285   : > { %v537_v28 = vpop.xlane.xlu1 %536 }
 0x286   : > { %v538_v30 = vcvt.f32.s32 %v537_v28  ;;  %v1248_v28 = vld [vmem:[%s1537_s3 + $0x10] ss:$8 sps:$4 sm:$0xff]  }
 0x288   : > { %v541_v31 = vadd.s32 %v540_v29, %v538_v30  ;;  %v1253_v29 = vld [vmem:[%s1537_s3 + $0x4] ss:$8 sps:$4 sm:$0xff]   ;;  %v1251_v30 = vld [vmem:[%s1537_s3] ss:$8 sps:$4 sm:$0xff]  }
 0x28a   : > { %vm542_vm5 = vcmp.eq.s32.totalorder %v1364_v17, %v541_v31 }
 0x28b   : > { %v593_v32 = vsel %vm542_vm5, -inf, %v369_v13  ;;  %v543_v33 = vsel %vm542_vm5, 1.0, %v1278_v0  ;;  %v1229_v13 = vld [vmem:[%s1538_s4] ss:$8 sps:$4 sm:$0xff]  }
 0x28c   : > { %v594_v34 = vsel %vm521_vm2, %v593_v32, -inf  ;;  %v544_v35 = vpack.c.bf16 %v543_v33, %v543_v33  ;;  %493 = vmatpush1.bf16.msra.mxu1 %v1229_v13 }
 0x28d   : > { %595 = vmax.xlane.f32.xlu0 %v594_v34  ;;  %905 = vmatprep.subr.bf16.mxu1 %v1232_v14 }
 0x28e   : > { %1158 = vmatmul.mubr.msk.bf16.vlgmr.msra.gmra.mxu0 %vm521_vm2, %v544_v35 }
 0x28f   : > { %1162 = vmatpush3.bf16.msra.mxu0 %v1351_v5  ;;  %1163 = vmatprep.mubr.msk.bf16.mxu0 %vm1279_vm0, %v1278_v0 }
 0x290   : > { %1167 = vmatprep.subr.bf16.mxu0 %v1278_v0  ;;  %511 = vmatmul.mubr.bf16.vlgmr.msra.gmra.mxu1 %v1346_v2  ;;  %v1241_v2 = vld [vmem:[%s1537_s3 + $0x44] ss:$8 sps:$4 sm:$0xff]  }
 0x291   : > { %906 = vmatpush1.bf16.msra.mxu1 %v1230_v15  ;;  %937 = vmatprep.mubr.bf16.mxu1 %v1280_v8 }
 0x292   : > { %907 = vmatprep.subr.bf16.mxu1 %v1235_v18 }
 0x295   : > { %908 = vmatpush1.bf16.msra.mxu1 %v1233_v19 }
 0x296   : > { %909 = vmatprep.subr.bf16.mxu1 %v1238_v20 }
 0x299   : > { %910 = vmatpush1.bf16.msra.mxu1 %v1236_v21 }
 0x29a   : > { %911 = vmatprep.subr.bf16.mxu1 %v1241_v2 }
 0x29d   : > { %912 = vmatpush1.bf16.msra.mxu1 %v1239_v22 }
 0x29e   : > { %913 = vmatprep.subr.bf16.mxu1 %v1244_v23 }
 0x2a1   : > { %914 = vmatpush1.bf16.msra.mxu1 %v1242_v24 }
 0x2a2   : > { %915 = vmatprep.subr.bf16.mxu1 %v1247_v25 }
 0x2a5   : > { %916 = vmatpush1.bf16.msra.mxu1 %v1245_v26 }
 0x2a6   : > { %917 = vmatprep.subr.bf16.mxu1 %v1250_v27 }
 0x2a9   : > { %918 = vmatpush1.bf16.msra.mxu1 %v1248_v28 }
 0x2aa   : > { %919 = vmatprep.subr.bf16.mxu1 %v1253_v29 }
 0x2ad   : > { %920 = vmatpush1.bf16.msra.mxu1 %v1251_v30  ;;  %v389_v30 = vshrl.u32 %v388_v16, 7 }
 0x316   : > { %v596_v36 = vpop.xlane.xlu0 %595 }
 0x317   : > { %vm597_vm6 = vcmp.ge.f32.partialorder %v593_v32, %v596_v36 }
 0x318   : > { %v598_v37 = vsel %vm597_vm6, %v1364_v17, 8 }
 0x319   : > { %v599_v38 = vsel %vm521_vm2, %v598_v37, 2147483647 }
 0x31a   : > { %v601_v39 = vshra.s32 %v599_v38, 16  ;;  %v600_v45 = vand.u32 65535, %v599_v38 }
 0x31c   : > { %v603_v40 = vcvt.s32.f32 %v601_v39  ;;  %v602_v47 = vcvt.s32.f32 %v600_v45 }
 0x31e   : > { %604 = vmin.xlane.f32.xlu1 %v603_v40 }
 0x34e   : > { %v1378_v41 = vpop.f32.mrf.mxu0 }
 0x34f   : > { %v592_v39 = vpack.c.bf16 %v1378_v41, %v1378_v41 }
 0x350   : > { %v1159_v42 = vpop.f32.mrf.mxu0  ;;  %v1497_v45 = vpop.f32.mrf.mxu1 }
 0x352   : > { %v589_v43 = vpop.f32.mrf.mxu0 }
 0x354   : > { %v1160_v44 = vpop.f32.mrf.mxu0 }
 0x3a7   : > { %v605_v46 = vpop.xlane.xlu1 %604 }
 0x3a8   : > { %vm606_vm7 = vcmp.eq.f32.partialorder %v603_v40, %v605_v46  ;;  %v611_v51 = vcvt.f32.s32 %v605_v46  ;;  %v1499_v46 = vpop.f32.mrf.mxu1 }
 0x3a9   : > { %v607_v48 = vsel %vm606_vm7, %v602_v47, inf }
 0x3aa   : > { %608 = vmin.xlane.f32.xlu0 %v607_v48  ;;  %v612_v53 = vshll.u32 %v611_v51, 16  ;;  %v516_v47 = vpop.f32.mrf.mxu1 }
 0x3ac   : > { %v517_v48 = vpop.f32.mrf.mxu1 }
 0x433   : > { %v609_v52 = vpop.xlane.xlu0 %608 }
 0x434   : > { %v610_v54 = vcvt.f32.s32 %v609_v52 }
 0x436   : > { %v613_v55 = vadd.s32 %v612_v53, %v610_v54 }
 0x438   : > { %vm614_vm8 = vcmp.eq.s32.totalorder %v1364_v17, %v613_v55 }
 0x439   : > { %v1387_v56 = vsel %vm614_vm8, -inf, %v593_v32  ;;  %v615_v57 = vsel %vm614_vm8, 1.0, %v1278_v0 }
 0x43a   : > { %v662_v58 = vsel %vm521_vm2, %v1387_v56, -inf  ;;  %v616_v59 = vpack.c.bf16 %v615_v57, %v615_v57 }
 0x43b   : > { %663 = vmax.xlane.f32.xlu1 %v662_v58 }
 0x43c   : > { %1164 = vmatmul.mubr.msk.bf16.vlgmr.msra.gmra.mxu0 %vm521_vm2, %v616_v59 }
 0x43d   : > { %1168 = vmatpush3.bf16.msra.mxu0 %v1351_v5  ;;  %1169 = vmatprep.mubr.msk.bf16.mxu0 %vm1279_vm0, %v1278_v0 }
 0x43e   : > { %1173 = vmatprep.subr.bf16.mxu0 %v1278_v0 }
 0x4c4   : > { %v664_v31 = vpop.xlane.xlu1 %663 }
 0x4c5   : > { %vm665_vm9 = vcmp.ge.f32.partialorder %v1387_v56, %v664_v31  ;;  %v390_v31 = vsub.s32 0, %v389_v30 }
 0x4c6   : > { %v666_v32 = vsel %vm665_vm9, %v1364_v17, 8 }
 0x4c7   : > { %v667_v33 = vsel %vm521_vm2, %v666_v32, 2147483647 }
 0x4c8   : > { %v669_v34 = vshra.s32 %v667_v33, 16  ;;  %v668_v49 = vand.u32 65535, %v667_v33  ;;  %v394_v33 = vsub.s32 1, %v389_v30 }
 0x4ca   : > { %v671_v35 = vcvt.s32.f32 %v669_v34  ;;  %v670_v51 = vcvt.s32.f32 %v668_v49 }
 0x4cc   : > { %672 = vmin.xlane.f32.xlu0 %v671_v35 }
 0x4fc   : > { %v654_v36 = vpop.f32.mrf.mxu0 }
 0x4fd   : > { %v660_v37 = vpack.c.bf16 %v654_v36, %v654_v36 }
 0x4fe   : > { %v1165_v38 = vpop.f32.mrf.mxu0 }
 0x4ff   : > { %v798_v40 = vrot.slane %v660_v37, 4 }
 0x500   : > { %v657_v42 = vpop.f32.mrf.mxu0 }
 0x501   : > { %v803_v43 = vsel %vm548_vm1, %v592_v39, %v798_v40 }
 0x502   : > { %v1166_v44 = vpop.f32.mrf.mxu0  ;;  %938 = vmatmul.mubr.bf16.vlgmr.msra.gmra.mxu1 %v803_v43 }
 0x503   : > { %947 = vmatprep.mubr.bf16.mxu1 %v1280_v8 }
 0x555   : > { %v673_v50 = vpop.xlane.xlu0 %672 }
 0x556   : > { %vm674_vm10 = vcmp.eq.f32.partialorder %v671_v35, %v673_v50  ;;  %v679_v41 = vcvt.f32.s32 %v673_v50 }
 0x557   : > { %v675_v52 = vsel %vm674_vm10, %v670_v51, inf }
 0x558   : > { %676 = vmin.xlane.f32.xlu1 %v675_v52  ;;  %v680_v54 = vshll.u32 %v679_v41, 16 }
 0x5c2   : > { %v939_v28 = vpop.f32.mrf.mxu1 }
 0x5c4   : > { %v941_v29 = vpop.f32.mrf.mxu1 }
 0x5e1   : > { %v677_v53 = vpop.xlane.xlu1 %676 }
 0x5e2   : > { %v678_v55 = vcvt.f32.s32 %v677_v53 }
 0x5e4   : > { %v681_v57 = vadd.s32 %v680_v54, %v678_v55 }
 0x5e6   : > { %vm682_vm11 = vcmp.eq.s32.totalorder %v1364_v17, %v681_v57 }
 0x5e7   : > { %v729_v58 = vsel %vm682_vm11, -inf, %v1387_v56  ;;  %v683_v59 = vsel %vm682_vm11, 1.0, %v1278_v0 }
 0x5e8   : > { %v730_v60 = vsel %vm521_vm2, %v729_v58, -inf  ;;  %v684_v61 = vpack.c.bf16 %v683_v59, %v683_v59 }
 0x5e9   : > { %731 = vmax.xlane.f32.xlu0 %v730_v60 }
 0x5ea   : > { %1170 = vmatmul.mubr.msk.bf16.vlgmr.msra.gmra.mxu0 %vm521_vm2, %v684_v61 }
 0x5eb   : > { %1174 = vmatpush3.bf16.msra.mxu0 %v1351_v5  ;;  %1175 = vmatprep.mubr.msk.bf16.mxu0 %vm1279_vm0, %v1278_v0 }
 0x672   : > { %v732_v62 = vpop.xlane.xlu0 %731 }
 0x673   : > { %vm733_vm12 = vcmp.ge.f32.partialorder %v729_v58, %v732_v62 }
 0x674   : > { %v734_v63 = vsel %vm733_vm12, %v1364_v17, 8 }
 0x675   : > { %v735_v1 = vsel %vm521_vm2, %v734_v63, 2147483647 }
 0x676   : > { %v737_v56 = vshra.s32 %v735_v1, 16  ;;  %v736_v9 = vand.u32 65535, %v735_v1 }
 0x678   : > { %v739_v3 = vcvt.s32.f32 %v737_v56  ;;  %v738_v11 = vcvt.s32.f32 %v736_v9 }
 0x67a   : > { %740 = vmin.xlane.f32.xlu1 %v739_v3 }
 0x6aa   : > { %v722_v4 = vpop.f32.mrf.mxu0 }
 0x6ab   : > { %v728_v23 = vpack.c.bf16 %v722_v4, %v722_v4 }
 0x6ac   : > { %v1171_v6 = vpop.f32.mrf.mxu0 }
 0x6ae   : > { %v725_v7 = vpop.f32.mrf.mxu0 }
 0x6b0   : > { %v1172_v8 = vpop.f32.mrf.mxu0 }
 0x703   : > { %v741_v10 = vpop.xlane.xlu1 %740 }
 0x704   : > { %vm742_vm13 = vcmp.eq.f32.partialorder %v739_v3, %v741_v10  ;;  %v747_v12 = vcvt.f32.s32 %v741_v10 }
 0x705   : > { %v743_v5 = vsel %vm742_vm13, %v738_v11, inf }
 0x706   : > { %744 = vmin.xlane.f32.xlu0 %v743_v5  ;;  %v748_v14 = vshll.u32 %v747_v12, 16 }
 0x78f   : > { %v745_v13 = vpop.xlane.xlu0 %744 }
 0x790   : > { %v746_v15 = vcvt.f32.s32 %v745_v13 }
 0x792   : > { %v749_v18 = vadd.s32 %v748_v14, %v746_v15 }
 0x794   : > { %vm750_vm14 = vcmp.eq.s32.totalorder %v1364_v17, %v749_v18  ;;  %v943_v17 = vpop.f32.mrf.mxu1 }
 0x795   : > { %v751_v19 = vsel %vm750_vm14, 1.0, %v1278_v0  ;;  %v386_v0 = vld [vmem:[%s1539_s5] sm:$0x3]  ;;  %v958_v36 = vmax.f32 %v939_v28, %v943_v17 }
 0x796   : > { %v752_v20 = vpack.c.bf16 %v751_v19, %v751_v19  ;;  %v945_v32 = vpop.f32.mrf.mxu1  ;;  %v391_v35 = vrot.slane %v386_v0, %v390_v31  ;;  %v395_v38 = vrot.slane %v386_v0, %v394_v33 }
 0x797   : > { %v959_v39 = vmax.f32 %v941_v29, %v945_v32 }
 0x798   : > { %1176 = vmatmul.mubr.msk.bf16.vlgmr.msra.gmra.mxu0 %vm521_vm2, %v752_v20  ;;  %v513_v43 = vadd.f32 %v1497_v45, %v391_v35  ;;  %v515_v48 = vadd.f32 %v1499_v46, %v395_v38 }
 0x858   : > { %v790_v21 = vpop.f32.mrf.mxu0 }
 0x859   : > { %v796_v2 = vpack.c.bf16 %v790_v21, %v790_v21 }
 0x85a   : > { %v1177_v22 = vpop.f32.mrf.mxu0 }
 0x85b   : > { %v800_v24 = vrot.slane %v796_v2, 4 }
 0x85c   : > { %v793_v25 = vpop.f32.mrf.mxu0 }
 0x85d   : > { %v807_v26 = vsel %vm548_vm1, %v728_v23, %v800_v24 }
 0x85e   : > { %v1178_v27 = vpop.f32.mrf.mxu0  ;;  %948 = vmatmul.mubr.bf16.gmra.mxu1 %v807_v26 }
 0x91e   : > { %v949_v34 = vpop.f32.mrf.mxu1 }
 0x91f   : > { %v960_v40 = vmax.f32 %v958_v36, %v949_v34 }
 0x920   : > { %v951_v37 = vpop.f32.mrf.mxu1 }
 0x921   : > { %v961_v16 = vmax.f32 %v959_v39, %v951_v37 }
 0x922   : > { %v953_v42 = vpop.f32.mrf.mxu1 }
 0x923   : > { %v962_v44 = vmax.f32 %v960_v40, %v953_v42 }
 0x924   : > { %v955_v47 = vpop.f32.mrf.mxu1 }
 0x925   : > { %v964_v49 = vadd.f32 %v962_v44, %v513_v43  ;;  %v963_v50 = vmax.f32 %v961_v16, %v955_v47 }
 0x927   : > { %v968_v51 = vmul.f32 0.2, %v964_v49  ;;  %v965_v52 = vadd.f32 %v963_v50, %v515_v48  ;;  %vm966_vm15 = vcmp.ge.f32.partialorder %v964_v49, 0.0 }
 0x929   : > { %vm967_vm0 = vcmp.ge.f32.partialorder %v965_v52, 0.0  ;;  %v969_v41 = vmul.f32 0.2, %v965_v52  ;;  %v970_v53 = vsel %vm966_vm15, %v964_v49, %v968_v51 }
 0x92b   : > { %v971_v54 = vsel %vm967_vm0, %v965_v52, %v969_v41 }
 0x92c   : > { %v1138_v45 = vpack.c.bf16 %v971_v54, %v970_v53 }
 0x92e   : > { %980 = vst [vmem:[%s312_s20] sm:$0xff] %v1138_v45 }
 0x92f PF: > { %s16_s23 = sadd.s32 1, %s1276_s23   ;;  %s1541_s21 = smov %s1272_s22 }
 0x930   : > { %p13_p5 = scmp.ge.s32.totalorder %s16_s23, 4   ;;  %s1542_s22 = smov %s1544_s24 }
 0x932   :  { %15 = sbr.rel (!%p13_p5) target bundleno = 2 (0x2), region = 80 }

</bundles_post_ra>
